<compile_context>
chip_gen: v7x
topology: tpu7x:2x2x1
jax: 0.10.0
libtpu: 0.0.40
codegen_flags: <defaults>
</compile_context>

<pallas_src>
import functools

import jax
import jax.numpy as jnp
from jax import lax
from jax.experimental import pallas as pl
from jax.experimental.pallas import tpu as pltpu


# -----------------------------------------------------------------------------
# Tiling helpers
# -----------------------------------------------------------------------------
def _round_up(x, m):
    return ((x + m - 1) // m) * m


def _pick_tile(dim, target, align):
    """Return (padded_dim, tile) with tile | padded_dim, tile % align == 0."""
    target = max(align, (target // align) * align)
    dim_a = _round_up(dim, align)
    if dim_a <= target:
        return dim_a, dim_a
    for t in range(target, align - 1, -align):
        if dim_a % t == 0:
            return dim_a, t
    return _round_up(dim, target), target


# -----------------------------------------------------------------------------
# Pallas kernel 1: tiled matmul (+ optional bias, optional fused tanh)
# -----------------------------------------------------------------------------
def _matmul_kernel(*refs, act, has_bias):
    if has_bias:
        x_ref, w_ref, b_ref, o_ref, acc_ref = refs
    else:
        x_ref, w_ref, o_ref, acc_ref = refs
    k = pl.program_id(2)

    @pl.when(k == 0)
    def _():
        acc_ref[...] = jnp.zeros_like(acc_ref)

    acc_ref[...] += jnp.dot(x_ref[...], w_ref[...],
                            preferred_element_type=jnp.float32)

    @pl.when(k == pl.num_programs(2) - 1)
    def _():
        acc = acc_ref[...]
        if has_bias:
            acc = acc + b_ref[...].astype(jnp.float32)
        if act == "tanh":
            acc = jnp.tanh(acc)
        o_ref[...] = acc.astype(o_ref.dtype)


def pallas_matmul(patches, w, b=None, act="none", out_dtype=jnp.bfloat16,
                  tm_target=256, tn_target=256, tk_target=768):
    """(M,K) @ (K,Cout) [+ b] [tanh] with a grid-tiled bf16 MXU kernel."""
    M, K = patches.shape
    K2, Cout = w.shape
    assert K == K2

    M_pad, tm = _pick_tile(M, tm_target, 8)
    N_pad, tn = _pick_tile(Cout, tn_target, 128)   # lane-dense output channels
    K_pad, tk = _pick_tile(K, tk_target, 128)

    x = patches.astype(jnp.bfloat16)
    wv = w.astype(jnp.bfloat16)
    if (M_pad, K_pad) != (M, K):
        x = jnp.pad(x, ((0, M_pad - M), (0, K_pad - K)))
    if (K_pad, N_pad) != (K, Cout):
        wv = jnp.pad(wv, ((0, K_pad - K), (0, N_pad - Cout)))

    has_bias = b is not None
    args = [x, wv]
    in_specs = [
        pl.BlockSpec((tm, tk), lambda i, j, k: (i, k)),
        pl.BlockSpec((tk, tn), lambda i, j, k: (k, j)),
    ]
    if has_bias:
        bv = jnp.pad(b.astype(jnp.float32).reshape(1, Cout),
                     ((0, 0), (0, N_pad - Cout)))
        args.append(bv)
        in_specs.append(pl.BlockSpec((1, tn), lambda i, j, k: (0, j)))

    grid = (M_pad // tm, N_pad // tn, K_pad // tk)
    kernel = functools.partial(_matmul_kernel, act=act, has_bias=has_bias)

    cost = pl.CostEstimate(
        flops=2 * M_pad * K_pad * N_pad,
        transcendentals=(M_pad * N_pad) if act == "tanh" else 0,
        bytes_accessed=(M_pad * K_pad + K_pad * N_pad) * 2
        + M_pad * N_pad * jnp.dtype(out_dtype).itemsize,
    )

    out = pl.pallas_call(
        kernel,
        out_shape=jax.ShapeDtypeStruct((M_pad, N_pad), out_dtype),
        grid_spec=pltpu.PrefetchScalarGridSpec(
            num_scalar_prefetch=0,
            grid=grid,
            in_specs=in_specs,
            out_specs=pl.BlockSpec((tm, tn), lambda i, j, k: (i, j)),
            scratch_shapes=[pltpu.VMEM((tm, tn), jnp.float32)],
        ),
        compiler_params=pltpu.CompilerParams(
            dimension_semantics=("parallel", "parallel", "arbitrary")),
        cost_estimate=cost,
    )(*args)

    if (M_pad, N_pad) != (M, Cout):
        out = out[:M, :Cout]
    return out


# -----------------------------------------------------------------------------
# Pallas kernel 2: instance norm (+ optional ReLU, + optional residual add)
# -----------------------------------------------------------------------------
def _inorm_act_kernel(*refs, relu, has_residual, eps):
    if has_residual:
        x_ref, r_ref, o_ref = refs
    else:
        x_ref, o_ref = refs
    x = x_ref[...].astype(jnp.float32)               # (1, HW, tc)
    mean = jnp.mean(x, axis=1, keepdims=True)        # single-pass stats
    msq = jnp.mean(x * x, axis=1, keepdims=True)
    var = msq - mean * mean
    y = (x - mean) * lax.rsqrt(var + eps)
    if relu:
        y = jnp.maximum(y, 0.0)
    if has_residual:
        y = y + r_ref[...].astype(jnp.float32)
    o_ref[...] = y.astype(o_ref.dtype)


def pallas_instance_norm_act(x_nhwc, relu=True, residual=None, eps=1e-5,
                             out_dtype=jnp.bfloat16):
    N, H, W, C = x_nhwc.shape
    HW = H * W
    tc = 128 if C % 128 == 0 else C                  # lane-dense channel slab
    x2 = x_nhwc.reshape(N, HW, C)

    args = [x2]
    in_specs = [pl.BlockSpec((1, HW, tc), lambda n, c: (n, 0, c))]
    if residual is not None:
        args.append(residual.reshape(N, HW, C))
        in_specs.append(pl.BlockSpec((1, HW, tc), lambda n, c: (n, 0, c)))

    kernel = functools.partial(_inorm_act_kernel, relu=relu,
                               has_residual=residual is not None, eps=eps)
    out = pl.pallas_call(
        kernel,
        out_shape=jax.ShapeDtypeStruct((N, HW, C), out_dtype),
        grid_spec=pltpu.PrefetchScalarGridSpec(
            num_scalar_prefetch=0,
            grid=(N, C // tc),
            in_specs=in_specs,
            out_specs=pl.BlockSpec((1, HW, tc), lambda n, c: (n, 0, c)),
        ),
        compiler_params=pltpu.CompilerParams(
            dimension_semantics=("parallel", "parallel")),
    )(*args)
    return out.reshape(N, H, W, C)


# -----------------------------------------------------------------------------
# JAX glue: padding, im2col, conv / conv-transpose wrappers around the kernels
# -----------------------------------------------------------------------------
def _im2col(x_nhwc, kh, kw, stride):
    # x_nhwc is already padded.  Returns (N*oh*ow, kh*kw*C), oh, ow.
    N, H, W, C = x_nhwc.shape
    oh = (H - kh) // stride + 1
    ow = (W - kw) // stride + 1
    slices = []
    for i in range(kh):
        for j in range(kw):
            slices.append(
                x_nhwc[:, i: i + oh * stride: stride, j: j + ow * stride: stride, :]
            )
    p = jnp.stack(slices, axis=3)            # (N, oh, ow, kh*kw, C)
    return p.reshape(N * oh * ow, kh * kw * C), oh, ow


def conv2d(x_nhwc, w_pt, b=None, stride=1, act="none", out_dtype=jnp.bfloat16):
    # w_pt: PyTorch Conv2d layout (Cout, Cin, kh, kw).
    Cout, Cin, kh, kw = w_pt.shape
    patches, oh, ow = _im2col(x_nhwc.astype(jnp.bfloat16), kh, kw, stride)
    w2 = jnp.transpose(w_pt, (2, 3, 1, 0)).reshape(kh * kw * Cin, Cout)
    out = pallas_matmul(patches, w2, b, act=act, out_dtype=out_dtype)
    N = x_nhwc.shape[0]
    return out.reshape(N, oh, ow, Cout)


def conv_transpose2d(x_nhwc, w_pt, out_dtype=jnp.bfloat16):
    # ConvTranspose2d(k=3, stride=2, padding=1, output_padding=1) via the
    # sub-pixel decomposition: one small stride-1 conv per output phase.
    # (Bias is omitted here: every use is followed by InstanceNorm, for which
    #  a per-channel bias is an exact no-op.)
    N, H, W, Cin = x_nhwc.shape
    Cin2, Cout, kh, kw = w_pt.shape
    assert Cin == Cin2 and (kh, kw) == (3, 3)
    xp = jnp.pad(x_nhwc, ((0, 0), (0, 1), (0, 1), (0, 0)))   # high-side zero pad
    taps = {0: (1,), 1: (2, 0)}   # output phase -> original kernel tap indices
    out = jnp.zeros((N, 2 * H, 2 * W, Cout), out_dtype)
    for r in (0, 1):
        for s in (0, 1):
            ky_list, kx_list = taps[r], taps[s]
            skh, skw = len(ky_list), len(kx_list)
            rows = []
            for ky in ky_list:
                cols = [w_pt[:, :, ky, kx] for kx in kx_list]   # (Cin, Cout) each
                rows.append(jnp.stack(cols, axis=-1))           # (Cin, Cout, skw)
            wsub = jnp.stack(rows, axis=-2)                     # (Cin, Cout, skh, skw)
            wsub = jnp.transpose(wsub, (1, 0, 2, 3))            # (Cout, Cin, skh, skw)
            xin = xp[:, : H + skh - 1, : W + skw - 1, :]
            phase = conv2d(xin, wsub, b=None, stride=1, out_dtype=out_dtype)
            out = out.at[:, r::2, s::2, :].set(phase)
    return out


def refl_pad(x_nhwc, p):
    return jnp.pad(x_nhwc, ((0, 0), (p, p), (p, p), (0, 0)), mode="reflect")


def zero_pad(x_nhwc, p):
    return jnp.pad(x_nhwc, ((0, 0), (p, p), (p, p), (0, 0)))


# -----------------------------------------------------------------------------
# Generator parameters + forward
# -----------------------------------------------------------------------------
def init_generator_params(key, input_nc=3, output_nc=3, n_residual_blocks=2):
    def nrm(k, shape, scale=0.05):
        return jax.random.normal(k, shape, jnp.float32) * scale

    keys = iter(jax.random.split(key, 64))
    p = {}
    p["c1_w"] = nrm(next(keys), (64, input_nc, 7, 7))
    p["c1_b"] = nrm(next(keys), (64,), 0.01)
    p["d1_w"] = nrm(next(keys), (128, 64, 3, 3))
    p["d1_b"] = nrm(next(keys), (128,), 0.01)
    p["d2_w"] = nrm(next(keys), (256, 128, 3, 3))
    p["d2_b"] = nrm(next(keys), (256,), 0.01)
    for i in range(n_residual_blocks):
        p[f"r{i}_w1"] = nrm(next(keys), (256, 256, 3, 3))
        p[f"r{i}_b1"] = nrm(next(keys), (256,), 0.01)
        p[f"r{i}_w2"] = nrm(next(keys), (256, 256, 3, 3))
        p[f"r{i}_b2"] = nrm(next(keys), (256,), 0.01)
    # ConvTranspose2d weights (PyTorch layout: Cin, Cout, kh, kw).
    p["u1_w"] = nrm(next(keys), (256, 128, 3, 3))
    p["u1_b"] = nrm(next(keys), (128,), 0.01)
    p["u2_w"] = nrm(next(keys), (128, 64, 3, 3))
    p["u2_b"] = nrm(next(keys), (64,), 0.01)
    p["out_w"] = nrm(next(keys), (output_nc, 64, 7, 7))
    p["out_b"] = nrm(next(keys), (output_nc,), 0.01)
    return p


def generator_forward_nhwc(x_nhwc, params, n_residual_blocks=2):
    # NOTE: conv biases feeding directly into InstanceNorm are skipped (exact
    # no-op: IN subtracts the per-channel mean).  Only the final conv keeps b.
    # Initial: ReflectionPad(3) -> Conv7 -> IN -> ReLU
    h = conv2d(refl_pad(x_nhwc, 3), params["c1_w"])
    h = pallas_instance_norm_act(h, relu=True)
    # Downsample x2: Conv3 s2 p1 -> IN -> ReLU
    h = conv2d(zero_pad(h, 1), params["d1_w"], stride=2)
    h = pallas_instance_norm_act(h, relu=True)
    h = conv2d(zero_pad(h, 1), params["d2_w"], stride=2)
    h = pallas_instance_norm_act(h, relu=True)
    # Residual blocks.
    for i in range(n_residual_blocks):
        r = h
        t = conv2d(refl_pad(h, 1), params[f"r{i}_w1"])
        t = pallas_instance_norm_act(t, relu=True)
        t = conv2d(refl_pad(t, 1), params[f"r{i}_w2"])
        h = pallas_instance_norm_act(t, relu=False, residual=r)   # x + block(x)
    # Upsample x2: ConvTranspose3 s2 p1 op1 -> IN -> ReLU  (sub-pixel lowering)
    h = conv_transpose2d(h, params["u1_w"])
    h = pallas_instance_norm_act(h, relu=True)
    h = conv_transpose2d(h, params["u2_w"])
    h = pallas_instance_norm_act(h, relu=True)
    # Output: ReflectionPad(3) -> Conv7 (+bias) -> Tanh (fused in matmul kernel)
    h = conv2d(refl_pad(h, 3), params["out_w"], b=params["out_b"],
               act="tanh", out_dtype=jnp.float32)
    return h


@jax.jit
def generator_forward(x_nchw, params):
    x_nhwc = jnp.transpose(x_nchw, (0, 2, 3, 1))
    y_nhwc = generator_forward_nhwc(x_nhwc, params)
    return jnp.transpose(y_nhwc, (0, 3, 1, 2))   # back to NCHW like PyTorch


# -----------------------------------------------------------------------------
if __name__ == "__main__":
    key = jax.random.PRNGKey(0)
    k_x, k_p = jax.random.split(key)

    N, C_in, H, W = 2, 3, 16, 16
    x = jax.random.normal(k_x, (N, C_in, H, W), jnp.float32)   # NCHW, like PyTorch
    params = init_generator_params(k_p, input_nc=3, output_nc=3, n_residual_blocks=2)

    y = generator_forward(x, params)
    y = jax.block_until_ready(y)

    assert y.shape == (N, 3, H, W), y.shape
    assert bool(jnp.all(jnp.isfinite(y)))
    assert bool(jnp.all(jnp.abs(y) <= 1.0))   # tanh output range
    print("KERNEL_OK")
</pallas_src>

<mosaic_0001>
module attributes {stable_mosaic.version = 11 : i64} {
  func.func @_inorm_act_kernel(%arg0: i32, %arg1: i32, %arg2: memref<1x256x64xbf16, #tpu.memory_space<vmem>>, %arg3: memref<1x256x64xbf16, #tpu.memory_space<vmem>>) attributes {dimension_semantics = [#tpu.dimension_semantics<parallel>, #tpu.dimension_semantics<parallel>], iteration_bounds = array<i64: 2, 1>, scalar_prefetch = 0 : i64, scratch_operands = 0 : i64, tpu.core_type = #tpu.core_type<tc>, window_params = [{transform_indices = @transform_0, window_bounds = array<i64: 1, 256, 64>}, {transform_indices = @transform_1, window_bounds = array<i64: 1, 256, 64>}]} {
    %c0 = arith.constant 0 : index
    %c0_0 = arith.constant 0 : index
    %c0_1 = arith.constant 0 : index
    %0 = vector.load %arg2[%c0, %c0_0, %c0_1] : memref<1x256x64xbf16, #tpu.memory_space<vmem>>, vector<1x256x64xbf16>
    %1 = arith.extf %0 : vector<1x256x64xbf16> to vector<1x256x64xf32>
    %cst = arith.constant dense<0.000000e+00> : vector<1x64xf32>
    %2 = vector.multi_reduction <add>, %1, %cst [1] : vector<1x256x64xf32> to vector<1x64xf32>
    %3 = vector.shape_cast %2 : vector<1x64xf32> to vector<1x1x64xf32>
    %cst_2 = arith.constant 2.560000e+02 : f32
    %4 = vector.broadcast %cst_2 : f32 to vector<1x1x64xf32>
    %5 = arith.divf %3, %4 : vector<1x1x64xf32>
    %6 = arith.mulf %1, %1 : vector<1x256x64xf32>
    %cst_3 = arith.constant dense<0.000000e+00> : vector<1x64xf32>
    %7 = vector.multi_reduction <add>, %6, %cst_3 [1] : vector<1x256x64xf32> to vector<1x64xf32>
    %8 = vector.shape_cast %7 : vector<1x64xf32> to vector<1x1x64xf32>
    %cst_4 = arith.constant 2.560000e+02 : f32
    %9 = vector.broadcast %cst_4 : f32 to vector<1x1x64xf32>
    %10 = arith.divf %8, %9 : vector<1x1x64xf32>
    %11 = arith.mulf %5, %5 : vector<1x1x64xf32>
    %12 = arith.subf %10, %11 : vector<1x1x64xf32>
    %13 = vector.broadcast %5 : vector<1x1x64xf32> to vector<1x256x64xf32>
    %14 = arith.subf %1, %13 : vector<1x256x64xf32>
    %cst_5 = arith.constant 9.99999974E-6 : f32
    %15 = vector.broadcast %cst_5 : f32 to vector<1x1x64xf32>
    %16 = arith.addf %12, %15 : vector<1x1x64xf32>
    %17 = math.rsqrt %16 : vector<1x1x64xf32>
    %18 = vector.broadcast %17 : vector<1x1x64xf32> to vector<1x256x64xf32>
    %19 = arith.mulf %14, %18 : vector<1x256x64xf32>
    %cst_6 = arith.constant 0.000000e+00 : f32
    %20 = vector.broadcast %cst_6 : f32 to vector<1x256x64xf32>
    %21 = arith.maximumf %19, %20 : vector<1x256x64xf32>
    %22 = arith.truncf %21 : vector<1x256x64xf32> to vector<1x256x64xbf16>
    %c0_7 = arith.constant 0 : index
    %c0_8 = arith.constant 0 : index
    %c0_9 = arith.constant 0 : index
    %23 = vector.load %arg3[%c0_7, %c0_8, %c0_9] : memref<1x256x64xbf16, #tpu.memory_space<vmem>>, vector<1x256x64xbf16>
    tpu.vector_store %arg3[%c0_7, %c0_8, %c0_9], %22 {strides = array<i32>} : memref<1x256x64xbf16, #tpu.memory_space<vmem>>, vector<1x256x64xbf16>,
    return
  }
  func.func @transform_0(%arg0: i32, %arg1: i32) -> (i32, i32, i32) {
    %c0_i32 = arith.constant 0 : i32
    %c0_i32_0 = arith.constant 0 : i32
    return %arg0, %c0_i32, %arg1 : i32, i32, i32
  }
  func.func @transform_1(%arg0: i32, %arg1: i32) -> (i32, i32, i32) {
    %c0_i32 = arith.constant 0 : i32
    %c0_i32_0 = arith.constant 0 : i32
    return %arg0, %c0_i32, %arg1 : i32, i32, i32
  }
}

module attributes {stable_mosaic.version = 11 : i64} {
  func.func @_matmul_kernel(%arg0: i32, %arg1: i32, %arg2: i32, %arg3: memref<256x256xbf16, #tpu.memory_space<vmem>>, %arg4: memref<256x128xbf16, #tpu.memory_space<vmem>>, %arg5: memref<256x128xbf16, #tpu.memory_space<vmem>>, %arg6: memref<256x128xf32, #tpu.memory_space<vmem>>) attributes {dimension_semantics = [#tpu.dimension_semantics<parallel>, #tpu.dimension_semantics<parallel>, #tpu.dimension_semantics<arbitrary>], iteration_bounds = array<i64: 2, 1, 1>, scalar_prefetch = 0 : i64, scratch_operands = 1 : i64, tpu.core_type = #tpu.core_type<tc>, window_params = [{transform_indices = @transform_0, window_bounds = array<i64: 256, 256>}, {transform_indices = @transform_1, window_bounds = array<i64: 256, 128>}, {transform_indices = @transform_2, window_bounds = array<i64: 256, 128>}]} {
    %c0_i32 = arith.constant 0 : i32
    %0 = arith.cmpi eq, %arg2, %c0_i32 : i32
    %1 = arith.extui %0 : i1 to i32
    %c0_i32_0 = arith.constant 0 : i32
    %2 = arith.cmpi ne, %1, %c0_i32_0 : i32
    scf.if %2 {
      %cst_10 = arith.constant 0.000000e+00 : f32
      %12 = vector.broadcast %cst_10 : f32 to vector<256x128xf32>
      %c0_11 = arith.constant 0 : index
      %c0_12 = arith.constant 0 : index
      %13 = vector.load %arg6[%c0_11, %c0_12] : memref<256x128xf32, #tpu.memory_space<vmem>>, vector<256x128xf32>
      tpu.vector_store %arg6[%c0_11, %c0_12], %12 {strides = array<i32>} : memref<256x128xf32, #tpu.memory_space<vmem>>, vector<256x128xf32>,
    } else {
    }
    %c0 = arith.constant 0 : index
    %c0_1 = arith.constant 0 : index
    %3 = vector.load %arg6[%c0, %c0_1] : memref<256x128xf32, #tpu.memory_space<vmem>>, vector<256x128xf32>
    %c0_2 = arith.constant 0 : index
    %c0_3 = arith.constant 0 : index
    %4 = vector.load %arg3[%c0_2, %c0_3] : memref<256x256xbf16, #tpu.memory_space<vmem>>, vector<256x256xbf16>
    %c0_4 = arith.constant 0 : index
    %c0_5 = arith.constant 0 : index
    %5 = vector.load %arg4[%c0_4, %c0_5] : memref<256x128xbf16, #tpu.memory_space<vmem>>, vector<256x128xbf16>
    %cst = arith.constant dense<0.000000e+00> : vector<256x128xf32>
    %6 = tpu.matmul %4, %5, %cst {dimension_numbers = #tpu.dot_dimension_numbers<[1], [0], [0], [1], [0, 0, 1, 1], [], []>} : vector<256x256xbf16>, vector<256x128xbf16>, vector<256x128xf32> -> vector<256x128xf32>
    %7 = arith.addf %3, %6 : vector<256x128xf32>
    %c0_6 = arith.constant 0 : index
    %c0_7 = arith.constant 0 : index
    %8 = vector.load %arg6[%c0_6, %c0_7] : memref<256x128xf32, #tpu.memory_space<vmem>>, vector<256x128xf32>
    tpu.vector_store %arg6[%c0_6, %c0_7], %7 {strides = array<i32>} : memref<256x128xf32, #tpu.memory_space<vmem>>, vector<256x128xf32>,
    %c0_i32_8 = arith.constant 0 : i32
    %9 = arith.cmpi eq, %arg2, %c0_i32_8 : i32
    %10 = arith.extui %9 : i1 to i32
    %c0_i32_9 = arith.constant 0 : i32
    %11 = arith.cmpi ne, %10, %c0_i32_9 : i32
    scf.if %11 {
      %c0_10 = arith.constant 0 : index
      %c0_11 = arith.constant 0 : index
      %12 = vector.load %arg6[%c0_10, %c0_11] : memref<256x128xf32, #tpu.memory_space<vmem>>, vector<256x128xf32>
      %13 = arith.truncf %12 : vector<256x128xf32> to vector<256x128xbf16>
      %c0_12 = arith.constant 0 : index
      %c0_13 = arith.constant 0 : index
      %14 = vector.load %arg5[%c0_12, %c0_13] : memref<256x128xbf16, #tpu.memory_space<vmem>>, vector<256x128xbf16>
      tpu.vector_store %arg5[%c0_12, %c0_13], %13 {strides = array<i32>} : memref<256x128xbf16, #tpu.memory_space<vmem>>, vector<256x128xbf16>,
    } else {
    }
    return
  }
  func.func @transform_0(%arg0: i32, %arg1: i32, %arg2: i32) -> (i32, i32) {
    %c0_i32 = arith.constant 0 : i32
    return %arg0, %arg2 : i32, i32
  }
  func.func @transform_1(%arg0: i32, %arg1: i32, %arg2: i32) -> (i32, i32) {
    %c0_i32 = arith.constant 0 : i32
    return %arg2, %arg1 : i32, i32
  }
  func.func @transform_2(%arg0: i32, %arg1: i32, %arg2: i32) -> (i32, i32) {
    %c0_i32 = arith.constant 0 : i32
    return %arg0, %arg1 : i32, i32
  }
}

module attributes {stable_mosaic.version = 11 : i64} {
  func.func @_matmul_kernel(%arg0: i32, %arg1: i32, %arg2: i32, %arg3: memref<128x640xbf16, #tpu.memory_space<vmem>>, %arg4: memref<640x128xbf16, #tpu.memory_space<vmem>>, %arg5: memref<128x128xbf16, #tpu.memory_space<vmem>>, %arg6: memref<128x128xf32, #tpu.memory_space<vmem>>) attributes {dimension_semantics = [#tpu.dimension_semantics<parallel>, #tpu.dimension_semantics<parallel>, #tpu.dimension_semantics<arbitrary>], iteration_bounds = array<i64: 1, 1, 1>, scalar_prefetch = 0 : i64, scratch_operands = 1 : i64, tpu.core_type = #tpu.core_type<tc>, window_params = [{transform_indices = @transform_0, window_bounds = array<i64: 128, 640>}, {transform_indices = @transform_1, window_bounds = array<i64: 640, 128>}, {transform_indices = @transform_2, window_bounds = array<i64: 128, 128>}]} {
    %c0_i32 = arith.constant 0 : i32
    %0 = arith.cmpi eq, %arg2, %c0_i32 : i32
    %1 = arith.extui %0 : i1 to i32
    %c0_i32_0 = arith.constant 0 : i32
    %2 = arith.cmpi ne, %1, %c0_i32_0 : i32
    scf.if %2 {
      %cst_10 = arith.constant 0.000000e+00 : f32
      %12 = vector.broadcast %cst_10 : f32 to vector<128x128xf32>
      %c0_11 = arith.constant 0 : index
      %c0_12 = arith.constant 0 : index
      %13 = vector.load %arg6[%c0_11, %c0_12] : memref<128x128xf32, #tpu.memory_space<vmem>>, vector<128x128xf32>
      tpu.vector_store %arg6[%c0_11, %c0_12], %12 {strides = array<i32>} : memref<128x128xf32, #tpu.memory_space<vmem>>, vector<128x128xf32>,
    } else {
    }
    %c0 = arith.constant 0 : index
    %c0_1 = arith.constant 0 : index
    %3 = vector.load %arg6[%c0, %c0_1] : memref<128x128xf32, #tpu.memory_space<vmem>>, vector<128x128xf32>
    %c0_2 = arith.constant 0 : index
    %c0_3 = arith.constant 0 : index
    %4 = vector.load %arg3[%c0_2, %c0_3] : memref<128x640xbf16, #tpu.memory_space<vmem>>, vector<128x640xbf16>
    %c0_4 = arith.constant 0 : index
    %c0_5 = arith.constant 0 : index
    %5 = vector.load %arg4[%c0_4, %c0_5] : memref<640x128xbf16, #tpu.memory_space<vmem>>, vector<640x128xbf16>
    %cst = arith.constant dense<0.000000e+00> : vector<128x128xf32>
    %6 = tpu.matmul %4, %5, %cst {dimension_numbers = #tpu.dot_dimension_numbers<[1], [0], [0], [1], [0, 0, 1, 1], [], []>} : vector<128x640xbf16>, vector<640x128xbf16>, vector<128x128xf32> -> vector<128x128xf32>
    %7 = arith.addf %3, %6 : vector<128x128xf32>
    %c0_6 = arith.constant 0 : index
    %c0_7 = arith.constant 0 : index
    %8 = vector.load %arg6[%c0_6, %c0_7] : memref<128x128xf32, #tpu.memory_space<vmem>>, vector<128x128xf32>
    tpu.vector_store %arg6[%c0_6, %c0_7], %7 {strides = array<i32>} : memref<128x128xf32, #tpu.memory_space<vmem>>, vector<128x128xf32>,
    %c0_i32_8 = arith.constant 0 : i32
    %9 = arith.cmpi eq, %arg2, %c0_i32_8 : i32
    %10 = arith.extui %9 : i1 to i32
    %c0_i32_9 = arith.constant 0 : i32
    %11 = arith.cmpi ne, %10, %c0_i32_9 : i32
    scf.if %11 {
      %c0_10 = arith.constant 0 : index
      %c0_11 = arith.constant 0 : index
      %12 = vector.load %arg6[%c0_10, %c0_11] : memref<128x128xf32, #tpu.memory_space<vmem>>, vector<128x128xf32>
      %13 = arith.truncf %12 : vector<128x128xf32> to vector<128x128xbf16>
      %c0_12 = arith.constant 0 : index
      %c0_13 = arith.constant 0 : index
      %14 = vector.load %arg5[%c0_12, %c0_13] : memref<128x128xbf16, #tpu.memory_space<vmem>>, vector<128x128xbf16>
      tpu.vector_store %arg5[%c0_12, %c0_13], %13 {strides = array<i32>} : memref<128x128xbf16, #tpu.memory_space<vmem>>, vector<128x128xbf16>,
    } else {
    }
    return
  }
  func.func @transform_0(%arg0: i32, %arg1: i32, %arg2: i32) -> (i32, i32) {
    %c0_i32 = arith.constant 0 : i32
    return %arg0, %arg2 : i32, i32
  }
  func.func @transform_1(%arg0: i32, %arg1: i32, %arg2: i32) -> (i32, i32) {
    %c0_i32 = arith.constant 0 : i32
    return %arg2, %arg1 : i32, i32
  }
  func.func @transform_2(%arg0: i32, %arg1: i32, %arg2: i32) -> (i32, i32) {
    %c0_i32 = arith.constant 0 : i32
    return %arg0, %arg1 : i32, i32
  }
}

module attributes {stable_mosaic.version = 11 : i64} {
  func.func @_inorm_act_kernel(%arg0: i32, %arg1: i32, %arg2: memref<1x64x128xbf16, #tpu.memory_space<vmem>>, %arg3: memref<1x64x128xbf16, #tpu.memory_space<vmem>>) attributes {dimension_semantics = [#tpu.dimension_semantics<parallel>, #tpu.dimension_semantics<parallel>], iteration_bounds = array<i64: 2, 1>, scalar_prefetch = 0 : i64, scratch_operands = 0 : i64, tpu.core_type = #tpu.core_type<tc>, window_params = [{transform_indices = @transform_0, window_bounds = array<i64: 1, 64, 128>}, {transform_indices = @transform_1, window_bounds = array<i64: 1, 64, 128>}]} {
    %c0 = arith.constant 0 : index
    %c0_0 = arith.constant 0 : index
    %c0_1 = arith.constant 0 : index
    %0 = vector.load %arg2[%c0, %c0_0, %c0_1] : memref<1x64x128xbf16, #tpu.memory_space<vmem>>, vector<1x64x128xbf16>
    %1 = arith.extf %0 : vector<1x64x128xbf16> to vector<1x64x128xf32>
    %cst = arith.constant dense<0.000000e+00> : vector<1x128xf32>
    %2 = vector.multi_reduction <add>, %1, %cst [1] : vector<1x64x128xf32> to vector<1x128xf32>
    %3 = vector.shape_cast %2 : vector<1x128xf32> to vector<1x1x128xf32>
    %cst_2 = arith.constant 6.400000e+01 : f32
    %4 = vector.broadcast %cst_2 : f32 to vector<1x1x128xf32>
    %5 = arith.divf %3, %4 : vector<1x1x128xf32>
    %6 = arith.mulf %1, %1 : vector<1x64x128xf32>
    %cst_3 = arith.constant dense<0.000000e+00> : vector<1x128xf32>
    %7 = vector.multi_reduction <add>, %6, %cst_3 [1] : vector<1x64x128xf32> to vector<1x128xf32>
    %8 = vector.shape_cast %7 : vector<1x128xf32> to vector<1x1x128xf32>
    %cst_4 = arith.constant 6.400000e+01 : f32
    %9 = vector.broadcast %cst_4 : f32 to vector<1x1x128xf32>
    %10 = arith.divf %8, %9 : vector<1x1x128xf32>
    %11 = arith.mulf %5, %5 : vector<1x1x128xf32>
    %12 = arith.subf %10, %11 : vector<1x1x128xf32>
    %13 = vector.broadcast %5 : vector<1x1x128xf32> to vector<1x64x128xf32>
    %14 = arith.subf %1, %13 : vector<1x64x128xf32>
    %cst_5 = arith.constant 9.99999974E-6 : f32
    %15 = vector.broadcast %cst_5 : f32 to vector<1x1x128xf32>
    %16 = arith.addf %12, %15 : vector<1x1x128xf32>
    %17 = math.rsqrt %16 : vector<1x1x128xf32>
    %18 = vector.broadcast %17 : vector<1x1x128xf32> to vector<1x64x128xf32>
    %19 = arith.mulf %14, %18 : vector<1x64x128xf32>
    %cst_6 = arith.constant 0.000000e+00 : f32
    %20 = vector.broadcast %cst_6 : f32 to vector<1x64x128xf32>
    %21 = arith.maximumf %19, %20 : vector<1x64x128xf32>
    %22 = arith.truncf %21 : vector<1x64x128xf32> to vector<1x64x128xbf16>
    %c0_7 = arith.constant 0 : index
    %c0_8 = arith.constant 0 : index
    %c0_9 = arith.constant 0 : index
    %23 = vector.load %arg3[%c0_7, %c0_8, %c0_9] : memref<1x64x128xbf16, #tpu.memory_space<vmem>>, vector<1x64x128xbf16>
    tpu.vector_store %arg3[%c0_7, %c0_8, %c0_9], %22 {strides = array<i32>} : memref<1x64x128xbf16, #tpu.memory_space<vmem>>, vector<1x64x128xbf16>,
    return
  }
  func.func @transform_0(%arg0: i32, %arg1: i32) -> (i32, i32, i32) {
    %c0_i32 = arith.constant 0 : i32
    %c0_i32_0 = arith.constant 0 : i32
    return %arg0, %c0_i32, %arg1 : i32, i32, i32
  }
  func.func @transform_1(%arg0: i32, %arg1: i32) -> (i32, i32, i32) {
    %c0_i32 = arith.constant 0 : i32
    %c0_i32_0 = arith.constant 0 : i32
    return %arg0, %c0_i32, %arg1 : i32, i32, i32
  }
}

module attributes {stable_mosaic.version = 11 : i64} {
  func.func @_matmul_kernel(%arg0: i32, %arg1: i32, %arg2: i32, %arg3: memref<32x384xbf16, #tpu.memory_space<vmem>>, %arg4: memref<384x256xbf16, #tpu.memory_space<vmem>>, %arg5: memref<32x256xbf16, #tpu.memory_space<vmem>>, %arg6: memref<32x256xf32, #tpu.memory_space<vmem>>) attributes {dimension_semantics = [#tpu.dimension_semantics<parallel>, #tpu.dimension_semantics<parallel>, #tpu.dimension_semantics<arbitrary>], iteration_bounds = array<i64: 1, 1, 3>, scalar_prefetch = 0 : i64, scratch_operands = 1 : i64, tpu.core_type = #tpu.core_type<tc>, window_params = [{transform_indices = @transform_0, window_bounds = array<i64: 32, 384>}, {transform_indices = @transform_1, window_bounds = array<i64: 384, 256>}, {transform_indices = @transform_2, window_bounds = array<i64: 32, 256>}]} {
    %c0_i32 = arith.constant 0 : i32
    %0 = arith.cmpi eq, %arg2, %c0_i32 : i32
    %1 = arith.extui %0 : i1 to i32
    %c0_i32_0 = arith.constant 0 : i32
    %2 = arith.cmpi ne, %1, %c0_i32_0 : i32
    scf.if %2 {
      %cst_9 = arith.constant 0.000000e+00 : f32
      %12 = vector.broadcast %cst_9 : f32 to vector<32x256xf32>
      %c0_10 = arith.constant 0 : index
      %c0_11 = arith.constant 0 : index
      %13 = vector.load %arg6[%c0_10, %c0_11] : memref<32x256xf32, #tpu.memory_space<vmem>>, vector<32x256xf32>
      tpu.vector_store %arg6[%c0_10, %c0_11], %12 {strides = array<i32>} : memref<32x256xf32, #tpu.memory_space<vmem>>, vector<32x256xf32>,
    } else {
    }
    %c0 = arith.constant 0 : index
    %c0_1 = arith.constant 0 : index
    %3 = vector.load %arg6[%c0, %c0_1] : memref<32x256xf32, #tpu.memory_space<vmem>>, vector<32x256xf32>
    %c0_2 = arith.constant 0 : index
    %c0_3 = arith.constant 0 : index
    %4 = vector.load %arg3[%c0_2, %c0_3] : memref<32x384xbf16, #tpu.memory_space<vmem>>, vector<32x384xbf16>
    %c0_4 = arith.constant 0 : index
    %c0_5 = arith.constant 0 : index
    %5 = vector.load %arg4[%c0_4, %c0_5] : memref<384x256xbf16, #tpu.memory_space<vmem>>, vector<384x256xbf16>
    %cst = arith.constant dense<0.000000e+00> : vector<32x256xf32>
    %6 = tpu.matmul %4, %5, %cst {dimension_numbers = #tpu.dot_dimension_numbers<[1], [0], [0], [1], [0, 0, 1, 1], [], []>} : vector<32x384xbf16>, vector<384x256xbf16>, vector<32x256xf32> -> vector<32x256xf32>
    %7 = arith.addf %3, %6 : vector<32x256xf32>
    %c0_6 = arith.constant 0 : index
    %c0_7 = arith.constant 0 : index
    %8 = vector.load %arg6[%c0_6, %c0_7] : memref<32x256xf32, #tpu.memory_space<vmem>>, vector<32x256xf32>
    tpu.vector_store %arg6[%c0_6, %c0_7], %7 {strides = array<i32>} : memref<32x256xf32, #tpu.memory_space<vmem>>, vector<32x256xf32>,
    %c2_i32 = arith.constant 2 : i32
    %9 = arith.cmpi eq, %arg2, %c2_i32 : i32
    %10 = arith.extui %9 : i1 to i32
    %c0_i32_8 = arith.constant 0 : i32
    %11 = arith.cmpi ne, %10, %c0_i32_8 : i32
    scf.if %11 {
      %c0_9 = arith.constant 0 : index
      %c0_10 = arith.constant 0 : index
      %12 = vector.load %arg6[%c0_9, %c0_10] : memref<32x256xf32, #tpu.memory_space<vmem>>, vector<32x256xf32>
      %13 = arith.truncf %12 : vector<32x256xf32> to vector<32x256xbf16>
      %c0_11 = arith.constant 0 : index
      %c0_12 = arith.constant 0 : index
      %14 = vector.load %arg5[%c0_11, %c0_12] : memref<32x256xbf16, #tpu.memory_space<vmem>>, vector<32x256xbf16>
      tpu.vector_store %arg5[%c0_11, %c0_12], %13 {strides = array<i32>} : memref<32x256xbf16, #tpu.memory_space<vmem>>, vector<32x256xbf16>,
    } else {
    }
    return
  }
  func.func @transform_0(%arg0: i32, %arg1: i32, %arg2: i32) -> (i32, i32) {
    %c0_i32 = arith.constant 0 : i32
    return %arg0, %arg2 : i32, i32
  }
  func.func @transform_1(%arg0: i32, %arg1: i32, %arg2: i32) -> (i32, i32) {
    %c0_i32 = arith.constant 0 : i32
    return %arg2, %arg1 : i32, i32
  }
  func.func @transform_2(%arg0: i32, %arg1: i32, %arg2: i32) -> (i32, i32) {
    %c0_i32 = arith.constant 0 : i32
    return %arg0, %arg1 : i32, i32
  }
}

module attributes {stable_mosaic.version = 11 : i64} {
  func.func @_inorm_act_kernel(%arg0: i32, %arg1: i32, %arg2: memref<1x16x128xbf16, #tpu.memory_space<vmem>>, %arg3: memref<1x16x128xbf16, #tpu.memory_space<vmem>>) attributes {dimension_semantics = [#tpu.dimension_semantics<parallel>, #tpu.dimension_semantics<parallel>], iteration_bounds = array<i64: 2, 2>, scalar_prefetch = 0 : i64, scratch_operands = 0 : i64, tpu.core_type = #tpu.core_type<tc>, window_params = [{transform_indices = @transform_0, window_bounds = array<i64: 1, 16, 128>}, {transform_indices = @transform_1, window_bounds = array<i64: 1, 16, 128>}]} {
    %c0 = arith.constant 0 : index
    %c0_0 = arith.constant 0 : index
    %c0_1 = arith.constant 0 : index
    %0 = vector.load %arg2[%c0, %c0_0, %c0_1] : memref<1x16x128xbf16, #tpu.memory_space<vmem>>, vector<1x16x128xbf16>
    %1 = arith.extf %0 : vector<1x16x128xbf16> to vector<1x16x128xf32>
    %cst = arith.constant dense<0.000000e+00> : vector<1x128xf32>
    %2 = vector.multi_reduction <add>, %1, %cst [1] : vector<1x16x128xf32> to vector<1x128xf32>
    %3 = vector.shape_cast %2 : vector<1x128xf32> to vector<1x1x128xf32>
    %cst_2 = arith.constant 1.600000e+01 : f32
    %4 = vector.broadcast %cst_2 : f32 to vector<1x1x128xf32>
    %5 = arith.divf %3, %4 : vector<1x1x128xf32>
    %6 = arith.mulf %1, %1 : vector<1x16x128xf32>
    %cst_3 = arith.constant dense<0.000000e+00> : vector<1x128xf32>
    %7 = vector.multi_reduction <add>, %6, %cst_3 [1] : vector<1x16x128xf32> to vector<1x128xf32>
    %8 = vector.shape_cast %7 : vector<1x128xf32> to vector<1x1x128xf32>
    %cst_4 = arith.constant 1.600000e+01 : f32
    %9 = vector.broadcast %cst_4 : f32 to vector<1x1x128xf32>
    %10 = arith.divf %8, %9 : vector<1x1x128xf32>
    %11 = arith.mulf %5, %5 : vector<1x1x128xf32>
    %12 = arith.subf %10, %11 : vector<1x1x128xf32>
    %13 = vector.broadcast %5 : vector<1x1x128xf32> to vector<1x16x128xf32>
    %14 = arith.subf %1, %13 : vector<1x16x128xf32>
    %cst_5 = arith.constant 9.99999974E-6 : f32
    %15 = vector.broadcast %cst_5 : f32 to vector<1x1x128xf32>
    %16 = arith.addf %12, %15 : vector<1x1x128xf32>
    %17 = math.rsqrt %16 : vector<1x1x128xf32>
    %18 = vector.broadcast %17 : vector<1x1x128xf32> to vector<1x16x128xf32>
    %19 = arith.mulf %14, %18 : vector<1x16x128xf32>
    %cst_6 = arith.constant 0.000000e+00 : f32
    %20 = vector.broadcast %cst_6 : f32 to vector<1x16x128xf32>
    %21 = arith.maximumf %19, %20 : vector<1x16x128xf32>
    %22 = arith.truncf %21 : vector<1x16x128xf32> to vector<1x16x128xbf16>
    %c0_7 = arith.constant 0 : index
    %c0_8 = arith.constant 0 : index
    %c0_9 = arith.constant 0 : index
    %23 = vector.load %arg3[%c0_7, %c0_8, %c0_9] : memref<1x16x128xbf16, #tpu.memory_space<vmem>>, vector<1x16x128xbf16>
    tpu.vector_store %arg3[%c0_7, %c0_8, %c0_9], %22 {strides = array<i32>} : memref<1x16x128xbf16, #tpu.memory_space<vmem>>, vector<1x16x128xbf16>,
    return
  }
  func.func @transform_0(%arg0: i32, %arg1: i32) -> (i32, i32, i32) {
    %c0_i32 = arith.constant 0 : i32
    %c0_i32_0 = arith.constant 0 : i32
    return %arg0, %c0_i32, %arg1 : i32, i32, i32
  }
  func.func @transform_1(%arg0: i32, %arg1: i32) -> (i32, i32, i32) {
    %c0_i32 = arith.constant 0 : i32
    %c0_i32_0 = arith.constant 0 : i32
    return %arg0, %c0_i32, %arg1 : i32, i32, i32
  }
}

module attributes {stable_mosaic.version = 11 : i64} {
  func.func @_matmul_kernel(%arg0: i32, %arg1: i32, %arg2: i32, %arg3: memref<32x768xbf16, #tpu.memory_space<vmem>>, %arg4: memref<768x256xbf16, #tpu.memory_space<vmem>>, %arg5: memref<32x256xbf16, #tpu.memory_space<vmem>>, %arg6: memref<32x256xf32, #tpu.memory_space<vmem>>) attributes {dimension_semantics = [#tpu.dimension_semantics<parallel>, #tpu.dimension_semantics<parallel>, #tpu.dimension_semantics<arbitrary>], iteration_bounds = array<i64: 1, 1, 3>, scalar_prefetch = 0 : i64, scratch_operands = 1 : i64, tpu.core_type = #tpu.core_type<tc>, window_params = [{transform_indices = @transform_0, window_bounds = array<i64: 32, 768>}, {transform_indices = @transform_1, window_bounds = array<i64: 768, 256>}, {transform_indices = @transform_2, window_bounds = array<i64: 32, 256>}]} {
    %c0_i32 = arith.constant 0 : i32
    %0 = arith.cmpi eq, %arg2, %c0_i32 : i32
    %1 = arith.extui %0 : i1 to i32
    %c0_i32_0 = arith.constant 0 : i32
    %2 = arith.cmpi ne, %1, %c0_i32_0 : i32
    scf.if %2 {
      %cst_9 = arith.constant 0.000000e+00 : f32
      %12 = vector.broadcast %cst_9 : f32 to vector<32x256xf32>
      %c0_10 = arith.constant 0 : index
      %c0_11 = arith.constant 0 : index
      %13 = vector.load %arg6[%c0_10, %c0_11] : memref<32x256xf32, #tpu.memory_space<vmem>>, vector<32x256xf32>
      tpu.vector_store %arg6[%c0_10, %c0_11], %12 {strides = array<i32>} : memref<32x256xf32, #tpu.memory_space<vmem>>, vector<32x256xf32>,
    } else {
    }
    %c0 = arith.constant 0 : index
    %c0_1 = arith.constant 0 : index
    %3 = vector.load %arg6[%c0, %c0_1] : memref<32x256xf32, #tpu.memory_space<vmem>>, vector<32x256xf32>
    %c0_2 = arith.constant 0 : index
    %c0_3 = arith.constant 0 : index
    %4 = vector.load %arg3[%c0_2, %c0_3] : memref<32x768xbf16, #tpu.memory_space<vmem>>, vector<32x768xbf16>
    %c0_4 = arith.constant 0 : index
    %c0_5 = arith.constant 0 : index
    %5 = vector.load %arg4[%c0_4, %c0_5] : memref<768x256xbf16, #tpu.memory_space<vmem>>, vector<768x256xbf16>
    %cst = arith.constant dense<0.000000e+00> : vector<32x256xf32>
    %6 = tpu.matmul %4, %5, %cst {dimension_numbers = #tpu.dot_dimension_numbers<[1], [0], [0], [1], [0, 0, 1, 1], [], []>} : vector<32x768xbf16>, vector<768x256xbf16>, vector<32x256xf32> -> vector<32x256xf32>
    %7 = arith.addf %3, %6 : vector<32x256xf32>
    %c0_6 = arith.constant 0 : index
    %c0_7 = arith.constant 0 : index
    %8 = vector.load %arg6[%c0_6, %c0_7] : memref<32x256xf32, #tpu.memory_space<vmem>>, vector<32x256xf32>
    tpu.vector_store %arg6[%c0_6, %c0_7], %7 {strides = array<i32>} : memref<32x256xf32, #tpu.memory_space<vmem>>, vector<32x256xf32>,
    %c2_i32 = arith.constant 2 : i32
    %9 = arith.cmpi eq, %arg2, %c2_i32 : i32
    %10 = arith.extui %9 : i1 to i32
    %c0_i32_8 = arith.constant 0 : i32
    %11 = arith.cmpi ne, %10, %c0_i32_8 : i32
    scf.if %11 {
      %c0_9 = arith.constant 0 : index
      %c0_10 = arith.constant 0 : index
      %12 = vector.load %arg6[%c0_9, %c0_10] : memref<32x256xf32, #tpu.memory_space<vmem>>, vector<32x256xf32>
      %13 = arith.truncf %12 : vector<32x256xf32> to vector<32x256xbf16>
      %c0_11 = arith.constant 0 : index
      %c0_12 = arith.constant 0 : index
      %14 = vector.load %arg5[%c0_11, %c0_12] : memref<32x256xbf16, #tpu.memory_space<vmem>>, vector<32x256xbf16>
      tpu.vector_store %arg5[%c0_11, %c0_12], %13 {strides = array<i32>} : memref<32x256xbf16, #tpu.memory_space<vmem>>, vector<32x256xbf16>,
    } else {
    }
    return
  }
  func.func @transform_0(%arg0: i32, %arg1: i32, %arg2: i32) -> (i32, i32) {
    %c0_i32 = arith.constant 0 : i32
    return %arg0, %arg2 : i32, i32
  }
  func.func @transform_1(%arg0: i32, %arg1: i32, %arg2: i32) -> (i32, i32) {
    %c0_i32 = arith.constant 0 : i32
    return %arg2, %arg1 : i32, i32
  }
  func.func @transform_2(%arg0: i32, %arg1: i32, %arg2: i32) -> (i32, i32) {
    %c0_i32 = arith.constant 0 : i32
    return %arg0, %arg1 : i32, i32
  }
}

module attributes {stable_mosaic.version = 11 : i64} {
  func.func @_inorm_act_kernel(%arg0: i32, %arg1: i32, %arg2: memref<1x16x128xbf16, #tpu.memory_space<vmem>>, %arg3: memref<1x16x128xbf16, #tpu.memory_space<vmem>>, %arg4: memref<1x16x128xbf16, #tpu.memory_space<vmem>>) attributes {dimension_semantics = [#tpu.dimension_semantics<parallel>, #tpu.dimension_semantics<parallel>], iteration_bounds = array<i64: 2, 2>, scalar_prefetch = 0 : i64, scratch_operands = 0 : i64, tpu.core_type = #tpu.core_type<tc>, window_params = [{transform_indices = @transform_0, window_bounds = array<i64: 1, 16, 128>}, {transform_indices = @transform_1, window_bounds = array<i64: 1, 16, 128>}, {transform_indices = @transform_2, window_bounds = array<i64: 1, 16, 128>}]} {
    %c0 = arith.constant 0 : index
    %c0_0 = arith.constant 0 : index
    %c0_1 = arith.constant 0 : index
    %0 = vector.load %arg2[%c0, %c0_0, %c0_1] : memref<1x16x128xbf16, #tpu.memory_space<vmem>>, vector<1x16x128xbf16>
    %1 = arith.extf %0 : vector<1x16x128xbf16> to vector<1x16x128xf32>
    %cst = arith.constant dense<0.000000e+00> : vector<1x128xf32>
    %2 = vector.multi_reduction <add>, %1, %cst [1] : vector<1x16x128xf32> to vector<1x128xf32>
    %3 = vector.shape_cast %2 : vector<1x128xf32> to vector<1x1x128xf32>
    %cst_2 = arith.constant 1.600000e+01 : f32
    %4 = vector.broadcast %cst_2 : f32 to vector<1x1x128xf32>
    %5 = arith.divf %3, %4 : vector<1x1x128xf32>
    %6 = arith.mulf %1, %1 : vector<1x16x128xf32>
    %cst_3 = arith.constant dense<0.000000e+00> : vector<1x128xf32>
    %7 = vector.multi_reduction <add>, %6, %cst_3 [1] : vector<1x16x128xf32> to vector<1x128xf32>
    %8 = vector.shape_cast %7 : vector<1x128xf32> to vector<1x1x128xf32>
    %cst_4 = arith.constant 1.600000e+01 : f32
    %9 = vector.broadcast %cst_4 : f32 to vector<1x1x128xf32>
    %10 = arith.divf %8, %9 : vector<1x1x128xf32>
    %11 = arith.mulf %5, %5 : vector<1x1x128xf32>
    %12 = arith.subf %10, %11 : vector<1x1x128xf32>
    %13 = vector.broadcast %5 : vector<1x1x128xf32> to vector<1x16x128xf32>
    %14 = arith.subf %1, %13 : vector<1x16x128xf32>
    %cst_5 = arith.constant 9.99999974E-6 : f32
    %15 = vector.broadcast %cst_5 : f32 to vector<1x1x128xf32>
    %16 = arith.addf %12, %15 : vector<1x1x128xf32>
    %17 = math.rsqrt %16 : vector<1x1x128xf32>
    %18 = vector.broadcast %17 : vector<1x1x128xf32> to vector<1x16x128xf32>
    %19 = arith.mulf %14, %18 : vector<1x16x128xf32>
    %c0_6 = arith.constant 0 : index
    %c0_7 = arith.constant 0 : index
    %c0_8 = arith.constant 0 : index
    %20 = vector.load %arg3[%c0_6, %c0_7, %c0_8] : memref<1x16x128xbf16, #tpu.memory_space<vmem>>, vector<1x16x128xbf16>
    %21 = arith.extf %20 : vector<1x16x128xbf16> to vector<1x16x128xf32>
    %22 = arith.addf %19, %21 : vector<1x16x128xf32>
    %23 = arith.truncf %22 : vector<1x16x128xf32> to vector<1x16x128xbf16>
    %c0_9 = arith.constant 0 : index
    %c0_10 = arith.constant 0 : index
    %c0_11 = arith.constant 0 : index
    %24 = vector.load %arg4[%c0_9, %c0_10, %c0_11] : memref<1x16x128xbf16, #tpu.memory_space<vmem>>, vector<1x16x128xbf16>
    tpu.vector_store %arg4[%c0_9, %c0_10, %c0_11], %23 {strides = array<i32>} : memref<1x16x128xbf16, #tpu.memory_space<vmem>>, vector<1x16x128xbf16>,
    return
  }
  func.func @transform_0(%arg0: i32, %arg1: i32) -> (i32, i32, i32) {
    %c0_i32 = arith.constant 0 : i32
    %c0_i32_0 = arith.constant 0 : i32
    return %arg0, %c0_i32, %arg1 : i32, i32, i32
  }
  func.func @transform_1(%arg0: i32, %arg1: i32) -> (i32, i32, i32) {
    %c0_i32 = arith.constant 0 : i32
    %c0_i32_0 = arith.constant 0 : i32
    return %arg0, %c0_i32, %arg1 : i32, i32, i32
  }
  func.func @transform_2(%arg0: i32, %arg1: i32) -> (i32, i32, i32) {
    %c0_i32 = arith.constant 0 : i32
    %c0_i32_0 = arith.constant 0 : i32
    return %arg0, %c0_i32, %arg1 : i32, i32, i32
  }
}

module attributes {stable_mosaic.version = 11 : i64} {
  func.func @_matmul_kernel(%arg0: i32, %arg1: i32, %arg2: i32, %arg3: memref<32x512xbf16, #tpu.memory_space<vmem>>, %arg4: memref<512x128xbf16, #tpu.memory_space<vmem>>, %arg5: memref<32x128xbf16, #tpu.memory_space<vmem>>, %arg6: memref<32x128xf32, #tpu.memory_space<vmem>>) attributes {dimension_semantics = [#tpu.dimension_semantics<parallel>, #tpu.dimension_semantics<parallel>, #tpu.dimension_semantics<arbitrary>], iteration_bounds = array<i64: 1, 1, 2>, scalar_prefetch = 0 : i64, scratch_operands = 1 : i64, tpu.core_type = #tpu.core_type<tc>, window_params = [{transform_indices = @transform_0, window_bounds = array<i64: 32, 512>}, {transform_indices = @transform_1, window_bounds = array<i64: 512, 128>}, {transform_indices = @transform_2, window_bounds = array<i64: 32, 128>}]} {
    %c0_i32 = arith.constant 0 : i32
    %0 = arith.cmpi eq, %arg2, %c0_i32 : i32
    %1 = arith.extui %0 : i1 to i32
    %c0_i32_0 = arith.constant 0 : i32
    %2 = arith.cmpi ne, %1, %c0_i32_0 : i32
    scf.if %2 {
      %cst_9 = arith.constant 0.000000e+00 : f32
      %12 = vector.broadcast %cst_9 : f32 to vector<32x128xf32>
      %c0_10 = arith.constant 0 : index
      %c0_11 = arith.constant 0 : index
      %13 = vector.load %arg6[%c0_10, %c0_11] : memref<32x128xf32, #tpu.memory_space<vmem>>, vector<32x128xf32>
      tpu.vector_store %arg6[%c0_10, %c0_11], %12 {strides = array<i32>} : memref<32x128xf32, #tpu.memory_space<vmem>>, vector<32x128xf32>,
    } else {
    }
    %c0 = arith.constant 0 : index
    %c0_1 = arith.constant 0 : index
    %3 = vector.load %arg6[%c0, %c0_1] : memref<32x128xf32, #tpu.memory_space<vmem>>, vector<32x128xf32>
    %c0_2 = arith.constant 0 : index
    %c0_3 = arith.constant 0 : index
    %4 = vector.load %arg3[%c0_2, %c0_3] : memref<32x512xbf16, #tpu.memory_space<vmem>>, vector<32x512xbf16>
    %c0_4 = arith.constant 0 : index
    %c0_5 = arith.constant 0 : index
    %5 = vector.load %arg4[%c0_4, %c0_5] : memref<512x128xbf16, #tpu.memory_space<vmem>>, vector<512x128xbf16>
    %cst = arith.constant dense<0.000000e+00> : vector<32x128xf32>
    %6 = tpu.matmul %4, %5, %cst {dimension_numbers = #tpu.dot_dimension_numbers<[1], [0], [0], [1], [0, 0, 1, 1], [], []>} : vector<32x512xbf16>, vector<512x128xbf16>, vector<32x128xf32> -> vector<32x128xf32>
    %7 = arith.addf %3, %6 : vector<32x128xf32>
    %c0_6 = arith.constant 0 : index
    %c0_7 = arith.constant 0 : index
    %8 = vector.load %arg6[%c0_6, %c0_7] : memref<32x128xf32, #tpu.memory_space<vmem>>, vector<32x128xf32>
    tpu.vector_store %arg6[%c0_6, %c0_7], %7 {strides = array<i32>} : memref<32x128xf32, #tpu.memory_space<vmem>>, vector<32x128xf32>,
    %c1_i32 = arith.constant 1 : i32
    %9 = arith.cmpi eq, %arg2, %c1_i32 : i32
    %10 = arith.extui %9 : i1 to i32
    %c0_i32_8 = arith.constant 0 : i32
    %11 = arith.cmpi ne, %10, %c0_i32_8 : i32
    scf.if %11 {
      %c0_9 = arith.constant 0 : index
      %c0_10 = arith.constant 0 : index
      %12 = vector.load %arg6[%c0_9, %c0_10] : memref<32x128xf32, #tpu.memory_space<vmem>>, vector<32x128xf32>
      %13 = arith.truncf %12 : vector<32x128xf32> to vector<32x128xbf16>
      %c0_11 = arith.constant 0 : index
      %c0_12 = arith.constant 0 : index
      %14 = vector.load %arg5[%c0_11, %c0_12] : memref<32x128xbf16, #tpu.memory_space<vmem>>, vector<32x128xbf16>
      tpu.vector_store %arg5[%c0_11, %c0_12], %13 {strides = array<i32>} : memref<32x128xbf16, #tpu.memory_space<vmem>>, vector<32x128xbf16>,
    } else {
    }
    return
  }
  func.func @transform_0(%arg0: i32, %arg1: i32, %arg2: i32) -> (i32, i32) {
    %c0_i32 = arith.constant 0 : i32
    return %arg0, %arg2 : i32, i32
  }
  func.func @transform_1(%arg0: i32, %arg1: i32, %arg2: i32) -> (i32, i32) {
    %c0_i32 = arith.constant 0 : i32
    return %arg2, %arg1 : i32, i32
  }
  func.func @transform_2(%arg0: i32, %arg1: i32, %arg2: i32) -> (i32, i32) {
    %c0_i32 = arith.constant 0 : i32
    return %arg0, %arg1 : i32, i32
  }
}

module attributes {stable_mosaic.version = 11 : i64} {
  func.func @_matmul_kernel(%arg0: i32, %arg1: i32, %arg2: i32, %arg3: memref<32x512xbf16, #tpu.memory_space<vmem>>, %arg4: memref<512x128xbf16, #tpu.memory_space<vmem>>, %arg5: memref<32x128xbf16, #tpu.memory_space<vmem>>, %arg6: memref<32x128xf32, #tpu.memory_space<vmem>>) attributes {dimension_semantics = [#tpu.dimension_semantics<parallel>, #tpu.dimension_semantics<parallel>, #tpu.dimension_semantics<arbitrary>], iteration_bounds = array<i64: 1, 1, 1>, scalar_prefetch = 0 : i64, scratch_operands = 1 : i64, tpu.core_type = #tpu.core_type<tc>, window_params = [{transform_indices = @transform_0, window_bounds = array<i64: 32, 512>}, {transform_indices = @transform_1, window_bounds = array<i64: 512, 128>}, {transform_indices = @transform_2, window_bounds = array<i64: 32, 128>}]} {
    %c0_i32 = arith.constant 0 : i32
    %0 = arith.cmpi eq, %arg2, %c0_i32 : i32
    %1 = arith.extui %0 : i1 to i32
    %c0_i32_0 = arith.constant 0 : i32
    %2 = arith.cmpi ne, %1, %c0_i32_0 : i32
    scf.if %2 {
      %cst_10 = arith.constant 0.000000e+00 : f32
      %12 = vector.broadcast %cst_10 : f32 to vector<32x128xf32>
      %c0_11 = arith.constant 0 : index
      %c0_12 = arith.constant 0 : index
      %13 = vector.load %arg6[%c0_11, %c0_12] : memref<32x128xf32, #tpu.memory_space<vmem>>, vector<32x128xf32>
      tpu.vector_store %arg6[%c0_11, %c0_12], %12 {strides = array<i32>} : memref<32x128xf32, #tpu.memory_space<vmem>>, vector<32x128xf32>,
    } else {
    }
    %c0 = arith.constant 0 : index
    %c0_1 = arith.constant 0 : index
    %3 = vector.load %arg6[%c0, %c0_1] : memref<32x128xf32, #tpu.memory_space<vmem>>, vector<32x128xf32>
    %c0_2 = arith.constant 0 : index
    %c0_3 = arith.constant 0 : index
    %4 = vector.load %arg3[%c0_2, %c0_3] : memref<32x512xbf16, #tpu.memory_space<vmem>>, vector<32x512xbf16>
    %c0_4 = arith.constant 0 : index
    %c0_5 = arith.constant 0 : index
    %5 = vector.load %arg4[%c0_4, %c0_5] : memref<512x128xbf16, #tpu.memory_space<vmem>>, vector<512x128xbf16>
    %cst = arith.constant dense<0.000000e+00> : vector<32x128xf32>
    %6 = tpu.matmul %4, %5, %cst {dimension_numbers = #tpu.dot_dimension_numbers<[1], [0], [0], [1], [0, 0, 1, 1], [], []>} : vector<32x512xbf16>, vector<512x128xbf16>, vector<32x128xf32> -> vector<32x128xf32>
    %7 = arith.addf %3, %6 : vector<32x128xf32>
    %c0_6 = arith.constant 0 : index
    %c0_7 = arith.constant 0 : index
    %8 = vector.load %arg6[%c0_6, %c0_7] : memref<32x128xf32, #tpu.memory_space<vmem>>, vector<32x128xf32>
    tpu.vector_store %arg6[%c0_6, %c0_7], %7 {strides = array<i32>} : memref<32x128xf32, #tpu.memory_space<vmem>>, vector<32x128xf32>,
    %c0_i32_8 = arith.constant 0 : i32
    %9 = arith.cmpi eq, %arg2, %c0_i32_8 : i32
    %10 = arith.extui %9 : i1 to i32
    %c0_i32_9 = arith.constant 0 : i32
    %11 = arith.cmpi ne, %10, %c0_i32_9 : i32
    scf.if %11 {
      %c0_10 = arith.constant 0 : index
      %c0_11 = arith.constant 0 : index
      %12 = vector.load %arg6[%c0_10, %c0_11] : memref<32x128xf32, #tpu.memory_space<vmem>>, vector<32x128xf32>
      %13 = arith.truncf %12 : vector<32x128xf32> to vector<32x128xbf16>
      %c0_12 = arith.constant 0 : index
      %c0_13 = arith.constant 0 : index
      %14 = vector.load %arg5[%c0_12, %c0_13] : memref<32x128xbf16, #tpu.memory_space<vmem>>, vector<32x128xbf16>
      tpu.vector_store %arg5[%c0_12, %c0_13], %13 {strides = array<i32>} : memref<32x128xbf16, #tpu.memory_space<vmem>>, vector<32x128xbf16>,
    } else {
    }
    return
  }
  func.func @transform_0(%arg0: i32, %arg1: i32, %arg2: i32) -> (i32, i32) {
    %c0_i32 = arith.constant 0 : i32
    return %arg0, %arg2 : i32, i32
  }
  func.func @transform_1(%arg0: i32, %arg1: i32, %arg2: i32) -> (i32, i32) {
    %c0_i32 = arith.constant 0 : i32
    return %arg2, %arg1 : i32, i32
  }
  func.func @transform_2(%arg0: i32, %arg1: i32, %arg2: i32) -> (i32, i32) {
    %c0_i32 = arith.constant 0 : i32
    return %arg0, %arg1 : i32, i32
  }
}

module attributes {stable_mosaic.version = 11 : i64} {
  func.func @_matmul_kernel(%arg0: i32, %arg1: i32, %arg2: i32, %arg3: memref<32x256xbf16, #tpu.memory_space<vmem>>, %arg4: memref<256x128xbf16, #tpu.memory_space<vmem>>, %arg5: memref<32x128xbf16, #tpu.memory_space<vmem>>, %arg6: memref<32x128xf32, #tpu.memory_space<vmem>>) attributes {dimension_semantics = [#tpu.dimension_semantics<parallel>, #tpu.dimension_semantics<parallel>, #tpu.dimension_semantics<arbitrary>], iteration_bounds = array<i64: 1, 1, 1>, scalar_prefetch = 0 : i64, scratch_operands = 1 : i64, tpu.core_type = #tpu.core_type<tc>, window_params = [{transform_indices = @transform_0, window_bounds = array<i64: 32, 256>}, {transform_indices = @transform_1, window_bounds = array<i64: 256, 128>}, {transform_indices = @transform_2, window_bounds = array<i64: 32, 128>}]} {
    %c0_i32 = arith.constant 0 : i32
    %0 = arith.cmpi eq, %arg2, %c0_i32 : i32
    %1 = arith.extui %0 : i1 to i32
    %c0_i32_0 = arith.constant 0 : i32
    %2 = arith.cmpi ne, %1, %c0_i32_0 : i32
    scf.if %2 {
      %cst_10 = arith.constant 0.000000e+00 : f32
      %12 = vector.broadcast %cst_10 : f32 to vector<32x128xf32>
      %c0_11 = arith.constant 0 : index
      %c0_12 = arith.constant 0 : index
      %13 = vector.load %arg6[%c0_11, %c0_12] : memref<32x128xf32, #tpu.memory_space<vmem>>, vector<32x128xf32>
      tpu.vector_store %arg6[%c0_11, %c0_12], %12 {strides = array<i32>} : memref<32x128xf32, #tpu.memory_space<vmem>>, vector<32x128xf32>,
    } else {
    }
    %c0 = arith.constant 0 : index
    %c0_1 = arith.constant 0 : index
    %3 = vector.load %arg6[%c0, %c0_1] : memref<32x128xf32, #tpu.memory_space<vmem>>, vector<32x128xf32>
    %c0_2 = arith.constant 0 : index
    %c0_3 = arith.constant 0 : index
    %4 = vector.load %arg3[%c0_2, %c0_3] : memref<32x256xbf16, #tpu.memory_space<vmem>>, vector<32x256xbf16>
    %c0_4 = arith.constant 0 : index
    %c0_5 = arith.constant 0 : index
    %5 = vector.load %arg4[%c0_4, %c0_5] : memref<256x128xbf16, #tpu.memory_space<vmem>>, vector<256x128xbf16>
    %cst = arith.constant dense<0.000000e+00> : vector<32x128xf32>
    %6 = tpu.matmul %4, %5, %cst {dimension_numbers = #tpu.dot_dimension_numbers<[1], [0], [0], [1], [0, 0, 1, 1], [], []>} : vector<32x256xbf16>, vector<256x128xbf16>, vector<32x128xf32> -> vector<32x128xf32>
    %7 = arith.addf %3, %6 : vector<32x128xf32>
    %c0_6 = arith.constant 0 : index
    %c0_7 = arith.constant 0 : index
    %8 = vector.load %arg6[%c0_6, %c0_7] : memref<32x128xf32, #tpu.memory_space<vmem>>, vector<32x128xf32>
    tpu.vector_store %arg6[%c0_6, %c0_7], %7 {strides = array<i32>} : memref<32x128xf32, #tpu.memory_space<vmem>>, vector<32x128xf32>,
    %c0_i32_8 = arith.constant 0 : i32
    %9 = arith.cmpi eq, %arg2, %c0_i32_8 : i32
    %10 = arith.extui %9 : i1 to i32
    %c0_i32_9 = arith.constant 0 : i32
    %11 = arith.cmpi ne, %10, %c0_i32_9 : i32
    scf.if %11 {
      %c0_10 = arith.constant 0 : index
      %c0_11 = arith.constant 0 : index
      %12 = vector.load %arg6[%c0_10, %c0_11] : memref<32x128xf32, #tpu.memory_space<vmem>>, vector<32x128xf32>
      %13 = arith.truncf %12 : vector<32x128xf32> to vector<32x128xbf16>
      %c0_12 = arith.constant 0 : index
      %c0_13 = arith.constant 0 : index
      %14 = vector.load %arg5[%c0_12, %c0_13] : memref<32x128xbf16, #tpu.memory_space<vmem>>, vector<32x128xbf16>
      tpu.vector_store %arg5[%c0_12, %c0_13], %13 {strides = array<i32>} : memref<32x128xbf16, #tpu.memory_space<vmem>>, vector<32x128xbf16>,
    } else {
    }
    return
  }
  func.func @transform_0(%arg0: i32, %arg1: i32, %arg2: i32) -> (i32, i32) {
    %c0_i32 = arith.constant 0 : i32
    return %arg0, %arg2 : i32, i32
  }
  func.func @transform_1(%arg0: i32, %arg1: i32, %arg2: i32) -> (i32, i32) {
    %c0_i32 = arith.constant 0 : i32
    return %arg2, %arg1 : i32, i32
  }
  func.func @transform_2(%arg0: i32, %arg1: i32, %arg2: i32) -> (i32, i32) {
    %c0_i32 = arith.constant 0 : i32
    return %arg0, %arg1 : i32, i32
  }
}

module attributes {stable_mosaic.version = 11 : i64} {
  func.func @_matmul_kernel(%arg0: i32, %arg1: i32, %arg2: i32, %arg3: memref<128x512xbf16, #tpu.memory_space<vmem>>, %arg4: memref<512x128xbf16, #tpu.memory_space<vmem>>, %arg5: memref<128x128xbf16, #tpu.memory_space<vmem>>, %arg6: memref<128x128xf32, #tpu.memory_space<vmem>>) attributes {dimension_semantics = [#tpu.dimension_semantics<parallel>, #tpu.dimension_semantics<parallel>, #tpu.dimension_semantics<arbitrary>], iteration_bounds = array<i64: 1, 1, 1>, scalar_prefetch = 0 : i64, scratch_operands = 1 : i64, tpu.core_type = #tpu.core_type<tc>, window_params = [{transform_indices = @transform_0, window_bounds = array<i64: 128, 512>}, {transform_indices = @transform_1, window_bounds = array<i64: 512, 128>}, {transform_indices = @transform_2, window_bounds = array<i64: 128, 128>}]} {
    %c0_i32 = arith.constant 0 : i32
    %0 = arith.cmpi eq, %arg2, %c0_i32 : i32
    %1 = arith.extui %0 : i1 to i32
    %c0_i32_0 = arith.constant 0 : i32
    %2 = arith.cmpi ne, %1, %c0_i32_0 : i32
    scf.if %2 {
      %cst_10 = arith.constant 0.000000e+00 : f32
      %12 = vector.broadcast %cst_10 : f32 to vector<128x128xf32>
      %c0_11 = arith.constant 0 : index
      %c0_12 = arith.constant 0 : index
      %13 = vector.load %arg6[%c0_11, %c0_12] : memref<128x128xf32, #tpu.memory_space<vmem>>, vector<128x128xf32>
      tpu.vector_store %arg6[%c0_11, %c0_12], %12 {strides = array<i32>} : memref<128x128xf32, #tpu.memory_space<vmem>>, vector<128x128xf32>,
    } else {
    }
    %c0 = arith.constant 0 : index
    %c0_1 = arith.constant 0 : index
    %3 = vector.load %arg6[%c0, %c0_1] : memref<128x128xf32, #tpu.memory_space<vmem>>, vector<128x128xf32>
    %c0_2 = arith.constant 0 : index
    %c0_3 = arith.constant 0 : index
    %4 = vector.load %arg3[%c0_2, %c0_3] : memref<128x512xbf16, #tpu.memory_space<vmem>>, vector<128x512xbf16>
    %c0_4 = arith.constant 0 : index
    %c0_5 = arith.constant 0 : index
    %5 = vector.load %arg4[%c0_4, %c0_5] : memref<512x128xbf16, #tpu.memory_space<vmem>>, vector<512x128xbf16>
    %cst = arith.constant dense<0.000000e+00> : vector<128x128xf32>
    %6 = tpu.matmul %4, %5, %cst {dimension_numbers = #tpu.dot_dimension_numbers<[1], [0], [0], [1], [0, 0, 1, 1], [], []>} : vector<128x512xbf16>, vector<512x128xbf16>, vector<128x128xf32> -> vector<128x128xf32>
    %7 = arith.addf %3, %6 : vector<128x128xf32>
    %c0_6 = arith.constant 0 : index
    %c0_7 = arith.constant 0 : index
    %8 = vector.load %arg6[%c0_6, %c0_7] : memref<128x128xf32, #tpu.memory_space<vmem>>, vector<128x128xf32>
    tpu.vector_store %arg6[%c0_6, %c0_7], %7 {strides = array<i32>} : memref<128x128xf32, #tpu.memory_space<vmem>>, vector<128x128xf32>,
    %c0_i32_8 = arith.constant 0 : i32
    %9 = arith.cmpi eq, %arg2, %c0_i32_8 : i32
    %10 = arith.extui %9 : i1 to i32
    %c0_i32_9 = arith.constant 0 : i32
    %11 = arith.cmpi ne, %10, %c0_i32_9 : i32
    scf.if %11 {
      %c0_10 = arith.constant 0 : index
      %c0_11 = arith.constant 0 : index
      %12 = vector.load %arg6[%c0_10, %c0_11] : memref<128x128xf32, #tpu.memory_space<vmem>>, vector<128x128xf32>
      %13 = arith.truncf %12 : vector<128x128xf32> to vector<128x128xbf16>
      %c0_12 = arith.constant 0 : index
      %c0_13 = arith.constant 0 : index
      %14 = vector.load %arg5[%c0_12, %c0_13] : memref<128x128xbf16, #tpu.memory_space<vmem>>, vector<128x128xbf16>
      tpu.vector_store %arg5[%c0_12, %c0_13], %13 {strides = array<i32>} : memref<128x128xbf16, #tpu.memory_space<vmem>>, vector<128x128xbf16>,
    } else {
    }
    return
  }
  func.func @transform_0(%arg0: i32, %arg1: i32, %arg2: i32) -> (i32, i32) {
    %c0_i32 = arith.constant 0 : i32
    return %arg0, %arg2 : i32, i32
  }
  func.func @transform_1(%arg0: i32, %arg1: i32, %arg2: i32) -> (i32, i32) {
    %c0_i32 = arith.constant 0 : i32
    return %arg2, %arg1 : i32, i32
  }
  func.func @transform_2(%arg0: i32, %arg1: i32, %arg2: i32) -> (i32, i32) {
    %c0_i32 = arith.constant 0 : i32
    return %arg0, %arg1 : i32, i32
  }
}

module attributes {stable_mosaic.version = 11 : i64} {
  func.func @_matmul_kernel(%arg0: i32, %arg1: i32, %arg2: i32, %arg3: memref<128x256xbf16, #tpu.memory_space<vmem>>, %arg4: memref<256x128xbf16, #tpu.memory_space<vmem>>, %arg5: memref<128x128xbf16, #tpu.memory_space<vmem>>, %arg6: memref<128x128xf32, #tpu.memory_space<vmem>>) attributes {dimension_semantics = [#tpu.dimension_semantics<parallel>, #tpu.dimension_semantics<parallel>, #tpu.dimension_semantics<arbitrary>], iteration_bounds = array<i64: 1, 1, 1>, scalar_prefetch = 0 : i64, scratch_operands = 1 : i64, tpu.core_type = #tpu.core_type<tc>, window_params = [{transform_indices = @transform_0, window_bounds = array<i64: 128, 256>}, {transform_indices = @transform_1, window_bounds = array<i64: 256, 128>}, {transform_indices = @transform_2, window_bounds = array<i64: 128, 128>}]} {
    %c0_i32 = arith.constant 0 : i32
    %0 = arith.cmpi eq, %arg2, %c0_i32 : i32
    %1 = arith.extui %0 : i1 to i32
    %c0_i32_0 = arith.constant 0 : i32
    %2 = arith.cmpi ne, %1, %c0_i32_0 : i32
    scf.if %2 {
      %cst_10 = arith.constant 0.000000e+00 : f32
      %12 = vector.broadcast %cst_10 : f32 to vector<128x128xf32>
      %c0_11 = arith.constant 0 : index
      %c0_12 = arith.constant 0 : index
      %13 = vector.load %arg6[%c0_11, %c0_12] : memref<128x128xf32, #tpu.memory_space<vmem>>, vector<128x128xf32>
      tpu.vector_store %arg6[%c0_11, %c0_12], %12 {strides = array<i32>} : memref<128x128xf32, #tpu.memory_space<vmem>>, vector<128x128xf32>,
    } else {
    }
    %c0 = arith.constant 0 : index
    %c0_1 = arith.constant 0 : index
    %3 = vector.load %arg6[%c0, %c0_1] : memref<128x128xf32, #tpu.memory_space<vmem>>, vector<128x128xf32>
    %c0_2 = arith.constant 0 : index
    %c0_3 = arith.constant 0 : index
    %4 = vector.load %arg3[%c0_2, %c0_3] : memref<128x256xbf16, #tpu.memory_space<vmem>>, vector<128x256xbf16>
    %c0_4 = arith.constant 0 : index
    %c0_5 = arith.constant 0 : index
    %5 = vector.load %arg4[%c0_4, %c0_5] : memref<256x128xbf16, #tpu.memory_space<vmem>>, vector<256x128xbf16>
    %cst = arith.constant dense<0.000000e+00> : vector<128x128xf32>
    %6 = tpu.matmul %4, %5, %cst {dimension_numbers = #tpu.dot_dimension_numbers<[1], [0], [0], [1], [0, 0, 1, 1], [], []>} : vector<128x256xbf16>, vector<256x128xbf16>, vector<128x128xf32> -> vector<128x128xf32>
    %7 = arith.addf %3, %6 : vector<128x128xf32>
    %c0_6 = arith.constant 0 : index
    %c0_7 = arith.constant 0 : index
    %8 = vector.load %arg6[%c0_6, %c0_7] : memref<128x128xf32, #tpu.memory_space<vmem>>, vector<128x128xf32>
    tpu.vector_store %arg6[%c0_6, %c0_7], %7 {strides = array<i32>} : memref<128x128xf32, #tpu.memory_space<vmem>>, vector<128x128xf32>,
    %c0_i32_8 = arith.constant 0 : i32
    %9 = arith.cmpi eq, %arg2, %c0_i32_8 : i32
    %10 = arith.extui %9 : i1 to i32
    %c0_i32_9 = arith.constant 0 : i32
    %11 = arith.cmpi ne, %10, %c0_i32_9 : i32
    scf.if %11 {
      %c0_10 = arith.constant 0 : index
      %c0_11 = arith.constant 0 : index
      %12 = vector.load %arg6[%c0_10, %c0_11] : memref<128x128xf32, #tpu.memory_space<vmem>>, vector<128x128xf32>
      %13 = arith.truncf %12 : vector<128x128xf32> to vector<128x128xbf16>
      %c0_12 = arith.constant 0 : index
      %c0_13 = arith.constant 0 : index
      %14 = vector.load %arg5[%c0_12, %c0_13] : memref<128x128xbf16, #tpu.memory_space<vmem>>, vector<128x128xbf16>
      tpu.vector_store %arg5[%c0_12, %c0_13], %13 {strides = array<i32>} : memref<128x128xbf16, #tpu.memory_space<vmem>>, vector<128x128xbf16>,
    } else {
    }
    return
  }
  func.func @transform_0(%arg0: i32, %arg1: i32, %arg2: i32) -> (i32, i32) {
    %c0_i32 = arith.constant 0 : i32
    return %arg0, %arg2 : i32, i32
  }
  func.func @transform_1(%arg0: i32, %arg1: i32, %arg2: i32) -> (i32, i32) {
    %c0_i32 = arith.constant 0 : i32
    return %arg2, %arg1 : i32, i32
  }
  func.func @transform_2(%arg0: i32, %arg1: i32, %arg2: i32) -> (i32, i32) {
    %c0_i32 = arith.constant 0 : i32
    return %arg0, %arg1 : i32, i32
  }
}

module attributes {stable_mosaic.version = 11 : i64} {
  func.func @_matmul_kernel(%arg0: i32, %arg1: i32, %arg2: i32, %arg3: memref<128x128xbf16, #tpu.memory_space<vmem>>, %arg4: memref<128x128xbf16, #tpu.memory_space<vmem>>, %arg5: memref<128x128xbf16, #tpu.memory_space<vmem>>, %arg6: memref<128x128xf32, #tpu.memory_space<vmem>>) attributes {dimension_semantics = [#tpu.dimension_semantics<parallel>, #tpu.dimension_semantics<parallel>, #tpu.dimension_semantics<arbitrary>], iteration_bounds = array<i64: 1, 1, 1>, scalar_prefetch = 0 : i64, scratch_operands = 1 : i64, tpu.core_type = #tpu.core_type<tc>, window_params = [{transform_indices = @transform_0, window_bounds = array<i64: 128, 128>}, {transform_indices = @transform_1, window_bounds = array<i64: 128, 128>}, {transform_indices = @transform_2, window_bounds = array<i64: 128, 128>}]} {
    %c0_i32 = arith.constant 0 : i32
    %0 = arith.cmpi eq, %arg2, %c0_i32 : i32
    %1 = arith.extui %0 : i1 to i32
    %c0_i32_0 = arith.constant 0 : i32
    %2 = arith.cmpi ne, %1, %c0_i32_0 : i32
    scf.if %2 {
      %cst_10 = arith.constant 0.000000e+00 : f32
      %12 = vector.broadcast %cst_10 : f32 to vector<128x128xf32>
      %c0_11 = arith.constant 0 : index
      %c0_12 = arith.constant 0 : index
      %13 = vector.load %arg6[%c0_11, %c0_12] : memref<128x128xf32, #tpu.memory_space<vmem>>, vector<128x128xf32>
      tpu.vector_store %arg6[%c0_11, %c0_12], %12 {strides = array<i32>} : memref<128x128xf32, #tpu.memory_space<vmem>>, vector<128x128xf32>,
    } else {
    }
    %c0 = arith.constant 0 : index
    %c0_1 = arith.constant 0 : index
    %3 = vector.load %arg6[%c0, %c0_1] : memref<128x128xf32, #tpu.memory_space<vmem>>, vector<128x128xf32>
    %c0_2 = arith.constant 0 : index
    %c0_3 = arith.constant 0 : index
    %4 = vector.load %arg3[%c0_2, %c0_3] : memref<128x128xbf16, #tpu.memory_space<vmem>>, vector<128x128xbf16>
    %c0_4 = arith.constant 0 : index
    %c0_5 = arith.constant 0 : index
    %5 = vector.load %arg4[%c0_4, %c0_5] : memref<128x128xbf16, #tpu.memory_space<vmem>>, vector<128x128xbf16>
    %cst = arith.constant dense<0.000000e+00> : vector<128x128xf32>
    %6 = tpu.matmul %4, %5, %cst {dimension_numbers = #tpu.dot_dimension_numbers<[1], [0], [0], [1], [0, 0, 1, 1], [], []>} : vector<128x128xbf16>, vector<128x128xbf16>, vector<128x128xf32> -> vector<128x128xf32>
    %7 = arith.addf %3, %6 : vector<128x128xf32>
    %c0_6 = arith.constant 0 : index
    %c0_7 = arith.constant 0 : index
    %8 = vector.load %arg6[%c0_6, %c0_7] : memref<128x128xf32, #tpu.memory_space<vmem>>, vector<128x128xf32>
    tpu.vector_store %arg6[%c0_6, %c0_7], %7 {strides = array<i32>} : memref<128x128xf32, #tpu.memory_space<vmem>>, vector<128x128xf32>,
    %c0_i32_8 = arith.constant 0 : i32
    %9 = arith.cmpi eq, %arg2, %c0_i32_8 : i32
    %10 = arith.extui %9 : i1 to i32
    %c0_i32_9 = arith.constant 0 : i32
    %11 = arith.cmpi ne, %10, %c0_i32_9 : i32
    scf.if %11 {
      %c0_10 = arith.constant 0 : index
      %c0_11 = arith.constant 0 : index
      %12 = vector.load %arg6[%c0_10, %c0_11] : memref<128x128xf32, #tpu.memory_space<vmem>>, vector<128x128xf32>
      %13 = arith.truncf %12 : vector<128x128xf32> to vector<128x128xbf16>
      %c0_12 = arith.constant 0 : index
      %c0_13 = arith.constant 0 : index
      %14 = vector.load %arg5[%c0_12, %c0_13] : memref<128x128xbf16, #tpu.memory_space<vmem>>, vector<128x128xbf16>
      tpu.vector_store %arg5[%c0_12, %c0_13], %13 {strides = array<i32>} : memref<128x128xbf16, #tpu.memory_space<vmem>>, vector<128x128xbf16>,
    } else {
    }
    return
  }
  func.func @transform_0(%arg0: i32, %arg1: i32, %arg2: i32) -> (i32, i32) {
    %c0_i32 = arith.constant 0 : i32
    return %arg0, %arg2 : i32, i32
  }
  func.func @transform_1(%arg0: i32, %arg1: i32, %arg2: i32) -> (i32, i32) {
    %c0_i32 = arith.constant 0 : i32
    return %arg2, %arg1 : i32, i32
  }
  func.func @transform_2(%arg0: i32, %arg1: i32, %arg2: i32) -> (i32, i32) {
    %c0_i32 = arith.constant 0 : i32
    return %arg0, %arg1 : i32, i32
  }
}

module attributes {stable_mosaic.version = 11 : i64} {
  func.func @_matmul_kernel(%arg0: i32, %arg1: i32, %arg2: i32, %arg3: memref<256x640xbf16, #tpu.memory_space<vmem>>, %arg4: memref<640x128xbf16, #tpu.memory_space<vmem>>, %arg5: memref<1x128xf32, #tpu.memory_space<vmem>>, %arg6: memref<256x128xf32, #tpu.memory_space<vmem>>, %arg7: memref<256x128xf32, #tpu.memory_space<vmem>>) attributes {dimension_semantics = [#tpu.dimension_semantics<parallel>, #tpu.dimension_semantics<parallel>, #tpu.dimension_semantics<arbitrary>], iteration_bounds = array<i64: 2, 1, 5>, scalar_prefetch = 0 : i64, scratch_operands = 1 : i64, tpu.core_type = #tpu.core_type<tc>, window_params = [{transform_indices = @transform_0, window_bounds = array<i64: 256, 640>}, {transform_indices = @transform_1, window_bounds = array<i64: 640, 128>}, {transform_indices = @transform_2, window_bounds = array<i64: 1, 128>}, {transform_indices = @transform_3, window_bounds = array<i64: 256, 128>}]} {
    %c0_i32 = arith.constant 0 : i32
    %0 = arith.cmpi eq, %arg2, %c0_i32 : i32
    %1 = arith.extui %0 : i1 to i32
    %c0_i32_0 = arith.constant 0 : i32
    %2 = arith.cmpi ne, %1, %c0_i32_0 : i32
    scf.if %2 {
      %cst_9 = arith.constant 0.000000e+00 : f32
      %12 = vector.broadcast %cst_9 : f32 to vector<256x128xf32>
      %c0_10 = arith.constant 0 : index
      %c0_11 = arith.constant 0 : index
      %13 = vector.load %arg7[%c0_10, %c0_11] : memref<256x128xf32, #tpu.memory_space<vmem>>, vector<256x128xf32>
      tpu.vector_store %arg7[%c0_10, %c0_11], %12 {strides = array<i32>} : memref<256x128xf32, #tpu.memory_space<vmem>>, vector<256x128xf32>,
    } else {
    }
    %c0 = arith.constant 0 : index
    %c0_1 = arith.constant 0 : index
    %3 = vector.load %arg7[%c0, %c0_1] : memref<256x128xf32, #tpu.memory_space<vmem>>, vector<256x128xf32>
    %c0_2 = arith.constant 0 : index
    %c0_3 = arith.constant 0 : index
    %4 = vector.load %arg3[%c0_2, %c0_3] : memref<256x640xbf16, #tpu.memory_space<vmem>>, vector<256x640xbf16>
    %c0_4 = arith.constant 0 : index
    %c0_5 = arith.constant 0 : index
    %5 = vector.load %arg4[%c0_4, %c0_5] : memref<640x128xbf16, #tpu.memory_space<vmem>>, vector<640x128xbf16>
    %cst = arith.constant dense<0.000000e+00> : vector<256x128xf32>
    %6 = tpu.matmul %4, %5, %cst {dimension_numbers = #tpu.dot_dimension_numbers<[1], [0], [0], [1], [0, 0, 1, 1], [], []>} : vector<256x640xbf16>, vector<640x128xbf16>, vector<256x128xf32> -> vector<256x128xf32>
    %7 = arith.addf %3, %6 : vector<256x128xf32>
    %c0_6 = arith.constant 0 : index
    %c0_7 = arith.constant 0 : index
    %8 = vector.load %arg7[%c0_6, %c0_7] : memref<256x128xf32, #tpu.memory_space<vmem>>, vector<256x128xf32>
    tpu.vector_store %arg7[%c0_6, %c0_7], %7 {strides = array<i32>} : memref<256x128xf32, #tpu.memory_space<vmem>>, vector<256x128xf32>,
    %c4_i32 = arith.constant 4 : i32
    %9 = arith.cmpi eq, %arg2, %c4_i32 : i32
    %10 = arith.extui %9 : i1 to i32
    %c0_i32_8 = arith.constant 0 : i32
    %11 = arith.cmpi ne, %10, %c0_i32_8 : i32
    scf.if %11 {
      %c0_9 = arith.constant 0 : index
      %c0_10 = arith.constant 0 : index
      %12 = vector.load %arg7[%c0_9, %c0_10] : memref<256x128xf32, #tpu.memory_space<vmem>>, vector<256x128xf32>
      %c0_11 = arith.constant 0 : index
      %c0_12 = arith.constant 0 : index
      %13 = vector.load %arg5[%c0_11, %c0_12] : memref<1x128xf32, #tpu.memory_space<vmem>>, vector<1x128xf32>
      %14 = vector.broadcast %13 : vector<1x128xf32> to vector<256x128xf32>
      %15 = arith.addf %12, %14 : vector<256x128xf32>
      %16 = math.tanh %15 : vector<256x128xf32>
      %c0_13 = arith.constant 0 : index
      %c0_14 = arith.constant 0 : index
      %17 = vector.load %arg6[%c0_13, %c0_14] : memref<256x128xf32, #tpu.memory_space<vmem>>, vector<256x128xf32>
      tpu.vector_store %arg6[%c0_13, %c0_14], %16 {strides = array<i32>} : memref<256x128xf32, #tpu.memory_space<vmem>>, vector<256x128xf32>,
    } else {
    }
    return
  }
  func.func @transform_0(%arg0: i32, %arg1: i32, %arg2: i32) -> (i32, i32) {
    %c0_i32 = arith.constant 0 : i32
    return %arg0, %arg2 : i32, i32
  }
  func.func @transform_1(%arg0: i32, %arg1: i32, %arg2: i32) -> (i32, i32) {
    %c0_i32 = arith.constant 0 : i32
    return %arg2, %arg1 : i32, i32
  }
  func.func @transform_2(%arg0: i32, %arg1: i32, %arg2: i32) -> (i32, i32) {
    %c0_i32 = arith.constant 0 : i32
    %c0_i32_0 = arith.constant 0 : i32
    return %c0_i32, %arg1 : i32, i32
  }
  func.func @transform_3(%arg0: i32, %arg1: i32, %arg2: i32) -> (i32, i32) {
    %c0_i32 = arith.constant 0 : i32
    return %arg0, %arg1 : i32, i32
  }
}

</mosaic_0001>

<bundles_post_ra>
// kernel: generator_forward.26
= control target key start
LH: loop header
LB: loop body
LE: loop exit
PB: predicated region body
PF: predicated region fallthrough
CT: control target
= control target key end

     0   :  { %s946_s6 = smov 0   ;;  %s948_s7 = smov 0   ;;  %s1444_s0 = inlined_call_operand.vmem [shape: bf16[2,256,64], index: 0, kind: input, shape index: {}]   ;;  %s1445_s1 = inlined_call_operand.vmem [shape: bf16[2,256,64], index: 1, kind: output, shape index: {}]  }
   0x1   :  { %s950_s8 = smov 0  }
   0x2 LB: > { %s23_s9 = sadd.s32 1, %s930_s7  ;;  %p734_p0 = scmp.ge.s32.totalorder %s934_s8, 1  ;;  %s934_s8 = sphi %s950_s8, %s11_s8   ;;  %s930_s7 = sphi %s948_s7, %s1447_s7   ;;  %s926_s6 = sphi %s946_s6, %s1446_s6  }
   0x3   : > { %p25_p1 = scmp.ge.s32.totalorder %s23_s9, 2  ;;  %p106_p2 = scmp.lt.s32.totalorder %s934_s8, 3 }
   0x5   : > { %s1449_s9 = smov (%p25_p1, %s23_s9), 0  ;;  %p107_p3 = pnand %p734_p0, %p106_p2 }
   0x6   : > { %p132_p4 = scmp.lt.s32.totalorder (!%p107_p3), %s926_s6, 1  ;;  %vm212_vm0 = vcmask (!%p107_p3), 523264   ;;  %vm614_vm1 = vcmask (!%p107_p3), 519168  }
   0x7   : > { %110 = sbr.rel (%p107_p3) target bundleno = 149 (0x95), region = 24 }
   0xe   : > { %s1451_s6 = smov (!%p132_p4, %s926_s6), 1 }
   0xf   : > { %s773_s10 = sshll.u32 %s1451_s6, 7 }
  0x10   : > { %s972_s13 = scalar_lea.vmem %s1444_s0, %s773_s10  ;;  %s1297_s16 = scalar_lea.vmem %s1445_s1, %s773_s10 }
  0x11   : > { %v808_v0 = vld [vmem:[%s972_s13] sm:$0xff]   ;;  %v871_v1 = vld [vmem:[%s972_s13 + $0x8] sm:$0xff]   ;;  %v872_v5 = vld [vmem:[%s972_s13 + $0x10] sm:$0xff]  }
  0x12   : > { %v976_v2 = vunpack.c.l.bf16 %v808_v0  ;;  %v978_v3 = vunpack.c.h.bf16 %v808_v0  ;;  %v980_v4 = vunpack.c.l.bf16 %v871_v1  ;;  %v983_v6 = vunpack.c.h.bf16 %v871_v1  ;;  %v873_v11 = vld [vmem:[%s972_s13 + $0x18] sm:$0xff]   ;;  %v874_v18 = vld [vmem:[%s972_s13 + $0x20] sm:$0xff]   ;;  %v875_v25 = vld [vmem:[%s972_s13 + $0x28] sm:$0xff]  }
  0x13   : > { %v985_v7 = vunpack.c.l.bf16 %v872_v5  ;;  %v994_v13 = vunpack.c.h.bf16 %v872_v5  ;;  %v998_v16 = vunpack.c.l.bf16 %v873_v11  ;;  %v1003_v20 = vunpack.c.h.bf16 %v873_v11  ;;  %v876_v33 = vld [vmem:[%s972_s13 + $0x30] sm:$0xff]   ;;  %v877_v44 = vld [vmem:[%s972_s13 + $0x38] sm:$0xff]   ;;  %v878_v57 = vld [vmem:[%s972_s13 + $0x40] sm:$0xff]  }
  0x14   : > { %v213_v8 = vsel %vm212_vm0, %v976_v2, 0.0  ;;  %v214_v9 = vsel %vm212_vm0, %v978_v3, 0.0  ;;  %v216_v10 = vsel %vm212_vm0, %v980_v4, 0.0  ;;  %v218_v14 = vsel %vm212_vm0, %v983_v6, 0.0  ;;  %v879_v11 = vld [vmem:[%s972_s13 + $0x48] sm:$0xff]  }
  0x15   : > { %v215_v12 = vadd.f32 %v214_v9, %v213_v8  ;;  %v220_v17 = vsel %vm212_vm0, %v985_v7, 0.0  ;;  %v222_v21 = vsel %vm212_vm0, %v994_v13, 0.0  ;;  %v1007_v23 = vunpack.c.l.bf16 %v874_v18 }
  0x16   : > { %v224_v24 = vsel %vm212_vm0, %v998_v16, 0.0  ;;  %v1012_v27 = vunpack.c.h.bf16 %v874_v18  ;;  %v226_v28 = vsel %vm212_vm0, %v1003_v20, 0.0  ;;  %v1016_v30 = vunpack.c.l.bf16 %v875_v25 }
  0x17   : > { %v217_v15 = vadd.f32 %v216_v10, %v215_v12  ;;  %v228_v31 = vsel %vm212_vm0, %v1007_v23, 0.0  ;;  %v1020_v32 = vunpack.c.h.bf16 %v875_v25  ;;  %v284_v36 = vmul.f32 %v976_v2, %v976_v2 }
  0x18   : > { %v230_v35 = vsel %vm212_vm0, %v1012_v27, 0.0  ;;  %v285_v37 = vmul.f32 %v978_v3, %v978_v3  ;;  %v286_v38 = vmul.f32 %v980_v4, %v980_v4  ;;  %v1031_v40 = vunpack.c.l.bf16 %v876_v33 }
  0x19   : > { %v219_v19 = vadd.f32 %v218_v14, %v217_v15  ;;  %v232_v41 = vsel %vm212_vm0, %v1016_v30, 0.0  ;;  %v287_v42 = vmul.f32 %v983_v6, %v983_v6  ;;  %v1037_v43 = vunpack.c.h.bf16 %v876_v33 }
  0x1a   : > { %v234_v46 = vsel %vm212_vm0, %v1020_v32, 0.0  ;;  %v288_v47 = vmul.f32 %v985_v7, %v985_v7  ;;  %v316_v48 = vsel %vm212_vm0, %v284_v36, 0.0  ;;  %v317_v49 = vsel %vm212_vm0, %v285_v37, 0.0 }
  0x1b   : > { %v221_v22 = vadd.f32 %v220_v17, %v219_v19  ;;  %v319_v50 = vsel %vm212_vm0, %v286_v38, 0.0  ;;  %v318_v52 = vadd.f32 %v317_v49, %v316_v48  ;;  %v1047_v53 = vunpack.c.l.bf16 %v877_v44 }
  0x1c   : > { %v236_v54 = vsel %vm212_vm0, %v1031_v40, 0.0  ;;  %v289_v55 = vmul.f32 %v994_v13, %v994_v13  ;;  %v321_v56 = vsel %vm212_vm0, %v287_v42, 0.0  ;;  %v1055_v60 = vunpack.c.h.bf16 %v877_v44 }
  0x1d   : > { %v223_v26 = vadd.f32 %v222_v21, %v221_v22  ;;  %v320_v59 = vadd.f32 %v319_v50, %v318_v52  ;;  %v238_v61 = vsel %vm212_vm0, %v1037_v43, 0.0  ;;  %v290_v62 = vmul.f32 %v998_v16, %v998_v16 }
  0x1e   : > { %v323_v63 = vsel %vm212_vm0, %v288_v47, 0.0  ;;  %v1062_v5 = vunpack.c.l.bf16 %v878_v57  ;;  %v240_v8 = vsel %vm212_vm0, %v1047_v53, 0.0  ;;  %v291_v9 = vmul.f32 %v1003_v20, %v1003_v20 }
  0x1f   : > { %v225_v29 = vadd.f32 %v224_v24, %v223_v26  ;;  %v322_v1 = vadd.f32 %v321_v56, %v320_v59  ;;  %v325_v10 = vsel %vm212_vm0, %v289_v55, 0.0  ;;  %v1070_v15 = vunpack.c.h.bf16 %v878_v57 }
  0x20   : > { %v242_v17 = vsel %vm212_vm0, %v1055_v60, 0.0  ;;  %v292_v18 = vmul.f32 %v1007_v23, %v1007_v23  ;;  %v327_v19 = vsel %vm212_vm0, %v290_v62, 0.0  ;;  %v1077_v24 = vunpack.c.l.bf16 %v879_v11 }
  0x21   : > { %v227_v34 = vadd.f32 %v226_v28, %v225_v29  ;;  %v324_v14 = vadd.f32 %v323_v63, %v322_v1  ;;  %v244_v25 = vsel %vm212_vm0, %v1062_v5, 0.0  ;;  %v293_v26 = vmul.f32 %v1012_v27, %v1012_v27  ;;  %v880_v29 = vld [vmem:[%s972_s13 + $0x50] sm:$0xff]  }
  0x22   : > { %v329_v28 = vsel %vm212_vm0, %v291_v9, 0.0  ;;  %v294_v36 = vmul.f32 %v1016_v30, %v1016_v30  ;;  %v331_v37 = vsel %vm212_vm0, %v292_v18, 0.0  ;;  %v248_v42 = vsel %vm212_vm0, %v1077_v24, 0.0 }
  0x23   : > { %v229_v39 = vadd.f32 %v228_v31, %v227_v34  ;;  %v326_v22 = vadd.f32 %v325_v10, %v324_v14  ;;  %v1085_v34 = vunpack.c.h.bf16 %v879_v11  ;;  %v295_v44 = vmul.f32 %v1020_v32, %v1020_v32 }
  0x24   : > { %v1100_v49 = vunpack.c.h.bf16 %v880_v29  ;;  %v335_v52 = vsel %vm212_vm0, %v294_v36, 0.0 }
  0x25   : > { %v231_v45 = vadd.f32 %v230_v35, %v229_v39  ;;  %v328_v33 = vadd.f32 %v327_v19, %v326_v22  ;;  %v246_v35 = vsel %vm212_vm0, %v1070_v15, 0.0  ;;  %v250_v50 = vsel %vm212_vm0, %v1085_v34, 0.0  ;;  %v883_v19 = vld [vmem:[%s972_s13 + $0x68] sm:$0xff]  }
  0x26   : > { %v337_v59 = vsel %vm212_vm0, %v295_v44, 0.0  ;;  %v254_v1 = vsel %vm212_vm0, %v1100_v49, 0.0 }
  0x27   : > { %v233_v51 = vadd.f32 %v232_v41, %v231_v45  ;;  %v330_v39 = vadd.f32 %v329_v28, %v328_v33  ;;  %v1092_v41 = vunpack.c.l.bf16 %v880_v29  ;;  %v333_v45 = vsel %vm212_vm0, %v293_v26, 0.0 }
  0x28   : > { %v300_v28 = vmul.f32 %v1062_v5, %v1062_v5 }
  0x29   : > { %v235_v58 = vadd.f32 %v234_v46, %v233_v51  ;;  %v881_v46 = vld [vmem:[%s972_s13 + $0x58] sm:$0xff]   ;;  %v332_v48 = vadd.f32 %v331_v37, %v330_v39  ;;  %v296_v51 = vmul.f32 %v1031_v40, %v1031_v40  ;;  %v252_v57 = vsel %vm212_vm0, %v1092_v41, 0.0  ;;  %v884_v39 = vld [vmem:[%s972_s13 + $0x70] sm:$0xff]  }
  0x2a   : > { %v1107_v56 = vunpack.c.l.bf16 %v881_v46  ;;  %v301_v37 = vmul.f32 %v1070_v15, %v1070_v15 }
  0x2b   : > { %v237_v0 = vadd.f32 %v236_v54, %v235_v58  ;;  %v334_v55 = vadd.f32 %v333_v45, %v332_v48  ;;  %v297_v58 = vmul.f32 %v1037_v43, %v1037_v43  ;;  %v339_v9 = vsel %vm212_vm0, %v296_v51, 0.0 }
  0x2c   : > { %v256_v14 = vsel %vm212_vm0, %v1107_v56, 0.0  ;;  %v1145_v45 = vunpack.c.h.bf16 %v883_v19  ;;  %v347_v48 = vsel %vm212_vm0, %v300_v28, 0.0  ;;  %v306_v28 = vmul.f32 %v1107_v56, %v1107_v56 }
  0x2d   : > { %v239_v12 = vadd.f32 %v238_v61, %v237_v0  ;;  %v882_v61 = vld [vmem:[%s972_s13 + $0x60] sm:$0xff]   ;;  %v336_v63 = vadd.f32 %v335_v52, %v334_v55  ;;  %v1115_v0 = vunpack.c.h.bf16 %v881_v46  ;;  %v341_v18 = vsel %vm212_vm0, %v297_v58, 0.0  ;;  %v885_v58 = vld [vmem:[%s972_s13 + $0x78] sm:$0xff]  }
  0x2e   : > { %v1152_v52 = vunpack.c.l.bf16 %v884_v39  ;;  %v303_v55 = vmul.f32 %v1085_v34, %v1085_v34 }
  0x2f   : > { %v241_v21 = vadd.f32 %v240_v8, %v239_v12  ;;  %v298_v8 = vmul.f32 %v1047_v53, %v1047_v53  ;;  %v338_v11 = vadd.f32 %v337_v59, %v336_v63  ;;  %v1122_v12 = vunpack.c.l.bf16 %v882_v61 }
  0x30   : > { %v258_v26 = vsel %vm212_vm0, %v1115_v0, 0.0  ;;  %v266_v63 = vsel %vm212_vm0, %v1145_v45, 0.0 }
  0x31   : > { %v243_v31 = vadd.f32 %v242_v17, %v241_v21  ;;  %v299_v17 = vmul.f32 %v1055_v60, %v1055_v60  ;;  %v340_v22 = vadd.f32 %v339_v9, %v338_v11  ;;  %v343_v29 = vsel %vm212_vm0, %v298_v8, 0.0 }
  0x32   : > { %v260_v36 = vsel %vm212_vm0, %v1122_v12, 0.0  ;;  %v1167_v11 = vunpack.c.l.bf16 %v885_v58 }
  0x33   : > { %v245_v38 = vadd.f32 %v244_v25, %v243_v31  ;;  %v1130_v25 = vunpack.c.h.bf16 %v882_v61  ;;  %v342_v33 = vadd.f32 %v341_v18, %v340_v22  ;;  %v353_v18 = vsel %vm212_vm0, %v303_v55, 0.0 }
  0x34   : > { %v1174_v22 = vunpack.c.h.bf16 %v885_v58 }
  0x35   : > { %v247_v47 = vadd.f32 %v246_v35, %v245_v38  ;;  %v1137_v35 = vunpack.c.l.bf16 %v883_v19  ;;  %v345_v38 = vsel %vm212_vm0, %v299_v17, 0.0  ;;  %v344_v44 = vadd.f32 %v343_v29, %v342_v33 }
  0x36   : > { %v262_v46 = vsel %vm212_vm0, %v1130_v25, 0.0  ;;  %v305_v17 = vmul.f32 %v1100_v49, %v1100_v49 }
  0x37   : > { %v249_v54 = vadd.f32 %v248_v42, %v247_v47  ;;  %v302_v47 = vmul.f32 %v1077_v24, %v1077_v24  ;;  %v346_v51 = vadd.f32 %v345_v38, %v344_v44  ;;  %v274_v44 = vsel %vm212_vm0, %v1174_v22, 0.0 }
  0x38   : > { %v357_v38 = vsel %vm212_vm0, %v305_v17, 0.0  ;;  %v310_v58 = vmul.f32 %v1137_v35, %v1137_v35 }
  0x39   : > { %v251_v62 = vadd.f32 %v250_v50, %v249_v54  ;;  %v264_v54 = vsel %vm212_vm0, %v1137_v35, 0.0  ;;  %v348_v61 = vadd.f32 %v347_v48, %v346_v51  ;;  %v351_v8 = vsel %vm212_vm0, %v302_v47, 0.0 }
  0x3a   : > { %v359_v47 = vsel %vm212_vm0, %v306_v28, 0.0  ;;  %v309_v51 = vmul.f32 %v1130_v25, %v1130_v25  ;;  %v314_v28 = vmul.f32 %v1167_v11, %v1167_v11 }
  0x3b   : > { %v253_v10 = vadd.f32 %v252_v57, %v251_v62  ;;  %v349_v57 = vsel %vm212_vm0, %v301_v37, 0.0  ;;  %v1160_v62 = vunpack.c.h.bf16 %v884_v39  ;;  %v307_v37 = vmul.f32 %v1115_v0, %v1115_v0 }
  0x3d   : > { %v255_v21 = vadd.f32 %v254_v1, %v253_v10  ;;  %v304_v1 = vmul.f32 %v1092_v41, %v1092_v41  ;;  %v350_v10 = vadd.f32 %v349_v57, %v348_v61 }
  0x3f   : > { %v257_v31 = vadd.f32 %v256_v14, %v255_v21  ;;  %v268_v14 = vsel %vm212_vm0, %v1152_v52, 0.0  ;;  %v352_v21 = vadd.f32 %v351_v8, %v350_v10  ;;  %v355_v29 = vsel %vm212_vm0, %v304_v1, 0.0 }
  0x40   : > { %v311_v1 = vmul.f32 %v1145_v45, %v1145_v45  ;;  %v365_v8 = vsel %vm212_vm0, %v309_v51, 0.0  ;;  %v312_v10 = vmul.f32 %v1152_v52, %v1152_v52 }
  0x41   : > { %v259_v42 = vadd.f32 %v258_v26, %v257_v31  ;;  %v270_v26 = vsel %vm212_vm0, %v1160_v62, 0.0  ;;  %v354_v33 = vadd.f32 %v353_v18, %v352_v21 }
  0x42   : > { %v369_v21 = vsel %vm212_vm0, %v311_v1, 0.0 }
  0x43   : > { %v261_v50 = vadd.f32 %v260_v36, %v259_v42  ;;  %v272_v36 = vsel %vm212_vm0, %v1167_v11, 0.0  ;;  %v356_v42 = vadd.f32 %v355_v29, %v354_v33  ;;  %v371_v29 = vsel %vm212_vm0, %v312_v10, 0.0 }
  0x45   : > { %v263_v59 = vadd.f32 %v262_v46, %v261_v50  ;;  %v308_v46 = vmul.f32 %v1122_v12, %v1122_v12  ;;  %v358_v50 = vadd.f32 %v357_v38, %v356_v42 }
  0x47   : > { %v265_v9 = vadd.f32 %v264_v54, %v263_v59  ;;  %v361_v54 = vsel %vm212_vm0, %v307_v37, 0.0  ;;  %v360_v57 = vadd.f32 %v359_v47, %v358_v50  ;;  %v363_v59 = vsel %vm212_vm0, %v308_v46, 0.0 }
  0x49   : > { %v267_v19 = vadd.f32 %v266_v63, %v265_v9  ;;  %v362_v63 = vadd.f32 %v361_v54, %v360_v57 }
  0x4b   : > { %v269_v31 = vadd.f32 %v268_v14, %v267_v19  ;;  %v364_v9 = vadd.f32 %v363_v59, %v362_v63  ;;  %v367_v14 = vsel %vm212_vm0, %v310_v58, 0.0  ;;  %v313_v19 = vmul.f32 %v1160_v62, %v1160_v62 }
  0x4d   : > { %v271_v39 = vadd.f32 %v270_v26, %v269_v31  ;;  %v366_v18 = vadd.f32 %v365_v8, %v364_v9  ;;  %v373_v37 = vsel %vm212_vm0, %v313_v19, 0.0 }
  0x4f   : > { %v273_v48 = vadd.f32 %v272_v36, %v271_v39  ;;  %v368_v26 = vadd.f32 %v367_v14, %v366_v18  ;;  %v315_v36 = vmul.f32 %v1174_v22, %v1174_v22  ;;  %v375_v39 = vsel %vm212_vm0, %v314_v28, 0.0 }
  0x51   : > { %v275_v55 = vadd.f32 %v274_v44, %v273_v48  ;;  %v370_v33 = vadd.f32 %v369_v21, %v368_v26  ;;  %v377_v46 = vsel %vm212_vm0, %v315_v36, 0.0 }
  0x53   : > { %v276_v61 = vrot.slane %v275_v55, 4  ;;  %v372_v38 = vadd.f32 %v371_v29, %v370_v33 }
  0x55   : > { %v277_v17 = vadd.f32 %v276_v61, %v275_v55  ;;  %v374_v44 = vadd.f32 %v373_v37, %v372_v38 }
  0x57   : > { %v278_v31 = vrot.slane %v277_v17, 2  ;;  %v376_v47 = vadd.f32 %v375_v39, %v374_v44 }
  0x59   : > { %v279_v42 = vadd.f32 %v278_v31, %v277_v17  ;;  %v378_v50 = vadd.f32 %v377_v46, %v376_v47 }
  0x5b   : > { %v280_v48 = vrot.slane %v279_v42, 1  ;;  %v379_v51 = vrot.slane %v378_v50, 4 }
  0x5d   : > { %v281_v54 = vadd.f32 %v280_v48, %v279_v42  ;;  %v380_v55 = vadd.f32 %v379_v51, %v378_v50 }
  0x5f   : > { %v381_v57 = vrot.slane %v380_v55, 2  ;;  %v1214_v58 = vmul.f32 0.00390625, %v281_v54 }
  0x61   : > { %v382_v59 = vadd.f32 %v381_v57, %v380_v55  ;;  %v386_v1 = vmul.f32 %v1214_v58, %v1214_v58  ;;  %v388_v14 = vsub.f32 %v976_v2, %v1214_v58  ;;  %v389_v17 = vsub.f32 %v978_v3, %v1214_v58 }
  0x62   : > { %v390_v18 = vsub.f32 %v980_v4, %v1214_v58  ;;  %v391_v19 = vsub.f32 %v983_v6, %v1214_v58  ;;  %v392_v21 = vsub.f32 %v985_v7, %v1214_v58  ;;  %v393_v26 = vsub.f32 %v994_v13, %v1214_v58 }
  0x63   : > { %v383_v61 = vrot.slane %v382_v59, 1  ;;  %v394_v28 = vsub.f32 %v998_v16, %v1214_v58  ;;  %v395_v2 = vsub.f32 %v1003_v20, %v1214_v58  ;;  %v396_v3 = vsub.f32 %v1007_v23, %v1214_v58 }
  0x64   : > { %v397_v4 = vsub.f32 %v1012_v27, %v1214_v58  ;;  %v398_v6 = vsub.f32 %v1016_v30, %v1214_v58  ;;  %v399_v7 = vsub.f32 %v1020_v32, %v1214_v58  ;;  %v400_v13 = vsub.f32 %v1031_v40, %v1214_v58 }
  0x65   : > { %v384_v63 = vadd.f32 %v383_v61, %v382_v59  ;;  %v401_v16 = vsub.f32 %v1037_v43, %v1214_v58  ;;  %v402_v20 = vsub.f32 %v1047_v53, %v1214_v58  ;;  %v403_v23 = vsub.f32 %v1055_v60, %v1214_v58 }
  0x66   : > { %v404_v27 = vsub.f32 %v1062_v5, %v1214_v58  ;;  %v405_v30 = vsub.f32 %v1070_v15, %v1214_v58  ;;  %v406_v32 = vsub.f32 %v1077_v24, %v1214_v58  ;;  %v407_v40 = vsub.f32 %v1085_v34, %v1214_v58 }
  0x67   : > { %v385_v8 = vmul.f32 0.00390625, %v384_v63  ;;  %v408_v43 = vsub.f32 %v1092_v41, %v1214_v58  ;;  %v409_v53 = vsub.f32 %v1100_v49, %v1214_v58  ;;  %v410_v60 = vsub.f32 %v1107_v56, %v1214_v58 }
  0x68   : > { %v411_v29 = vsub.f32 %v1115_v0, %v1214_v58  ;;  %v412_v31 = vsub.f32 %v1122_v12, %v1214_v58  ;;  %v413_v33 = vsub.f32 %v1130_v25, %v1214_v58  ;;  %v414_v36 = vsub.f32 %v1137_v35, %v1214_v58 }
  0x69   : > { %v387_v9 = vsub.f32 %v385_v8, %v386_v1  ;;  %v415_v37 = vsub.f32 %v1145_v45, %v1214_v58  ;;  %v416_v39 = vsub.f32 %v1152_v52, %v1214_v58  ;;  %v417_v42 = vsub.f32 %v1160_v62, %v1214_v58 }
  0x6a   : > { %v418_v44 = vsub.f32 %v1167_v11, %v1214_v58  ;;  %v419_v46 = vsub.f32 %v1174_v22, %v1214_v58 }
  0x6b   : > { %v420_v10 = vadd.f32 1e-05, %v387_v9 }
  0x6d   : > { %910 = vrsqrt.f32 %v420_v10 }
  0x77   : > { %v1274_v38 = vpop.eup %910 }
  0x78   : > { %v422_v47 = vmul.f32 %v1274_v38, %v388_v14  ;;  %v423_v48 = vmul.f32 %v1274_v38, %v389_v17  ;;  %v424_v50 = vmul.f32 %v1274_v38, %v390_v18  ;;  %v425_v51 = vmul.f32 %v1274_v38, %v391_v19 }
  0x79   : > { %v426_v54 = vmul.f32 %v1274_v38, %v392_v21  ;;  %v427_v55 = vmul.f32 %v1274_v38, %v393_v26  ;;  %v428_v57 = vmul.f32 %v1274_v38, %v394_v28  ;;  %v429_v59 = vmul.f32 %v1274_v38, %v395_v2 }
  0x7a   : > { %v454_v61 = vmax.f32 %v422_v47, 0.0  ;;  %v455_v63 = vmax.f32 %v423_v48, 0.0  ;;  %v456_v1 = vmax.f32 %v424_v50, 0.0  ;;  %v457_v8 = vmax.f32 %v425_v51, 0.0 }
  0x7b   : > { %v458_v9 = vmax.f32 %v426_v54, 0.0  ;;  %v459_v10 = vmax.f32 %v427_v55, 0.0  ;;  %v460_v14 = vmax.f32 %v428_v57, 0.0  ;;  %v461_v17 = vmax.f32 %v429_v59, 0.0 }
  0x7c   : > { %v775_v18 = vpack.c.bf16 %v454_v61, %v454_v61  ;;  %v776_v19 = vpack.c.bf16 %v455_v63, %v455_v63  ;;  %v777_v21 = vpack.c.bf16 %v456_v1, %v456_v1  ;;  %v778_v26 = vpack.c.bf16 %v457_v8, %v457_v8 }
  0x7d   : > { %v779_v28 = vpack.c.bf16 %v458_v9, %v458_v9  ;;  %v780_v2 = vpack.c.bf16 %v459_v10, %v459_v10  ;;  %v781_v47 = vpack.c.bf16 %v460_v14, %v460_v14  ;;  %v782_v48 = vpack.c.bf16 %v461_v17, %v461_v17 }
  0x7e   : > { %615 = vst.msk [vmem:[%s1297_s16] sm:$0xf] %vm614_vm1, %v775_v18  ;;  %616 = vst.msk [vmem:[%s1297_s16 + $0x4] sm:$0xf] %vm614_vm1, %v776_v19  ;;  %v430_v50 = vmul.f32 %v1274_v38, %v396_v3  ;;  %v431_v51 = vmul.f32 %v1274_v38, %v397_v4  ;;  %v432_v54 = vmul.f32 %v1274_v38, %v398_v6 }
  0x7f   : > { %617 = vst.msk [vmem:[%s1297_s16 + $0x8] sm:$0xf] %vm614_vm1, %v777_v21  ;;  %618 = vst.msk [vmem:[%s1297_s16 + $0xc] sm:$0xf] %vm614_vm1, %v778_v26  ;;  %v433_v55 = vmul.f32 %v1274_v38, %v399_v7  ;;  %v434_v57 = vmul.f32 %v1274_v38, %v400_v13  ;;  %v435_v59 = vmul.f32 %v1274_v38, %v401_v16 }
  0x80   : > { %619 = vst.msk [vmem:[%s1297_s16 + $0x10] sm:$0xf] %vm614_vm1, %v779_v28  ;;  %620 = vst.msk [vmem:[%s1297_s16 + $0x14] sm:$0xf] %vm614_vm1, %v780_v2  ;;  %v436_v3 = vmul.f32 %v1274_v38, %v402_v20  ;;  %v437_v4 = vmul.f32 %v1274_v38, %v403_v23  ;;  %v462_v61 = vmax.f32 %v430_v50, 0.0  ;;  %v463_v6 = vmax.f32 %v431_v51, 0.0 }
  0x81   : > { %621 = vst.msk [vmem:[%s1297_s16 + $0x18] sm:$0xf] %vm614_vm1, %v781_v47  ;;  %622 = vst.msk [vmem:[%s1297_s16 + $0x1c] sm:$0xf] %vm614_vm1, %v782_v48  ;;  %v464_v7 = vmax.f32 %v432_v54, 0.0  ;;  %v465_v63 = vmax.f32 %v433_v55, 0.0  ;;  %v438_v21 = vmul.f32 %v1274_v38, %v404_v27  ;;  %v439_v26 = vmul.f32 %v1274_v38, %v405_v30 }
  0x82   : > { %v466_v1 = vmax.f32 %v434_v57, 0.0  ;;  %v467_v8 = vmax.f32 %v435_v59, 0.0  ;;  %v468_v9 = vmax.f32 %v436_v3, 0.0  ;;  %v469_v10 = vmax.f32 %v437_v4, 0.0 }
  0x83   : > { %v783_v14 = vpack.c.bf16 %v462_v61, %v462_v61  ;;  %v784_v13 = vpack.c.bf16 %v463_v6, %v463_v6  ;;  %v785_v16 = vpack.c.bf16 %v464_v7, %v464_v7  ;;  %v786_v20 = vpack.c.bf16 %v465_v63, %v465_v63 }
  0x84   : > { %v787_v23 = vpack.c.bf16 %v466_v1, %v466_v1  ;;  %v788_v17 = vpack.c.bf16 %v467_v8, %v467_v8  ;;  %v789_v18 = vpack.c.bf16 %v468_v9, %v468_v9  ;;  %v790_v19 = vpack.c.bf16 %v469_v10, %v469_v10 }
  0x85   : > { %623 = vst.msk [vmem:[%s1297_s16 + $0x20] sm:$0xf] %vm614_vm1, %v783_v14  ;;  %624 = vst.msk [vmem:[%s1297_s16 + $0x24] sm:$0xf] %vm614_vm1, %v784_v13  ;;  %v440_v28 = vmul.f32 %v1274_v38, %v406_v32  ;;  %v441_v2 = vmul.f32 %v1274_v38, %v407_v40  ;;  %v442_v5 = vmul.f32 %v1274_v38, %v408_v43  ;;  %v470_v27 = vmax.f32 %v438_v21, 0.0 }
  0x86   : > { %625 = vst.msk [vmem:[%s1297_s16 + $0x28] sm:$0xf] %vm614_vm1, %v785_v16  ;;  %626 = vst.msk [vmem:[%s1297_s16 + $0x2c] sm:$0xf] %vm614_vm1, %v786_v20  ;;  %v443_v15 = vmul.f32 %v1274_v38, %v409_v53  ;;  %v444_v24 = vmul.f32 %v1274_v38, %v410_v60  ;;  %v445_v34 = vmul.f32 %v1274_v38, %v411_v29  ;;  %v471_v41 = vmax.f32 %v439_v26, 0.0 }
  0x87   : > { %627 = vst.msk [vmem:[%s1297_s16 + $0x30] sm:$0xf] %vm614_vm1, %v787_v23  ;;  %628 = vst.msk [vmem:[%s1297_s16 + $0x34] sm:$0xf] %vm614_vm1, %v788_v17  ;;  %v472_v30 = vmax.f32 %v440_v28, 0.0  ;;  %v473_v32 = vmax.f32 %v441_v2, 0.0  ;;  %v791_v56 = vpack.c.bf16 %v470_v27, %v470_v27  ;;  %v446_v54 = vmul.f32 %v1274_v38, %v412_v31 }
  0x88   : > { %629 = vst.msk [vmem:[%s1297_s16 + $0x38] sm:$0xf] %vm614_vm1, %v789_v18  ;;  %630 = vst.msk [vmem:[%s1297_s16 + $0x3c] sm:$0xf] %vm614_vm1, %v790_v19  ;;  %v474_v49 = vmax.f32 %v442_v5, 0.0  ;;  %v475_v40 = vmax.f32 %v443_v15, 0.0  ;;  %v792_v60 = vpack.c.bf16 %v471_v41, %v471_v41  ;;  %v447_v55 = vmul.f32 %v1274_v38, %v413_v33 }
  0x89   : > { %v476_v43 = vmax.f32 %v444_v24, 0.0  ;;  %v477_v53 = vmax.f32 %v445_v34, 0.0  ;;  %v793_v47 = vpack.c.bf16 %v472_v30, %v472_v30  ;;  %v794_v0 = vpack.c.bf16 %v473_v32, %v473_v32  ;;  %631 = vst.msk [vmem:[%s1297_s16 + $0x40] sm:$0xf] %vm614_vm1, %v791_v56 }
  0x8a   : > { %v795_v29 = vpack.c.bf16 %v474_v49, %v474_v49  ;;  %v796_v48 = vpack.c.bf16 %v475_v40, %v475_v40  ;;  %632 = vst.msk [vmem:[%s1297_s16 + $0x44] sm:$0xf] %vm614_vm1, %v792_v60  ;;  %v448_v57 = vmul.f32 %v1274_v38, %v414_v36  ;;  %v449_v59 = vmul.f32 %v1274_v38, %v415_v37 }
  0x8b   : > { %v797_v50 = vpack.c.bf16 %v476_v43, %v476_v43  ;;  %v798_v51 = vpack.c.bf16 %v477_v53, %v477_v53  ;;  %633 = vst.msk [vmem:[%s1297_s16 + $0x48] sm:$0xf] %vm614_vm1, %v793_v47  ;;  %634 = vst.msk [vmem:[%s1297_s16 + $0x4c] sm:$0xf] %vm614_vm1, %v794_v0  ;;  %v450_v12 = vmul.f32 %v1274_v38, %v416_v39  ;;  %v478_v31 = vmax.f32 %v446_v54, 0.0 }
  0x8c   : > { %635 = vst.msk [vmem:[%s1297_s16 + $0x50] sm:$0xf] %vm614_vm1, %v795_v29  ;;  %636 = vst.msk [vmem:[%s1297_s16 + $0x54] sm:$0xf] %vm614_vm1, %v796_v48  ;;  %v451_v25 = vmul.f32 %v1274_v38, %v417_v42  ;;  %v452_v35 = vmul.f32 %v1274_v38, %v418_v44  ;;  %v453_v45 = vmul.f32 %v1274_v38, %v419_v46  ;;  %v479_v52 = vmax.f32 %v447_v55, 0.0 }
  0x8d   : > { %637 = vst.msk [vmem:[%s1297_s16 + $0x58] sm:$0xf] %vm614_vm1, %v797_v50  ;;  %638 = vst.msk [vmem:[%s1297_s16 + $0x5c] sm:$0xf] %vm614_vm1, %v798_v51  ;;  %v480_v33 = vmax.f32 %v448_v57, 0.0  ;;  %v481_v36 = vmax.f32 %v449_v59, 0.0  ;;  %v799_v42 = vpack.c.bf16 %v478_v31, %v478_v31 }
  0x8e   : > { %v482_v62 = vmax.f32 %v450_v12, 0.0  ;;  %v483_v37 = vmax.f32 %v451_v25, 0.0  ;;  %v484_v11 = vmax.f32 %v452_v35, 0.0  ;;  %v485_v39 = vmax.f32 %v453_v45, 0.0 }
  0x8f   : > { %v800_v22 = vpack.c.bf16 %v479_v52, %v479_v52  ;;  %v801_v58 = vpack.c.bf16 %v480_v33, %v480_v33  ;;  %v802_v38 = vpack.c.bf16 %v481_v36, %v481_v36  ;;  %639 = vst.msk [vmem:[%s1297_s16 + $0x60] sm:$0xf] %vm614_vm1, %v799_v42 }
  0x90   : > { %v803_v44 = vpack.c.bf16 %v482_v62, %v482_v62  ;;  %v804_v46 = vpack.c.bf16 %v483_v37, %v483_v37  ;;  %v805_v3 = vpack.c.bf16 %v484_v11, %v484_v11  ;;  %v806_v4 = vpack.c.bf16 %v485_v39, %v485_v39 }
  0x91   : > { %640 = vst.msk [vmem:[%s1297_s16 + $0x64] sm:$0xf] %vm614_vm1, %v800_v22  ;;  %641 = vst.msk [vmem:[%s1297_s16 + $0x68] sm:$0xf] %vm614_vm1, %v801_v58 }
  0x92   : > { %642 = vst.msk [vmem:[%s1297_s16 + $0x6c] sm:$0xf] %vm614_vm1, %v802_v38  ;;  %643 = vst.msk [vmem:[%s1297_s16 + $0x70] sm:$0xf] %vm614_vm1, %v803_v44 }
  0x93   : > { %644 = vst.msk [vmem:[%s1297_s16 + $0x74] sm:$0xf] %vm614_vm1, %v804_v46  ;;  %645 = vst.msk [vmem:[%s1297_s16 + $0x78] sm:$0xf] %vm614_vm1, %v805_v3 }
  0x94   : > { %646 = vst.msk [vmem:[%s1297_s16 + $0x7c] sm:$0xf] %vm614_vm1, %v806_v4 }
  0x95 PF: > { %s11_s8 = sadd.s32 1, %s934_s8   ;;  %s1446_s6 = smov %s930_s7 }
  0x96   : > { %p8_p5 = scmp.ge.s32.totalorder %s11_s8, 4   ;;  %s1447_s7 = smov %s1449_s9 }
  0x98   :  { %10 = sbr.rel (!%p8_p5) target bundleno = 2 (0x2), region = 54 }

// kernel: generator_forward.25
= control target key start
LH: loop header
LB: loop body
LE: loop exit
PB: predicated region body
PF: predicated region fallthrough
CT: control target
= control target key end

     0   :  { %s1613_s9 = smov 0   ;;  %s1615_s10 = smov 0   ;;  %s1750_s0 = inlined_call_operand.vmem [shape: bf16[512,256], index: 0, kind: input, shape index: {}]   ;;  %s1751_s1 = inlined_call_operand.vmem [shape: bf16[256,128], index: 1, kind: input, shape index: {}]   ;;  %s1752_s2 = inlined_call_operand.vmem [shape: bf16[512,128], index: 2, kind: output, shape index: {}]  }
   0x1   :  { %s1617_s11 = smov 0  }
   0x2 LB: > { %s31_s12 = sadd.s32 1, %s1592_s10  ;;  %p1142_p0 = scmp.ge.s32.totalorder %s1596_s11, 1  ;;  %s1596_s11 = sphi %s1617_s11, %s12_s11   ;;  %s1592_s10 = sphi %s1615_s10, %s1754_s10   ;;  %s1588_s9 = sphi %s1613_s9, %s1753_s9  }
   0x3   : > { %p33_p1 = scmp.ge.s32.totalorder %s31_s12, 2  ;;  %p158_p2 = scmp.lt.s32.totalorder %s1596_s11, 3 }
   0x5   : > { %s1756_s12 = smov (%p33_p1, %s31_s12), 0  ;;  %p159_p3 = pnand %p1142_p0, %p158_p2 }
   0x6   : > { %v1510_v0 = vld [vmem:[%s1751_s1 + $0x40] sm:$0xff] (!%p159_p3)   ;;  %s1143_s15 = sshll.u32 (!%p159_p3), %s1588_s9, 5  ;;  %v1512_v2 = vld [vmem:[%s1751_s1 + $0x48] sm:$0xff] (!%p159_p3)   ;;  %v1514_v4 = vld [vmem:[%s1751_s1 + $0x50] sm:$0xff] (!%p159_p3)  }
   0x7   : > { %162 = sbr.rel (%p159_p3) target bundleno = 315 (0x13b), region = 28  ;;  %v1511_v1 = vld [vmem:[%s1751_s1] sm:$0xff] (!%p159_p3)   ;;  %1358 = vmatprep.subr.bf16.mxu0 (!%p159_p3), %v1510_v0  ;;  %1470 = vmatprep.subr.bf16.mxu1 (!%p159_p3), %v1510_v0  ;;  %v1513_v3 = vld [vmem:[%s1751_s1 + $0x8] sm:$0xff] (!%p159_p3)   ;;  %p198_p4 = scmp.lt.s32.totalorder (!%p159_p3), %s1143_s15, 63  ;;  %v1515_v5 = vld [vmem:[%s1751_s1 + $0x10] sm:$0xff] (!%p159_p3)  }
   0x8   : > { %1359 = vmatpush3.bf16.msra.mxu0 (!%p159_p3), %v1511_v1  ;;  %1478 = vmatpush3.bf16.msra.mxu1 (!%p159_p3), %v1511_v1  ;;  %v1516_v6 = vld [vmem:[%s1751_s1 + $0x58] sm:$0xff] (!%p159_p3)   ;;  %v1518_v8 = vld [vmem:[%s1751_s1 + $0x60] sm:$0xff] (!%p159_p3)   ;;  %v1520_v10 = vld [vmem:[%s1751_s1 + $0x68] sm:$0xff] (!%p159_p3)  }
   0x9   : > { %1360 = vmatprep.subr.bf16.mxu0 (!%p159_p3), %v1512_v2  ;;  %1471 = vmatprep.subr.bf16.mxu1 (!%p159_p3), %v1512_v2  ;;  %v1517_v7 = vld [vmem:[%s1751_s1 + $0x18] sm:$0xff] (!%p159_p3)   ;;  %v1519_v9 = vld [vmem:[%s1751_s1 + $0x20] sm:$0xff] (!%p159_p3)   ;;  %v1521_v13 = vld [vmem:[%s1751_s1 + $0x28] sm:$0xff] (!%p159_p3)  }
   0xa   : > { %v1522_v14 = vld [vmem:[%s1751_s1 + $0x70] sm:$0xff] (!%p159_p3)   ;;  %v1524_v16 = vld [vmem:[%s1751_s1 + $0x78] sm:$0xff] (!%p159_p3)  }
   0xb   : > { %v1523_v15 = vld [vmem:[%s1751_s1 + $0x30] sm:$0xff] (!%p159_p3)   ;;  %v1525_v17 = vld [vmem:[%s1751_s1 + $0x38] sm:$0xff] (!%p159_p3)  }
   0xc   : > { %1361 = vmatpush3.bf16.msra.mxu0 (!%p159_p3), %v1513_v3  ;;  %1479 = vmatpush3.bf16.msra.mxu1 (!%p159_p3), %v1513_v3 }
   0xd   : > { %1362 = vmatprep.subr.bf16.mxu0 (!%p159_p3), %v1514_v4  ;;  %1472 = vmatprep.subr.bf16.mxu1 (!%p159_p3), %v1514_v4 }
   0xe   : > { %s1758_s15 = smov (!%p198_p4, %s1143_s15), 63 }
   0xf   : > { %s1230_s30 = sshll.u32 %s1758_s15, 3  ;;  %s1147_s26 = sshll.u32 %s1758_s15, 2 }
  0x10   : > { %1363 = vmatpush3.bf16.msra.mxu0 %v1515_v5  ;;  %1480 = vmatpush3.bf16.msra.mxu1 %v1515_v5  ;;  %s1664_s7 = scalar_lea.vmem %s1750_s0, %s1230_s30  ;;  %s1723_s29 = scalar_lea.vmem %s1752_s2, %s1147_s26 }
  0x11   : > { %1364 = vmatprep.subr.bf16.mxu0 %v1516_v6  ;;  %1473 = vmatprep.subr.bf16.mxu1 %v1516_v6  ;;  %v1528_v11 = vld [vmem:[%s1664_s7 + $0x4] ss:$8 sps:$4 sm:$0xff]   ;;  %v1526_v18 = vld [vmem:[%s1664_s7] ss:$8 sps:$4 sm:$0xff]   ;;  %v1532_v20 = vld [vmem:[%s1664_s7 + $0x14] ss:$8 sps:$4 sm:$0xff]  }
  0x12   : > { %v1531_v12 = vld [vmem:[%s1664_s7 + $0x84] ss:$8 sps:$4 sm:$0xff]   ;;  %647 = vmatprep.mubr.bf16.mxu0 %v1528_v11  ;;  %v1529_v19 = vld [vmem:[%s1664_s7 + $0x80] ss:$8 sps:$4 sm:$0xff]   ;;  %v1534_v21 = vld [vmem:[%s1664_s7 + $0x94] ss:$8 sps:$4 sm:$0xff]  }
  0x13   : > { %711 = vmatprep.mubr.bf16.mxu1 %v1531_v12  ;;  %v1536_v22 = vld [vmem:[%s1664_s7 + $0x10] ss:$8 sps:$4 sm:$0xff]   ;;  %v1538_v24 = vld [vmem:[%s1664_s7 + $0x24] ss:$8 sps:$4 sm:$0xff]   ;;  %v1542_v26 = vld [vmem:[%s1664_s7 + $0x20] ss:$8 sps:$4 sm:$0xff]  }
  0x14   : > { %1365 = vmatpush3.bf16.msra.mxu0 %v1517_v7  ;;  %1481 = vmatpush3.bf16.msra.mxu1 %v1517_v7  ;;  %v1537_v23 = vld [vmem:[%s1664_s7 + $0x90] ss:$8 sps:$4 sm:$0xff]   ;;  %v1540_v25 = vld [vmem:[%s1664_s7 + $0xa4] ss:$8 sps:$4 sm:$0xff]   ;;  %v1543_v27 = vld [vmem:[%s1664_s7 + $0xa0] ss:$8 sps:$4 sm:$0xff]  }
  0x15   : > { %1366 = vmatprep.subr.bf16.mxu0 %v1518_v8  ;;  %1474 = vmatprep.subr.bf16.mxu1 %v1518_v8  ;;  %v1544_v28 = vld [vmem:[%s1664_s7 + $0x34] ss:$8 sps:$4 sm:$0xff]   ;;  %v1548_v30 = vld [vmem:[%s1664_s7 + $0x30] ss:$8 sps:$4 sm:$0xff]   ;;  %v1550_v32 = vld [vmem:[%s1664_s7 + $0x44] ss:$8 sps:$4 sm:$0xff]  }
  0x16   : > { %v1546_v29 = vld [vmem:[%s1664_s7 + $0xb4] ss:$8 sps:$4 sm:$0xff]   ;;  %v1549_v31 = vld [vmem:[%s1664_s7 + $0xb0] ss:$8 sps:$4 sm:$0xff]   ;;  %v1552_v33 = vld [vmem:[%s1664_s7 + $0xc4] ss:$8 sps:$4 sm:$0xff]  }
  0x17   : > { %v1554_v34 = vld [vmem:[%s1664_s7 + $0x40] ss:$8 sps:$4 sm:$0xff]   ;;  %v1556_v36 = vld [vmem:[%s1664_s7 + $0x54] ss:$8 sps:$4 sm:$0xff]   ;;  %v1560_v38 = vld [vmem:[%s1664_s7 + $0x50] ss:$8 sps:$4 sm:$0xff]  }
  0x18   : > { %1367 = vmatpush3.bf16.msra.mxu0 %v1519_v9  ;;  %1482 = vmatpush3.bf16.msra.mxu1 %v1519_v9  ;;  %v1555_v35 = vld [vmem:[%s1664_s7 + $0xc0] ss:$8 sps:$4 sm:$0xff]   ;;  %v1558_v37 = vld [vmem:[%s1664_s7 + $0xd4] ss:$8 sps:$4 sm:$0xff]   ;;  %v1561_v39 = vld [vmem:[%s1664_s7 + $0xd0] ss:$8 sps:$4 sm:$0xff]  }
  0x19   : > { %1368 = vmatprep.subr.bf16.mxu0 %v1520_v10  ;;  %1475 = vmatprep.subr.bf16.mxu1 %v1520_v10  ;;  %v1562_v40 = vld [vmem:[%s1664_s7 + $0x64] ss:$8 sps:$4 sm:$0xff]   ;;  %v1566_v42 = vld [vmem:[%s1664_s7 + $0x60] ss:$8 sps:$4 sm:$0xff]   ;;  %v1568_v44 = vld [vmem:[%s1664_s7 + $0x74] ss:$8 sps:$4 sm:$0xff]  }
  0x1a   : > { %v1564_v41 = vld [vmem:[%s1664_s7 + $0xe4] ss:$8 sps:$4 sm:$0xff]   ;;  %v1567_v43 = vld [vmem:[%s1664_s7 + $0xe0] ss:$8 sps:$4 sm:$0xff]   ;;  %v1570_v45 = vld [vmem:[%s1664_s7 + $0xf4] ss:$8 sps:$4 sm:$0xff]  }
  0x1b   : > { %v1572_v46 = vld [vmem:[%s1664_s7 + $0x70] ss:$8 sps:$4 sm:$0xff]  }
  0x1c   : > { %1369 = vmatpush3.bf16.msra.mxu0 %v1521_v13  ;;  %1483 = vmatpush3.bf16.msra.mxu1 %v1521_v13  ;;  %v1573_v47 = vld [vmem:[%s1664_s7 + $0xf0] ss:$8 sps:$4 sm:$0xff]  }
  0x1d   : > { %1370 = vmatprep.subr.bf16.mxu0 %v1522_v14  ;;  %1476 = vmatprep.subr.bf16.mxu1 %v1522_v14 }
  0x20   : > { %1371 = vmatpush3.bf16.msra.mxu0 %v1523_v15  ;;  %1484 = vmatpush3.bf16.msra.mxu1 %v1523_v15 }
  0x21   : > { %1372 = vmatprep.subr.bf16.mxu0 %v1524_v16  ;;  %1477 = vmatprep.subr.bf16.mxu1 %v1524_v16 }
  0x24   : > { %1373 = vmatpush3.bf16.msra.mxu0 %v1525_v17  ;;  %1485 = vmatpush3.bf16.msra.mxu1 %v1525_v17 }
  0x27   : > { %648 = vmatmul.mubr.bf16.vlgmr.msra.gmra.mrb[0].mxu0 %v1526_v18  ;;  %712 = vmatmul.mubr.bf16.vlgmr.msra.gmra.mrb[0].mxu1 %v1529_v19 }
  0x28   : > { %655 = vmatprep.mubr.bf16.mxu0 %v1532_v20  ;;  %719 = vmatprep.mubr.bf16.mxu1 %v1534_v21 }
  0x2f   : > { %656 = vmatmul.mubr.bf16.gmra.mrb[4].mxu0 %v1536_v22  ;;  %720 = vmatmul.mubr.bf16.gmra.mrb[4].mxu1 %v1537_v23 }
  0x30   : > { %663 = vmatprep.mubr.bf16.mxu0 %v1538_v24  ;;  %727 = vmatprep.mubr.bf16.mxu1 %v1540_v25 }
  0x37   : > { %664 = vmatmul.mubr.bf16.gmra.mrb[8].mxu0 %v1542_v26  ;;  %728 = vmatmul.mubr.bf16.gmra.mrb[8].mxu1 %v1543_v27 }
  0x38   : > { %671 = vmatprep.mubr.bf16.mxu0 %v1544_v28  ;;  %735 = vmatprep.mubr.bf16.mxu1 %v1546_v29 }
  0x3f   : > { %672 = vmatmul.mubr.bf16.gmra.mrb[12].mxu0 %v1548_v30  ;;  %736 = vmatmul.mubr.bf16.gmra.mrb[12].mxu1 %v1549_v31 }
  0x40   : > { %679 = vmatprep.mubr.bf16.mxu0 %v1550_v32  ;;  %743 = vmatprep.mubr.bf16.mxu1 %v1552_v33 }
  0x47   : > { %680 = vmatmul.mubr.bf16.gmra.mrb[16].mxu0 %v1554_v34  ;;  %744 = vmatmul.mubr.bf16.gmra.mrb[16].mxu1 %v1555_v35 }
  0x48   : > { %687 = vmatprep.mubr.bf16.mxu0 %v1556_v36  ;;  %751 = vmatprep.mubr.bf16.mxu1 %v1558_v37 }
  0x4f   : > { %688 = vmatmul.mubr.bf16.gmra.mrb[20].mxu0 %v1560_v38  ;;  %752 = vmatmul.mubr.bf16.gmra.mrb[20].mxu1 %v1561_v39 }
  0x50   : > { %695 = vmatprep.mubr.bf16.mxu0 %v1562_v40  ;;  %759 = vmatprep.mubr.bf16.mxu1 %v1564_v41 }
  0x57   : > { %696 = vmatmul.mubr.bf16.gmra.mrb[24].mxu0 %v1566_v42  ;;  %760 = vmatmul.mubr.bf16.gmra.mrb[24].mxu1 %v1567_v43 }
  0x58   : > { %703 = vmatprep.mubr.bf16.mxu0 %v1568_v44  ;;  %767 = vmatprep.mubr.bf16.mxu1 %v1570_v45 }
  0x5f   : > { %704 = vmatmul.mubr.bf16.gmra.mrb[28].mxu0 %v1572_v46  ;;  %768 = vmatmul.mubr.bf16.gmra.mrb[28].mxu1 %v1573_v47 }
  0xfa   : > { %v1374_v48 = vpop.f32.mrb[0].mxu0  ;;  %v1422_v49 = vpop.f32.mrb[0].mxu1 }
  0xfb   : > { %v1375_v50 = vpop.f32.mrb[1].mxu0  ;;  %v1423_v51 = vpop.f32.mrb[1].mxu1 }
  0xfc   : > { %v1376_v52 = vadd.f32 %v1375_v50, %v1374_v48  ;;  %v1424_v53 = vadd.f32 %v1423_v51, %v1422_v49  ;;  %v1377_v54 = vpop.f32.mrb[2].mxu0  ;;  %v1425_v55 = vpop.f32.mrb[2].mxu1 }
  0xfd   : > { %v1378_v56 = vpop.f32.mrb[3].mxu0  ;;  %v1426_v57 = vpop.f32.mrb[3].mxu1 }
  0xfe   : > { %v1379_v58 = vadd.f32 %v1378_v56, %v1377_v54  ;;  %v1427_v59 = vadd.f32 %v1426_v57, %v1425_v55 }
 0x100   : > { %v1266_v60 = vpack.c.bf16 %v1379_v58, %v1376_v52  ;;  %v1306_v61 = vpack.c.bf16 %v1427_v59, %v1424_v53 }
 0x102   : > { %1267 = vst [vmem:[%s1723_s29] sm:$0xff] %v1266_v60   ;;  %1350 = vst [vmem:[%s1723_s29 + $0x40] sm:$0xff] %v1306_v61   ;;  %v1380_v62 = vpop.f32.mrb[4].mxu0  ;;  %v1428_v63 = vpop.f32.mrb[4].mxu1 }
 0x103   : > { %v1381_v0 = vpop.f32.mrb[5].mxu0  ;;  %v1429_v1 = vpop.f32.mrb[5].mxu1 }
 0x104   : > { %v1382_v2 = vadd.f32 %v1381_v0, %v1380_v62  ;;  %v1430_v3 = vadd.f32 %v1429_v1, %v1428_v63  ;;  %v1383_v4 = vpop.f32.mrb[6].mxu0  ;;  %v1431_v5 = vpop.f32.mrb[6].mxu1 }
 0x105   : > { %v1384_v6 = vpop.f32.mrb[7].mxu0  ;;  %v1432_v7 = vpop.f32.mrb[7].mxu1 }
 0x106   : > { %v1385_v8 = vadd.f32 %v1384_v6, %v1383_v4  ;;  %v1433_v9 = vadd.f32 %v1432_v7, %v1431_v5 }
 0x108   : > { %v1271_v10 = vpack.c.bf16 %v1385_v8, %v1382_v2  ;;  %v1311_v11 = vpack.c.bf16 %v1433_v9, %v1430_v3 }
 0x10a   : > { %1343 = vst [vmem:[%s1723_s29 + $0x8] sm:$0xff] %v1271_v10   ;;  %1351 = vst [vmem:[%s1723_s29 + $0x48] sm:$0xff] %v1311_v11   ;;  %v1386_v12 = vpop.f32.mrb[8].mxu0  ;;  %v1434_v13 = vpop.f32.mrb[8].mxu1 }
 0x10b   : > { %v1387_v14 = vpop.f32.mrb[9].mxu0  ;;  %v1435_v15 = vpop.f32.mrb[9].mxu1 }
 0x10c   : > { %v1388_v16 = vadd.f32 %v1387_v14, %v1386_v12  ;;  %v1436_v17 = vadd.f32 %v1435_v15, %v1434_v13  ;;  %v1389_v18 = vpop.f32.mrb[10].mxu0  ;;  %v1437_v19 = vpop.f32.mrb[10].mxu1 }
 0x10d   : > { %v1390_v20 = vpop.f32.mrb[11].mxu0  ;;  %v1438_v21 = vpop.f32.mrb[11].mxu1 }
 0x10e   : > { %v1391_v22 = vadd.f32 %v1390_v20, %v1389_v18  ;;  %v1439_v23 = vadd.f32 %v1438_v21, %v1437_v19 }
 0x110   : > { %v1276_v24 = vpack.c.bf16 %v1391_v22, %v1388_v16  ;;  %v1316_v25 = vpack.c.bf16 %v1439_v23, %v1436_v17 }
 0x112   : > { %1344 = vst [vmem:[%s1723_s29 + $0x10] sm:$0xff] %v1276_v24   ;;  %1352 = vst [vmem:[%s1723_s29 + $0x50] sm:$0xff] %v1316_v25   ;;  %v1392_v26 = vpop.f32.mrb[12].mxu0  ;;  %v1440_v27 = vpop.f32.mrb[12].mxu1 }
 0x113   : > { %v1393_v28 = vpop.f32.mrb[13].mxu0  ;;  %v1441_v29 = vpop.f32.mrb[13].mxu1 }
 0x114   : > { %v1394_v30 = vadd.f32 %v1393_v28, %v1392_v26  ;;  %v1442_v31 = vadd.f32 %v1441_v29, %v1440_v27  ;;  %v1395_v32 = vpop.f32.mrb[14].mxu0  ;;  %v1443_v33 = vpop.f32.mrb[14].mxu1 }
 0x115   : > { %v1396_v34 = vpop.f32.mrb[15].mxu0  ;;  %v1444_v35 = vpop.f32.mrb[15].mxu1 }
 0x116   : > { %v1397_v36 = vadd.f32 %v1396_v34, %v1395_v32  ;;  %v1445_v37 = vadd.f32 %v1444_v35, %v1443_v33 }
 0x118   : > { %v1281_v38 = vpack.c.bf16 %v1397_v36, %v1394_v30  ;;  %v1321_v39 = vpack.c.bf16 %v1445_v37, %v1442_v31 }
 0x11a   : > { %1345 = vst [vmem:[%s1723_s29 + $0x18] sm:$0xff] %v1281_v38   ;;  %1353 = vst [vmem:[%s1723_s29 + $0x58] sm:$0xff] %v1321_v39   ;;  %v1398_v40 = vpop.f32.mrb[16].mxu0  ;;  %v1446_v41 = vpop.f32.mrb[16].mxu1 }
 0x11b   : > { %v1399_v42 = vpop.f32.mrb[17].mxu0  ;;  %v1447_v43 = vpop.f32.mrb[17].mxu1 }
 0x11c   : > { %v1400_v44 = vadd.f32 %v1399_v42, %v1398_v40  ;;  %v1448_v45 = vadd.f32 %v1447_v43, %v1446_v41  ;;  %v1401_v46 = vpop.f32.mrb[18].mxu0  ;;  %v1449_v47 = vpop.f32.mrb[18].mxu1 }
 0x11d   : > { %v1402_v48 = vpop.f32.mrb[19].mxu0  ;;  %v1450_v49 = vpop.f32.mrb[19].mxu1 }
 0x11e   : > { %v1403_v50 = vadd.f32 %v1402_v48, %v1401_v46  ;;  %v1451_v51 = vadd.f32 %v1450_v49, %v1449_v47 }
 0x120   : > { %v1286_v52 = vpack.c.bf16 %v1403_v50, %v1400_v44  ;;  %v1326_v53 = vpack.c.bf16 %v1451_v51, %v1448_v45 }
 0x122   : > { %1346 = vst [vmem:[%s1723_s29 + $0x20] sm:$0xff] %v1286_v52   ;;  %1354 = vst [vmem:[%s1723_s29 + $0x60] sm:$0xff] %v1326_v53   ;;  %v1404_v54 = vpop.f32.mrb[20].mxu0  ;;  %v1452_v55 = vpop.f32.mrb[20].mxu1 }
 0x123   : > { %v1405_v56 = vpop.f32.mrb[21].mxu0  ;;  %v1453_v57 = vpop.f32.mrb[21].mxu1 }
 0x124   : > { %v1406_v58 = vadd.f32 %v1405_v56, %v1404_v54  ;;  %v1454_v59 = vadd.f32 %v1453_v57, %v1452_v55  ;;  %v1407_v60 = vpop.f32.mrb[22].mxu0  ;;  %v1455_v61 = vpop.f32.mrb[22].mxu1 }
 0x125   : > { %v1408_v62 = vpop.f32.mrb[23].mxu0  ;;  %v1456_v63 = vpop.f32.mrb[23].mxu1 }
 0x126   : > { %v1409_v0 = vadd.f32 %v1408_v62, %v1407_v60  ;;  %v1457_v1 = vadd.f32 %v1456_v63, %v1455_v61 }
 0x128   : > { %v1291_v2 = vpack.c.bf16 %v1409_v0, %v1406_v58  ;;  %v1331_v3 = vpack.c.bf16 %v1457_v1, %v1454_v59 }
 0x12a   : > { %1347 = vst [vmem:[%s1723_s29 + $0x28] sm:$0xff] %v1291_v2   ;;  %1355 = vst [vmem:[%s1723_s29 + $0x68] sm:$0xff] %v1331_v3   ;;  %v1410_v4 = vpop.f32.mrb[24].mxu0  ;;  %v1458_v5 = vpop.f32.mrb[24].mxu1 }
 0x12b   : > { %v1411_v6 = vpop.f32.mrb[25].mxu0  ;;  %v1459_v7 = vpop.f32.mrb[25].mxu1 }
 0x12c   : > { %v1412_v8 = vadd.f32 %v1411_v6, %v1410_v4  ;;  %v1460_v9 = vadd.f32 %v1459_v7, %v1458_v5  ;;  %v1413_v10 = vpop.f32.mrb[26].mxu0  ;;  %v1461_v11 = vpop.f32.mrb[26].mxu1 }
 0x12d   : > { %v1414_v12 = vpop.f32.mrb[27].mxu0  ;;  %v1462_v13 = vpop.f32.mrb[27].mxu1 }
 0x12e   : > { %v1415_v14 = vadd.f32 %v1414_v12, %v1413_v10  ;;  %v1463_v15 = vadd.f32 %v1462_v13, %v1461_v11 }
 0x130   : > { %v1296_v16 = vpack.c.bf16 %v1415_v14, %v1412_v8  ;;  %v1336_v17 = vpack.c.bf16 %v1463_v15, %v1460_v9 }
 0x132   : > { %1348 = vst [vmem:[%s1723_s29 + $0x30] sm:$0xff] %v1296_v16   ;;  %1356 = vst [vmem:[%s1723_s29 + $0x70] sm:$0xff] %v1336_v17   ;;  %v1416_v18 = vpop.f32.mrb[28].mxu0  ;;  %v1464_v19 = vpop.f32.mrb[28].mxu1 }
 0x133   : > { %v1417_v20 = vpop.f32.mrb[29].mxu0  ;;  %v1465_v21 = vpop.f32.mrb[29].mxu1 }
 0x134   : > { %v1418_v22 = vadd.f32 %v1417_v20, %v1416_v18  ;;  %v1466_v23 = vadd.f32 %v1465_v21, %v1464_v19  ;;  %v1419_v24 = vpop.f32.mrb[30].mxu0  ;;  %v1467_v25 = vpop.f32.mrb[30].mxu1 }
 0x135   : > { %v1420_v26 = vpop.f32.mrb[31].mxu0  ;;  %v1468_v27 = vpop.f32.mrb[31].mxu1 }
 0x136   : > { %v1421_v28 = vadd.f32 %v1420_v26, %v1419_v24  ;;  %v1469_v29 = vadd.f32 %v1468_v27, %v1467_v25 }
 0x138   : > { %v1301_v30 = vpack.c.bf16 %v1421_v28, %v1418_v22  ;;  %v1341_v31 = vpack.c.bf16 %v1469_v29, %v1466_v23 }
 0x13a   : > { %1349 = vst [vmem:[%s1723_s29 + $0x38] sm:$0xff] %v1301_v30   ;;  %1357 = vst [vmem:[%s1723_s29 + $0x78] sm:$0xff] %v1341_v31  }
 0x13b PF: > { %s12_s11 = sadd.s32 1, %s1596_s11   ;;  %s1753_s9 = smov %s1592_s10 }
 0x13c   : > { %p9_p5 = scmp.ge.s32.totalorder %s12_s11, 4   ;;  %s1754_s10 = smov %s1756_s12 }
 0x13e   :  { %11 = sbr.rel (!%p9_p5) target bundleno = 2 (0x2), region = 69 }

// kernel: generator_forward.27
= control target key start
LH: loop header
LB: loop body
LE: loop exit
PB: predicated region body
PF: predicated region fallthrough
CT: control target
= control target key end

     0   :  { %s1800_s1 = inlined_call_operand.vmem [shape: bf16[640,128], index: 1, kind: input, shape index: {}]   ;;  %s1801_s0 = inlined_call_operand.vmem [shape: bf16[128,640], index: 0, kind: input, shape index: {}]   ;;  %s1802_s2 = inlined_call_operand.vmem [shape: bf16[128,128], index: 2, kind: output, shape index: {}]  }
   0x1   :  { %v1401_v0 = vld [vmem:[%s1800_s1 + $0x40] sm:$0xff]   ;;  %v1405_v4 = vld [vmem:[%s1800_s1 + $0x48] sm:$0xff]   ;;  %v1409_v8 = vld [vmem:[%s1800_s1 + $0x50] sm:$0xff]  }
   0x2   :  { %v1402_v1 = vld [vmem:[%s1800_s1 + $0xc0] sm:$0xff]   ;;  %1209 = vmatprep.subr.bf16.mxu0 %v1401_v0  ;;  %v1406_v5 = vld [vmem:[%s1800_s1 + $0xc8] sm:$0xff]   ;;  %v1410_v9 = vld [vmem:[%s1800_s1 + $0xd0] sm:$0xff]  }
   0x3   :  { %v1403_v2 = vld [vmem:[%s1800_s1] sm:$0xff]   ;;  %1273 = vmatprep.subr.bf16.mxu1 %v1402_v1  ;;  %v1407_v6 = vld [vmem:[%s1800_s1 + $0x8] sm:$0xff]   ;;  %v1411_v10 = vld [vmem:[%s1800_s1 + $0x10] sm:$0xff]  }
   0x4   :  { %v1404_v3 = vld [vmem:[%s1800_s1 + $0x80] sm:$0xff]   ;;  %1210 = vmatpush3.bf16.msra.mxu0 %v1403_v2  ;;  %v1408_v7 = vld [vmem:[%s1800_s1 + $0x88] sm:$0xff]   ;;  %v1412_v11 = vld [vmem:[%s1800_s1 + $0x90] sm:$0xff]  }
   0x5   :  { %1274 = vmatpush3.bf16.msra.mxu1 %v1404_v3  ;;  %1211 = vmatprep.subr.bf16.mxu0 %v1405_v4  ;;  %v1413_v12 = vld [vmem:[%s1800_s1 + $0x58] sm:$0xff]   ;;  %v1417_v16 = vld [vmem:[%s1800_s1 + $0x60] sm:$0xff]   ;;  %v1421_v20 = vld [vmem:[%s1800_s1 + $0x68] sm:$0xff]  }
   0x6   :  { %1275 = vmatprep.subr.bf16.mxu1 %v1406_v5  ;;  %v1414_v13 = vld [vmem:[%s1800_s1 + $0xd8] sm:$0xff]   ;;  %v1418_v17 = vld [vmem:[%s1800_s1 + $0xe0] sm:$0xff]   ;;  %v1422_v21 = vld [vmem:[%s1800_s1 + $0xe8] sm:$0xff]  }
   0x7   :  { %v1415_v14 = vld [vmem:[%s1800_s1 + $0x18] sm:$0xff]   ;;  %v1419_v18 = vld [vmem:[%s1800_s1 + $0x20] sm:$0xff]   ;;  %v1423_v22 = vld [vmem:[%s1800_s1 + $0x28] sm:$0xff]  }
   0x8   :  { %1212 = vmatpush3.bf16.msra.mxu0 %v1407_v6  ;;  %v1416_v15 = vld [vmem:[%s1800_s1 + $0x98] sm:$0xff]   ;;  %v1420_v19 = vld [vmem:[%s1800_s1 + $0xa0] sm:$0xff]   ;;  %v1424_v23 = vld [vmem:[%s1800_s1 + $0xa8] sm:$0xff]  }
   0x9   :  { %1276 = vmatpush3.bf16.msra.mxu1 %v1408_v7  ;;  %1213 = vmatprep.subr.bf16.mxu0 %v1409_v8  ;;  %v1425_v24 = vld [vmem:[%s1800_s1 + $0x70] sm:$0xff]   ;;  %v1429_v28 = vld [vmem:[%s1800_s1 + $0x78] sm:$0xff]   ;;  %v1438_v35 = vld [vmem:[%s1801_s0 + $0xc] ss:$20 sps:$4 sm:$0xff]  }
   0xa   :  { %1277 = vmatprep.subr.bf16.mxu1 %v1410_v9  ;;  %v1426_v25 = vld [vmem:[%s1800_s1 + $0xf0] sm:$0xff]   ;;  %v1430_v29 = vld [vmem:[%s1800_s1 + $0xf8] sm:$0xff]   ;;  %v1439_v36 = vld [vmem:[%s1800_s1 + $0x100] sm:$0xff]   ;;  %753 = vmatprep.mubr.bf16.mxu1 %v1438_v35 }
   0xb   :  { %v1427_v26 = vld [vmem:[%s1800_s1 + $0x30] sm:$0xff]   ;;  %v1431_v30 = vld [vmem:[%s1800_s1 + $0x38] sm:$0xff]   ;;  %v1440_v37 = vld [vmem:[%s1801_s0 + $0x2c] ss:$20 sps:$4 sm:$0xff]  }
   0xc   :  { %1214 = vmatpush3.bf16.msra.mxu0 %v1411_v10  ;;  %v1428_v27 = vld [vmem:[%s1800_s1 + $0xb0] sm:$0xff]   ;;  %v1432_v31 = vld [vmem:[%s1800_s1 + $0xb8] sm:$0xff]   ;;  %v1446_v39 = vld [vmem:[%s1800_s1 + $0x108] sm:$0xff]  }
   0xd   :  { %1278 = vmatpush3.bf16.msra.mxu1 %v1412_v11  ;;  %1215 = vmatprep.subr.bf16.mxu0 %v1413_v12  ;;  %v1433_v32 = vld [vmem:[%s1801_s0] ss:$20 sps:$4 sm:$0xff]   ;;  %v1435_v33 = vld [vmem:[%s1801_s0 + $0x4] ss:$20 sps:$4 sm:$0xff]   ;;  %v1436_v34 = vld [vmem:[%s1801_s0 + $0x8] ss:$20 sps:$4 sm:$0xff]  }
   0xe   :  { %1279 = vmatprep.subr.bf16.mxu1 %v1414_v13  ;;  %656 = vmatprep.mubr.bf16.mxu0 %v1435_v33  ;;  %v1442_v38 = vld [vmem:[%s1801_s0 + $0x34] ss:$20 sps:$4 sm:$0xff]   ;;  %v1445_v41 = vld [vmem:[%s1801_s0 + $0x30] ss:$20 sps:$4 sm:$0xff]   ;;  %v1460_v45 = vld [vmem:[%s1800_s1 + $0x118] sm:$0xff]  }
   0xf   :  { %v1444_v40 = vld [vmem:[%s1801_s0 + $0x28] ss:$20 sps:$4 sm:$0xff]   ;;  %v1453_v44 = vld [vmem:[%s1800_s1 + $0x110] sm:$0xff]   ;;  %v1452_v47 = vld [vmem:[%s1801_s0 + $0x58] ss:$20 sps:$4 sm:$0xff]  }
  0x10   :  { %1216 = vmatpush3.bf16.msra.mxu0 %v1415_v14  ;;  %v1447_v42 = vld [vmem:[%s1801_s0 + $0x54] ss:$20 sps:$4 sm:$0xff]   ;;  %v1449_v43 = vld [vmem:[%s1801_s0 + $0x5c] ss:$20 sps:$4 sm:$0xff]   ;;  %v1456_v49 = vld [vmem:[%s1801_s0 + $0x84] ss:$20 sps:$4 sm:$0xff]  }
  0x11   :  { %1280 = vmatpush3.bf16.msra.mxu1 %v1416_v15  ;;  %1217 = vmatprep.subr.bf16.mxu0 %v1417_v16  ;;  %v1451_v46 = vld [vmem:[%s1801_s0 + $0x50] ss:$20 sps:$4 sm:$0xff]   ;;  %v1474_v51 = vld [vmem:[%s1800_s1 + $0x128] sm:$0xff]   ;;  %v1459_v53 = vld [vmem:[%s1801_s0 + $0x80] ss:$20 sps:$4 sm:$0xff]  }
  0x12   :  { %1281 = vmatprep.subr.bf16.mxu1 %v1418_v17  ;;  %v1454_v48 = vld [vmem:[%s1801_s0 + $0x7c] ss:$20 sps:$4 sm:$0xff]   ;;  %v1467_v50 = vld [vmem:[%s1800_s1 + $0x120] sm:$0xff]   ;;  %v1458_v52 = vld [vmem:[%s1801_s0 + $0x78] ss:$20 sps:$4 sm:$0xff]  }
  0x13   :  { %v1461_v54 = vld [vmem:[%s1801_s0 + $0xa4] ss:$20 sps:$4 sm:$0xff]   ;;  %v1481_v55 = vld [vmem:[%s1800_s1 + $0x130] sm:$0xff]   ;;  %v1463_v56 = vld [vmem:[%s1801_s0 + $0xac] ss:$20 sps:$4 sm:$0xff]  }
  0x14   :  { %1218 = vmatpush3.bf16.msra.mxu0 %v1419_v18  ;;  %v1488_v57 = vld [vmem:[%s1800_s1 + $0x138] sm:$0xff]   ;;  %v1465_v58 = vld [vmem:[%s1801_s0 + $0xa0] ss:$20 sps:$4 sm:$0xff]   ;;  %v1473_v63 = vld [vmem:[%s1801_s0 + $0xd0] ss:$20 sps:$4 sm:$0xff]  }
  0x15   :  { %1282 = vmatpush3.bf16.msra.mxu1 %v1420_v19  ;;  %1219 = vmatprep.subr.bf16.mxu0 %v1421_v20  ;;  %v1466_v59 = vld [vmem:[%s1801_s0 + $0xa8] ss:$20 sps:$4 sm:$0xff]   ;;  %v1468_v60 = vld [vmem:[%s1801_s0 + $0xcc] ss:$20 sps:$4 sm:$0xff]   ;;  %v1479_v2 = vld [vmem:[%s1801_s0 + $0xf0] ss:$20 sps:$4 sm:$0xff]  }
  0x16   :  { %1283 = vmatprep.subr.bf16.mxu1 %v1422_v21  ;;  %v1470_v61 = vld [vmem:[%s1801_s0 + $0xd4] ss:$20 sps:$4 sm:$0xff]   ;;  %v1477_v1 = vld [vmem:[%s1801_s0 + $0xfc] ss:$20 sps:$4 sm:$0xff]   ;;  %v1480_v3 = vld [vmem:[%s1801_s0 + $0xf8] ss:$20 sps:$4 sm:$0xff]  }
  0x17   :  { %v1472_v62 = vld [vmem:[%s1801_s0 + $0xc8] ss:$20 sps:$4 sm:$0xff]   ;;  %v1484_v5 = vld [vmem:[%s1801_s0 + $0x124] ss:$20 sps:$4 sm:$0xff]   ;;  %v1487_v7 = vld [vmem:[%s1801_s0 + $0x120] ss:$20 sps:$4 sm:$0xff]  }
  0x18   :  { %1220 = vmatpush3.bf16.msra.mxu0 %v1423_v22  ;;  %v1475_v0 = vld [vmem:[%s1801_s0 + $0xf4] ss:$20 sps:$4 sm:$0xff]   ;;  %v1482_v4 = vld [vmem:[%s1801_s0 + $0x11c] ss:$20 sps:$4 sm:$0xff]   ;;  %v1486_v6 = vld [vmem:[%s1801_s0 + $0x118] ss:$20 sps:$4 sm:$0xff]  }
  0x19   :  { %1284 = vmatpush3.bf16.msra.mxu1 %v1424_v23  ;;  %1221 = vmatprep.subr.bf16.mxu0 %v1425_v24  ;;  %v1489_v8 = vld [vmem:[%s1801_s0 + $0x10] ss:$20 sps:$4 sm:$0xff]   ;;  %v1491_v10 = vld [vmem:[%s1801_s0 + $0x38] ss:$20 sps:$4 sm:$0xff]   ;;  %v1493_v12 = vld [vmem:[%s1801_s0 + $0x60] ss:$20 sps:$4 sm:$0xff]  }
  0x1a   :  { %1285 = vmatprep.subr.bf16.mxu1 %v1426_v25  ;;  %v1490_v9 = vld [vmem:[%s1801_s0 + $0xb0] ss:$20 sps:$4 sm:$0xff]   ;;  %v1492_v11 = vld [vmem:[%s1801_s0 + $0xd8] ss:$20 sps:$4 sm:$0xff]   ;;  %v1494_v13 = vld [vmem:[%s1801_s0 + $0x100] ss:$20 sps:$4 sm:$0xff]  }
  0x1b   :  { %v1495_v14 = vld [vmem:[%s1801_s0 + $0x88] ss:$20 sps:$4 sm:$0xff]  }
  0x1c   :  { %1222 = vmatpush3.bf16.msra.mxu0 %v1427_v26  ;;  %v1496_v15 = vld [vmem:[%s1801_s0 + $0x128] ss:$20 sps:$4 sm:$0xff]  }
  0x1d   :  { %1286 = vmatpush3.bf16.msra.mxu1 %v1428_v27  ;;  %1223 = vmatprep.subr.bf16.mxu0 %v1429_v28 }
  0x1e   :  { %1287 = vmatprep.subr.bf16.mxu1 %v1430_v29 }
  0x20   :  { %1224 = vmatpush3.bf16.msra.mxu0 %v1431_v30 }
  0x21   :  { %1288 = vmatpush3.bf16.msra.mxu1 %v1432_v31  ;;  %1353 = vmatprep.subr.bf16.mxu0 %v1439_v36 }
  0x22   :  { %1385 = vmatprep.subr.bf16.mxu1 %v1439_v36 }
  0x23   :  { %657 = vmatmul.mubr.bf16.vlgmr.msra.gmra.mrb[0].mxu0 %v1433_v32 }
  0x24   :  { %754 = vmatmul.mubr.bf16.vlgmr.msra.gmra.mrb[0].mxu1 %v1436_v34  ;;  %1354 = vmatpush3.bf16.msra.mxu0 %v1439_v36 }
  0x25   :  { %1393 = vmatpush3.bf16.msra.mxu1 %v1439_v36  ;;  %664 = vmatprep.mubr.bf16.mxu0 %v1440_v37 }
  0x26   :  { %761 = vmatprep.mubr.bf16.mxu1 %v1442_v38  ;;  %1355 = vmatprep.subr.bf16.mxu0 %v1446_v39 }
  0x27   :  { %1386 = vmatprep.subr.bf16.mxu1 %v1446_v39 }
  0x28   :  { %1356 = vmatpush3.bf16.msra.mxu0 %v1446_v39 }
  0x29   :  { %1394 = vmatpush3.bf16.msra.mxu1 %v1446_v39  ;;  %1357 = vmatprep.subr.bf16.mxu0 %v1453_v44 }
  0x2a   :  { %1387 = vmatprep.subr.bf16.mxu1 %v1453_v44 }
  0x2b   :  { %665 = vmatmul.mubr.bf16.gmra.mrb[4].mxu0 %v1444_v40 }
  0x2c   :  { %762 = vmatmul.mubr.bf16.gmra.mrb[4].mxu1 %v1445_v41  ;;  %672 = vmatprep.mubr.bf16.mxu0 %v1447_v42 }
  0x2d   :  { %769 = vmatprep.mubr.bf16.mxu1 %v1449_v43  ;;  %1358 = vmatpush3.bf16.msra.mxu0 %v1453_v44 }
  0x2e   :  { %1395 = vmatpush3.bf16.msra.mxu1 %v1453_v44  ;;  %1359 = vmatprep.subr.bf16.mxu0 %v1460_v45 }
  0x2f   :  { %1388 = vmatprep.subr.bf16.mxu1 %v1460_v45 }
  0x31   :  { %1360 = vmatpush3.bf16.msra.mxu0 %v1460_v45 }
  0x32   :  { %1396 = vmatpush3.bf16.msra.mxu1 %v1460_v45  ;;  %1361 = vmatprep.subr.bf16.mxu0 %v1467_v50 }
  0x33   :  { %673 = vmatmul.mubr.bf16.gmra.mrb[8].mxu0 %v1451_v46  ;;  %1389 = vmatprep.subr.bf16.mxu1 %v1467_v50 }
  0x34   :  { %770 = vmatmul.mubr.bf16.gmra.mrb[8].mxu1 %v1452_v47  ;;  %680 = vmatprep.mubr.bf16.mxu0 %v1454_v48 }
  0x35   :  { %777 = vmatprep.mubr.bf16.mxu1 %v1456_v49  ;;  %1362 = vmatpush3.bf16.msra.mxu0 %v1467_v50 }
  0x36   :  { %1397 = vmatpush3.bf16.msra.mxu1 %v1467_v50  ;;  %1363 = vmatprep.subr.bf16.mxu0 %v1474_v51 }
  0x37   :  { %1390 = vmatprep.subr.bf16.mxu1 %v1474_v51 }
  0x39   :  { %1364 = vmatpush3.bf16.msra.mxu0 %v1474_v51 }
  0x3a   :  { %1398 = vmatpush3.bf16.msra.mxu1 %v1474_v51  ;;  %1365 = vmatprep.subr.bf16.mxu0 %v1481_v55 }
  0x3b   :  { %681 = vmatmul.mubr.bf16.gmra.mrb[12].mxu0 %v1458_v52  ;;  %1391 = vmatprep.subr.bf16.mxu1 %v1481_v55 }
  0x3c   :  { %778 = vmatmul.mubr.bf16.gmra.mrb[12].mxu1 %v1459_v53  ;;  %688 = vmatprep.mubr.bf16.mxu0 %v1461_v54 }
  0x3d   :  { %785 = vmatprep.mubr.bf16.mxu1 %v1463_v56  ;;  %1366 = vmatpush3.bf16.msra.mxu0 %v1481_v55 }
  0x3e   :  { %1399 = vmatpush3.bf16.msra.mxu1 %v1481_v55  ;;  %1367 = vmatprep.subr.bf16.mxu0 %v1488_v57 }
  0x3f   :  { %1392 = vmatprep.subr.bf16.mxu1 %v1488_v57 }
  0x41   :  { %1368 = vmatpush3.bf16.msra.mxu0 %v1488_v57 }
  0x42   :  { %1400 = vmatpush3.bf16.msra.mxu1 %v1488_v57 }
  0x43   :  { %689 = vmatmul.mubr.bf16.gmra.mrb[16].mxu0 %v1465_v58 }
  0x44   :  { %786 = vmatmul.mubr.bf16.gmra.mrb[16].mxu1 %v1466_v59  ;;  %696 = vmatprep.mubr.bf16.mxu0 %v1468_v60 }
  0x45   :  { %793 = vmatprep.mubr.bf16.mxu1 %v1470_v61 }
  0x4b   :  { %697 = vmatmul.mubr.bf16.gmra.mrb[20].mxu0 %v1472_v62 }
  0x4c   :  { %794 = vmatmul.mubr.bf16.gmra.mrb[20].mxu1 %v1473_v63  ;;  %704 = vmatprep.mubr.bf16.mxu0 %v1475_v0 }
  0x4d   :  { %801 = vmatprep.mubr.bf16.mxu1 %v1477_v1 }
  0x53   :  { %705 = vmatmul.mubr.bf16.gmra.mrb[24].mxu0 %v1479_v2 }
  0x54   :  { %802 = vmatmul.mubr.bf16.gmra.mrb[24].mxu1 %v1480_v3  ;;  %712 = vmatprep.mubr.bf16.mxu0 %v1482_v4 }
  0x55   :  { %809 = vmatprep.mubr.bf16.mxu1 %v1484_v5 }
  0x5b   :  { %713 = vmatmul.mubr.bf16.gmra.mrb[28].mxu0 %v1486_v6 }
  0x5c   :  { %810 = vmatmul.mubr.bf16.gmra.mrb[28].mxu1 %v1487_v7  ;;  %1369 = vmatprep.mubr.bf16.mxu0 %v1489_v8 }
  0x5d   :  { %1377 = vmatprep.mubr.bf16.mxu1 %v1490_v9 }
  0x63   :  { %1370 = vmatmul.mubr.bf16.vlgmr.msra.gmra.mrb[32].mxu0 %v1491_v10 }
  0x64   :  { %1378 = vmatmul.mubr.bf16.vlgmr.msra.gmra.mrb[32].mxu1 %v1492_v11  ;;  %1373 = vmatprep.mubr.bf16.mxu0 %v1493_v12 }
  0x65   :  { %1381 = vmatprep.mubr.bf16.mxu1 %v1494_v13 }
  0x6b   :  { %1374 = vmatmul.mubr.bf16.gmra.mrb[36].mxu0 %v1495_v14 }
  0x6c   :  { %1382 = vmatmul.mubr.bf16.gmra.mrb[36].mxu1 %v1496_v15 }
  0xf6   :  { %v1225_v16 = vpop.f32.mrb[0].mxu0 }
  0xf7   :  { %v1289_v17 = vpop.f32.mrb[0].mxu1  ;;  %v1226_v18 = vpop.f32.mrb[1].mxu0 }
  0xf8   :  { %v1227_v19 = vadd.f32 %v1226_v18, %v1225_v16  ;;  %v1290_v20 = vpop.f32.mrb[1].mxu1  ;;  %v1228_v21 = vpop.f32.mrb[2].mxu0 }
  0xf9   :  { %v1291_v22 = vadd.f32 %v1290_v20, %v1289_v17  ;;  %v1292_v23 = vpop.f32.mrb[2].mxu1  ;;  %v1229_v24 = vpop.f32.mrb[3].mxu0 }
  0xfa   :  { %v1230_v25 = vadd.f32 %v1229_v24, %v1228_v21  ;;  %v1293_v26 = vpop.f32.mrb[3].mxu1 }
  0xfb   :  { %v1294_v27 = vadd.f32 %v1293_v26, %v1292_v23  ;;  %v1752_v28 = vadd.f32 %v1291_v22, %v1227_v19 }
  0xfd   :  { %v1754_v29 = vadd.f32 %v1294_v27, %v1230_v25 }
  0xfe   :  { %v1231_v30 = vpop.f32.mrb[4].mxu0 }
  0xff   :  { %v1295_v31 = vpop.f32.mrb[4].mxu1  ;;  %v1232_v32 = vpop.f32.mrb[5].mxu0 }
 0x100   :  { %v1233_v33 = vadd.f32 %v1232_v32, %v1231_v30  ;;  %v1296_v34 = vpop.f32.mrb[5].mxu1  ;;  %v1234_v35 = vpop.f32.mrb[6].mxu0 }
 0x101   :  { %v1297_v36 = vadd.f32 %v1296_v34, %v1295_v31  ;;  %v1298_v37 = vpop.f32.mrb[6].mxu1  ;;  %v1235_v38 = vpop.f32.mrb[7].mxu0 }
 0x102   :  { %v1236_v39 = vadd.f32 %v1235_v38, %v1234_v35  ;;  %v1299_v40 = vpop.f32.mrb[7].mxu1 }
 0x103   :  { %v1300_v41 = vadd.f32 %v1299_v40, %v1298_v37  ;;  %v1756_v42 = vadd.f32 %v1297_v36, %v1233_v33 }
 0x105   :  { %v1758_v43 = vadd.f32 %v1300_v41, %v1236_v39 }
 0x106   :  { %v1237_v44 = vpop.f32.mrb[8].mxu0 }
 0x107   :  { %v1301_v45 = vpop.f32.mrb[8].mxu1  ;;  %v1238_v46 = vpop.f32.mrb[9].mxu0 }
 0x108   :  { %v1239_v47 = vadd.f32 %v1238_v46, %v1237_v44  ;;  %v1302_v48 = vpop.f32.mrb[9].mxu1  ;;  %v1240_v49 = vpop.f32.mrb[10].mxu0 }
 0x109   :  { %v1303_v50 = vadd.f32 %v1302_v48, %v1301_v45  ;;  %v1304_v51 = vpop.f32.mrb[10].mxu1  ;;  %v1241_v52 = vpop.f32.mrb[11].mxu0 }
 0x10a   :  { %v1242_v53 = vadd.f32 %v1241_v52, %v1240_v49  ;;  %v1305_v54 = vpop.f32.mrb[11].mxu1 }
 0x10b   :  { %v1306_v55 = vadd.f32 %v1305_v54, %v1304_v51  ;;  %v1760_v56 = vadd.f32 %v1303_v50, %v1239_v47 }
 0x10d   :  { %v1762_v57 = vadd.f32 %v1306_v55, %v1242_v53 }
 0x10e   :  { %v1243_v58 = vpop.f32.mrb[12].mxu0 }
 0x10f   :  { %v1307_v59 = vpop.f32.mrb[12].mxu1  ;;  %v1244_v60 = vpop.f32.mrb[13].mxu0 }
 0x110   :  { %v1245_v61 = vadd.f32 %v1244_v60, %v1243_v58  ;;  %v1308_v62 = vpop.f32.mrb[13].mxu1  ;;  %v1246_v63 = vpop.f32.mrb[14].mxu0 }
 0x111   :  { %v1309_v0 = vadd.f32 %v1308_v62, %v1307_v59  ;;  %v1310_v1 = vpop.f32.mrb[14].mxu1  ;;  %v1247_v2 = vpop.f32.mrb[15].mxu0 }
 0x112   :  { %v1248_v3 = vadd.f32 %v1247_v2, %v1246_v63  ;;  %v1311_v4 = vpop.f32.mrb[15].mxu1 }
 0x113   :  { %v1312_v5 = vadd.f32 %v1311_v4, %v1310_v1  ;;  %v1764_v6 = vadd.f32 %v1309_v0, %v1245_v61 }
 0x115   :  { %v1766_v7 = vadd.f32 %v1312_v5, %v1248_v3 }
 0x116   :  { %v1249_v8 = vpop.f32.mrb[16].mxu0 }
 0x117   :  { %v1313_v9 = vpop.f32.mrb[16].mxu1  ;;  %v1250_v10 = vpop.f32.mrb[17].mxu0 }
 0x118   :  { %v1251_v11 = vadd.f32 %v1250_v10, %v1249_v8  ;;  %v1314_v12 = vpop.f32.mrb[17].mxu1  ;;  %v1252_v13 = vpop.f32.mrb[18].mxu0 }
 0x119   :  { %v1315_v14 = vadd.f32 %v1314_v12, %v1313_v9  ;;  %v1316_v15 = vpop.f32.mrb[18].mxu1  ;;  %v1253_v16 = vpop.f32.mrb[19].mxu0 }
 0x11a   :  { %v1254_v17 = vadd.f32 %v1253_v16, %v1252_v13  ;;  %v1317_v18 = vpop.f32.mrb[19].mxu1 }
 0x11b   :  { %v1318_v19 = vadd.f32 %v1317_v18, %v1316_v15  ;;  %v788_v20 = vadd.f32 %v1315_v14, %v1251_v11 }
 0x11d   :  { %v791_v21 = vadd.f32 %v1318_v19, %v1254_v17 }
 0x11e   :  { %v1255_v22 = vpop.f32.mrb[20].mxu0 }
 0x11f   :  { %v1319_v23 = vpop.f32.mrb[20].mxu1  ;;  %v1256_v24 = vpop.f32.mrb[21].mxu0 }
 0x120   :  { %v1257_v25 = vadd.f32 %v1256_v24, %v1255_v22  ;;  %v1320_v26 = vpop.f32.mrb[21].mxu1  ;;  %v1258_v27 = vpop.f32.mrb[22].mxu0 }
 0x121   :  { %v1321_v30 = vadd.f32 %v1320_v26, %v1319_v23  ;;  %v1322_v31 = vpop.f32.mrb[22].mxu1  ;;  %v1259_v32 = vpop.f32.mrb[23].mxu0 }
 0x122   :  { %v1260_v33 = vadd.f32 %v1259_v32, %v1258_v27  ;;  %v1323_v34 = vpop.f32.mrb[23].mxu1 }
 0x123   :  { %v1324_v35 = vadd.f32 %v1323_v34, %v1322_v31  ;;  %v796_v36 = vadd.f32 %v1321_v30, %v1257_v25 }
 0x125   :  { %v799_v37 = vadd.f32 %v1324_v35, %v1260_v33 }
 0x126   :  { %v1261_v38 = vpop.f32.mrb[24].mxu0 }
 0x127   :  { %v1325_v39 = vpop.f32.mrb[24].mxu1  ;;  %v1262_v40 = vpop.f32.mrb[25].mxu0 }
 0x128   :  { %v1263_v41 = vadd.f32 %v1262_v40, %v1261_v38  ;;  %v1326_v44 = vpop.f32.mrb[25].mxu1  ;;  %v1264_v45 = vpop.f32.mrb[26].mxu0 }
 0x129   :  { %v1327_v46 = vadd.f32 %v1326_v44, %v1325_v39  ;;  %v1328_v47 = vpop.f32.mrb[26].mxu1  ;;  %v1265_v48 = vpop.f32.mrb[27].mxu0 }
 0x12a   :  { %v1266_v49 = vadd.f32 %v1265_v48, %v1264_v45  ;;  %v1329_v50 = vpop.f32.mrb[27].mxu1 }
 0x12b   :  { %v1330_v51 = vadd.f32 %v1329_v50, %v1328_v47  ;;  %v804_v52 = vadd.f32 %v1327_v46, %v1263_v41 }
 0x12d   :  { %v807_v53 = vadd.f32 %v1330_v51, %v1266_v49 }
 0x12e   :  { %v1267_v54 = vpop.f32.mrb[28].mxu0 }
 0x12f   :  { %v1331_v55 = vpop.f32.mrb[28].mxu1  ;;  %v1268_v58 = vpop.f32.mrb[29].mxu0 }
 0x130   :  { %v1269_v59 = vadd.f32 %v1268_v58, %v1267_v54  ;;  %v1332_v60 = vpop.f32.mrb[29].mxu1  ;;  %v1270_v61 = vpop.f32.mrb[30].mxu0 }
 0x131   :  { %v1333_v62 = vadd.f32 %v1332_v60, %v1331_v55  ;;  %v1334_v63 = vpop.f32.mrb[30].mxu1  ;;  %v1271_v0 = vpop.f32.mrb[31].mxu0 }
 0x132   :  { %v1272_v1 = vadd.f32 %v1271_v0, %v1270_v61  ;;  %v1335_v2 = vpop.f32.mrb[31].mxu1 }
 0x133   :  { %v1336_v3 = vadd.f32 %v1335_v2, %v1334_v63  ;;  %v812_v4 = vadd.f32 %v1333_v62, %v1269_v59 }
 0x135   :  { %v815_v5 = vadd.f32 %v1336_v3, %v1272_v1 }
 0x136   :  { %v1371_v8 = vpop.f32.mrb[32].mxu0 }
 0x137   :  { %v861_v9 = vadd.f32 %v1371_v8, %v1756_v42  ;;  %v1379_v10 = vpop.f32.mrb[32].mxu1  ;;  %v852_v11 = vpop.f32.mrb[33].mxu0 }
 0x138   :  { %v893_v12 = vadd.f32 %v1379_v10, %v796_v36  ;;  %v853_v13 = vadd.f32 %v852_v11, %v1752_v28  ;;  %v884_v14 = vpop.f32.mrb[33].mxu1  ;;  %v1372_v15 = vpop.f32.mrb[34].mxu0 }
 0x139   :  { %v885_v16 = vadd.f32 %v884_v14, %v788_v20  ;;  %v864_v17 = vadd.f32 %v1372_v15, %v1758_v43  ;;  %v1380_v18 = vpop.f32.mrb[34].mxu1  ;;  %v855_v19 = vpop.f32.mrb[35].mxu0 }
 0x13a   :  { %v896_v22 = vadd.f32 %v1380_v18, %v799_v37  ;;  %v856_v23 = vadd.f32 %v855_v19, %v1754_v29  ;;  %v887_v24 = vpop.f32.mrb[35].mxu1 }
 0x13b   :  { %v1170_v25 = vpack.c.bf16 %v864_v17, %v861_v9  ;;  %v888_v26 = vadd.f32 %v887_v24, %v791_v21 }
 0x13c   :  { %v1190_v27 = vpack.c.bf16 %v896_v22, %v893_v12  ;;  %v1165_v42 = vpack.c.bf16 %v856_v23, %v853_v13 }
 0x13d   :  { %1202 = vst [vmem:[%s1802_s2 + $0x8] sm:$0xff] %v1170_v25   ;;  %v1185_v28 = vpack.c.bf16 %v888_v26, %v885_v16 }
 0x13e   :  { %1206 = vst [vmem:[%s1802_s2 + $0x28] sm:$0xff] %v1190_v27   ;;  %1166 = vst [vmem:[%s1802_s2] sm:$0xff] %v1165_v42   ;;  %v1375_v43 = vpop.f32.mrb[36].mxu0 }
 0x13f   :  { %1205 = vst [vmem:[%s1802_s2 + $0x20] sm:$0xff] %v1185_v28   ;;  %v877_v29 = vadd.f32 %v1375_v43, %v1764_v6  ;;  %v1383_v20 = vpop.f32.mrb[36].mxu1  ;;  %v868_v21 = vpop.f32.mrb[37].mxu0 }
 0x140   :  { %v909_v30 = vadd.f32 %v1383_v20, %v812_v4  ;;  %v869_v31 = vadd.f32 %v868_v21, %v1760_v56  ;;  %v900_v32 = vpop.f32.mrb[37].mxu1  ;;  %v1376_v33 = vpop.f32.mrb[38].mxu0 }
 0x141   :  { %v901_v34 = vadd.f32 %v900_v32, %v804_v52  ;;  %v880_v35 = vadd.f32 %v1376_v33, %v1766_v7  ;;  %v1384_v36 = vpop.f32.mrb[38].mxu1  ;;  %v871_v37 = vpop.f32.mrb[39].mxu0 }
 0x142   :  { %v912_v38 = vadd.f32 %v1384_v36, %v815_v5  ;;  %v872_v39 = vadd.f32 %v871_v37, %v1762_v57  ;;  %v903_v40 = vpop.f32.mrb[39].mxu1 }
 0x143   :  { %v1180_v41 = vpack.c.bf16 %v880_v35, %v877_v29  ;;  %v904_v44 = vadd.f32 %v903_v40, %v807_v53 }
 0x144   :  { %v1200_v45 = vpack.c.bf16 %v912_v38, %v909_v30  ;;  %v1175_v6 = vpack.c.bf16 %v872_v39, %v869_v31 }
 0x145   :  { %1204 = vst [vmem:[%s1802_s2 + $0x18] sm:$0xff] %v1180_v41   ;;  %v1195_v56 = vpack.c.bf16 %v904_v44, %v901_v34 }
 0x146   :  { %1208 = vst [vmem:[%s1802_s2 + $0x38] sm:$0xff] %v1200_v45   ;;  %1203 = vst [vmem:[%s1802_s2 + $0x10] sm:$0xff] %v1175_v6  }
 0x147   :  { %1207 = vst [vmem:[%s1802_s2 + $0x30] sm:$0xff] %v1195_v56  }

// kernel: generator_forward.28
= control target key start
LH: loop header
LB: loop body
LE: loop exit
PB: predicated region body
PF: predicated region fallthrough
CT: control target
= control target key end

     0   :  { %s483_s6 = smov 0   ;;  %s485_s7 = smov 0   ;;  %s523_s0 = inlined_call_operand.vmem [shape: bf16[2,64,128], index: 0, kind: input, shape index: {}]   ;;  %s524_s1 = inlined_call_operand.vmem [shape: bf16[2,64,128], index: 1, kind: output, shape index: {}]  }
   0x1   :  { %s487_s8 = smov 0  }
   0x2 LB: > { %s23_s9 = sadd.s32 1, %s467_s7  ;;  %p356_p0 = scmp.ge.s32.totalorder %s471_s8, 1  ;;  %s471_s8 = sphi %s487_s8, %s11_s8   ;;  %s467_s7 = sphi %s485_s7, %s526_s7   ;;  %s463_s6 = sphi %s483_s6, %s525_s6  }
   0x3   : > { %p25_p1 = scmp.ge.s32.totalorder %s23_s9, 2  ;;  %p106_p2 = scmp.lt.s32.totalorder %s471_s8, 3 }
   0x5   : > { %s528_s9 = smov (%p25_p1, %s23_s9), 0  ;;  %p107_p3 = pnand %p356_p0, %p106_p2 }
   0x6   : > { %p132_p4 = scmp.lt.s32.totalorder (!%p107_p3), %s463_s6, 1 }
   0x7   : > { %110 = sbr.rel (%p107_p3) target bundleno = 73 (0x49), region = 24 }
   0xe   : > { %s530_s6 = smov (!%p132_p4, %s463_s6), 1 }
   0xf   : > { %s371_s10 = sshll.u32 %s530_s6, 5 }
  0x10   : > { %s139_s13 = scalar_lea.vmem %s523_s0, %s371_s10  ;;  %s147_s16 = scalar_lea.vmem %s524_s1, %s371_s10 }
  0x11   : > { %v382_v0 = vld [vmem:[%s139_s13] sm:$0xff]   ;;  %v417_v1 = vld [vmem:[%s139_s13 + $0x8] sm:$0xff]   ;;  %v418_v2 = vld [vmem:[%s139_s13 + $0x10] sm:$0xff]  }
  0x12   : > { %v383_v3 = vunpack.c.l.bf16 %v382_v0  ;;  %v384_v4 = vunpack.c.h.bf16 %v382_v0  ;;  %v387_v5 = vunpack.c.l.bf16 %v417_v1  ;;  %v388_v6 = vunpack.c.h.bf16 %v417_v1  ;;  %v419_v12 = vld [vmem:[%s139_s13 + $0x18] sm:$0xff]  }
  0x13   : > { %v391_v7 = vunpack.c.l.bf16 %v418_v2  ;;  %v392_v13 = vunpack.c.h.bf16 %v418_v2  ;;  %v395_v17 = vunpack.c.l.bf16 %v419_v12  ;;  %v396_v21 = vunpack.c.h.bf16 %v419_v12 }
  0x14   : > { %v164_v8 = vadd.f32 %v384_v4, %v383_v3  ;;  %v179_v9 = vmul.f32 %v383_v3, %v383_v3  ;;  %v180_v10 = vmul.f32 %v384_v4, %v384_v4  ;;  %v181_v11 = vmul.f32 %v387_v5, %v387_v5 }
  0x15   : > { %v182_v15 = vmul.f32 %v388_v6, %v388_v6  ;;  %v183_v19 = vmul.f32 %v391_v7, %v391_v7  ;;  %v184_v23 = vmul.f32 %v392_v13, %v392_v13  ;;  %v185_v26 = vmul.f32 %v395_v17, %v395_v17 }
  0x16   : > { %v165_v14 = vadd.f32 %v387_v5, %v164_v8  ;;  %v187_v16 = vadd.f32 %v180_v10, %v179_v9  ;;  %v186_v29 = vmul.f32 %v396_v21, %v396_v21 }
  0x18   : > { %v166_v18 = vadd.f32 %v388_v6, %v165_v14  ;;  %v188_v20 = vadd.f32 %v187_v16, %v181_v11 }
  0x1a   : > { %v167_v22 = vadd.f32 %v391_v7, %v166_v18  ;;  %v189_v24 = vadd.f32 %v188_v20, %v182_v15 }
  0x1c   : > { %v168_v25 = vadd.f32 %v392_v13, %v167_v22  ;;  %v190_v27 = vadd.f32 %v189_v24, %v183_v19 }
  0x1e   : > { %v169_v28 = vadd.f32 %v395_v17, %v168_v25  ;;  %v191_v30 = vadd.f32 %v190_v27, %v184_v23 }
  0x20   : > { %v170_v31 = vadd.f32 %v396_v21, %v169_v28  ;;  %v192_v32 = vadd.f32 %v191_v30, %v185_v26 }
  0x22   : > { %v171_v33 = vrot.slane %v170_v31, 4  ;;  %v193_v34 = vadd.f32 %v192_v32, %v186_v29 }
  0x24   : > { %v172_v35 = vadd.f32 %v171_v33, %v170_v31  ;;  %v194_v36 = vrot.slane %v193_v34, 4 }
  0x26   : > { %v173_v37 = vrot.slane %v172_v35, 2  ;;  %v195_v38 = vadd.f32 %v194_v36, %v193_v34 }
  0x28   : > { %v174_v39 = vadd.f32 %v173_v37, %v172_v35  ;;  %v196_v40 = vrot.slane %v195_v38, 2 }
  0x2a   : > { %v175_v41 = vrot.slane %v174_v39, 1  ;;  %v197_v42 = vadd.f32 %v196_v40, %v195_v38 }
  0x2c   : > { %v176_v43 = vadd.f32 %v175_v41, %v174_v39  ;;  %v198_v44 = vrot.slane %v197_v42, 1 }
  0x2e   : > { %v178_v45 = vmul.f32 0.015625, %v176_v43  ;;  %v199_v46 = vadd.f32 %v198_v44, %v197_v42 }
  0x30   : > { %v200_v47 = vmul.f32 0.015625, %v199_v46  ;;  %v201_v48 = vmul.f32 %v178_v45, %v178_v45  ;;  %v203_v51 = vsub.f32 %v383_v3, %v178_v45  ;;  %v204_v52 = vsub.f32 %v384_v4, %v178_v45 }
  0x31   : > { %v205_v53 = vsub.f32 %v387_v5, %v178_v45  ;;  %v206_v54 = vsub.f32 %v388_v6, %v178_v45  ;;  %v207_v55 = vsub.f32 %v391_v7, %v178_v45  ;;  %v208_v56 = vsub.f32 %v392_v13, %v178_v45 }
  0x32   : > { %v202_v49 = vsub.f32 %v200_v47, %v201_v48  ;;  %v209_v57 = vsub.f32 %v395_v17, %v178_v45  ;;  %v210_v58 = vsub.f32 %v396_v21, %v178_v45 }
  0x34   : > { %v211_v50 = vadd.f32 1e-05, %v202_v49 }
  0x36   : > { %447 = vrsqrt.f32 %v211_v50 }
  0x40   : > { %v448_v59 = vpop.eup %447 }
  0x41   : > { %v213_v60 = vmul.f32 %v448_v59, %v203_v51  ;;  %v214_v61 = vmul.f32 %v448_v59, %v204_v52  ;;  %v215_v62 = vmul.f32 %v448_v59, %v205_v53  ;;  %v216_v63 = vmul.f32 %v448_v59, %v206_v54 }
  0x42   : > { %v217_v0 = vmul.f32 %v448_v59, %v207_v55  ;;  %v218_v1 = vmul.f32 %v448_v59, %v208_v56  ;;  %v219_v2 = vmul.f32 %v448_v59, %v209_v57  ;;  %v220_v8 = vmul.f32 %v448_v59, %v210_v58 }
  0x43   : > { %v221_v9 = vmax.f32 %v213_v60, 0.0  ;;  %v222_v10 = vmax.f32 %v214_v61, 0.0  ;;  %v223_v3 = vmax.f32 %v215_v62, 0.0  ;;  %v224_v4 = vmax.f32 %v216_v63, 0.0 }
  0x44   : > { %v225_v5 = vmax.f32 %v217_v0, 0.0  ;;  %v226_v6 = vmax.f32 %v218_v1, 0.0  ;;  %v227_v7 = vmax.f32 %v219_v2, 0.0  ;;  %v228_v11 = vmax.f32 %v220_v8, 0.0 }
  0x45   : > { %v400_v12 = vpack.c.bf16 %v222_v10, %v221_v9  ;;  %v405_v13 = vpack.c.bf16 %v224_v4, %v223_v3 }
  0x46   : > { %v410_v14 = vpack.c.bf16 %v226_v6, %v225_v5  ;;  %v415_v15 = vpack.c.bf16 %v228_v11, %v227_v7 }
  0x47   : > { %401 = vst [vmem:[%s147_s16] sm:$0xff] %v400_v12   ;;  %420 = vst [vmem:[%s147_s16 + $0x8] sm:$0xff] %v405_v13  }
  0x48   : > { %421 = vst [vmem:[%s147_s16 + $0x10] sm:$0xff] %v410_v14   ;;  %422 = vst [vmem:[%s147_s16 + $0x18] sm:$0xff] %v415_v15  }
  0x49 PF: > { %s11_s8 = sadd.s32 1, %s471_s8   ;;  %s525_s6 = smov %s467_s7 }
  0x4a   : > { %p8_p5 = scmp.ge.s32.totalorder %s11_s8, 4   ;;  %s526_s7 = smov %s528_s9 }
  0x4c   :  { %10 = sbr.rel (!%p8_p5) target bundleno = 2 (0x2), region = 54 }

// kernel: generator_forward.29
= control target key start
LH: loop header
LB: loop body
LE: loop exit
PB: predicated region body
PF: predicated region fallthrough
CT: control target
= control target key end

     0   :  { %s1168_s9 = smov 0   ;;  %s1170_s10 = smov 0   ;;  %s1307_s0 = inlined_call_operand.vmem [shape: bf16[32,1152], index: 0, kind: input, shape index: {}]   ;;  %s1308_s1 = inlined_call_operand.vmem [shape: bf16[1152,256], index: 1, kind: input, shape index: {}]   ;;  %s1309_s2 = inlined_call_operand.vmem [shape: bf16[32,256], index: 2, kind: output, shape index: {}]  }
   0x1   :  { %s1172_s11 = smov 0   ;;  %s1174_s12 = smov 0  }
   0x2   :  { %s1176_s13 = smov 0  }
   0x3 LB: > { %s24_s14 = sadd.s32 1, %s1145_s12  ;;  %p47_p1 = scmp.ne.s32.totalorder %s1137_s10, %s1133_s9  ;;  %s1149_s13 = sphi %s1176_s13, %s12_s13   ;;  %s1145_s12 = sphi %s1174_s12, %s1313_s12   ;;  %s1141_s11 = sphi %s1172_s11, %s1312_s11   ;;  %s1137_s10 = sphi %s1170_s10, %s1311_s10   ;;  %s1133_s9 = sphi %s1168_s9, %s1310_s9  }
   0x4   : > { %p25_p0 = scmp.ge.s32.totalorder %s24_s14, 3  ;;  %p48_p2 = scmp.eq.s32.totalorder %s1149_s13, 0 }
   0x5   : > { %s40_s16 = sadd.s32 1, %s1137_s10  ;;  %p896_p5 = scmp.ge.s32.totalorder %s1149_s13, 3 }
   0x6   : > { %s1315_s14 = smov (%p25_p0, %s24_s14), 0  ;;  %p49_p3 = por %p48_p2, %p47_p1 }
   0x7   : > { %s36_s15 = ssub.s32 %s1145_s12, %s1315_s14  ;;  %129 = sbr.rel (%p896_p5) target bundleno = 23 (0x17), region = 16 }
   0x8   : > { %p38_p4 = scmp.eq.s32.totalorder %s36_s15, 0 }
   0xa   : > { %s1203_s17 = scalar_select %p38_p4, %s1137_s10, %s40_s16  }
   0xe   : > { %132 = sbr.rel (!%p49_p3) target bundleno = 23 (0x17), region = 20  ;;  %s134_s18 = sand.u32 (%p49_p3), 1, %s1137_s10  }
   0xf   : > { %s973_s19 = smul.u32 (%p49_p3), 12, %s1145_s12 }
  0x10   : > { %s987_s20 = smul.u32 (%p49_p3), 48, %s134_s18 }
  0x11   : > { %s142_s23 = scalar_lea.vmem (%p49_p3), %s1307_s0, %s973_s19 }
  0x12   : > { %v157_v0 = vld [vmem:[%s142_s23] sm:$0xff] (%p49_p3)  ;;  %v161_v2 = vld [vmem:[%s142_s23 + $0x48] sm:$0xff] (%p49_p3)  ;;  %s136_s24 = scalar_lea.vmem (%p49_p3), [#allocation3], %s987_s20  ;;  %v902_v6 = vld [vmem:[%s142_s23 + $0x50] sm:$0xf] (%p49_p3) }
  0x13   : > { %v159_v1 = vld [vmem:[%s142_s23 + $0x24] sm:$0xff] (%p49_p3)  ;;  %158 = vst [vmem:[%s136_s24] sm:$0xff] (%p49_p3), %v157_v0  ;;  %162 = vst [vmem:[%s136_s24 + $0x18] sm:$0xff] (%p49_p3), %v161_v2  ;;  %v163_v3 = vld [vmem:[%s142_s23 + $0x6c] sm:$0xff] (%p49_p3) }
  0x14   : > { %160 = vst [vmem:[%s136_s24 + $0xc] sm:$0xff] (%p49_p3), %v159_v1  ;;  %v898_v4 = vld [vmem:[%s142_s23 + $0x8] sm:$0xf] (%p49_p3)  ;;  %v900_v5 = vld [vmem:[%s142_s23 + $0x2c] sm:$0xf] (%p49_p3)  ;;  %164 = vst [vmem:[%s136_s24 + $0x24] sm:$0xff] (%p49_p3), %v163_v3 }
  0x15   : > { %899 = vst [vmem:[%s136_s24 + $0x8] sm:$0xf] %v898_v4  ;;  %901 = vst [vmem:[%s136_s24 + $0x14] sm:$0xf] %v900_v5  ;;  %v904_v7 = vld [vmem:[%s142_s23 + $0x74] sm:$0xf] }
  0x16   : > { %903 = vst [vmem:[%s136_s24 + $0x20] sm:$0xf] %v902_v6  ;;  %905 = vst [vmem:[%s136_s24 + $0x2c] sm:$0xf] %v904_v7 }
  0x17 PF: > { %p906_p6 = scmp.ge.s32.totalorder %s1149_s13, 1  ;;  %p199_p7 = scmp.lt.s32.totalorder %s1149_s13, 4 }
  0x19   : > { %p200_p8 = pnand %p906_p6, %p199_p7 }
  0x1a   : > { %s206_s25 = sand.u32 (!%p200_p8), 1, %s1133_s9   ;;  %s244_s26 = smul.u32 (!%p200_p8), 48, %s1141_s11 }
  0x1b   : > { %203 = sbr.rel (%p200_p8) target bundleno = 344 (0x158), region = 50  ;;  %p909_p10 = scmp.ne.s32.totalorder (!%p200_p8), %s1141_s11, 0 }
  0x1c   : > { %s988_s27 = smul.u32 (!%p200_p8), 48, %s206_s25  ;;  %p246_p9 = scmp.lt.s32.totalorder (!%p200_p8), %s244_s26, 143 }
  0x1e   : > { %s1220_s4 = scalar_lea.vmem (!%p200_p8), [#allocation3], %s988_s27 }
  0x22   : > { %s1317_s26 = smov (!%p246_p9, %s244_s26), 143  ;;  %272 = sbr.rel (%p909_p10) target bundleno = 41 (0x29), region = 58 }
  0x23   : > { %s974_s28 = sshll.u32 %s1317_s26, 3  ;;  %v1151_v8 = vmov (!%p909_p10), 0.0  }
  0x24   : > { %s1218_s3 = scalar_lea.vmem %s1308_s1, %s974_s28  ;;  %273 = vst [vmem:[#allocation2] sm:$0xff] (!%p909_p10), %v1151_v8  ;;  %274 = vst [vmem:[#allocation2 + $0x8] sm:$0xff] (!%p909_p10), %v1151_v8 }
  0x25   : > { %275 = vst [vmem:[#allocation2 + $0x10] sm:$0xff] (!%p909_p10), %v1151_v8  ;;  %276 = vst [vmem:[#allocation2 + $0x18] sm:$0xff] (!%p909_p10), %v1151_v8 }
  0x26   : > { %277 = vst [vmem:[#allocation2 + $0x20] sm:$0xff] (!%p909_p10), %v1151_v8  ;;  %278 = vst [vmem:[#allocation2 + $0x28] sm:$0xff] (!%p909_p10), %v1151_v8 }
  0x27   : > { %279 = vst [vmem:[#allocation2 + $0x30] sm:$0xff] (!%p909_p10), %v1151_v8  ;;  %280 = vst [vmem:[#allocation2 + $0x38] sm:$0xff] (!%p909_p10), %v1151_v8 }
  0x29 PF: > { %v1031_v9 = vld [vmem:[%s1218_s3 + $0x4] ss:$8 sps:$4 sm:$0xff]   ;;  %v1033_v10 = vld [vmem:[%s1218_s3] ss:$8 sps:$4 sm:$0xff]   ;;  %v1152_v11 = vmov 0   ;;  %p964_p11 = scmp.ne.s32.totalorder %s1141_s11, 2 }
  0x2a   : > { %702 = vmatprep.mubr.bf16.mxu0 %v1152_v11  ;;  %617 = vmatprep.subr.bf16.mxu1 %v1031_v9  ;;  %v1034_v12 = vld [vmem:[%s1218_s3 + $0x14] ss:$8 sps:$4 sm:$0xff]   ;;  %v1036_v13 = vld [vmem:[%s1218_s3 + $0x10] ss:$8 sps:$4 sm:$0xff]   ;;  %v1037_v14 = vld [vmem:[%s1218_s3 + $0x24] ss:$8 sps:$4 sm:$0xff]  }
  0x2b   : > { %618 = vmatpush1.bf16.msra.mxu1 %v1033_v10  ;;  %v1039_v15 = vld [vmem:[%s1218_s3 + $0x20] ss:$8 sps:$4 sm:$0xff]   ;;  %v1040_v16 = vld [vmem:[%s1218_s3 + $0x34] ss:$8 sps:$4 sm:$0xff]   ;;  %v1042_v17 = vld [vmem:[%s1218_s3 + $0x30] ss:$8 sps:$4 sm:$0xff]  }
  0x2c   : > { %619 = vmatprep.subr.bf16.mxu1 %v1034_v12  ;;  %v1055_v18 = vld [vmem:[%s1218_s3 + $0x104] ss:$8 sps:$4 sm:$0xff]   ;;  %v1057_v19 = vld [vmem:[%s1218_s3 + $0x100] ss:$8 sps:$4 sm:$0xff]   ;;  %v1061_v21 = vld [vmem:[%s1218_s3 + $0x114] ss:$8 sps:$4 sm:$0xff]  }
  0x2d   : > { %v1043_v20 = vld [vmem:[%s1218_s3 + $0x44] ss:$8 sps:$4 sm:$0xff]   ;;  %670 = vmatprep.subr.bf16.mxu0 %v1055_v18  ;;  %v1063_v22 = vld [vmem:[%s1218_s3 + $0x110] ss:$8 sps:$4 sm:$0xff]   ;;  %v1045_v23 = vld [vmem:[%s1218_s3 + $0x40] ss:$8 sps:$4 sm:$0xff]  }
  0x2e   : > { %671 = vmatpush1.bf16.msra.mxu0 %v1057_v19  ;;  %v1046_v24 = vld [vmem:[%s1218_s3 + $0x54] ss:$8 sps:$4 sm:$0xff]   ;;  %v1067_v25 = vld [vmem:[%s1218_s3 + $0x124] ss:$8 sps:$4 sm:$0xff]   ;;  %v1069_v26 = vld [vmem:[%s1218_s3 + $0x120] ss:$8 sps:$4 sm:$0xff]  }
  0x2f   : > { %620 = vmatpush1.bf16.msra.mxu1 %v1036_v13  ;;  %672 = vmatprep.subr.bf16.mxu0 %v1061_v21  ;;  %v1048_v27 = vld [vmem:[%s1218_s3 + $0x50] ss:$8 sps:$4 sm:$0xff]   ;;  %v1073_v28 = vld [vmem:[%s1218_s3 + $0x134] ss:$8 sps:$4 sm:$0xff]   ;;  %v1049_v29 = vld [vmem:[%s1218_s3 + $0x64] ss:$8 sps:$4 sm:$0xff]  }
  0x30   : > { %621 = vmatprep.subr.bf16.mxu1 %v1037_v14  ;;  %v1075_v30 = vld [vmem:[%s1218_s3 + $0x130] ss:$8 sps:$4 sm:$0xff]   ;;  %v1051_v31 = vld [vmem:[%s1218_s3 + $0x60] ss:$8 sps:$4 sm:$0xff]   ;;  %v1079_v32 = vld [vmem:[%s1218_s3 + $0x144] ss:$8 sps:$4 sm:$0xff]  }
  0x31   : > { %v1052_v33 = vld [vmem:[%s1218_s3 + $0x74] ss:$8 sps:$4 sm:$0xff]   ;;  %v1081_v34 = vld [vmem:[%s1218_s3 + $0x140] ss:$8 sps:$4 sm:$0xff]   ;;  %v1054_v35 = vld [vmem:[%s1218_s3 + $0x70] ss:$8 sps:$4 sm:$0xff]  }
  0x32   : > { %673 = vmatpush1.bf16.msra.mxu0 %v1063_v22  ;;  %v1085_v36 = vld [vmem:[%s1218_s3 + $0x154] ss:$8 sps:$4 sm:$0xff]   ;;  %v1058_v37 = vld [vmem:[%s1218_s3 + $0x84] ss:$8 sps:$4 sm:$0xff]   ;;  %v1087_v38 = vld [vmem:[%s1218_s3 + $0x150] ss:$8 sps:$4 sm:$0xff]  }
  0x33   : > { %622 = vmatpush1.bf16.msra.mxu1 %v1039_v15  ;;  %674 = vmatprep.subr.bf16.mxu0 %v1067_v25  ;;  %v1060_v39 = vld [vmem:[%s1218_s3 + $0x80] ss:$8 sps:$4 sm:$0xff]   ;;  %v1091_v40 = vld [vmem:[%s1218_s3 + $0x164] ss:$8 sps:$4 sm:$0xff]   ;;  %v1064_v41 = vld [vmem:[%s1218_s3 + $0x94] ss:$8 sps:$4 sm:$0xff]  }
  0x34   : > { %623 = vmatprep.subr.bf16.mxu1 %v1040_v16  ;;  %v1066_v42 = vld [vmem:[%s1218_s3 + $0x90] ss:$8 sps:$4 sm:$0xff]   ;;  %v1093_v43 = vld [vmem:[%s1218_s3 + $0x160] ss:$8 sps:$4 sm:$0xff]   ;;  %v1097_v45 = vld [vmem:[%s1218_s3 + $0x174] ss:$8 sps:$4 sm:$0xff]  }
  0x35   : > { %v1106_v44 = vld [vmem:[%s1220_s4 + $0x4] ss:$12 sps:$4 sm:$0xff]   ;;  %v1103_v50 = vld [vmem:[%s1220_s4 + $0x8] ss:$12 sps:$4 sm:$0xff]   ;;  %v1107_v55 = vld [vmem:[%s1220_s4 + $0x20] ss:$12 sps:$4 sm:$0xff]  }
  0x36   : > { %675 = vmatpush1.bf16.msra.mxu0 %v1069_v26  ;;  %v1070_v46 = vld [vmem:[%s1218_s3 + $0xa4] ss:$8 sps:$4 sm:$0xff]   ;;  %649 = vmatprep.mubr.bf16.mxu1 %v1106_v44  ;;  %v1099_v47 = vld [vmem:[%s1218_s3 + $0x170] ss:$8 sps:$4 sm:$0xff]   ;;  %v1072_v48 = vld [vmem:[%s1218_s3 + $0xa0] ss:$8 sps:$4 sm:$0xff]  }
  0x37   : > { %624 = vmatpush1.bf16.msra.mxu1 %v1042_v17  ;;  %676 = vmatprep.subr.bf16.mxu0 %v1073_v28  ;;  %v1076_v49 = vld [vmem:[%s1218_s3 + $0xb4] ss:$8 sps:$4 sm:$0xff]   ;;  %v1078_v51 = vld [vmem:[%s1218_s3 + $0xb0] ss:$8 sps:$4 sm:$0xff]   ;;  %v1082_v52 = vld [vmem:[%s1218_s3 + $0xc4] ss:$8 sps:$4 sm:$0xff]  }
  0x38   : > { %625 = vmatprep.subr.bf16.mxu1 %v1043_v20  ;;  %v1084_v53 = vld [vmem:[%s1218_s3 + $0xc0] ss:$8 sps:$4 sm:$0xff]   ;;  %v1088_v54 = vld [vmem:[%s1218_s3 + $0xd4] ss:$8 sps:$4 sm:$0xff]   ;;  %v1090_v56 = vld [vmem:[%s1218_s3 + $0xd0] ss:$8 sps:$4 sm:$0xff]  }
  0x39   : > { %v1094_v57 = vld [vmem:[%s1218_s3 + $0xe4] ss:$8 sps:$4 sm:$0xff]   ;;  %v1096_v58 = vld [vmem:[%s1218_s3 + $0xe0] ss:$8 sps:$4 sm:$0xff]   ;;  %v1100_v59 = vld [vmem:[%s1218_s3 + $0xf4] ss:$8 sps:$4 sm:$0xff]  }
  0x3a   : > { %677 = vmatpush1.bf16.msra.mxu0 %v1075_v30  ;;  %v1102_v60 = vld [vmem:[%s1218_s3 + $0xf0] ss:$8 sps:$4 sm:$0xff]   ;;  %v281_v8 = vld [vmem:[#allocation2] sm:$0xff] }
  0x3b   : > { %626 = vmatpush1.bf16.msra.mxu1 %v1045_v23  ;;  %678 = vmatprep.subr.bf16.mxu0 %v1079_v32  ;;  %v1104_v61 = vld [vmem:[%s1220_s4] ss:$12 sps:$4 sm:$0xff]   ;;  %v1108_v62 = vld [vmem:[%s1220_s4 + $0x1c] ss:$12 sps:$4 sm:$0xff]   ;;  %v1110_v63 = vld [vmem:[%s1220_s4 + $0x18] ss:$12 sps:$4 sm:$0xff]  }
  0x3c   : > { %627 = vmatprep.subr.bf16.mxu1 %v1046_v24  ;;  %v283_v14 = vld [vmem:[#allocation2 + $0x10] sm:$0xff]  ;;  %v284_v18 = vld [vmem:[#allocation2 + $0x18] sm:$0xff]  ;;  %v285_v24 = vld [vmem:[#allocation2 + $0x20] sm:$0xff] }
  0x3d   : > { %v287_v30 = vld [vmem:[#allocation2 + $0x30] sm:$0xff] }
  0x3e   : > { %679 = vmatpush1.bf16.msra.mxu0 %v1081_v34  ;;  %v288_v34 = vld [vmem:[#allocation2 + $0x38] sm:$0xff] }
  0x3f   : > { %628 = vmatpush1.bf16.msra.mxu1 %v1048_v27  ;;  %680 = vmatprep.subr.bf16.mxu0 %v1085_v36  ;;  %v286_v27 = vld [vmem:[#allocation2 + $0x28] sm:$0xff] }
  0x40   : > { %629 = vmatprep.subr.bf16.mxu1 %v1049_v29 }
  0x42   : > { %681 = vmatpush1.bf16.msra.mxu0 %v1087_v38 }
  0x43   : > { %630 = vmatpush1.bf16.msra.mxu1 %v1051_v31  ;;  %682 = vmatprep.subr.bf16.mxu0 %v1091_v40 }
  0x44   : > { %631 = vmatprep.subr.bf16.mxu1 %v1052_v33 }
  0x46   : > { %683 = vmatpush1.bf16.msra.mxu0 %v1093_v43 }
  0x47   : > { %632 = vmatpush1.bf16.msra.mxu1 %v1054_v35  ;;  %684 = vmatprep.subr.bf16.mxu0 %v1097_v45 }
  0x48   : > { %633 = vmatprep.subr.bf16.mxu1 %v1058_v37 }
  0x4a   : > { %685 = vmatpush1.bf16.msra.mxu0 %v1099_v47 }
  0x4b   : > { %634 = vmatpush1.bf16.msra.mxu1 %v1060_v39 }
  0x4c   : > { %635 = vmatprep.subr.bf16.mxu1 %v1064_v41 }
  0x4d   : > { %703 = vmatmul.mubr.bf16.vlgmr.msra.gmra.mrb[0].mxu0 %v1103_v50 }
  0x4e   : > { %712 = vmatprep.mubr.bf16.mxu0 %v1152_v11  ;;  %v282_v11 = vld [vmem:[#allocation2 + $0x8] sm:$0xff] }
  0x4f   : > { %636 = vmatpush1.bf16.msra.mxu1 %v1066_v42 }
  0x50   : > { %637 = vmatprep.subr.bf16.mxu1 %v1070_v46 }
  0x53   : > { %638 = vmatpush1.bf16.msra.mxu1 %v1072_v48 }
  0x54   : > { %639 = vmatprep.subr.bf16.mxu1 %v1076_v49 }
  0x55   : > { %713 = vmatmul.mubr.bf16.gmra.mrb[4].mxu0 %v1107_v55 }
  0x57   : > { %640 = vmatpush1.bf16.msra.mxu1 %v1078_v51 }
  0x58   : > { %641 = vmatprep.subr.bf16.mxu1 %v1082_v52 }
  0x5b   : > { %642 = vmatpush1.bf16.msra.mxu1 %v1084_v53 }
  0x5c   : > { %643 = vmatprep.subr.bf16.mxu1 %v1088_v54 }
  0x5f   : > { %644 = vmatpush1.bf16.msra.mxu1 %v1090_v56 }
  0x60   : > { %645 = vmatprep.subr.bf16.mxu1 %v1094_v57 }
  0x63   : > { %646 = vmatpush1.bf16.msra.mxu1 %v1096_v58 }
  0x64   : > { %647 = vmatprep.subr.bf16.mxu1 %v1100_v59 }
  0x67   : > { %648 = vmatpush1.bf16.msra.mxu1 %v1102_v60 }
  0x6a   : > { %650 = vmatmul.mubr.bf16.vlgmr.msra.gmra.mrb[0].mxu1 %v1104_v61 }
  0x6b   : > { %659 = vmatprep.mubr.bf16.mxu1 %v1108_v62 }
  0x72   : > { %660 = vmatmul.mubr.bf16.gmra.mrb[4].mxu1 %v1110_v63 }
 0x120   : > { %v704_v0 = vpop.f32.mrb[0].mxu0 }
 0x121   : > { %v706_v1 = vpop.f32.mrb[1].mxu0 }
 0x122   : > { %v708_v2 = vpop.f32.mrb[2].mxu0 }
 0x123   : > { %v710_v3 = vpop.f32.mrb[3].mxu0 }
 0x128   : > { %v714_v4 = vpop.f32.mrb[4].mxu0 }
 0x129   : > { %v716_v5 = vpop.f32.mrb[5].mxu0 }
 0x12a   : > { %v718_v6 = vpop.f32.mrb[6].mxu0 }
 0x12b   : > { %v720_v7 = vpop.f32.mrb[7].mxu0 }
 0x13d   : > { %v651_v9 = vpop.f32.mrb[0].mxu1 }
 0x13e   : > { %v705_v10 = vadd.f32 %v704_v0, %v651_v9  ;;  %v653_v12 = vpop.f32.mrb[1].mxu1 }
 0x13f   : > { %v707_v13 = vadd.f32 %v706_v1, %v653_v12  ;;  %v655_v15 = vpop.f32.mrb[2].mxu1 }
 0x140   : > { %v723_v16 = vadd.f32 %v705_v10, %v281_v8  ;;  %v709_v17 = vadd.f32 %v708_v2, %v655_v15  ;;  %v657_v19 = vpop.f32.mrb[3].mxu1 }
 0x141   : > { %v724_v20 = vadd.f32 %v707_v13, %v282_v11  ;;  %v711_v21 = vadd.f32 %v710_v3, %v657_v19 }
 0x142   : > { %731 = vst [vmem:[#allocation2] sm:$0xff] %v723_v16  ;;  %v725_v22 = vadd.f32 %v709_v17, %v283_v14 }
 0x143   : > { %732 = vst [vmem:[#allocation2 + $0x8] sm:$0xff] %v724_v20  ;;  %v726_v23 = vadd.f32 %v711_v21, %v284_v18 }
 0x144   : > { %733 = vst [vmem:[#allocation2 + $0x10] sm:$0xff] %v725_v22 }
 0x145   : > { %734 = vst [vmem:[#allocation2 + $0x18] sm:$0xff] %v726_v23  ;;  %v661_v25 = vpop.f32.mrb[4].mxu1 }
 0x146   : > { %v715_v26 = vadd.f32 %v714_v4, %v661_v25  ;;  %v663_v28 = vpop.f32.mrb[5].mxu1 }
 0x147   : > { %v717_v29 = vadd.f32 %v716_v5, %v663_v28  ;;  %v665_v31 = vpop.f32.mrb[6].mxu1  ;;  %742 = sbr.rel (%p964_p11) target bundleno = 344 (0x158), region = 62 }
 0x148   : > { %v727_v32 = vadd.f32 %v715_v26, %v285_v24  ;;  %v719_v33 = vadd.f32 %v718_v6, %v665_v31  ;;  %v667_v35 = vpop.f32.mrb[7].mxu1 }
 0x149   : > { %v728_v36 = vadd.f32 %v717_v29, %v286_v27  ;;  %v721_v37 = vadd.f32 %v720_v7, %v667_v35  ;;  %v743_v40 = vld [vmem:[#allocation2] sm:$0xff] (!%p964_p11) }
 0x14a   : > { %735 = vst [vmem:[#allocation2 + $0x20] sm:$0xff] %v727_v32  ;;  %v729_v38 = vadd.f32 %v719_v33, %v287_v30  ;;  %v744_v41 = vld [vmem:[#allocation2 + $0x8] sm:$0xff] (!%p964_p11) }
 0x14b   : > { %736 = vst [vmem:[#allocation2 + $0x28] sm:$0xff] %v728_v36  ;;  %v730_v39 = vadd.f32 %v721_v37, %v288_v34  ;;  %v745_v42 = vld [vmem:[#allocation2 + $0x10] sm:$0xff] (!%p964_p11)  ;;  %v975_v43 = vpack.c.bf16 (!%p964_p11), %v744_v41, %v743_v40 }
 0x14c   : > { %737 = vst [vmem:[#allocation2 + $0x30] sm:$0xff] %v729_v38  ;;  %v746_v44 = vld [vmem:[#allocation2 + $0x18] sm:$0xff] (!%p964_p11) }
 0x14d   : > { %738 = vst [vmem:[#allocation2 + $0x38] sm:$0xff] %v730_v39  ;;  %v976_v47 = vpack.c.bf16 (!%p964_p11), %v746_v44, %v745_v42  ;;  %775 = vst [vmem:[%s1309_s2] sm:$0xff] (!%p964_p11), %v975_v43 }
 0x14f   : > { %776 = vst [vmem:[%s1309_s2 + $0x8] sm:$0xff] %v976_v47 }
 0x151   : > { %v747_v45 = vld [vmem:[#allocation2 + $0x20] sm:$0xff] }
 0x152   : > { %v748_v46 = vld [vmem:[#allocation2 + $0x28] sm:$0xff] }
 0x153   : > { %v977_v48 = vpack.c.bf16 %v748_v46, %v747_v45  ;;  %v749_v49 = vld [vmem:[#allocation2 + $0x30] sm:$0xff] }
 0x154   : > { %v750_v50 = vld [vmem:[#allocation2 + $0x38] sm:$0xff] }
 0x155   : > { %v978_v51 = vpack.c.bf16 %v750_v50, %v749_v49  ;;  %777 = vst [vmem:[%s1309_s2 + $0x10] sm:$0xff] %v977_v48 }
 0x157   : > { %778 = vst [vmem:[%s1309_s2 + $0x18] sm:$0xff] %v978_v51 }
 0x158 PF: > { %s12_s13 = sadd.s32 1, %s1149_s13   ;;  %s1310_s9 = smov %s1137_s10 }
 0x159   : > { %p9_p12 = scmp.ge.s32.totalorder %s12_s13, 5   ;;  %s1311_s10 = smov %s1203_s17 }
 0x15a   : > { %s1312_s11 = smov %s1145_s12  ;;  %s1313_s12 = smov %s1315_s14 }
 0x15b   :  { %11 = sbr.rel (!%p9_p12) target bundleno = 3 (0x3), region = 106 }

// kernel: generator_forward.30
= control target key start
LH: loop header
LB: loop body
LE: loop exit
PB: predicated region body
PF: predicated region fallthrough
CT: control target
= control target key end

     0   :  { %s495_s6 = smov 0   ;;  %s497_s7 = smov 0   ;;  %s595_s0 = inlined_call_operand.vmem [shape: bf16[2,16,256], index: 0, kind: input, shape index: {}]   ;;  %s596_s1 = inlined_call_operand.vmem [shape: bf16[2,16,256], index: 1, kind: output, shape index: {}]  }
   0x1   :  { %s499_s8 = smov 0   ;;  %s501_s9 = smov 0  }
   0x2   :  { %s503_s10 = smov 0   ;;  %s505_s11 = smov 0  }
   0x3   :  { %s507_s12 = smov 0  }
   0x4 LB: > { %s20_s13 = sadd.s32 1, %s475_s10  ;;  %s23_s14 = sadd.s32 1, %s479_s11  ;;  %s483_s12 = sphi %s507_s12, %s11_s12   ;;  %s479_s11 = sphi %s505_s11, %s603_s11   ;;  %s475_s10 = sphi %s503_s10, %s602_s10   ;;  %s471_s9 = sphi %s501_s9, %s601_s9   ;;  %s467_s8 = sphi %s499_s8, %s600_s8   ;;  %s463_s7 = sphi %s497_s7, %s599_s7   ;;  %s459_s6 = sphi %s495_s6, %s598_s6  }
   0x5   : > { %p21_p0 = scmp.ge.s32.totalorder %s20_s13, 2  ;;  %s343_s15 = sadd.s32 4294967295, %s483_s12  }
   0x6   : > { %p39_p1 = scmp.ne.s32.totalorder %s463_s7, %s459_s6  ;;  %p40_p2 = scmp.eq.s32.totalorder %s483_s12, 0 }
   0x7   : > { %s605_s13 = smov (%p21_p0, %s20_s13), 0  ;;  %s607_s14 = smov (!%p21_p0, %s23_s14), %s479_s11 }
   0x8   : > { %p25_p3 = scmp.ge.s32.totalorder %s607_s14, 2  ;;  %p71_p4 = scmp.eq.s32.totalorder %s343_s15, 3 }
   0x9   : > { %s28_s16 = ssub.s32 %s475_s10, %s605_s13  ;;  %p41_p5 = por %p40_p2, %p39_p1 }
   0xa   : > { %s609_s14 = smov (%p25_p3, %s607_s14), 0  ;;  %p543_p6 = por %p71_p4, %p39_p1 }
   0xb   : > { %s27_s18 = ssub.s32 %s479_s11, %s609_s14  ;;  %s32_s20 = sadd.s32 1, %s463_s7 }
   0xc   : > { %s29_s19 = sor.u32 %s28_s16, %s27_s18  ;;  %p346_p8 = scmp.ge.s32.totalorder %s483_s12, 4 }
   0xd   : > { %p30_p7 = scmp.eq.s32.totalorder %s29_s19, 0 }
   0xe   : > { %93 = sbr.rel (%p346_p8) target bundleno = 28 (0x1c), region = 16 }
   0xf   : > { %s551_s21 = scalar_select %p30_p7, %s463_s7, %s32_s20  }
  0x15   : > { %96 = sbr.rel (!%p41_p5) target bundleno = 28 (0x1c), region = 20  ;;  %s98_s22 = sand.u32 (%p41_p5), 1, %s463_s7  }
  0x16   : > { %s348_s23 = sshll.u32 (%p41_p5), %s479_s11, 2  ;;  %s347_s24 = sshll.u32 (%p41_p5), %s98_s22, 3 }
  0x17   : > { %s102_s25 = sadd.s32 (%p41_p5), %s475_s10, %s348_s23  ;;  %s100_s30 = scalar_lea.vmem (%p41_p5), [#allocation2], %s347_s24 }
  0x18   : > { %s349_s26 = sshll.u32 (%p41_p5), %s102_s25, 2 }
  0x19   : > { %s104_s29 = scalar_lea.vmem (%p41_p5), %s595_s0, %s349_s26 }
  0x1a   : > { %v120_v0 = vld [vmem:[%s104_s29] sm:$0xf] (%p41_p5)  ;;  %v122_v1 = vld [vmem:[%s104_s29 + $0x8] sm:$0xf] (%p41_p5) }
  0x1b   : > { %121 = vst [vmem:[%s100_s30] sm:$0xf] (%p41_p5), %v120_v0  ;;  %123 = vst [vmem:[%s100_s30 + $0x4] sm:$0xf] (%p41_p5), %v122_v1 }
  0x1c PF: > { %p350_p9 = scmp.ge.s32.totalorder %s483_s12, 1  ;;  %p149_p10 = scmp.lt.s32.totalorder %s483_s12, 5 }
  0x1e   : > { %p150_p11 = pnand %p350_p9, %p149_p10 }
  0x1f   : > { %s156_s2 = sand.u32 (!%p150_p11), 1, %s459_s6  }
  0x20   : > { %153 = sbr.rel (%p150_p11) target bundleno = 85 (0x55), region = 61  ;;  %s563_s3 = sshll.u32 (!%p150_p11), %s156_s2, 3 }
  0x21   : > { %s158_s4 = scalar_lea.vmem (!%p150_p11), [#allocation2], %s563_s3  ;;  %s173_s5 = scalar_lea.vmem (!%p150_p11), [#allocation3], %s563_s3 }
  0x22   : > { %v363_v2 = vld [vmem:[%s158_s4] sm:$0xff] (!%p150_p11)  }
  0x23   : > { %v364_v3 = vunpack.c.l.bf16 (!%p150_p11), %v363_v2  ;;  %v365_v4 = vunpack.c.h.bf16 (!%p150_p11), %v363_v2 }
  0x25   : > { %v178_v5 = vadd.f32 (!%p150_p11), %v365_v4, %v364_v3  ;;  %v187_v6 = vmul.f32 (!%p150_p11), %v364_v3, %v364_v3  ;;  %v188_v7 = vmul.f32 (!%p150_p11), %v365_v4, %v365_v4 }
  0x27   : > { %v179_v8 = vrot.slane %v178_v5, 4  ;;  %v189_v9 = vadd.f32 %v188_v7, %v187_v6  ;;  %s356_s6 = sshll.u32 (%p543_p6), %s471_s9, 2 }
  0x28   : > { %s225_s15 = sadd.s32 (%p543_p6), %s467_s8, %s356_s6 }
  0x29   : > { %v180_v10 = vadd.f32 %v179_v8, %v178_v5  ;;  %v190_v11 = vrot.slane %v189_v9, 4  ;;  %s357_s16 = sshll.u32 (%p543_p6), %s225_s15, 2 }
  0x2a   : > { %s227_s20 = scalar_lea.vmem (%p543_p6), %s596_s1, %s357_s16 }
  0x2b   : > { %v181_v12 = vrot.slane %v180_v10, 2  ;;  %v191_v13 = vadd.f32 %v190_v11, %v189_v9 }
  0x2d   : > { %v182_v14 = vadd.f32 %v181_v12, %v180_v10  ;;  %v192_v15 = vrot.slane %v191_v13, 2 }
  0x2f   : > { %v183_v16 = vrot.slane %v182_v14, 1  ;;  %v193_v17 = vadd.f32 %v192_v15, %v191_v13 }
  0x31   : > { %v184_v18 = vadd.f32 %v183_v16, %v182_v14  ;;  %v194_v19 = vrot.slane %v193_v17, 1 }
  0x33   : > { %v186_v20 = vmul.f32 0.0625, %v184_v18  ;;  %v195_v21 = vadd.f32 %v194_v19, %v193_v17 }
  0x35   : > { %v196_v22 = vmul.f32 0.0625, %v195_v21  ;;  %v197_v23 = vmul.f32 %v186_v20, %v186_v20  ;;  %v199_v26 = vsub.f32 %v364_v3, %v186_v20  ;;  %v200_v27 = vsub.f32 %v365_v4, %v186_v20 }
  0x37   : > { %v198_v24 = vsub.f32 %v196_v22, %v197_v23 }
  0x39   : > { %v201_v25 = vadd.f32 1e-05, %v198_v24 }
  0x3b   : > { %427 = vrsqrt.f32 %v201_v25 }
  0x45   : > { %v428_v28 = vpop.eup %427 }
  0x46   : > { %v203_v29 = vmul.f32 %v428_v28, %v199_v26  ;;  %v204_v30 = vmul.f32 %v428_v28, %v200_v27  ;;  %223 = sbr.rel (!%p543_p6) target bundleno = 85 (0x55), region = 69 }
  0x48   : > { %v205_v31 = vmax.f32 %v203_v29, 0.0  ;;  %v206_v32 = vmax.f32 %v204_v30, 0.0 }
  0x4a   : > { %v369_v33 = vpack.c.bf16 %v206_v32, %v205_v31 }
  0x4c   : > { %370 = vst [vmem:[%s173_s5] sm:$0xff] %v369_v33  }
  0x53   : > { %v243_v34 = vld [vmem:[%s173_s5] sm:$0xf]  ;;  %v245_v35 = vld [vmem:[%s173_s5 + $0x4] sm:$0xf] }
  0x54   : > { %244 = vst [vmem:[%s227_s20] sm:$0xf] %v243_v34  ;;  %246 = vst [vmem:[%s227_s20 + $0x8] sm:$0xf] %v245_v35 }
  0x55 PF: > { %s11_s12 = sadd.s32 1, %s483_s12   ;;  %s598_s6 = smov %s463_s7 }
  0x56   : > { %p8_p12 = scmp.ge.s32.totalorder %s11_s12, 6   ;;  %s599_s7 = smov %s551_s21 }
  0x57   : > { %s600_s8 = smov %s475_s10  ;;  %s601_s9 = smov %s479_s11 }
  0x58   : > { %s602_s10 = smov %s605_s13  ;;  %s603_s11 = smov %s609_s14 }
  0x59   :  { %10 = sbr.rel (!%p8_p12) target bundleno = 4 (0x4), region = 141 }

// kernel: generator_forward.31
= control target key start
LH: loop header
LB: loop body
LE: loop exit
PB: predicated region body
PF: predicated region fallthrough
CT: control target
= control target key end

     0   :  { %s1701_s9 = smov 0   ;;  %s1703_s10 = smov 0   ;;  %s1892_s0 = inlined_call_operand.vmem [shape: bf16[32,2304], index: 0, kind: input, shape index: {}]   ;;  %s1893_s1 = inlined_call_operand.vmem [shape: bf16[2304,256], index: 1, kind: input, shape index: {}]   ;;  %s1894_s2 = inlined_call_operand.vmem [shape: bf16[32,256], index: 2, kind: output, shape index: {}]  }
   0x1   :  { %s1705_s11 = smov 0   ;;  %s1707_s12 = smov 0  }
   0x2   :  { %s1709_s13 = smov 0  }
   0x3 LB: > { %s24_s14 = sadd.s32 1, %s1679_s12  ;;  %p47_p1 = scmp.ne.s32.totalorder %s1671_s10, %s1667_s9  ;;  %s1683_s13 = sphi %s1709_s13, %s12_s13   ;;  %s1679_s12 = sphi %s1707_s12, %s1898_s12   ;;  %s1675_s11 = sphi %s1705_s11, %s1897_s11   ;;  %s1671_s10 = sphi %s1703_s10, %s1896_s10   ;;  %s1667_s9 = sphi %s1701_s9, %s1895_s9  }
   0x4   : > { %p25_p0 = scmp.ge.s32.totalorder %s24_s14, 3  ;;  %p48_p2 = scmp.eq.s32.totalorder %s1683_s13, 0 }
   0x5   : > { %s40_s16 = sadd.s32 1, %s1671_s10  ;;  %p1263_p5 = scmp.ge.s32.totalorder %s1683_s13, 3 }
   0x6   : > { %s1900_s14 = smov (%p25_p0, %s24_s14), 0  ;;  %p49_p3 = por %p48_p2, %p47_p1 }
   0x7   : > { %s36_s15 = ssub.s32 %s1679_s12, %s1900_s14  ;;  %129 = sbr.rel (%p1263_p5) target bundleno = 25 (0x19), region = 16 }
   0x8   : > { %p38_p4 = scmp.eq.s32.totalorder %s36_s15, 0 }
   0xa   : > { %s1736_s17 = scalar_select %p38_p4, %s1671_s10, %s40_s16  }
   0xe   : > { %132 = sbr.rel (!%p49_p3) target bundleno = 25 (0x19), region = 20  ;;  %s134_s18 = sand.u32 (%p49_p3), 1, %s1671_s10  }
   0xf   : > { %s1386_s19 = smul.u32 (%p49_p3), 24, %s1679_s12 }
  0x10   : > { %s1440_s20 = smul.u32 (%p49_p3), 96, %s134_s18 }
  0x11   : > { %s142_s23 = scalar_lea.vmem (%p49_p3), %s1892_s0, %s1386_s19 }
  0x12   : > { %v155_v0 = vld [vmem:[%s142_s23] sm:$0xff] (%p49_p3)  ;;  %v157_v1 = vld [vmem:[%s142_s23 + $0x8] sm:$0xff] (%p49_p3)  ;;  %v159_v2 = vld [vmem:[%s142_s23 + $0x10] sm:$0xff] (%p49_p3)  ;;  %s136_s24 = scalar_lea.vmem (%p49_p3), [#allocation3], %s1440_s20 }
  0x13   : > { %156 = vst [vmem:[%s136_s24] sm:$0xff] (%p49_p3), %v155_v0  ;;  %158 = vst [vmem:[%s136_s24 + $0x8] sm:$0xff] (%p49_p3), %v157_v1  ;;  %v161_v3 = vld [vmem:[%s142_s23 + $0x48] sm:$0xff] (%p49_p3)  ;;  %v163_v4 = vld [vmem:[%s142_s23 + $0x50] sm:$0xff] (%p49_p3) }
  0x14   : > { %160 = vst [vmem:[%s136_s24 + $0x10] sm:$0xff] (%p49_p3), %v159_v2  ;;  %v165_v5 = vld [vmem:[%s142_s23 + $0x58] sm:$0xff] (%p49_p3)  ;;  %162 = vst [vmem:[%s136_s24 + $0x18] sm:$0xff] (%p49_p3), %v161_v3  ;;  %v167_v6 = vld [vmem:[%s142_s23 + $0x90] sm:$0xff] (%p49_p3) }
  0x15   : > { %164 = vst [vmem:[%s136_s24 + $0x20] sm:$0xff] %v163_v4  ;;  %166 = vst [vmem:[%s136_s24 + $0x28] sm:$0xff] %v165_v5  ;;  %v169_v7 = vld [vmem:[%s142_s23 + $0x98] sm:$0xff]  ;;  %v171_v8 = vld [vmem:[%s142_s23 + $0xa0] sm:$0xff] }
  0x16   : > { %168 = vst [vmem:[%s136_s24 + $0x30] sm:$0xff] %v167_v6  ;;  %170 = vst [vmem:[%s136_s24 + $0x38] sm:$0xff] %v169_v7  ;;  %v173_v9 = vld [vmem:[%s142_s23 + $0xd8] sm:$0xff]  ;;  %v175_v10 = vld [vmem:[%s142_s23 + $0xe0] sm:$0xff] }
  0x17   : > { %172 = vst [vmem:[%s136_s24 + $0x40] sm:$0xff] %v171_v8  ;;  %v177_v11 = vld [vmem:[%s142_s23 + $0xe8] sm:$0xff]  ;;  %174 = vst [vmem:[%s136_s24 + $0x48] sm:$0xff] %v173_v9 }
  0x18   : > { %176 = vst [vmem:[%s136_s24 + $0x50] sm:$0xff] %v175_v10  ;;  %178 = vst [vmem:[%s136_s24 + $0x58] sm:$0xff] %v177_v11 }
  0x19 PF: > { %p1265_p6 = scmp.ge.s32.totalorder %s1683_s13, 1  ;;  %p198_p7 = scmp.lt.s32.totalorder %s1683_s13, 4 }
  0x1b   : > { %p199_p8 = pnand %p1265_p6, %p198_p7 }
  0x1c   : > { %s205_s25 = sand.u32 (!%p199_p8), 1, %s1667_s9   ;;  %s243_s26 = smul.u32 (!%p199_p8), 96, %s1675_s11 }
  0x1d   : > { %202 = sbr.rel (%p199_p8) target bundleno = 403 (0x193), region = 47  ;;  %p1268_p10 = scmp.ne.s32.totalorder (!%p199_p8), %s1675_s11, 0 }
  0x1e   : > { %s1441_s27 = smul.u32 (!%p199_p8), 96, %s205_s25  ;;  %p245_p9 = scmp.lt.s32.totalorder (!%p199_p8), %s243_s26, 287 }
  0x20   : > { %s1753_s4 = scalar_lea.vmem (!%p199_p8), [#allocation3], %s1441_s27 }
  0x24   : > { %s1902_s26 = smov (!%p245_p9, %s243_s26), 287  ;;  %270 = sbr.rel (%p1268_p10) target bundleno = 43 (0x2b), region = 55 }
  0x25   : > { %s1387_s28 = sshll.u32 %s1902_s26, 3  ;;  %v1685_v12 = vmov (!%p1268_p10), 0.0  }
  0x26   : > { %s1751_s3 = scalar_lea.vmem %s1893_s1, %s1387_s28  ;;  %271 = vst [vmem:[#allocation2] sm:$0xff] (!%p1268_p10), %v1685_v12  ;;  %272 = vst [vmem:[#allocation2 + $0x8] sm:$0xff] (!%p1268_p10), %v1685_v12 }
  0x27   : > { %273 = vst [vmem:[#allocation2 + $0x10] sm:$0xff] (!%p1268_p10), %v1685_v12  ;;  %274 = vst [vmem:[#allocation2 + $0x18] sm:$0xff] (!%p1268_p10), %v1685_v12 }
  0x28   : > { %275 = vst [vmem:[#allocation2 + $0x20] sm:$0xff] (!%p1268_p10), %v1685_v12  ;;  %276 = vst [vmem:[#allocation2 + $0x28] sm:$0xff] (!%p1268_p10), %v1685_v12 }
  0x29   : > { %277 = vst [vmem:[#allocation2 + $0x30] sm:$0xff] (!%p1268_p10), %v1685_v12  ;;  %278 = vst [vmem:[#allocation2 + $0x38] sm:$0xff] (!%p1268_p10), %v1685_v12 }
  0x2b PF: > { %v1483_v13 = vld [vmem:[%s1751_s3 + $0x4] ss:$8 sps:$4 sm:$0xff]   ;;  %v1487_v15 = vld [vmem:[%s1751_s3] ss:$8 sps:$4 sm:$0xff]   ;;  %v1489_v17 = vld [vmem:[%s1751_s3 + $0x14] ss:$8 sps:$4 sm:$0xff]  }
  0x2c   : > { %v1485_v14 = vld [vmem:[%s1751_s3 + $0x104] ss:$8 sps:$4 sm:$0xff]   ;;  %935 = vmatprep.subr.bf16.mxu1 %v1483_v13  ;;  %v1488_v16 = vld [vmem:[%s1751_s3 + $0x100] ss:$8 sps:$4 sm:$0xff]   ;;  %v1491_v18 = vld [vmem:[%s1751_s3 + $0x114] ss:$8 sps:$4 sm:$0xff]  }
  0x2d   : > { %988 = vmatprep.subr.bf16.mxu0 %v1485_v14  ;;  %936 = vmatpush1.bf16.msra.mxu1 %v1487_v15  ;;  %v1493_v19 = vld [vmem:[%s1751_s3 + $0x10] ss:$8 sps:$4 sm:$0xff]   ;;  %v1495_v21 = vld [vmem:[%s1751_s3 + $0x24] ss:$8 sps:$4 sm:$0xff]   ;;  %v1499_v23 = vld [vmem:[%s1751_s3 + $0x20] ss:$8 sps:$4 sm:$0xff]  }
  0x2e   : > { %989 = vmatpush1.bf16.msra.mxu0 %v1488_v16  ;;  %937 = vmatprep.subr.bf16.mxu1 %v1489_v17  ;;  %v1494_v20 = vld [vmem:[%s1751_s3 + $0x110] ss:$8 sps:$4 sm:$0xff]   ;;  %v1497_v22 = vld [vmem:[%s1751_s3 + $0x124] ss:$8 sps:$4 sm:$0xff]   ;;  %v1500_v24 = vld [vmem:[%s1751_s3 + $0x120] ss:$8 sps:$4 sm:$0xff]  }
  0x2f   : > { %990 = vmatprep.subr.bf16.mxu0 %v1491_v18  ;;  %v1501_v25 = vld [vmem:[%s1751_s3 + $0x34] ss:$8 sps:$4 sm:$0xff]   ;;  %v1505_v27 = vld [vmem:[%s1751_s3 + $0x30] ss:$8 sps:$4 sm:$0xff]   ;;  %v1507_v29 = vld [vmem:[%s1751_s3 + $0x44] ss:$8 sps:$4 sm:$0xff]  }
  0x30   : > { %v1503_v26 = vld [vmem:[%s1751_s3 + $0x134] ss:$8 sps:$4 sm:$0xff]   ;;  %v1506_v28 = vld [vmem:[%s1751_s3 + $0x130] ss:$8 sps:$4 sm:$0xff]   ;;  %v1509_v30 = vld [vmem:[%s1751_s3 + $0x144] ss:$8 sps:$4 sm:$0xff]  }
  0x31   : > { %938 = vmatpush1.bf16.msra.mxu1 %v1493_v19  ;;  %v1511_v31 = vld [vmem:[%s1751_s3 + $0x40] ss:$8 sps:$4 sm:$0xff]   ;;  %v1513_v33 = vld [vmem:[%s1751_s3 + $0x54] ss:$8 sps:$4 sm:$0xff]   ;;  %v1517_v35 = vld [vmem:[%s1751_s3 + $0x50] ss:$8 sps:$4 sm:$0xff]  }
  0x32   : > { %991 = vmatpush1.bf16.msra.mxu0 %v1494_v20  ;;  %939 = vmatprep.subr.bf16.mxu1 %v1495_v21  ;;  %v1512_v32 = vld [vmem:[%s1751_s3 + $0x140] ss:$8 sps:$4 sm:$0xff]   ;;  %v1515_v34 = vld [vmem:[%s1751_s3 + $0x154] ss:$8 sps:$4 sm:$0xff]   ;;  %v1518_v36 = vld [vmem:[%s1751_s3 + $0x150] ss:$8 sps:$4 sm:$0xff]  }
  0x33   : > { %992 = vmatprep.subr.bf16.mxu0 %v1497_v22  ;;  %v1519_v37 = vld [vmem:[%s1751_s3 + $0x64] ss:$8 sps:$4 sm:$0xff]   ;;  %v1523_v39 = vld [vmem:[%s1751_s3 + $0x60] ss:$8 sps:$4 sm:$0xff]   ;;  %v1525_v41 = vld [vmem:[%s1751_s3 + $0x74] ss:$8 sps:$4 sm:$0xff]  }
  0x34   : > { %v1521_v38 = vld [vmem:[%s1751_s3 + $0x164] ss:$8 sps:$4 sm:$0xff]   ;;  %v1524_v40 = vld [vmem:[%s1751_s3 + $0x160] ss:$8 sps:$4 sm:$0xff]   ;;  %v1527_v42 = vld [vmem:[%s1751_s3 + $0x174] ss:$8 sps:$4 sm:$0xff]  }
  0x35   : > { %940 = vmatpush1.bf16.msra.mxu1 %v1499_v23  ;;  %v1529_v43 = vld [vmem:[%s1751_s3 + $0x70] ss:$8 sps:$4 sm:$0xff]   ;;  %v1531_v45 = vld [vmem:[%s1751_s3 + $0x84] ss:$8 sps:$4 sm:$0xff]   ;;  %v1535_v47 = vld [vmem:[%s1751_s3 + $0x80] ss:$8 sps:$4 sm:$0xff]  }
  0x36   : > { %993 = vmatpush1.bf16.msra.mxu0 %v1500_v24  ;;  %941 = vmatprep.subr.bf16.mxu1 %v1501_v25  ;;  %v1530_v44 = vld [vmem:[%s1751_s3 + $0x170] ss:$8 sps:$4 sm:$0xff]   ;;  %v1533_v46 = vld [vmem:[%s1751_s3 + $0x184] ss:$8 sps:$4 sm:$0xff]   ;;  %v1536_v48 = vld [vmem:[%s1751_s3 + $0x180] ss:$8 sps:$4 sm:$0xff]  }
  0x37   : > { %994 = vmatprep.subr.bf16.mxu0 %v1503_v26  ;;  %v1537_v49 = vld [vmem:[%s1751_s3 + $0x94] ss:$8 sps:$4 sm:$0xff]   ;;  %v1541_v51 = vld [vmem:[%s1751_s3 + $0x90] ss:$8 sps:$4 sm:$0xff]   ;;  %v1543_v53 = vld [vmem:[%s1751_s3 + $0xa4] ss:$8 sps:$4 sm:$0xff]  }
  0x38   : > { %v1539_v50 = vld [vmem:[%s1751_s3 + $0x194] ss:$8 sps:$4 sm:$0xff]   ;;  %v1542_v52 = vld [vmem:[%s1751_s3 + $0x190] ss:$8 sps:$4 sm:$0xff]   ;;  %v1545_v54 = vld [vmem:[%s1751_s3 + $0x1a4] ss:$8 sps:$4 sm:$0xff]  }
  0x39   : > { %942 = vmatpush1.bf16.msra.mxu1 %v1505_v27  ;;  %v1547_v55 = vld [vmem:[%s1751_s3 + $0xa0] ss:$8 sps:$4 sm:$0xff]   ;;  %v1549_v57 = vld [vmem:[%s1751_s3 + $0xb4] ss:$8 sps:$4 sm:$0xff]   ;;  %v1553_v59 = vld [vmem:[%s1751_s3 + $0xb0] ss:$8 sps:$4 sm:$0xff]  }
  0x3a   : > { %995 = vmatpush1.bf16.msra.mxu0 %v1506_v28  ;;  %943 = vmatprep.subr.bf16.mxu1 %v1507_v29  ;;  %v1548_v56 = vld [vmem:[%s1751_s3 + $0x1a0] ss:$8 sps:$4 sm:$0xff]   ;;  %v1551_v58 = vld [vmem:[%s1751_s3 + $0x1b4] ss:$8 sps:$4 sm:$0xff]   ;;  %v1554_v60 = vld [vmem:[%s1751_s3 + $0x1b0] ss:$8 sps:$4 sm:$0xff]  }
  0x3b   : > { %996 = vmatprep.subr.bf16.mxu0 %v1509_v30  ;;  %v1555_v61 = vld [vmem:[%s1751_s3 + $0xc4] ss:$8 sps:$4 sm:$0xff]   ;;  %v1559_v1 = vld [vmem:[%s1751_s3 + $0xc0] ss:$8 sps:$4 sm:$0xff]   ;;  %v1561_v3 = vld [vmem:[%s1751_s3 + $0xd4] ss:$8 sps:$4 sm:$0xff]  }
  0x3c   : > { %v1581_v62 = vld [vmem:[%s1753_s4 + $0x4] ss:$24 sps:$4 sm:$0xff]   ;;  %v1560_v2 = vld [vmem:[%s1751_s3 + $0x1c0] ss:$8 sps:$4 sm:$0xff]   ;;  %v1565_v5 = vld [vmem:[%s1751_s3 + $0xd0] ss:$8 sps:$4 sm:$0xff]  }
  0x3d   : > { %944 = vmatpush1.bf16.msra.mxu1 %v1511_v31  ;;  %v1557_v63 = vld [vmem:[%s1751_s3 + $0x1c4] ss:$8 sps:$4 sm:$0xff]   ;;  %967 = vmatprep.mubr.bf16.mxu1 %v1581_v62  ;;  %v1563_v4 = vld [vmem:[%s1751_s3 + $0x1d4] ss:$8 sps:$4 sm:$0xff]   ;;  %v1566_v6 = vld [vmem:[%s1751_s3 + $0x1d0] ss:$8 sps:$4 sm:$0xff]  }
  0x3e   : > { %997 = vmatpush1.bf16.msra.mxu0 %v1512_v32  ;;  %945 = vmatprep.subr.bf16.mxu1 %v1513_v33  ;;  %v1584_v0 = vld [vmem:[%s1753_s4 + $0xc] ss:$24 sps:$4 sm:$0xff]   ;;  %v1571_v9 = vld [vmem:[%s1751_s3 + $0xe0] ss:$8 sps:$4 sm:$0xff]   ;;  %v1573_v11 = vld [vmem:[%s1751_s3 + $0xf4] ss:$8 sps:$4 sm:$0xff]  }
  0x3f   : > { %998 = vmatprep.subr.bf16.mxu0 %v1515_v34  ;;  %1020 = vmatprep.mubr.bf16.mxu0 %v1584_v0  ;;  %v1567_v7 = vld [vmem:[%s1751_s3 + $0xe4] ss:$8 sps:$4 sm:$0xff]   ;;  %v1572_v10 = vld [vmem:[%s1751_s3 + $0x1e0] ss:$8 sps:$4 sm:$0xff]   ;;  %v1575_v12 = vld [vmem:[%s1751_s3 + $0x1f4] ss:$8 sps:$4 sm:$0xff]  }
  0x40   : > { %v1569_v8 = vld [vmem:[%s1751_s3 + $0x1e4] ss:$8 sps:$4 sm:$0xff]   ;;  %v1577_v13 = vld [vmem:[%s1751_s3 + $0xf0] ss:$8 sps:$4 sm:$0xff]   ;;  %v1582_v17 = vld [vmem:[%s1753_s4 + $0x8] ss:$24 sps:$4 sm:$0xff]  }
  0x41   : > { %946 = vmatpush1.bf16.msra.mxu1 %v1517_v35  ;;  %v1578_v14 = vld [vmem:[%s1751_s3 + $0x1f0] ss:$8 sps:$4 sm:$0xff]   ;;  %v1587_v15 = vld [vmem:[%s1751_s3 + $0x204] ss:$8 sps:$4 sm:$0xff]   ;;  %v1585_v18 = vld [vmem:[%s1751_s3 + $0x200] ss:$8 sps:$4 sm:$0xff]  }
  0x42   : > { %999 = vmatpush1.bf16.msra.mxu0 %v1518_v36  ;;  %947 = vmatprep.subr.bf16.mxu1 %v1519_v37  ;;  %v1579_v16 = vld [vmem:[%s1753_s4] ss:$24 sps:$4 sm:$0xff]   ;;  %v1590_v19 = vld [vmem:[%s1751_s3 + $0x214] ss:$8 sps:$4 sm:$0xff]   ;;  %v1593_v23 = vld [vmem:[%s1751_s3 + $0x224] ss:$8 sps:$4 sm:$0xff]  }
  0x43   : > { %1000 = vmatprep.subr.bf16.mxu0 %v1521_v38  ;;  %v1624_v20 = vld [vmem:[%s1753_s4 + $0x34] ss:$24 sps:$4 sm:$0xff]   ;;  %v1588_v22 = vld [vmem:[%s1751_s3 + $0x210] ss:$8 sps:$4 sm:$0xff]   ;;  %v1591_v26 = vld [vmem:[%s1751_s3 + $0x220] ss:$8 sps:$4 sm:$0xff]  }
  0x44   : > { %v1626_v21 = vld [vmem:[%s1753_s4 + $0x3c] ss:$24 sps:$4 sm:$0xff]   ;;  %v1631_v24 = vld [vmem:[%s1753_s4 + $0x30] ss:$24 sps:$4 sm:$0xff]   ;;  %v1599_v31 = vld [vmem:[%s1751_s3 + $0x244] ss:$8 sps:$4 sm:$0xff]  }
  0x45   : > { %948 = vmatpush1.bf16.msra.mxu1 %v1523_v39  ;;  %v1632_v25 = vld [vmem:[%s1753_s4 + $0x38] ss:$24 sps:$4 sm:$0xff]   ;;  %v1596_v27 = vld [vmem:[%s1751_s3 + $0x234] ss:$8 sps:$4 sm:$0xff]   ;;  %v1597_v32 = vld [vmem:[%s1751_s3 + $0x240] ss:$8 sps:$4 sm:$0xff]  }
  0x46   : > { %1001 = vmatpush1.bf16.msra.mxu0 %v1524_v40  ;;  %949 = vmatprep.subr.bf16.mxu1 %v1525_v41  ;;  %v1641_v28 = vld [vmem:[%s1753_s4 + $0x14] ss:$24 sps:$4 sm:$0xff]   ;;  %v1644_v29 = vld [vmem:[%s1753_s4 + $0x44] ss:$24 sps:$4 sm:$0xff]   ;;  %v1594_v30 = vld [vmem:[%s1751_s3 + $0x230] ss:$8 sps:$4 sm:$0xff]  }
  0x47   : > { %1002 = vmatprep.subr.bf16.mxu0 %v1527_v42  ;;  %v1602_v33 = vld [vmem:[%s1751_s3 + $0x254] ss:$8 sps:$4 sm:$0xff]   ;;  %v1600_v34 = vld [vmem:[%s1751_s3 + $0x250] ss:$8 sps:$4 sm:$0xff]   ;;  %v1605_v35 = vld [vmem:[%s1751_s3 + $0x264] ss:$8 sps:$4 sm:$0xff]  }
  0x48   : > { %v1603_v36 = vld [vmem:[%s1751_s3 + $0x260] ss:$8 sps:$4 sm:$0xff]   ;;  %v1608_v37 = vld [vmem:[%s1751_s3 + $0x274] ss:$8 sps:$4 sm:$0xff]   ;;  %v1606_v38 = vld [vmem:[%s1751_s3 + $0x270] ss:$8 sps:$4 sm:$0xff]  }
  0x49   : > { %950 = vmatpush1.bf16.msra.mxu1 %v1529_v43  ;;  %v1611_v39 = vld [vmem:[%s1751_s3 + $0x284] ss:$8 sps:$4 sm:$0xff]   ;;  %v1609_v40 = vld [vmem:[%s1751_s3 + $0x280] ss:$8 sps:$4 sm:$0xff]   ;;  %v1614_v41 = vld [vmem:[%s1751_s3 + $0x294] ss:$8 sps:$4 sm:$0xff]  }
  0x4a   : > { %1003 = vmatpush1.bf16.msra.mxu0 %v1530_v44  ;;  %951 = vmatprep.subr.bf16.mxu1 %v1531_v45  ;;  %v1612_v42 = vld [vmem:[%s1751_s3 + $0x290] ss:$8 sps:$4 sm:$0xff]   ;;  %v1617_v43 = vld [vmem:[%s1751_s3 + $0x2a4] ss:$8 sps:$4 sm:$0xff]   ;;  %v1615_v44 = vld [vmem:[%s1751_s3 + $0x2a0] ss:$8 sps:$4 sm:$0xff]  }
  0x4b   : > { %1004 = vmatprep.subr.bf16.mxu0 %v1533_v46  ;;  %v1620_v45 = vld [vmem:[%s1751_s3 + $0x2b4] ss:$8 sps:$4 sm:$0xff]   ;;  %v1618_v46 = vld [vmem:[%s1751_s3 + $0x2b0] ss:$8 sps:$4 sm:$0xff]   ;;  %p1377_p11 = scmp.ne.s32.totalorder %s1675_s11, 2 }
  0x4d   : > { %952 = vmatpush1.bf16.msra.mxu1 %v1535_v47  ;;  %v1623_v47 = vld [vmem:[%s1751_s3 + $0x2c4] ss:$8 sps:$4 sm:$0xff]  }
  0x4e   : > { %1005 = vmatpush1.bf16.msra.mxu0 %v1536_v48  ;;  %953 = vmatprep.subr.bf16.mxu1 %v1537_v49  ;;  %v1621_v48 = vld [vmem:[%s1751_s3 + $0x2c0] ss:$8 sps:$4 sm:$0xff]   ;;  %v1630_v49 = vld [vmem:[%s1751_s3 + $0x2d4] ss:$8 sps:$4 sm:$0xff]  }
  0x4f   : > { %1006 = vmatprep.subr.bf16.mxu0 %v1539_v50  ;;  %v1628_v50 = vld [vmem:[%s1751_s3 + $0x2d0] ss:$8 sps:$4 sm:$0xff]  }
  0x51   : > { %954 = vmatpush1.bf16.msra.mxu1 %v1541_v51  ;;  %v1635_v51 = vld [vmem:[%s1751_s3 + $0x2e4] ss:$8 sps:$4 sm:$0xff]  }
  0x52   : > { %1007 = vmatpush1.bf16.msra.mxu0 %v1542_v52  ;;  %955 = vmatprep.subr.bf16.mxu1 %v1543_v53  ;;  %v1633_v52 = vld [vmem:[%s1751_s3 + $0x2e0] ss:$8 sps:$4 sm:$0xff]   ;;  %v1638_v53 = vld [vmem:[%s1751_s3 + $0x2f4] ss:$8 sps:$4 sm:$0xff]  }
  0x53   : > { %1008 = vmatprep.subr.bf16.mxu0 %v1545_v54  ;;  %v1636_v54 = vld [vmem:[%s1751_s3 + $0x2f0] ss:$8 sps:$4 sm:$0xff]  }
  0x55   : > { %956 = vmatpush1.bf16.msra.mxu1 %v1547_v55  ;;  %v1639_v55 = vld [vmem:[%s1753_s4 + $0x10] ss:$24 sps:$4 sm:$0xff]  }
  0x56   : > { %1009 = vmatpush1.bf16.msra.mxu0 %v1548_v56  ;;  %957 = vmatprep.subr.bf16.mxu1 %v1549_v57  ;;  %v1642_v56 = vld [vmem:[%s1753_s4 + $0x40] ss:$24 sps:$4 sm:$0xff]  }
  0x57   : > { %1010 = vmatprep.subr.bf16.mxu0 %v1551_v58 }
  0x59   : > { %958 = vmatpush1.bf16.msra.mxu1 %v1553_v59 }
  0x5a   : > { %1011 = vmatpush1.bf16.msra.mxu0 %v1554_v60  ;;  %959 = vmatprep.subr.bf16.mxu1 %v1555_v61 }
  0x5b   : > { %1012 = vmatprep.subr.bf16.mxu0 %v1557_v63 }
  0x5d   : > { %960 = vmatpush1.bf16.msra.mxu1 %v1559_v1 }
  0x5e   : > { %1013 = vmatpush1.bf16.msra.mxu0 %v1560_v2  ;;  %961 = vmatprep.subr.bf16.mxu1 %v1561_v3 }
  0x5f   : > { %1014 = vmatprep.subr.bf16.mxu0 %v1563_v4 }
  0x61   : > { %962 = vmatpush1.bf16.msra.mxu1 %v1565_v5 }
  0x62   : > { %1015 = vmatpush1.bf16.msra.mxu0 %v1566_v6  ;;  %963 = vmatprep.subr.bf16.mxu1 %v1567_v7 }
  0x63   : > { %1016 = vmatprep.subr.bf16.mxu0 %v1569_v8 }
  0x65   : > { %964 = vmatpush1.bf16.msra.mxu1 %v1571_v9  ;;  %v279_v9 = vld [vmem:[#allocation2] sm:$0xff] }
  0x66   : > { %1017 = vmatpush1.bf16.msra.mxu0 %v1572_v10  ;;  %965 = vmatprep.subr.bf16.mxu1 %v1573_v11  ;;  %v283_v11 = vld [vmem:[#allocation2 + $0x20] sm:$0xff] }
  0x67   : > { %1018 = vmatprep.subr.bf16.mxu0 %v1575_v12 }
  0x69   : > { %966 = vmatpush1.bf16.msra.mxu1 %v1577_v13 }
  0x6a   : > { %1019 = vmatpush1.bf16.msra.mxu0 %v1578_v14  ;;  %1392 = vmatprep.subr.bf16.mxu1 %v1587_v15 }
  0x6b   : > { %1041 = vmatprep.subr.bf16.mxu0 %v1587_v15  ;;  %v280_v15 = vld [vmem:[#allocation2 + $0x8] sm:$0xff] }
  0x6c   : > { %968 = vmatmul.mubr.bf16.vlgmr.msra.gmra.mrb[0].mxu1 %v1579_v16 }
  0x6d   : > { %1021 = vmatmul.mubr.bf16.vlgmr.msra.gmra.mrb[0].mxu0 %v1582_v17  ;;  %1408 = vmatpush1.bf16.msra.mxu1 %v1585_v18  ;;  %v284_v17 = vld [vmem:[#allocation2 + $0x28] sm:$0xff] }
  0x6e   : > { %1042 = vmatpush1.bf16.msra.mxu0 %v1585_v18  ;;  %1393 = vmatprep.subr.bf16.mxu1 %v1590_v19 }
  0x6f   : > { %1043 = vmatprep.subr.bf16.mxu0 %v1590_v19  ;;  %977 = vmatprep.mubr.bf16.mxu1 %v1624_v20 }
  0x70   : > { %1030 = vmatprep.mubr.bf16.mxu0 %v1626_v21  ;;  %v281_v21 = vld [vmem:[#allocation2 + $0x10] sm:$0xff] }
  0x71   : > { %1409 = vmatpush1.bf16.msra.mxu1 %v1588_v22 }
  0x72   : > { %1044 = vmatpush1.bf16.msra.mxu0 %v1588_v22  ;;  %1394 = vmatprep.subr.bf16.mxu1 %v1593_v23 }
  0x73   : > { %1045 = vmatprep.subr.bf16.mxu0 %v1593_v23  ;;  %v285_v23 = vld [vmem:[#allocation2 + $0x30] sm:$0xff] }
  0x74   : > { %978 = vmatmul.mubr.bf16.gmra.mrb[4].mxu1 %v1631_v24 }
  0x75   : > { %1031 = vmatmul.mubr.bf16.gmra.mrb[4].mxu0 %v1632_v25  ;;  %1410 = vmatpush1.bf16.msra.mxu1 %v1591_v26 }
  0x76   : > { %1046 = vmatpush1.bf16.msra.mxu0 %v1591_v26  ;;  %1395 = vmatprep.subr.bf16.mxu1 %v1596_v27 }
  0x77   : > { %1047 = vmatprep.subr.bf16.mxu0 %v1596_v27  ;;  %1073 = vmatprep.mubr.bf16.mxu0 %v1641_v28 }
  0x78   : > { %1083 = vmatprep.mubr.bf16.mxu1 %v1644_v29  ;;  %v282_v29 = vld [vmem:[#allocation2 + $0x18] sm:$0xff] }
  0x79   : > { %1411 = vmatpush1.bf16.msra.mxu1 %v1594_v30 }
  0x7a   : > { %1048 = vmatpush1.bf16.msra.mxu0 %v1594_v30  ;;  %1396 = vmatprep.subr.bf16.mxu1 %v1599_v31 }
  0x7b   : > { %1049 = vmatprep.subr.bf16.mxu0 %v1599_v31  ;;  %v286_v31 = vld [vmem:[#allocation2 + $0x38] sm:$0xff] }
  0x7d   : > { %1412 = vmatpush1.bf16.msra.mxu1 %v1597_v32 }
  0x7e   : > { %1050 = vmatpush1.bf16.msra.mxu0 %v1597_v32  ;;  %1397 = vmatprep.subr.bf16.mxu1 %v1602_v33 }
  0x7f   : > { %1051 = vmatprep.subr.bf16.mxu0 %v1602_v33 }
  0x81   : > { %1413 = vmatpush1.bf16.msra.mxu1 %v1600_v34 }
  0x82   : > { %1052 = vmatpush1.bf16.msra.mxu0 %v1600_v34  ;;  %1398 = vmatprep.subr.bf16.mxu1 %v1605_v35 }
  0x83   : > { %1053 = vmatprep.subr.bf16.mxu0 %v1605_v35 }
  0x85   : > { %1414 = vmatpush1.bf16.msra.mxu1 %v1603_v36 }
  0x86   : > { %1054 = vmatpush1.bf16.msra.mxu0 %v1603_v36  ;;  %1399 = vmatprep.subr.bf16.mxu1 %v1608_v37 }
  0x87   : > { %1055 = vmatprep.subr.bf16.mxu0 %v1608_v37 }
  0x89   : > { %1415 = vmatpush1.bf16.msra.mxu1 %v1606_v38 }
  0x8a   : > { %1056 = vmatpush1.bf16.msra.mxu0 %v1606_v38  ;;  %1400 = vmatprep.subr.bf16.mxu1 %v1611_v39 }
  0x8b   : > { %1057 = vmatprep.subr.bf16.mxu0 %v1611_v39 }
  0x8d   : > { %1416 = vmatpush1.bf16.msra.mxu1 %v1609_v40 }
  0x8e   : > { %1058 = vmatpush1.bf16.msra.mxu0 %v1609_v40  ;;  %1401 = vmatprep.subr.bf16.mxu1 %v1614_v41 }
  0x8f   : > { %1059 = vmatprep.subr.bf16.mxu0 %v1614_v41 }
  0x91   : > { %1417 = vmatpush1.bf16.msra.mxu1 %v1612_v42 }
  0x92   : > { %1060 = vmatpush1.bf16.msra.mxu0 %v1612_v42  ;;  %1402 = vmatprep.subr.bf16.mxu1 %v1617_v43 }
  0x93   : > { %1061 = vmatprep.subr.bf16.mxu0 %v1617_v43 }
  0x95   : > { %1418 = vmatpush1.bf16.msra.mxu1 %v1615_v44 }
  0x96   : > { %1062 = vmatpush1.bf16.msra.mxu0 %v1615_v44  ;;  %1403 = vmatprep.subr.bf16.mxu1 %v1620_v45 }
  0x97   : > { %1063 = vmatprep.subr.bf16.mxu0 %v1620_v45 }
  0x99   : > { %1419 = vmatpush1.bf16.msra.mxu1 %v1618_v46 }
  0x9a   : > { %1064 = vmatpush1.bf16.msra.mxu0 %v1618_v46  ;;  %1404 = vmatprep.subr.bf16.mxu1 %v1623_v47 }
  0x9b   : > { %1065 = vmatprep.subr.bf16.mxu0 %v1623_v47 }
  0x9d   : > { %1420 = vmatpush1.bf16.msra.mxu1 %v1621_v48 }
  0x9e   : > { %1066 = vmatpush1.bf16.msra.mxu0 %v1621_v48  ;;  %1405 = vmatprep.subr.bf16.mxu1 %v1630_v49 }
  0x9f   : > { %1067 = vmatprep.subr.bf16.mxu0 %v1630_v49 }
  0xa1   : > { %1421 = vmatpush1.bf16.msra.mxu1 %v1628_v50 }
  0xa2   : > { %1068 = vmatpush1.bf16.msra.mxu0 %v1628_v50  ;;  %1406 = vmatprep.subr.bf16.mxu1 %v1635_v51 }
  0xa3   : > { %1069 = vmatprep.subr.bf16.mxu0 %v1635_v51 }
  0xa5   : > { %1422 = vmatpush1.bf16.msra.mxu1 %v1633_v52 }
  0xa6   : > { %1070 = vmatpush1.bf16.msra.mxu0 %v1633_v52  ;;  %1407 = vmatprep.subr.bf16.mxu1 %v1638_v53 }
  0xa7   : > { %1071 = vmatprep.subr.bf16.mxu0 %v1638_v53 }
  0xa9   : > { %1423 = vmatpush1.bf16.msra.mxu1 %v1636_v54 }
  0xaa   : > { %1072 = vmatpush1.bf16.msra.mxu0 %v1636_v54 }
  0xac   : > { %1084 = vmatmul.mubr.bf16.vlgmr.msra.gmra.mrb[8].mxu1 %v1642_v56 }
  0xad   : > { %1074 = vmatmul.mubr.bf16.vlgmr.msra.gmra.mrb[0].mxu0 %v1639_v55 }
 0x13f   : > { %v969_v57 = vpop.f32.mrb[0].mxu1 }
 0x140   : > { %v971_v58 = vpop.f32.mrb[1].mxu1 }
 0x141   : > { %v973_v59 = vpop.f32.mrb[2].mxu1 }
 0x142   : > { %v975_v60 = vpop.f32.mrb[3].mxu1 }
 0x147   : > { %v979_v61 = vpop.f32.mrb[4].mxu1 }
 0x148   : > { %v1032_v62 = vpop.f32.mrb[4].mxu0  ;;  %v981_v0 = vpop.f32.mrb[5].mxu1 }
 0x149   : > { %v1033_v63 = vadd.f32 %v1032_v62, %v979_v61  ;;  %v1034_v1 = vpop.f32.mrb[5].mxu0  ;;  %v983_v3 = vpop.f32.mrb[6].mxu1 }
 0x14a   : > { %v1035_v2 = vadd.f32 %v1034_v1, %v981_v0  ;;  %v1036_v4 = vpop.f32.mrb[6].mxu0  ;;  %v985_v6 = vpop.f32.mrb[7].mxu1 }
 0x14b   : > { %v1037_v5 = vadd.f32 %v1036_v4, %v983_v3  ;;  %v1038_v7 = vpop.f32.mrb[7].mxu0 }
 0x14c   : > { %v1039_v8 = vadd.f32 %v1038_v7, %v985_v6 }
 0x17f   : > { %v1085_v12 = vpop.f32.mrb[8].mxu1 }
 0x180   : > { %v1075_v10 = vpop.f32.mrb[0].mxu0  ;;  %v1086_v14 = vadd.f32 %v1085_v12, %v1033_v63  ;;  %v1087_v18 = vpop.f32.mrb[9].mxu1 }
 0x181   : > { %v1424_v13 = vadd.f32 %v1075_v10, %v969_v57  ;;  %v1077_v16 = vpop.f32.mrb[1].mxu0  ;;  %v1088_v20 = vadd.f32 %v1087_v18, %v1035_v2  ;;  %v1089_v24 = vpop.f32.mrb[10].mxu1 }
 0x182   : > { %v1425_v19 = vadd.f32 %v1077_v16, %v971_v58  ;;  %v1079_v22 = vpop.f32.mrb[2].mxu0  ;;  %v1098_v26 = vadd.f32 %v1086_v14, %v283_v11  ;;  %v1090_v28 = vadd.f32 %v1089_v24, %v1037_v5  ;;  %v1091_v32 = vpop.f32.mrb[11].mxu1  ;;  %1113 = sbr.rel (%p1377_p11) target bundleno = 403 (0x193), region = 59 }
 0x183   : > { %v1094_v25 = vadd.f32 %v1424_v13, %v279_v9  ;;  %v1426_v27 = vadd.f32 %v1079_v22, %v973_v59  ;;  %v1081_v30 = vpop.f32.mrb[3].mxu0  ;;  %v1099_v34 = vadd.f32 %v1088_v20, %v284_v17  ;;  %v1092_v36 = vadd.f32 %v1091_v32, %v1039_v8 }
 0x184   : > { %v1095_v33 = vadd.f32 %v1425_v19, %v280_v15  ;;  %v1427_v35 = vadd.f32 %v1081_v30, %v975_v60  ;;  %1106 = vst [vmem:[#allocation2 + $0x20] sm:$0xff] %v1098_v26  ;;  %v1100_v38 = vadd.f32 %v1090_v28, %v285_v23 }
 0x185   : > { %1102 = vst [vmem:[#allocation2] sm:$0xff] %v1094_v25  ;;  %v1096_v37 = vadd.f32 %v1426_v27, %v281_v21  ;;  %1107 = vst [vmem:[#allocation2 + $0x28] sm:$0xff] %v1099_v34  ;;  %v1101_v40 = vadd.f32 %v1092_v36, %v286_v31 }
 0x186   : > { %1103 = vst [vmem:[#allocation2 + $0x8] sm:$0xff] %v1095_v33  ;;  %v1097_v39 = vadd.f32 %v1427_v35, %v282_v29  ;;  %1108 = vst [vmem:[#allocation2 + $0x30] sm:$0xff] %v1100_v38 }
 0x187   : > { %1104 = vst [vmem:[#allocation2 + $0x10] sm:$0xff] %v1096_v37  ;;  %1109 = vst [vmem:[#allocation2 + $0x38] sm:$0xff] %v1101_v40 }
 0x188   : > { %1105 = vst [vmem:[#allocation2 + $0x18] sm:$0xff] %v1097_v39 }
 0x18b   : > { %v1118_v46 = vld [vmem:[#allocation2 + $0x20] sm:$0xff] }
 0x18c   : > { %v1114_v41 = vld [vmem:[#allocation2] sm:$0xff]  ;;  %v1119_v47 = vld [vmem:[#allocation2 + $0x28] sm:$0xff] }
 0x18d   : > { %v1115_v42 = vld [vmem:[#allocation2 + $0x8] sm:$0xff]  ;;  %v1390_v49 = vpack.c.bf16 %v1119_v47, %v1118_v46  ;;  %v1120_v50 = vld [vmem:[#allocation2 + $0x30] sm:$0xff] }
 0x18e   : > { %v1116_v43 = vld [vmem:[#allocation2 + $0x10] sm:$0xff]  ;;  %v1388_v44 = vpack.c.bf16 %v1115_v42, %v1114_v41  ;;  %v1121_v51 = vld [vmem:[#allocation2 + $0x38] sm:$0xff] }
 0x18f   : > { %v1117_v45 = vld [vmem:[#allocation2 + $0x18] sm:$0xff]  ;;  %v1391_v52 = vpack.c.bf16 %v1121_v51, %v1120_v50  ;;  %1148 = vst [vmem:[%s1894_s2 + $0x10] sm:$0xff] %v1390_v49 }
 0x190   : > { %v1389_v48 = vpack.c.bf16 %v1117_v45, %v1116_v43  ;;  %1146 = vst [vmem:[%s1894_s2] sm:$0xff] %v1388_v44 }
 0x191   : > { %1149 = vst [vmem:[%s1894_s2 + $0x18] sm:$0xff] %v1391_v52 }
 0x192   : > { %1147 = vst [vmem:[%s1894_s2 + $0x8] sm:$0xff] %v1389_v48 }
 0x193 PF: > { %s12_s13 = sadd.s32 1, %s1683_s13   ;;  %s1895_s9 = smov %s1671_s10 }
 0x194   : > { %p9_p12 = scmp.ge.s32.totalorder %s12_s13, 5   ;;  %s1896_s10 = smov %s1736_s17 }
 0x195   : > { %s1897_s11 = smov %s1679_s12  ;;  %s1898_s12 = smov %s1900_s14 }
 0x196   :  { %11 = sbr.rel (!%p9_p12) target bundleno = 3 (0x3), region = 97 }

// kernel: generator_forward.34
= control target key start
LH: loop header
LB: loop body
LE: loop exit
PB: predicated region body
PF: predicated region fallthrough
CT: control target
= control target key end

     0   :  { %s628_s9 = smov 0   ;;  %s630_s10 = smov 0   ;;  %s743_s0 = inlined_call_operand.vmem [shape: bf16[2,16,256], index: 0, kind: input, shape index: {}]   ;;  %s744_s1 = inlined_call_operand.vmem [shape: bf16[2,16,256], index: 1, kind: input, shape index: {}]   ;;  %s745_s2 = inlined_call_operand.vmem [shape: bf16[2,16,256], index: 2, kind: output, shape index: {}]  }
   0x1   :  { %s632_s11 = smov 0   ;;  %s634_s12 = smov 0  }
   0x2   :  { %s636_s13 = smov 0   ;;  %s638_s14 = smov 0  }
   0x3   :  { %s640_s15 = smov 0  }
   0x4 LB: > { %s21_s16 = sadd.s32 1, %s603_s13  ;;  %s24_s17 = sadd.s32 1, %s607_s14  ;;  %s611_s15 = sphi %s640_s15, %s12_s15   ;;  %s607_s14 = sphi %s638_s14, %s753_s14   ;;  %s603_s13 = sphi %s636_s13, %s752_s13   ;;  %s599_s12 = sphi %s634_s12, %s751_s12   ;;  %s595_s11 = sphi %s632_s11, %s750_s11   ;;  %s591_s10 = sphi %s630_s10, %s749_s10   ;;  %s587_s9 = sphi %s628_s9, %s748_s9  }
   0x5   : > { %p22_p0 = scmp.ge.s32.totalorder %s21_s16, 2  ;;  %s463_s18 = sadd.s32 4294967295, %s611_s15  }
   0x6   : > { %p40_p1 = scmp.ne.s32.totalorder %s591_s10, %s587_s9  ;;  %p41_p2 = scmp.eq.s32.totalorder %s611_s15, 0 }
   0x7   : > { %s755_s16 = smov (%p22_p0, %s21_s16), 0  ;;  %s757_s17 = smov (!%p22_p0, %s24_s17), %s607_s14 }
   0x8   : > { %p26_p3 = scmp.ge.s32.totalorder %s757_s17, 2  ;;  %p100_p4 = scmp.eq.s32.totalorder %s463_s18, 3 }
   0x9   : > { %s29_s19 = ssub.s32 %s603_s13, %s755_s16  ;;  %p674_p5 = por %p41_p2, %p40_p1 }
   0xa   : > { %s759_s17 = smov (%p26_p3, %s757_s17), 0  ;;  %p680_p6 = por %p100_p4, %p40_p1 }
   0xb   : > { %s28_s22 = ssub.s32 %s607_s14, %s759_s17  ;;  %s33_s24 = sadd.s32 1, %s591_s10 }
   0xc   : > { %s30_s23 = sor.u32 %s29_s19, %s28_s22  ;;  %p466_p8 = scmp.ge.s32.totalorder %s611_s15, 4 }
   0xd   : > { %p31_p7 = scmp.eq.s32.totalorder %s30_s23, 0 }
   0xe   : > { %122 = sbr.rel (%p466_p8) target bundleno = 35 (0x23), region = 16 }
   0xf   : > { %s688_s25 = scalar_select %p31_p7, %s591_s10, %s33_s24  }
  0x15   : > { %125 = sbr.rel (!%p674_p5) target bundleno = 28 (0x1c), region = 20  ;;  %s127_s26 = sand.u32 (%p674_p5), 1, %s591_s10  }
  0x16   : > { %s468_s27 = sshll.u32 (%p674_p5), %s607_s14, 2  ;;  %s467_s28 = sshll.u32 (%p674_p5), %s127_s26, 3 }
  0x17   : > { %s131_s29 = sadd.s32 (%p674_p5), %s603_s13, %s468_s27  ;;  %s129_s6 = scalar_lea.vmem (%p674_p5), [#allocation2], %s467_s28 }
  0x18   : > { %s469_s30 = sshll.u32 (%p674_p5), %s131_s29, 2 }
  0x19   : > { %s133_s5 = scalar_lea.vmem (%p674_p5), %s743_s0, %s469_s30 }
  0x1a   : > { %v149_v0 = vld [vmem:[%s133_s5] sm:$0xf] (%p674_p5)  ;;  %v151_v1 = vld [vmem:[%s133_s5 + $0x8] sm:$0xf] (%p674_p5) }
  0x1b   : > { %150 = vst [vmem:[%s129_s6] sm:$0xf] (%p674_p5), %v149_v0  ;;  %152 = vst [vmem:[%s129_s6 + $0x4] sm:$0xf] (%p674_p5), %v151_v1 }
  0x1c PF: > { %179 = sbr.rel (!%p674_p5) target bundleno = 35 (0x23), region = 61  ;;  %s181_s7 = sand.u32 (%p674_p5), 1, %s591_s10  }
  0x1d   : > { %s471_s8 = sshll.u32 (%p674_p5), %s607_s14, 2  ;;  %s470_s18 = sshll.u32 (%p674_p5), %s181_s7, 3 }
  0x1e   : > { %s185_s19 = sadd.s32 (%p674_p5), %s603_s13, %s471_s8  ;;  %s183_s27 = scalar_lea.vmem (%p674_p5), [#allocation3], %s470_s18 }
  0x1f   : > { %s472_s22 = sshll.u32 (%p674_p5), %s185_s19, 2 }
  0x20   : > { %s187_s26 = scalar_lea.vmem (%p674_p5), %s744_s1, %s472_s22 }
  0x21   : > { %v203_v2 = vld [vmem:[%s187_s26] sm:$0xf] (%p674_p5)  ;;  %v205_v3 = vld [vmem:[%s187_s26 + $0x8] sm:$0xf] (%p674_p5) }
  0x22   : > { %204 = vst [vmem:[%s183_s27] sm:$0xf] (%p674_p5), %v203_v2  ;;  %206 = vst [vmem:[%s183_s27 + $0x4] sm:$0xf] (%p674_p5), %v205_v3 }
  0x23 PF: > { %p473_p9 = scmp.ge.s32.totalorder %s611_s15, 1  ;;  %p232_p10 = scmp.lt.s32.totalorder %s611_s15, 5 }
  0x25   : > { %p233_p11 = pnand %p473_p9, %p232_p10 }
  0x26   : > { %s239_s20 = sand.u32 (!%p233_p11), 1, %s587_s9  }
  0x27   : > { %236 = sbr.rel (%p233_p11) target bundleno = 92 (0x5c), region = 102  ;;  %s710_s28 = sshll.u32 (!%p233_p11), %s239_s20, 3 }
  0x28   : > { %s241_s29 = scalar_lea.vmem (!%p233_p11), [#allocation2], %s710_s28  ;;  %s248_s9 = scalar_lea.vmem (!%p233_p11), [#allocation3], %s710_s28 }
  0x29   : > { %v487_v4 = vld [vmem:[%s241_s29] sm:$0xff] (!%p233_p11)   ;;  %v491_v28 = vld [vmem:[%s248_s9] sm:$0xff] (!%p233_p11)   ;;  %s269_s30 = scalar_lea.vmem (!%p233_p11), [#allocation4], %s710_s28 }
  0x2a   : > { %v488_v5 = vunpack.c.l.bf16 (!%p233_p11), %v487_v4  ;;  %v489_v6 = vunpack.c.h.bf16 (!%p233_p11), %v487_v4  ;;  %v492_v31 = vunpack.c.l.bf16 (!%p233_p11), %v491_v28  ;;  %v493_v32 = vunpack.c.h.bf16 (!%p233_p11), %v491_v28 }
  0x2c   : > { %v274_v7 = vadd.f32 (!%p233_p11), %v489_v6, %v488_v5  ;;  %v283_v8 = vmul.f32 (!%p233_p11), %v488_v5, %v488_v5  ;;  %v284_v9 = vmul.f32 (!%p233_p11), %v489_v6, %v489_v6 }
  0x2e   : > { %v275_v10 = vrot.slane %v274_v7, 4  ;;  %v285_v11 = vadd.f32 %v284_v9, %v283_v8  ;;  %s480_s3 = sshll.u32 (%p680_p6), %s599_s12, 2 }
  0x2f   : > { %s325_s4 = sadd.s32 (%p680_p6), %s595_s11, %s480_s3 }
  0x30   : > { %v276_v12 = vadd.f32 %v275_v10, %v274_v7  ;;  %v286_v13 = vrot.slane %v285_v11, 4  ;;  %s481_s5 = sshll.u32 (%p680_p6), %s325_s4, 2 }
  0x31   : > { %s327_s8 = scalar_lea.vmem (%p680_p6), %s745_s2, %s481_s5 }
  0x32   : > { %v277_v14 = vrot.slane %v276_v12, 2  ;;  %v287_v15 = vadd.f32 %v286_v13, %v285_v11 }
  0x34   : > { %v278_v16 = vadd.f32 %v277_v14, %v276_v12  ;;  %v288_v17 = vrot.slane %v287_v15, 2 }
  0x36   : > { %v279_v18 = vrot.slane %v278_v16, 1  ;;  %v289_v19 = vadd.f32 %v288_v17, %v287_v15 }
  0x38   : > { %v280_v20 = vadd.f32 %v279_v18, %v278_v16  ;;  %v290_v21 = vrot.slane %v289_v19, 1 }
  0x3a   : > { %v282_v22 = vmul.f32 0.0625, %v280_v20  ;;  %v291_v23 = vadd.f32 %v290_v21, %v289_v19 }
  0x3c   : > { %v292_v24 = vmul.f32 0.0625, %v291_v23  ;;  %v293_v25 = vmul.f32 %v282_v22, %v282_v22  ;;  %v295_v29 = vsub.f32 %v488_v5, %v282_v22  ;;  %v296_v30 = vsub.f32 %v489_v6, %v282_v22 }
  0x3e   : > { %v294_v26 = vsub.f32 %v292_v24, %v293_v25 }
  0x40   : > { %v297_v27 = vadd.f32 1e-05, %v294_v26 }
  0x42   : > { %555 = vrsqrt.f32 %v297_v27 }
  0x4c   : > { %v556_v33 = vpop.eup %555 }
  0x4d   : > { %v299_v34 = vmul.f32 %v556_v33, %v295_v29  ;;  %v300_v35 = vmul.f32 %v556_v33, %v296_v30  ;;  %323 = sbr.rel (!%p680_p6) target bundleno = 92 (0x5c), region = 114 }
  0x4f   : > { %v305_v36 = vadd.f32 %v492_v31, %v299_v34  ;;  %v306_v37 = vadd.f32 %v493_v32, %v300_v35 }
  0x51   : > { %v497_v38 = vpack.c.bf16 %v306_v37, %v305_v36 }
  0x53   : > { %498 = vst [vmem:[%s269_s30] sm:$0xff] %v497_v38  }
  0x5a   : > { %v343_v39 = vld [vmem:[%s269_s30] sm:$0xf]  ;;  %v345_v40 = vld [vmem:[%s269_s30 + $0x4] sm:$0xf] }
  0x5b   : > { %344 = vst [vmem:[%s327_s8] sm:$0xf] %v343_v39  ;;  %346 = vst [vmem:[%s327_s8 + $0x8] sm:$0xf] %v345_v40 }
  0x5c PF: > { %s12_s15 = sadd.s32 1, %s611_s15   ;;  %s748_s9 = smov %s591_s10 }
  0x5d   : > { %p9_p12 = scmp.ge.s32.totalorder %s12_s15, 6   ;;  %s749_s10 = smov %s688_s25 }
  0x5e   : > { %s750_s11 = smov %s603_s13  ;;  %s751_s12 = smov %s607_s14 }
  0x5f   : > { %s752_s13 = smov %s755_s16  ;;  %s753_s14 = smov %s759_s17 }
  0x60   :  { %11 = sbr.rel (!%p9_p12) target bundleno = 4 (0x4), region = 194 }

// kernel: generator_forward.42
= control target key start
LH: loop header
LB: loop body
LE: loop exit
PB: predicated region body
PF: predicated region fallthrough
CT: control target
= control target key end

     0   :  { %s1069_s9 = smov 0   ;;  %s1071_s10 = smov 0   ;;  %s1186_s0 = inlined_call_operand.vmem [shape: bf16[32,1024], index: 0, kind: input, shape index: {}]   ;;  %s1187_s1 = inlined_call_operand.vmem [shape: bf16[1024,128], index: 1, kind: input, shape index: {}]   ;;  %s1188_s2 = inlined_call_operand.vmem [shape: bf16[32,128], index: 2, kind: output, shape index: {}]  }
   0x1   :  { %s1073_s11 = smov 0   ;;  %s1075_s12 = smov 0  }
   0x2   :  { %s1077_s13 = smov 0  }
   0x3 LB: > { %s24_s14 = sadd.s32 1, %s1047_s12  ;;  %p47_p1 = scmp.ne.s32.totalorder %s1039_s10, %s1035_s9  ;;  %s1051_s13 = sphi %s1077_s13, %s12_s13   ;;  %s1047_s12 = sphi %s1075_s12, %s1192_s12   ;;  %s1043_s11 = sphi %s1073_s11, %s1191_s11   ;;  %s1039_s10 = sphi %s1071_s10, %s1190_s10   ;;  %s1035_s9 = sphi %s1069_s9, %s1189_s9  }
   0x4   : > { %p25_p0 = scmp.ge.s32.totalorder %s24_s14, 2  ;;  %p48_p2 = scmp.eq.s32.totalorder %s1051_s13, 0 }
   0x5   : > { %s40_s16 = sadd.s32 1, %s1039_s10  ;;  %p798_p5 = scmp.ge.s32.totalorder %s1051_s13, 2 }
   0x6   : > { %s1194_s14 = smov (%p25_p0, %s24_s14), 0  ;;  %p49_p3 = por %p48_p2, %p47_p1 }
   0x7   : > { %s36_s15 = ssub.s32 %s1047_s12, %s1194_s14  ;;  %129 = sbr.rel (%p798_p5) target bundleno = 22 (0x16), region = 16 }
   0x8   : > { %p38_p4 = scmp.eq.s32.totalorder %s36_s15, 0 }
   0xa   : > { %s1104_s17 = scalar_select %p38_p4, %s1039_s10, %s40_s16  }
   0xe   : > { %132 = sbr.rel (!%p49_p3) target bundleno = 22 (0x16), region = 20  ;;  %s134_s18 = sand.u32 (%p49_p3), 1, %s1039_s10  }
   0xf   : > { %s856_s19 = sshll.u32 (%p49_p3), %s1047_s12, 4  ;;  %s799_s20 = sshll.u32 (%p49_p3), %s134_s18, 6 }
  0x10   : > { %s142_s23 = scalar_lea.vmem (%p49_p3), %s1186_s0, %s856_s19  ;;  %s136_s24 = scalar_lea.vmem (%p49_p3), [#allocation3], %s799_s20 }
  0x11   : > { %v155_v0 = vld [vmem:[%s142_s23] sm:$0xff] (%p49_p3)  ;;  %v157_v1 = vld [vmem:[%s142_s23 + $0x8] sm:$0xff] (%p49_p3) }
  0x12   : > { %v159_v2 = vld [vmem:[%s142_s23 + $0x20] sm:$0xff] (%p49_p3)  ;;  %156 = vst [vmem:[%s136_s24] sm:$0xff] (%p49_p3), %v155_v0  ;;  %158 = vst [vmem:[%s136_s24 + $0x8] sm:$0xff] (%p49_p3), %v157_v1  ;;  %v161_v3 = vld [vmem:[%s142_s23 + $0x28] sm:$0xff] (%p49_p3) }
  0x13   : > { %160 = vst [vmem:[%s136_s24 + $0x10] sm:$0xff] (%p49_p3), %v159_v2  ;;  %v163_v4 = vld [vmem:[%s142_s23 + $0x40] sm:$0xff] (%p49_p3)  ;;  %v165_v5 = vld [vmem:[%s142_s23 + $0x48] sm:$0xff] (%p49_p3)  ;;  %162 = vst [vmem:[%s136_s24 + $0x18] sm:$0xff] (%p49_p3), %v161_v3 }
  0x14   : > { %164 = vst [vmem:[%s136_s24 + $0x20] sm:$0xff] (%p49_p3), %v163_v4  ;;  %166 = vst [vmem:[%s136_s24 + $0x28] sm:$0xff] (%p49_p3), %v165_v5  ;;  %v167_v6 = vld [vmem:[%s142_s23 + $0x60] sm:$0xff] (%p49_p3)  ;;  %v169_v7 = vld [vmem:[%s142_s23 + $0x68] sm:$0xff] (%p49_p3) }
  0x15   : > { %168 = vst [vmem:[%s136_s24 + $0x30] sm:$0xff] %v167_v6  ;;  %170 = vst [vmem:[%s136_s24 + $0x38] sm:$0xff] %v169_v7 }
  0x16 PF: > { %p802_p6 = scmp.ge.s32.totalorder %s1051_s13, 1  ;;  %p187_p7 = scmp.lt.s32.totalorder %s1051_s13, 3 }
  0x18   : > { %p188_p8 = pnand %p802_p6, %p187_p7 }
  0x19   : > { %s194_s25 = sand.u32 (!%p188_p8), 1, %s1035_s9   ;;  %s804_s26 = sshll.u32 (!%p188_p8), %s1043_s11, 6 }
  0x1a   : > { %191 = sbr.rel (%p188_p8) target bundleno = 315 (0x13b), region = 47  ;;  %s803_s27 = sshll.u32 (!%p188_p8), %s194_s25, 6 }
  0x1b   : > { %p229_p9 = scmp.lt.s32.totalorder (!%p188_p8), %s804_s26, 127  ;;  %s1121_s4 = scalar_lea.vmem (!%p188_p8), [#allocation3], %s803_s27 }
  0x1c   : > { %p806_p10 = scmp.ne.s32.totalorder (!%p188_p8), %s1043_s11, 0 }
  0x21   : > { %s1196_s26 = smov (!%p229_p9, %s804_s26), 127  ;;  %250 = sbr.rel (%p806_p10) target bundleno = 40 (0x28), region = 55 }
  0x22   : > { %s805_s28 = sshll.u32 %s1196_s26, 2  ;;  %v1053_v8 = vmov (!%p806_p10), 0.0  }
  0x23   : > { %s1119_s3 = scalar_lea.vmem %s1187_s1, %s805_s28  ;;  %251 = vst [vmem:[#allocation2] sm:$0xff] (!%p806_p10), %v1053_v8  ;;  %252 = vst [vmem:[#allocation2 + $0x8] sm:$0xff] (!%p806_p10), %v1053_v8 }
  0x24   : > { %253 = vst [vmem:[#allocation2 + $0x10] sm:$0xff] (!%p806_p10), %v1053_v8  ;;  %254 = vst [vmem:[#allocation2 + $0x18] sm:$0xff] (!%p806_p10), %v1053_v8 }
  0x28 PF: > { %v969_v9 = vld [vmem:[%s1119_s3 + $0x40] sm:$0xff]   ;;  %v973_v13 = vld [vmem:[%s1119_s3 + $0x48] sm:$0xff]   ;;  %v977_v17 = vld [vmem:[%s1119_s3 + $0x50] sm:$0xff]   ;;  %p847_p11 = scmp.ne.s32.totalorder %s1043_s11, 1 }
  0x29   : > { %v970_v10 = vld [vmem:[%s1119_s3 + $0xc0] sm:$0xff]   ;;  %872 = vmatprep.subr.bf16.mxu0 %v969_v9  ;;  %v974_v14 = vld [vmem:[%s1119_s3 + $0xc8] sm:$0xff]   ;;  %v978_v18 = vld [vmem:[%s1119_s3 + $0xd0] sm:$0xff]  }
  0x2a   : > { %v971_v11 = vld [vmem:[%s1119_s3] sm:$0xff]   ;;  %900 = vmatprep.subr.bf16.mxu1 %v970_v10  ;;  %v975_v15 = vld [vmem:[%s1119_s3 + $0x8] sm:$0xff]   ;;  %v979_v19 = vld [vmem:[%s1119_s3 + $0x10] sm:$0xff]  }
  0x2b   : > { %v972_v12 = vld [vmem:[%s1119_s3 + $0x80] sm:$0xff]   ;;  %873 = vmatpush3.bf16.msra.mxu0 %v971_v11  ;;  %v976_v16 = vld [vmem:[%s1119_s3 + $0x88] sm:$0xff]   ;;  %v980_v20 = vld [vmem:[%s1119_s3 + $0x90] sm:$0xff]  }
  0x2c   : > { %901 = vmatpush3.bf16.msra.mxu1 %v972_v12  ;;  %874 = vmatprep.subr.bf16.mxu0 %v973_v13  ;;  %v981_v21 = vld [vmem:[%s1119_s3 + $0x58] sm:$0xff]   ;;  %v985_v25 = vld [vmem:[%s1119_s3 + $0x60] sm:$0xff]   ;;  %v989_v29 = vld [vmem:[%s1119_s3 + $0x68] sm:$0xff]  }
  0x2d   : > { %902 = vmatprep.subr.bf16.mxu1 %v974_v14  ;;  %v982_v22 = vld [vmem:[%s1119_s3 + $0xd8] sm:$0xff]   ;;  %v986_v26 = vld [vmem:[%s1119_s3 + $0xe0] sm:$0xff]   ;;  %v990_v30 = vld [vmem:[%s1119_s3 + $0xe8] sm:$0xff]  }
  0x2e   : > { %v983_v23 = vld [vmem:[%s1119_s3 + $0x18] sm:$0xff]   ;;  %v987_v27 = vld [vmem:[%s1119_s3 + $0x20] sm:$0xff]   ;;  %v991_v31 = vld [vmem:[%s1119_s3 + $0x28] sm:$0xff]  }
  0x2f   : > { %875 = vmatpush3.bf16.msra.mxu0 %v975_v15  ;;  %v984_v24 = vld [vmem:[%s1119_s3 + $0x98] sm:$0xff]   ;;  %v988_v28 = vld [vmem:[%s1119_s3 + $0xa0] sm:$0xff]   ;;  %v992_v32 = vld [vmem:[%s1119_s3 + $0xa8] sm:$0xff]  }
  0x30   : > { %903 = vmatpush3.bf16.msra.mxu1 %v976_v16  ;;  %876 = vmatprep.subr.bf16.mxu0 %v977_v17  ;;  %v993_v33 = vld [vmem:[%s1119_s3 + $0x70] sm:$0xff]   ;;  %v997_v37 = vld [vmem:[%s1119_s3 + $0x78] sm:$0xff]   ;;  %v255_v58 = vld [vmem:[#allocation2] sm:$0xff] }
  0x31   : > { %904 = vmatprep.subr.bf16.mxu1 %v978_v18  ;;  %v994_v34 = vld [vmem:[%s1119_s3 + $0xf0] sm:$0xff]   ;;  %v998_v38 = vld [vmem:[%s1119_s3 + $0xf8] sm:$0xff]   ;;  %v256_v63 = vld [vmem:[#allocation2 + $0x8] sm:$0xff] }
  0x32   : > { %v995_v35 = vld [vmem:[%s1119_s3 + $0x30] sm:$0xff]   ;;  %v999_v39 = vld [vmem:[%s1119_s3 + $0x38] sm:$0xff]  }
  0x33   : > { %877 = vmatpush3.bf16.msra.mxu0 %v979_v19  ;;  %v996_v36 = vld [vmem:[%s1119_s3 + $0xb0] sm:$0xff]   ;;  %v1000_v40 = vld [vmem:[%s1119_s3 + $0xb8] sm:$0xff]  }
  0x34   : > { %905 = vmatpush3.bf16.msra.mxu1 %v980_v20  ;;  %878 = vmatprep.subr.bf16.mxu0 %v981_v21  ;;  %v1001_v41 = vld [vmem:[%s1121_s4] ss:$16 sps:$4 sm:$0xff]   ;;  %v1003_v42 = vld [vmem:[%s1121_s4 + $0x4] ss:$16 sps:$4 sm:$0xff]   ;;  %v1004_v43 = vld [vmem:[%s1121_s4 + $0x8] ss:$16 sps:$4 sm:$0xff]  }
  0x35   : > { %906 = vmatprep.subr.bf16.mxu1 %v982_v22  ;;  %v1006_v44 = vld [vmem:[%s1121_s4 + $0xc] ss:$16 sps:$4 sm:$0xff]   ;;  %595 = vmatprep.mubr.bf16.mxu0 %v1003_v42  ;;  %v1007_v45 = vld [vmem:[%s1121_s4 + $0x24] ss:$16 sps:$4 sm:$0xff]   ;;  %v1011_v47 = vld [vmem:[%s1121_s4 + $0x20] ss:$16 sps:$4 sm:$0xff]  }
  0x36   : > { %644 = vmatprep.mubr.bf16.mxu1 %v1006_v44  ;;  %v1009_v46 = vld [vmem:[%s1121_s4 + $0x2c] ss:$16 sps:$4 sm:$0xff]   ;;  %v1012_v48 = vld [vmem:[%s1121_s4 + $0x28] ss:$16 sps:$4 sm:$0xff]   ;;  %v257_v12 = vld [vmem:[#allocation2 + $0x10] sm:$0xff] }
  0x37   : > { %879 = vmatpush3.bf16.msra.mxu0 %v983_v23  ;;  %v258_v17 = vld [vmem:[#allocation2 + $0x18] sm:$0xff] }
  0x38   : > { %907 = vmatpush3.bf16.msra.mxu1 %v984_v24  ;;  %880 = vmatprep.subr.bf16.mxu0 %v985_v25 }
  0x39   : > { %908 = vmatprep.subr.bf16.mxu1 %v986_v26 }
  0x3b   : > { %881 = vmatpush3.bf16.msra.mxu0 %v987_v27 }
  0x3c   : > { %909 = vmatpush3.bf16.msra.mxu1 %v988_v28  ;;  %882 = vmatprep.subr.bf16.mxu0 %v989_v29 }
  0x3d   : > { %910 = vmatprep.subr.bf16.mxu1 %v990_v30 }
  0x3f   : > { %883 = vmatpush3.bf16.msra.mxu0 %v991_v31 }
  0x40   : > { %911 = vmatpush3.bf16.msra.mxu1 %v992_v32  ;;  %884 = vmatprep.subr.bf16.mxu0 %v993_v33 }
  0x41   : > { %912 = vmatprep.subr.bf16.mxu1 %v994_v34 }
  0x43   : > { %885 = vmatpush3.bf16.msra.mxu0 %v995_v35 }
  0x44   : > { %913 = vmatpush3.bf16.msra.mxu1 %v996_v36  ;;  %886 = vmatprep.subr.bf16.mxu0 %v997_v37 }
  0x45   : > { %914 = vmatprep.subr.bf16.mxu1 %v998_v38 }
  0x47   : > { %887 = vmatpush3.bf16.msra.mxu0 %v999_v39 }
  0x48   : > { %915 = vmatpush3.bf16.msra.mxu1 %v1000_v40 }
  0x4a   : > { %596 = vmatmul.mubr.bf16.vlgmr.msra.gmra.mrb[0].mxu0 %v1001_v41 }
  0x4b   : > { %645 = vmatmul.mubr.bf16.vlgmr.msra.gmra.mrb[0].mxu1 %v1004_v43  ;;  %603 = vmatprep.mubr.bf16.mxu0 %v1007_v45 }
  0x4c   : > { %652 = vmatprep.mubr.bf16.mxu1 %v1009_v46 }
  0x52   : > { %604 = vmatmul.mubr.bf16.gmra.mrb[4].mxu0 %v1011_v47 }
  0x53   : > { %653 = vmatmul.mubr.bf16.gmra.mrb[4].mxu1 %v1012_v48 }
 0x11d   : > { %v888_v49 = vpop.f32.mrb[0].mxu0 }
 0x11e   : > { %v916_v50 = vpop.f32.mrb[0].mxu1  ;;  %v889_v51 = vpop.f32.mrb[1].mxu0 }
 0x11f   : > { %v890_v52 = vadd.f32 %v889_v51, %v888_v49  ;;  %v917_v53 = vpop.f32.mrb[1].mxu1  ;;  %v891_v54 = vpop.f32.mrb[2].mxu0 }
 0x120   : > { %v918_v55 = vadd.f32 %v917_v53, %v916_v50  ;;  %v919_v56 = vpop.f32.mrb[2].mxu1  ;;  %v892_v57 = vpop.f32.mrb[3].mxu0 }
 0x121   : > { %v893_v59 = vadd.f32 %v892_v57, %v891_v54  ;;  %v920_v60 = vpop.f32.mrb[3].mxu1 }
 0x122   : > { %v647_v61 = vadd.f32 %v918_v55, %v890_v52  ;;  %v921_v62 = vadd.f32 %v920_v60, %v919_v56 }
 0x124   : > { %v661_v0 = vadd.f32 %v647_v61, %v255_v58  ;;  %v650_v1 = vadd.f32 %v921_v62, %v893_v59 }
 0x125   : > { %v894_v2 = vpop.f32.mrb[4].mxu0 }
 0x126   : > { %665 = vst [vmem:[#allocation2] sm:$0xff] %v661_v0  ;;  %v662_v3 = vadd.f32 %v650_v1, %v256_v63  ;;  %v922_v4 = vpop.f32.mrb[4].mxu1  ;;  %v895_v5 = vpop.f32.mrb[5].mxu0 }
 0x127   : > { %v896_v6 = vadd.f32 %v895_v5, %v894_v2  ;;  %v923_v7 = vpop.f32.mrb[5].mxu1  ;;  %v897_v8 = vpop.f32.mrb[6].mxu0 }
 0x128   : > { %666 = vst [vmem:[#allocation2 + $0x8] sm:$0xff] %v662_v3  ;;  %v924_v9 = vadd.f32 %v923_v7, %v922_v4  ;;  %v925_v10 = vpop.f32.mrb[6].mxu1  ;;  %v898_v11 = vpop.f32.mrb[7].mxu0 }
 0x129   : > { %v899_v13 = vadd.f32 %v898_v11, %v897_v8  ;;  %v926_v14 = vpop.f32.mrb[7].mxu1 }
 0x12a   : > { %v655_v15 = vadd.f32 %v924_v9, %v896_v6  ;;  %v927_v16 = vadd.f32 %v926_v14, %v925_v10  ;;  %672 = sbr.rel (%p847_p11) target bundleno = 315 (0x13b), region = 59 }
 0x12c   : > { %v663_v18 = vadd.f32 %v655_v15, %v257_v12  ;;  %v658_v19 = vadd.f32 %v927_v16, %v899_v13 }
 0x12d   : > { %v673_v21 = vld [vmem:[#allocation2] sm:$0xff] (!%p847_p11) }
 0x12e   : > { %667 = vst [vmem:[#allocation2 + $0x10] sm:$0xff] %v663_v18  ;;  %v664_v20 = vadd.f32 %v658_v19, %v258_v17 }
 0x12f   : > { %v674_v22 = vld [vmem:[#allocation2 + $0x8] sm:$0xff] (!%p847_p11) }
 0x130   : > { %668 = vst [vmem:[#allocation2 + $0x18] sm:$0xff] %v664_v20  ;;  %v864_v24 = vpack.c.bf16 (!%p847_p11), %v674_v22, %v673_v21 }
 0x132   : > { %865 = vst [vmem:[%s1188_s2] sm:$0xff] %v864_v24  }
 0x135   : > { %v675_v23 = vld [vmem:[#allocation2 + $0x10] sm:$0xff] }
 0x137   : > { %v676_v25 = vld [vmem:[#allocation2 + $0x18] sm:$0xff] }
 0x138   : > { %v869_v26 = vpack.c.bf16 %v676_v25, %v675_v23 }
 0x13a   : > { %871 = vst [vmem:[%s1188_s2 + $0x8] sm:$0xff] %v869_v26  }
 0x13b PF: > { %s12_s13 = sadd.s32 1, %s1051_s13   ;;  %s1189_s9 = smov %s1039_s10 }
 0x13c   : > { %p9_p12 = scmp.ge.s32.totalorder %s12_s13, 4   ;;  %s1190_s10 = smov %s1104_s17 }
 0x13d   : > { %s1191_s11 = smov %s1047_s12  ;;  %s1192_s12 = smov %s1194_s14 }
 0x13e   :  { %11 = sbr.rel (!%p9_p12) target bundleno = 3 (0x3), region = 97 }

// kernel: generator_forward.41
= control target key start
LH: loop header
LB: loop body
LE: loop exit
PB: predicated region body
PF: predicated region fallthrough
CT: control target
= control target key end

     0   :  { %s765_s1 = inlined_call_operand.vmem [shape: bf16[512,128], index: 1, kind: input, shape index: {}]   ;;  %s766_s0 = inlined_call_operand.vmem [shape: bf16[32,512], index: 0, kind: input, shape index: {}]   ;;  %s767_s2 = inlined_call_operand.vmem [shape: bf16[32,128], index: 2, kind: output, shape index: {}]  }
   0x1   :  { %v580_v0 = vld [vmem:[%s765_s1 + $0x40] sm:$0xff]   ;;  %v584_v4 = vld [vmem:[%s765_s1 + $0x48] sm:$0xff]   ;;  %v588_v8 = vld [vmem:[%s765_s1 + $0x50] sm:$0xff]  }
   0x2   :  { %v581_v1 = vld [vmem:[%s765_s1 + $0xc0] sm:$0xff]   ;;  %524 = vmatprep.subr.bf16.mxu0 %v580_v0  ;;  %v585_v5 = vld [vmem:[%s765_s1 + $0xc8] sm:$0xff]   ;;  %v589_v9 = vld [vmem:[%s765_s1 + $0xd0] sm:$0xff]  }
   0x3   :  { %v582_v2 = vld [vmem:[%s765_s1] sm:$0xff]   ;;  %552 = vmatprep.subr.bf16.mxu1 %v581_v1  ;;  %v586_v6 = vld [vmem:[%s765_s1 + $0x8] sm:$0xff]   ;;  %v590_v10 = vld [vmem:[%s765_s1 + $0x10] sm:$0xff]  }
   0x4   :  { %v583_v3 = vld [vmem:[%s765_s1 + $0x80] sm:$0xff]   ;;  %525 = vmatpush3.bf16.msra.mxu0 %v582_v2  ;;  %v587_v7 = vld [vmem:[%s765_s1 + $0x88] sm:$0xff]   ;;  %v591_v11 = vld [vmem:[%s765_s1 + $0x90] sm:$0xff]  }
   0x5   :  { %553 = vmatpush3.bf16.msra.mxu1 %v583_v3  ;;  %526 = vmatprep.subr.bf16.mxu0 %v584_v4  ;;  %v592_v12 = vld [vmem:[%s765_s1 + $0x58] sm:$0xff]   ;;  %v596_v16 = vld [vmem:[%s765_s1 + $0x60] sm:$0xff]   ;;  %v600_v20 = vld [vmem:[%s765_s1 + $0x68] sm:$0xff]  }
   0x6   :  { %554 = vmatprep.subr.bf16.mxu1 %v585_v5  ;;  %v593_v13 = vld [vmem:[%s765_s1 + $0xd8] sm:$0xff]   ;;  %v597_v17 = vld [vmem:[%s765_s1 + $0xe0] sm:$0xff]   ;;  %v601_v21 = vld [vmem:[%s765_s1 + $0xe8] sm:$0xff]  }
   0x7   :  { %v594_v14 = vld [vmem:[%s765_s1 + $0x18] sm:$0xff]   ;;  %v598_v18 = vld [vmem:[%s765_s1 + $0x20] sm:$0xff]   ;;  %v602_v22 = vld [vmem:[%s765_s1 + $0x28] sm:$0xff]  }
   0x8   :  { %527 = vmatpush3.bf16.msra.mxu0 %v586_v6  ;;  %v595_v15 = vld [vmem:[%s765_s1 + $0x98] sm:$0xff]   ;;  %v599_v19 = vld [vmem:[%s765_s1 + $0xa0] sm:$0xff]   ;;  %v603_v23 = vld [vmem:[%s765_s1 + $0xa8] sm:$0xff]  }
   0x9   :  { %555 = vmatpush3.bf16.msra.mxu1 %v587_v7  ;;  %528 = vmatprep.subr.bf16.mxu0 %v588_v8  ;;  %v604_v24 = vld [vmem:[%s765_s1 + $0x70] sm:$0xff]   ;;  %v608_v28 = vld [vmem:[%s765_s1 + $0x78] sm:$0xff]  }
   0xa   :  { %556 = vmatprep.subr.bf16.mxu1 %v589_v9  ;;  %v605_v25 = vld [vmem:[%s765_s1 + $0xf0] sm:$0xff]   ;;  %v609_v29 = vld [vmem:[%s765_s1 + $0xf8] sm:$0xff]  }
   0xb   :  { %v606_v26 = vld [vmem:[%s765_s1 + $0x30] sm:$0xff]   ;;  %v610_v30 = vld [vmem:[%s765_s1 + $0x38] sm:$0xff]  }
   0xc   :  { %529 = vmatpush3.bf16.msra.mxu0 %v590_v10  ;;  %v607_v27 = vld [vmem:[%s765_s1 + $0xb0] sm:$0xff]   ;;  %v611_v31 = vld [vmem:[%s765_s1 + $0xb8] sm:$0xff]  }
   0xd   :  { %557 = vmatpush3.bf16.msra.mxu1 %v591_v11  ;;  %530 = vmatprep.subr.bf16.mxu0 %v592_v12  ;;  %v612_v32 = vld [vmem:[%s766_s0] ss:$16 sps:$4 sm:$0xff]   ;;  %v614_v33 = vld [vmem:[%s766_s0 + $0x4] ss:$16 sps:$4 sm:$0xff]   ;;  %v615_v34 = vld [vmem:[%s766_s0 + $0x8] ss:$16 sps:$4 sm:$0xff]  }
   0xe   :  { %558 = vmatprep.subr.bf16.mxu1 %v593_v13  ;;  %v617_v35 = vld [vmem:[%s766_s0 + $0xc] ss:$16 sps:$4 sm:$0xff]   ;;  %360 = vmatprep.mubr.bf16.mxu0 %v614_v33  ;;  %v618_v36 = vld [vmem:[%s766_s0 + $0x24] ss:$16 sps:$4 sm:$0xff]   ;;  %v622_v38 = vld [vmem:[%s766_s0 + $0x20] ss:$16 sps:$4 sm:$0xff]  }
   0xf   :  { %409 = vmatprep.mubr.bf16.mxu1 %v617_v35  ;;  %v620_v37 = vld [vmem:[%s766_s0 + $0x2c] ss:$16 sps:$4 sm:$0xff]   ;;  %v623_v39 = vld [vmem:[%s766_s0 + $0x28] ss:$16 sps:$4 sm:$0xff]  }
  0x10   :  { %531 = vmatpush3.bf16.msra.mxu0 %v594_v14 }
  0x11   :  { %559 = vmatpush3.bf16.msra.mxu1 %v595_v15  ;;  %532 = vmatprep.subr.bf16.mxu0 %v596_v16 }
  0x12   :  { %560 = vmatprep.subr.bf16.mxu1 %v597_v17 }
  0x14   :  { %533 = vmatpush3.bf16.msra.mxu0 %v598_v18 }
  0x15   :  { %561 = vmatpush3.bf16.msra.mxu1 %v599_v19  ;;  %534 = vmatprep.subr.bf16.mxu0 %v600_v20 }
  0x16   :  { %562 = vmatprep.subr.bf16.mxu1 %v601_v21 }
  0x18   :  { %535 = vmatpush3.bf16.msra.mxu0 %v602_v22 }
  0x19   :  { %563 = vmatpush3.bf16.msra.mxu1 %v603_v23  ;;  %536 = vmatprep.subr.bf16.mxu0 %v604_v24 }
  0x1a   :  { %564 = vmatprep.subr.bf16.mxu1 %v605_v25 }
  0x1c   :  { %537 = vmatpush3.bf16.msra.mxu0 %v606_v26 }
  0x1d   :  { %565 = vmatpush3.bf16.msra.mxu1 %v607_v27  ;;  %538 = vmatprep.subr.bf16.mxu0 %v608_v28 }
  0x1e   :  { %566 = vmatprep.subr.bf16.mxu1 %v609_v29 }
  0x20   :  { %539 = vmatpush3.bf16.msra.mxu0 %v610_v30 }
  0x21   :  { %567 = vmatpush3.bf16.msra.mxu1 %v611_v31 }
  0x23   :  { %361 = vmatmul.mubr.bf16.vlgmr.msra.gmra.mrb[0].mxu0 %v612_v32 }
  0x24   :  { %410 = vmatmul.mubr.bf16.vlgmr.msra.gmra.mrb[0].mxu1 %v615_v34  ;;  %368 = vmatprep.mubr.bf16.mxu0 %v618_v36 }
  0x25   :  { %417 = vmatprep.mubr.bf16.mxu1 %v620_v37 }
  0x2b   :  { %369 = vmatmul.mubr.bf16.gmra.mrb[4].mxu0 %v622_v38 }
  0x2c   :  { %418 = vmatmul.mubr.bf16.gmra.mrb[4].mxu1 %v623_v39 }
  0xf6   :  { %v540_v40 = vpop.f32.mrb[0].mxu0 }
  0xf7   :  { %v568_v41 = vpop.f32.mrb[0].mxu1  ;;  %v541_v42 = vpop.f32.mrb[1].mxu0 }
  0xf8   :  { %v542_v43 = vadd.f32 %v541_v42, %v540_v40  ;;  %v569_v44 = vpop.f32.mrb[1].mxu1  ;;  %v543_v45 = vpop.f32.mrb[2].mxu0 }
  0xf9   :  { %v570_v46 = vadd.f32 %v569_v44, %v568_v41  ;;  %v571_v47 = vpop.f32.mrb[2].mxu1  ;;  %v544_v48 = vpop.f32.mrb[3].mxu0 }
  0xfa   :  { %v545_v49 = vadd.f32 %v544_v48, %v543_v45  ;;  %v572_v50 = vpop.f32.mrb[3].mxu1 }
  0xfb   :  { %v412_v51 = vadd.f32 %v570_v46, %v542_v43  ;;  %v573_v52 = vadd.f32 %v572_v50, %v571_v47 }
  0xfd   :  { %v415_v53 = vadd.f32 %v573_v52, %v545_v49 }
  0xfe   :  { %v546_v54 = vpop.f32.mrb[4].mxu0 }
  0xff   :  { %v516_v55 = vpack.c.bf16 %v415_v53, %v412_v51  ;;  %v574_v56 = vpop.f32.mrb[4].mxu1  ;;  %v547_v57 = vpop.f32.mrb[5].mxu0 }
 0x100   :  { %v548_v58 = vadd.f32 %v547_v57, %v546_v54  ;;  %v575_v59 = vpop.f32.mrb[5].mxu1  ;;  %v549_v60 = vpop.f32.mrb[6].mxu0 }
 0x101   :  { %517 = vst [vmem:[%s767_s2] sm:$0xff] %v516_v55   ;;  %v576_v61 = vadd.f32 %v575_v59, %v574_v56  ;;  %v577_v62 = vpop.f32.mrb[6].mxu1  ;;  %v550_v63 = vpop.f32.mrb[7].mxu0 }
 0x102   :  { %v551_v0 = vadd.f32 %v550_v63, %v549_v60  ;;  %v578_v1 = vpop.f32.mrb[7].mxu1 }
 0x103   :  { %v420_v2 = vadd.f32 %v576_v61, %v548_v58  ;;  %v579_v3 = vadd.f32 %v578_v1, %v577_v62 }
 0x105   :  { %v423_v4 = vadd.f32 %v579_v3, %v551_v0 }
 0x107   :  { %v521_v5 = vpack.c.bf16 %v423_v4, %v420_v2 }
 0x109   :  { %523 = vst [vmem:[%s767_s2 + $0x8] sm:$0xff] %v521_v5  }

// kernel: generator_forward.39
= control target key start
LH: loop header
LB: loop body
LE: loop exit
PB: predicated region body
PF: predicated region fallthrough
CT: control target
= control target key end

     0   :  { %s450_s1 = inlined_call_operand.vmem [shape: bf16[256,128], index: 1, kind: input, shape index: {}]   ;;  %s451_s0 = inlined_call_operand.vmem [shape: bf16[32,256], index: 0, kind: input, shape index: {}]   ;;  %s452_s2 = inlined_call_operand.vmem [shape: bf16[32,128], index: 2, kind: output, shape index: {}]  }
   0x1   :  { %v347_v0 = vld [vmem:[%s450_s1 + $0x40] sm:$0xff]   ;;  %v349_v2 = vld [vmem:[%s450_s1 + $0x48] sm:$0xff]   ;;  %v351_v4 = vld [vmem:[%s450_s1 + $0x50] sm:$0xff]  }
   0x2   :  { %v348_v1 = vld [vmem:[%s450_s1] sm:$0xff]   ;;  %303 = vmatprep.subr.bf16.mxu0 %v347_v0  ;;  %331 = vmatprep.subr.bf16.mxu1 %v347_v0  ;;  %v350_v3 = vld [vmem:[%s450_s1 + $0x8] sm:$0xff]   ;;  %v352_v5 = vld [vmem:[%s450_s1 + $0x10] sm:$0xff]  }
   0x3   :  { %304 = vmatpush3.bf16.msra.mxu0 %v348_v1  ;;  %339 = vmatpush3.bf16.msra.mxu1 %v348_v1  ;;  %v353_v6 = vld [vmem:[%s450_s1 + $0x58] sm:$0xff]   ;;  %v355_v8 = vld [vmem:[%s450_s1 + $0x60] sm:$0xff]   ;;  %v357_v10 = vld [vmem:[%s450_s1 + $0x68] sm:$0xff]  }
   0x4   :  { %305 = vmatprep.subr.bf16.mxu0 %v349_v2  ;;  %332 = vmatprep.subr.bf16.mxu1 %v349_v2  ;;  %v354_v7 = vld [vmem:[%s450_s1 + $0x18] sm:$0xff]   ;;  %v356_v9 = vld [vmem:[%s450_s1 + $0x20] sm:$0xff]   ;;  %v358_v13 = vld [vmem:[%s450_s1 + $0x28] sm:$0xff]  }
   0x5   :  { %v365_v11 = vld [vmem:[%s451_s0 + $0x4] ss:$8 sps:$4 sm:$0xff]   ;;  %v368_v12 = vld [vmem:[%s451_s0 + $0x14] ss:$8 sps:$4 sm:$0xff]   ;;  %v363_v18 = vld [vmem:[%s451_s0] ss:$8 sps:$4 sm:$0xff]  }
   0x6   :  { %v359_v14 = vld [vmem:[%s450_s1 + $0x70] sm:$0xff]   ;;  %208 = vmatprep.mubr.bf16.mxu0 %v365_v11  ;;  %216 = vmatprep.mubr.bf16.mxu1 %v368_v12  ;;  %v361_v16 = vld [vmem:[%s450_s1 + $0x78] sm:$0xff]  }
   0x7   :  { %306 = vmatpush3.bf16.msra.mxu0 %v350_v3  ;;  %340 = vmatpush3.bf16.msra.mxu1 %v350_v3  ;;  %v360_v15 = vld [vmem:[%s450_s1 + $0x30] sm:$0xff]   ;;  %v362_v17 = vld [vmem:[%s450_s1 + $0x38] sm:$0xff]  }
   0x8   :  { %307 = vmatprep.subr.bf16.mxu0 %v351_v4  ;;  %333 = vmatprep.subr.bf16.mxu1 %v351_v4  ;;  %v366_v19 = vld [vmem:[%s451_s0 + $0x10] ss:$8 sps:$4 sm:$0xff]  }
   0xb   :  { %308 = vmatpush3.bf16.msra.mxu0 %v352_v5  ;;  %341 = vmatpush3.bf16.msra.mxu1 %v352_v5 }
   0xc   :  { %309 = vmatprep.subr.bf16.mxu0 %v353_v6  ;;  %334 = vmatprep.subr.bf16.mxu1 %v353_v6 }
   0xf   :  { %310 = vmatpush3.bf16.msra.mxu0 %v354_v7  ;;  %342 = vmatpush3.bf16.msra.mxu1 %v354_v7 }
  0x10   :  { %311 = vmatprep.subr.bf16.mxu0 %v355_v8  ;;  %335 = vmatprep.subr.bf16.mxu1 %v355_v8 }
  0x13   :  { %312 = vmatpush3.bf16.msra.mxu0 %v356_v9  ;;  %343 = vmatpush3.bf16.msra.mxu1 %v356_v9 }
  0x14   :  { %313 = vmatprep.subr.bf16.mxu0 %v357_v10  ;;  %336 = vmatprep.subr.bf16.mxu1 %v357_v10 }
  0x17   :  { %314 = vmatpush3.bf16.msra.mxu0 %v358_v13  ;;  %344 = vmatpush3.bf16.msra.mxu1 %v358_v13 }
  0x18   :  { %315 = vmatprep.subr.bf16.mxu0 %v359_v14  ;;  %337 = vmatprep.subr.bf16.mxu1 %v359_v14 }
  0x1b   :  { %316 = vmatpush3.bf16.msra.mxu0 %v360_v15  ;;  %345 = vmatpush3.bf16.msra.mxu1 %v360_v15 }
  0x1c   :  { %317 = vmatprep.subr.bf16.mxu0 %v361_v16  ;;  %338 = vmatprep.subr.bf16.mxu1 %v361_v16 }
  0x1f   :  { %318 = vmatpush3.bf16.msra.mxu0 %v362_v17  ;;  %346 = vmatpush3.bf16.msra.mxu1 %v362_v17 }
  0x22   :  { %209 = vmatmul.mubr.bf16.vlgmr.msra.gmra.mrb[0].mxu0 %v363_v18  ;;  %217 = vmatmul.mubr.bf16.vlgmr.msra.gmra.mrb[0].mxu1 %v366_v19 }
  0xf5   :  { %v319_v20 = vpop.f32.mrb[0].mxu0  ;;  %v325_v21 = vpop.f32.mrb[0].mxu1 }
  0xf6   :  { %v320_v22 = vpop.f32.mrb[1].mxu0  ;;  %v326_v23 = vpop.f32.mrb[1].mxu1 }
  0xf7   :  { %v321_v24 = vadd.f32 %v320_v22, %v319_v20  ;;  %v327_v25 = vadd.f32 %v326_v23, %v325_v21  ;;  %v322_v26 = vpop.f32.mrb[2].mxu0  ;;  %v328_v27 = vpop.f32.mrb[2].mxu1 }
  0xf8   :  { %v323_v28 = vpop.f32.mrb[3].mxu0  ;;  %v329_v29 = vpop.f32.mrb[3].mxu1 }
  0xf9   :  { %v324_v30 = vadd.f32 %v323_v28, %v322_v26  ;;  %v330_v31 = vadd.f32 %v329_v29, %v328_v27 }
  0xfb   :  { %v295_v32 = vpack.c.bf16 %v324_v30, %v321_v24  ;;  %v300_v33 = vpack.c.bf16 %v330_v31, %v327_v25 }
  0xfd   :  { %296 = vst [vmem:[%s452_s2] sm:$0xff] %v295_v32   ;;  %302 = vst [vmem:[%s452_s2 + $0x8] sm:$0xff] %v300_v33  }

// kernel: generator_forward.47
= control target key start
LH: loop header
LB: loop body
LE: loop exit
PB: predicated region body
PF: predicated region fallthrough
CT: control target
= control target key end

     0   :  { %s1407_s1 = inlined_call_operand.vmem [shape: bf16[512,128], index: 1, kind: input, shape index: {}]   ;;  %s1408_s0 = inlined_call_operand.vmem [shape: bf16[128,512], index: 0, kind: input, shape index: {}]   ;;  %s1409_s2 = inlined_call_operand.vmem [shape: bf16[128,128], index: 2, kind: output, shape index: {}]  }
   0x1   :  { %v1096_v0 = vld [vmem:[%s1407_s1 + $0x40] sm:$0xff]   ;;  %v1100_v4 = vld [vmem:[%s1407_s1 + $0x48] sm:$0xff]   ;;  %v1104_v8 = vld [vmem:[%s1407_s1 + $0x50] sm:$0xff]  }
   0x2   :  { %v1097_v1 = vld [vmem:[%s1407_s1 + $0xc0] sm:$0xff]   ;;  %968 = vmatprep.subr.bf16.mxu0 %v1096_v0  ;;  %v1101_v5 = vld [vmem:[%s1407_s1 + $0xc8] sm:$0xff]   ;;  %v1105_v9 = vld [vmem:[%s1407_s1 + $0xd0] sm:$0xff]  }
   0x3   :  { %v1098_v2 = vld [vmem:[%s1407_s1] sm:$0xff]   ;;  %1032 = vmatprep.subr.bf16.mxu1 %v1097_v1  ;;  %v1102_v6 = vld [vmem:[%s1407_s1 + $0x8] sm:$0xff]   ;;  %v1106_v10 = vld [vmem:[%s1407_s1 + $0x10] sm:$0xff]  }
   0x4   :  { %v1099_v3 = vld [vmem:[%s1407_s1 + $0x80] sm:$0xff]   ;;  %969 = vmatpush3.bf16.msra.mxu0 %v1098_v2  ;;  %v1103_v7 = vld [vmem:[%s1407_s1 + $0x88] sm:$0xff]   ;;  %v1107_v11 = vld [vmem:[%s1407_s1 + $0x90] sm:$0xff]  }
   0x5   :  { %1033 = vmatpush3.bf16.msra.mxu1 %v1099_v3  ;;  %970 = vmatprep.subr.bf16.mxu0 %v1100_v4  ;;  %v1108_v12 = vld [vmem:[%s1407_s1 + $0x58] sm:$0xff]   ;;  %v1112_v16 = vld [vmem:[%s1407_s1 + $0x60] sm:$0xff]   ;;  %v1116_v20 = vld [vmem:[%s1407_s1 + $0x68] sm:$0xff]  }
   0x6   :  { %1034 = vmatprep.subr.bf16.mxu1 %v1101_v5  ;;  %v1109_v13 = vld [vmem:[%s1407_s1 + $0xd8] sm:$0xff]   ;;  %v1113_v17 = vld [vmem:[%s1407_s1 + $0xe0] sm:$0xff]   ;;  %v1117_v21 = vld [vmem:[%s1407_s1 + $0xe8] sm:$0xff]  }
   0x7   :  { %v1110_v14 = vld [vmem:[%s1407_s1 + $0x18] sm:$0xff]   ;;  %v1114_v18 = vld [vmem:[%s1407_s1 + $0x20] sm:$0xff]   ;;  %v1118_v22 = vld [vmem:[%s1407_s1 + $0x28] sm:$0xff]  }
   0x8   :  { %971 = vmatpush3.bf16.msra.mxu0 %v1102_v6  ;;  %v1111_v15 = vld [vmem:[%s1407_s1 + $0x98] sm:$0xff]   ;;  %v1115_v19 = vld [vmem:[%s1407_s1 + $0xa0] sm:$0xff]   ;;  %v1119_v23 = vld [vmem:[%s1407_s1 + $0xa8] sm:$0xff]  }
   0x9   :  { %1035 = vmatpush3.bf16.msra.mxu1 %v1103_v7  ;;  %972 = vmatprep.subr.bf16.mxu0 %v1104_v8  ;;  %v1120_v24 = vld [vmem:[%s1407_s1 + $0x70] sm:$0xff]   ;;  %v1124_v28 = vld [vmem:[%s1407_s1 + $0x78] sm:$0xff]  }
   0xa   :  { %1036 = vmatprep.subr.bf16.mxu1 %v1105_v9  ;;  %v1121_v25 = vld [vmem:[%s1407_s1 + $0xf0] sm:$0xff]   ;;  %v1125_v29 = vld [vmem:[%s1407_s1 + $0xf8] sm:$0xff]  }
   0xb   :  { %v1122_v26 = vld [vmem:[%s1407_s1 + $0x30] sm:$0xff]   ;;  %v1126_v30 = vld [vmem:[%s1407_s1 + $0x38] sm:$0xff]  }
   0xc   :  { %973 = vmatpush3.bf16.msra.mxu0 %v1106_v10  ;;  %v1123_v27 = vld [vmem:[%s1407_s1 + $0xb0] sm:$0xff]   ;;  %v1127_v31 = vld [vmem:[%s1407_s1 + $0xb8] sm:$0xff]  }
   0xd   :  { %1037 = vmatpush3.bf16.msra.mxu1 %v1107_v11  ;;  %974 = vmatprep.subr.bf16.mxu0 %v1108_v12  ;;  %v1128_v32 = vld [vmem:[%s1408_s0] ss:$16 sps:$4 sm:$0xff]   ;;  %v1130_v33 = vld [vmem:[%s1408_s0 + $0x4] ss:$16 sps:$4 sm:$0xff]   ;;  %v1131_v34 = vld [vmem:[%s1408_s0 + $0x8] ss:$16 sps:$4 sm:$0xff]  }
   0xe   :  { %1038 = vmatprep.subr.bf16.mxu1 %v1109_v13  ;;  %v1133_v35 = vld [vmem:[%s1408_s0 + $0xc] ss:$16 sps:$4 sm:$0xff]   ;;  %528 = vmatprep.mubr.bf16.mxu0 %v1130_v33  ;;  %v1134_v36 = vld [vmem:[%s1408_s0 + $0x24] ss:$16 sps:$4 sm:$0xff]   ;;  %v1138_v38 = vld [vmem:[%s1408_s0 + $0x20] ss:$16 sps:$4 sm:$0xff]  }
   0xf   :  { %625 = vmatprep.mubr.bf16.mxu1 %v1133_v35  ;;  %v1136_v37 = vld [vmem:[%s1408_s0 + $0x2c] ss:$16 sps:$4 sm:$0xff]   ;;  %v1139_v39 = vld [vmem:[%s1408_s0 + $0x28] ss:$16 sps:$4 sm:$0xff]   ;;  %v1140_v40 = vld [vmem:[%s1408_s0 + $0x44] ss:$16 sps:$4 sm:$0xff]  }
  0x10   :  { %975 = vmatpush3.bf16.msra.mxu0 %v1110_v14  ;;  %v1142_v41 = vld [vmem:[%s1408_s0 + $0x4c] ss:$16 sps:$4 sm:$0xff]   ;;  %v1144_v42 = vld [vmem:[%s1408_s0 + $0x40] ss:$16 sps:$4 sm:$0xff]   ;;  %v1145_v43 = vld [vmem:[%s1408_s0 + $0x48] ss:$16 sps:$4 sm:$0xff]  }
  0x11   :  { %1039 = vmatpush3.bf16.msra.mxu1 %v1111_v15  ;;  %976 = vmatprep.subr.bf16.mxu0 %v1112_v16  ;;  %v1146_v44 = vld [vmem:[%s1408_s0 + $0x64] ss:$16 sps:$4 sm:$0xff]   ;;  %v1148_v45 = vld [vmem:[%s1408_s0 + $0x6c] ss:$16 sps:$4 sm:$0xff]   ;;  %v1150_v46 = vld [vmem:[%s1408_s0 + $0x60] ss:$16 sps:$4 sm:$0xff]  }
  0x12   :  { %1040 = vmatprep.subr.bf16.mxu1 %v1113_v17  ;;  %v1151_v47 = vld [vmem:[%s1408_s0 + $0x68] ss:$16 sps:$4 sm:$0xff]   ;;  %v1152_v48 = vld [vmem:[%s1408_s0 + $0x84] ss:$16 sps:$4 sm:$0xff]   ;;  %v1154_v49 = vld [vmem:[%s1408_s0 + $0x8c] ss:$16 sps:$4 sm:$0xff]  }
  0x13   :  { %v1156_v50 = vld [vmem:[%s1408_s0 + $0x80] ss:$16 sps:$4 sm:$0xff]   ;;  %v1157_v51 = vld [vmem:[%s1408_s0 + $0x88] ss:$16 sps:$4 sm:$0xff]   ;;  %v1158_v52 = vld [vmem:[%s1408_s0 + $0xa4] ss:$16 sps:$4 sm:$0xff]  }
  0x14   :  { %977 = vmatpush3.bf16.msra.mxu0 %v1114_v18  ;;  %v1160_v53 = vld [vmem:[%s1408_s0 + $0xac] ss:$16 sps:$4 sm:$0xff]   ;;  %v1162_v54 = vld [vmem:[%s1408_s0 + $0xa0] ss:$16 sps:$4 sm:$0xff]   ;;  %v1163_v55 = vld [vmem:[%s1408_s0 + $0xa8] ss:$16 sps:$4 sm:$0xff]  }
  0x15   :  { %1041 = vmatpush3.bf16.msra.mxu1 %v1115_v19  ;;  %978 = vmatprep.subr.bf16.mxu0 %v1116_v20  ;;  %v1164_v56 = vld [vmem:[%s1408_s0 + $0xc4] ss:$16 sps:$4 sm:$0xff]   ;;  %v1166_v57 = vld [vmem:[%s1408_s0 + $0xcc] ss:$16 sps:$4 sm:$0xff]   ;;  %v1168_v58 = vld [vmem:[%s1408_s0 + $0xc0] ss:$16 sps:$4 sm:$0xff]  }
  0x16   :  { %1042 = vmatprep.subr.bf16.mxu1 %v1117_v21  ;;  %v1169_v59 = vld [vmem:[%s1408_s0 + $0xc8] ss:$16 sps:$4 sm:$0xff]   ;;  %v1170_v60 = vld [vmem:[%s1408_s0 + $0xe4] ss:$16 sps:$4 sm:$0xff]   ;;  %v1172_v61 = vld [vmem:[%s1408_s0 + $0xec] ss:$16 sps:$4 sm:$0xff]  }
  0x17   :  { %v1174_v62 = vld [vmem:[%s1408_s0 + $0xe0] ss:$16 sps:$4 sm:$0xff]   ;;  %v1175_v63 = vld [vmem:[%s1408_s0 + $0xe8] ss:$16 sps:$4 sm:$0xff]  }
  0x18   :  { %979 = vmatpush3.bf16.msra.mxu0 %v1118_v22 }
  0x19   :  { %1043 = vmatpush3.bf16.msra.mxu1 %v1119_v23  ;;  %980 = vmatprep.subr.bf16.mxu0 %v1120_v24 }
  0x1a   :  { %1044 = vmatprep.subr.bf16.mxu1 %v1121_v25 }
  0x1c   :  { %981 = vmatpush3.bf16.msra.mxu0 %v1122_v26 }
  0x1d   :  { %1045 = vmatpush3.bf16.msra.mxu1 %v1123_v27  ;;  %982 = vmatprep.subr.bf16.mxu0 %v1124_v28 }
  0x1e   :  { %1046 = vmatprep.subr.bf16.mxu1 %v1125_v29 }
  0x20   :  { %983 = vmatpush3.bf16.msra.mxu0 %v1126_v30 }
  0x21   :  { %1047 = vmatpush3.bf16.msra.mxu1 %v1127_v31 }
  0x23   :  { %529 = vmatmul.mubr.bf16.vlgmr.msra.gmra.mrb[0].mxu0 %v1128_v32 }
  0x24   :  { %626 = vmatmul.mubr.bf16.vlgmr.msra.gmra.mrb[0].mxu1 %v1131_v34  ;;  %536 = vmatprep.mubr.bf16.mxu0 %v1134_v36 }
  0x25   :  { %633 = vmatprep.mubr.bf16.mxu1 %v1136_v37 }
  0x2b   :  { %537 = vmatmul.mubr.bf16.gmra.mrb[4].mxu0 %v1138_v38 }
  0x2c   :  { %634 = vmatmul.mubr.bf16.gmra.mrb[4].mxu1 %v1139_v39  ;;  %544 = vmatprep.mubr.bf16.mxu0 %v1140_v40 }
  0x2d   :  { %641 = vmatprep.mubr.bf16.mxu1 %v1142_v41 }
  0x33   :  { %545 = vmatmul.mubr.bf16.gmra.mrb[8].mxu0 %v1144_v42 }
  0x34   :  { %642 = vmatmul.mubr.bf16.gmra.mrb[8].mxu1 %v1145_v43  ;;  %552 = vmatprep.mubr.bf16.mxu0 %v1146_v44 }
  0x35   :  { %649 = vmatprep.mubr.bf16.mxu1 %v1148_v45 }
  0x3b   :  { %553 = vmatmul.mubr.bf16.gmra.mrb[12].mxu0 %v1150_v46 }
  0x3c   :  { %650 = vmatmul.mubr.bf16.gmra.mrb[12].mxu1 %v1151_v47  ;;  %560 = vmatprep.mubr.bf16.mxu0 %v1152_v48 }
  0x3d   :  { %657 = vmatprep.mubr.bf16.mxu1 %v1154_v49 }
  0x43   :  { %561 = vmatmul.mubr.bf16.gmra.mrb[16].mxu0 %v1156_v50 }
  0x44   :  { %658 = vmatmul.mubr.bf16.gmra.mrb[16].mxu1 %v1157_v51  ;;  %568 = vmatprep.mubr.bf16.mxu0 %v1158_v52 }
  0x45   :  { %665 = vmatprep.mubr.bf16.mxu1 %v1160_v53 }
  0x4b   :  { %569 = vmatmul.mubr.bf16.gmra.mrb[20].mxu0 %v1162_v54 }
  0x4c   :  { %666 = vmatmul.mubr.bf16.gmra.mrb[20].mxu1 %v1163_v55  ;;  %576 = vmatprep.mubr.bf16.mxu0 %v1164_v56 }
  0x4d   :  { %673 = vmatprep.mubr.bf16.mxu1 %v1166_v57 }
  0x53   :  { %577 = vmatmul.mubr.bf16.gmra.mrb[24].mxu0 %v1168_v58 }
  0x54   :  { %674 = vmatmul.mubr.bf16.gmra.mrb[24].mxu1 %v1169_v59  ;;  %584 = vmatprep.mubr.bf16.mxu0 %v1170_v60 }
  0x55   :  { %681 = vmatprep.mubr.bf16.mxu1 %v1172_v61 }
  0x5b   :  { %585 = vmatmul.mubr.bf16.gmra.mrb[28].mxu0 %v1174_v62 }
  0x5c   :  { %682 = vmatmul.mubr.bf16.gmra.mrb[28].mxu1 %v1175_v63 }
  0xf6   :  { %v984_v0 = vpop.f32.mrb[0].mxu0 }
  0xf7   :  { %v1048_v1 = vpop.f32.mrb[0].mxu1  ;;  %v985_v2 = vpop.f32.mrb[1].mxu0 }
  0xf8   :  { %v986_v3 = vadd.f32 %v985_v2, %v984_v0  ;;  %v1049_v4 = vpop.f32.mrb[1].mxu1  ;;  %v987_v5 = vpop.f32.mrb[2].mxu0 }
  0xf9   :  { %v1050_v6 = vadd.f32 %v1049_v4, %v1048_v1  ;;  %v1051_v7 = vpop.f32.mrb[2].mxu1  ;;  %v988_v8 = vpop.f32.mrb[3].mxu0 }
  0xfa   :  { %v989_v9 = vadd.f32 %v988_v8, %v987_v5  ;;  %v1052_v10 = vpop.f32.mrb[3].mxu1 }
  0xfb   :  { %v628_v11 = vadd.f32 %v1050_v6, %v986_v3  ;;  %v1053_v12 = vadd.f32 %v1052_v10, %v1051_v7 }
  0xfd   :  { %v631_v13 = vadd.f32 %v1053_v12, %v989_v9 }
  0xfe   :  { %v990_v14 = vpop.f32.mrb[4].mxu0 }
  0xff   :  { %v924_v15 = vpack.c.bf16 %v631_v13, %v628_v11  ;;  %v1054_v16 = vpop.f32.mrb[4].mxu1  ;;  %v991_v17 = vpop.f32.mrb[5].mxu0 }
 0x100   :  { %v992_v18 = vadd.f32 %v991_v17, %v990_v14  ;;  %v1055_v19 = vpop.f32.mrb[5].mxu1  ;;  %v993_v20 = vpop.f32.mrb[6].mxu0 }
 0x101   :  { %925 = vst [vmem:[%s1409_s2] sm:$0xff] %v924_v15   ;;  %v1056_v21 = vadd.f32 %v1055_v19, %v1054_v16  ;;  %v1057_v22 = vpop.f32.mrb[6].mxu1  ;;  %v994_v23 = vpop.f32.mrb[7].mxu0 }
 0x102   :  { %v995_v24 = vadd.f32 %v994_v23, %v993_v20  ;;  %v1058_v25 = vpop.f32.mrb[7].mxu1 }
 0x103   :  { %v636_v26 = vadd.f32 %v1056_v21, %v992_v18  ;;  %v1059_v27 = vadd.f32 %v1058_v25, %v1057_v22 }
 0x105   :  { %v639_v28 = vadd.f32 %v1059_v27, %v995_v24 }
 0x106   :  { %v996_v29 = vpop.f32.mrb[8].mxu0 }
 0x107   :  { %v929_v30 = vpack.c.bf16 %v639_v28, %v636_v26  ;;  %v1060_v31 = vpop.f32.mrb[8].mxu1  ;;  %v997_v32 = vpop.f32.mrb[9].mxu0 }
 0x108   :  { %v998_v33 = vadd.f32 %v997_v32, %v996_v29  ;;  %v1061_v34 = vpop.f32.mrb[9].mxu1  ;;  %v999_v35 = vpop.f32.mrb[10].mxu0 }
 0x109   :  { %961 = vst [vmem:[%s1409_s2 + $0x8] sm:$0xff] %v929_v30   ;;  %v1062_v36 = vadd.f32 %v1061_v34, %v1060_v31  ;;  %v1063_v37 = vpop.f32.mrb[10].mxu1  ;;  %v1000_v38 = vpop.f32.mrb[11].mxu0 }
 0x10a   :  { %v1001_v39 = vadd.f32 %v1000_v38, %v999_v35  ;;  %v1064_v40 = vpop.f32.mrb[11].mxu1 }
 0x10b   :  { %v644_v41 = vadd.f32 %v1062_v36, %v998_v33  ;;  %v1065_v42 = vadd.f32 %v1064_v40, %v1063_v37 }
 0x10d   :  { %v647_v43 = vadd.f32 %v1065_v42, %v1001_v39 }
 0x10e   :  { %v1002_v44 = vpop.f32.mrb[12].mxu0 }
 0x10f   :  { %v934_v45 = vpack.c.bf16 %v647_v43, %v644_v41  ;;  %v1066_v46 = vpop.f32.mrb[12].mxu1  ;;  %v1003_v47 = vpop.f32.mrb[13].mxu0 }
 0x110   :  { %v1004_v48 = vadd.f32 %v1003_v47, %v1002_v44  ;;  %v1067_v49 = vpop.f32.mrb[13].mxu1  ;;  %v1005_v50 = vpop.f32.mrb[14].mxu0 }
 0x111   :  { %962 = vst [vmem:[%s1409_s2 + $0x10] sm:$0xff] %v934_v45   ;;  %v1068_v51 = vadd.f32 %v1067_v49, %v1066_v46  ;;  %v1069_v52 = vpop.f32.mrb[14].mxu1  ;;  %v1006_v53 = vpop.f32.mrb[15].mxu0 }
 0x112   :  { %v1007_v54 = vadd.f32 %v1006_v53, %v1005_v50  ;;  %v1070_v55 = vpop.f32.mrb[15].mxu1 }
 0x113   :  { %v652_v56 = vadd.f32 %v1068_v51, %v1004_v48  ;;  %v1071_v57 = vadd.f32 %v1070_v55, %v1069_v52 }
 0x115   :  { %v655_v58 = vadd.f32 %v1071_v57, %v1007_v54 }
 0x116   :  { %v1008_v59 = vpop.f32.mrb[16].mxu0 }
 0x117   :  { %v939_v60 = vpack.c.bf16 %v655_v58, %v652_v56  ;;  %v1072_v61 = vpop.f32.mrb[16].mxu1  ;;  %v1009_v62 = vpop.f32.mrb[17].mxu0 }
 0x118   :  { %v1010_v63 = vadd.f32 %v1009_v62, %v1008_v59  ;;  %v1073_v0 = vpop.f32.mrb[17].mxu1  ;;  %v1011_v1 = vpop.f32.mrb[18].mxu0 }
 0x119   :  { %963 = vst [vmem:[%s1409_s2 + $0x18] sm:$0xff] %v939_v60   ;;  %v1074_v2 = vadd.f32 %v1073_v0, %v1072_v61  ;;  %v1075_v3 = vpop.f32.mrb[18].mxu1  ;;  %v1012_v4 = vpop.f32.mrb[19].mxu0 }
 0x11a   :  { %v1013_v5 = vadd.f32 %v1012_v4, %v1011_v1  ;;  %v1076_v6 = vpop.f32.mrb[19].mxu1 }
 0x11b   :  { %v660_v7 = vadd.f32 %v1074_v2, %v1010_v63  ;;  %v1077_v8 = vadd.f32 %v1076_v6, %v1075_v3 }
 0x11d   :  { %v663_v9 = vadd.f32 %v1077_v8, %v1013_v5 }
 0x11e   :  { %v1014_v10 = vpop.f32.mrb[20].mxu0 }
 0x11f   :  { %v944_v11 = vpack.c.bf16 %v663_v9, %v660_v7  ;;  %v1078_v12 = vpop.f32.mrb[20].mxu1  ;;  %v1015_v13 = vpop.f32.mrb[21].mxu0 }
 0x120   :  { %v1016_v14 = vadd.f32 %v1015_v13, %v1014_v10  ;;  %v1079_v15 = vpop.f32.mrb[21].mxu1  ;;  %v1017_v16 = vpop.f32.mrb[22].mxu0 }
 0x121   :  { %964 = vst [vmem:[%s1409_s2 + $0x20] sm:$0xff] %v944_v11   ;;  %v1080_v17 = vadd.f32 %v1079_v15, %v1078_v12  ;;  %v1081_v18 = vpop.f32.mrb[22].mxu1  ;;  %v1018_v19 = vpop.f32.mrb[23].mxu0 }
 0x122   :  { %v1019_v20 = vadd.f32 %v1018_v19, %v1017_v16  ;;  %v1082_v21 = vpop.f32.mrb[23].mxu1 }
 0x123   :  { %v668_v22 = vadd.f32 %v1080_v17, %v1016_v14  ;;  %v1083_v23 = vadd.f32 %v1082_v21, %v1081_v18 }
 0x125   :  { %v671_v24 = vadd.f32 %v1083_v23, %v1019_v20 }
 0x126   :  { %v1020_v25 = vpop.f32.mrb[24].mxu0 }
 0x127   :  { %v949_v26 = vpack.c.bf16 %v671_v24, %v668_v22  ;;  %v1084_v27 = vpop.f32.mrb[24].mxu1  ;;  %v1021_v28 = vpop.f32.mrb[25].mxu0 }
 0x128   :  { %v1022_v29 = vadd.f32 %v1021_v28, %v1020_v25  ;;  %v1085_v30 = vpop.f32.mrb[25].mxu1  ;;  %v1023_v31 = vpop.f32.mrb[26].mxu0 }
 0x129   :  { %965 = vst [vmem:[%s1409_s2 + $0x28] sm:$0xff] %v949_v26   ;;  %v1086_v32 = vadd.f32 %v1085_v30, %v1084_v27  ;;  %v1087_v33 = vpop.f32.mrb[26].mxu1  ;;  %v1024_v34 = vpop.f32.mrb[27].mxu0 }
 0x12a   :  { %v1025_v35 = vadd.f32 %v1024_v34, %v1023_v31  ;;  %v1088_v36 = vpop.f32.mrb[27].mxu1 }
 0x12b   :  { %v676_v37 = vadd.f32 %v1086_v32, %v1022_v29  ;;  %v1089_v38 = vadd.f32 %v1088_v36, %v1087_v33 }
 0x12d   :  { %v679_v39 = vadd.f32 %v1089_v38, %v1025_v35 }
 0x12e   :  { %v1026_v40 = vpop.f32.mrb[28].mxu0 }
 0x12f   :  { %v954_v41 = vpack.c.bf16 %v679_v39, %v676_v37  ;;  %v1090_v42 = vpop.f32.mrb[28].mxu1  ;;  %v1027_v43 = vpop.f32.mrb[29].mxu0 }
 0x130   :  { %v1028_v44 = vadd.f32 %v1027_v43, %v1026_v40  ;;  %v1091_v45 = vpop.f32.mrb[29].mxu1  ;;  %v1029_v46 = vpop.f32.mrb[30].mxu0 }
 0x131   :  { %966 = vst [vmem:[%s1409_s2 + $0x30] sm:$0xff] %v954_v41   ;;  %v1092_v47 = vadd.f32 %v1091_v45, %v1090_v42  ;;  %v1093_v48 = vpop.f32.mrb[30].mxu1  ;;  %v1030_v49 = vpop.f32.mrb[31].mxu0 }
 0x132   :  { %v1031_v50 = vadd.f32 %v1030_v49, %v1029_v46  ;;  %v1094_v51 = vpop.f32.mrb[31].mxu1 }
 0x133   :  { %v684_v52 = vadd.f32 %v1092_v47, %v1028_v44  ;;  %v1095_v53 = vadd.f32 %v1094_v51, %v1093_v48 }
 0x135   :  { %v687_v54 = vadd.f32 %v1095_v53, %v1031_v50 }
 0x137   :  { %v959_v55 = vpack.c.bf16 %v687_v54, %v684_v52 }
 0x139   :  { %967 = vst [vmem:[%s1409_s2 + $0x38] sm:$0xff] %v959_v55  }

// kernel: generator_forward.46
= control target key start
LH: loop header
LB: loop body
LE: loop exit
PB: predicated region body
PF: predicated region fallthrough
CT: control target
= control target key end

     0   :  { %s870_s1 = inlined_call_operand.vmem [shape: bf16[256,128], index: 1, kind: input, shape index: {}]   ;;  %s871_s0 = inlined_call_operand.vmem [shape: bf16[128,256], index: 0, kind: input, shape index: {}]   ;;  %s872_s2 = inlined_call_operand.vmem [shape: bf16[128,128], index: 2, kind: output, shape index: {}]  }
   0x1   :  { %v695_v0 = vld [vmem:[%s870_s1 + $0x40] sm:$0xff]   ;;  %v697_v2 = vld [vmem:[%s870_s1 + $0x48] sm:$0xff]   ;;  %v699_v4 = vld [vmem:[%s870_s1 + $0x50] sm:$0xff]  }
   0x2   :  { %v696_v1 = vld [vmem:[%s870_s1] sm:$0xff]   ;;  %615 = vmatprep.subr.bf16.mxu0 %v695_v0  ;;  %679 = vmatprep.subr.bf16.mxu1 %v695_v0  ;;  %v698_v3 = vld [vmem:[%s870_s1 + $0x8] sm:$0xff]   ;;  %v700_v5 = vld [vmem:[%s870_s1 + $0x10] sm:$0xff]  }
   0x3   :  { %616 = vmatpush3.bf16.msra.mxu0 %v696_v1  ;;  %687 = vmatpush3.bf16.msra.mxu1 %v696_v1  ;;  %v701_v6 = vld [vmem:[%s870_s1 + $0x58] sm:$0xff]   ;;  %v703_v8 = vld [vmem:[%s870_s1 + $0x60] sm:$0xff]   ;;  %v705_v10 = vld [vmem:[%s870_s1 + $0x68] sm:$0xff]  }
   0x4   :  { %617 = vmatprep.subr.bf16.mxu0 %v697_v2  ;;  %680 = vmatprep.subr.bf16.mxu1 %v697_v2  ;;  %v702_v7 = vld [vmem:[%s870_s1 + $0x18] sm:$0xff]   ;;  %v704_v9 = vld [vmem:[%s870_s1 + $0x20] sm:$0xff]   ;;  %v706_v13 = vld [vmem:[%s870_s1 + $0x28] sm:$0xff]  }
   0x5   :  { %v713_v11 = vld [vmem:[%s871_s0 + $0x4] ss:$8 sps:$4 sm:$0xff]   ;;  %v707_v14 = vld [vmem:[%s870_s1 + $0x70] sm:$0xff]   ;;  %v709_v16 = vld [vmem:[%s870_s1 + $0x78] sm:$0xff]  }
   0x6   :  { %v716_v12 = vld [vmem:[%s871_s0 + $0x44] ss:$8 sps:$4 sm:$0xff]   ;;  %304 = vmatprep.mubr.bf16.mxu0 %v713_v11  ;;  %v708_v15 = vld [vmem:[%s870_s1 + $0x30] sm:$0xff]   ;;  %v710_v17 = vld [vmem:[%s870_s1 + $0x38] sm:$0xff]  }
   0x7   :  { %618 = vmatpush3.bf16.msra.mxu0 %v698_v3  ;;  %688 = vmatpush3.bf16.msra.mxu1 %v698_v3  ;;  %v711_v18 = vld [vmem:[%s871_s0] ss:$8 sps:$4 sm:$0xff]   ;;  %v717_v20 = vld [vmem:[%s871_s0 + $0x14] ss:$8 sps:$4 sm:$0xff]   ;;  %v721_v22 = vld [vmem:[%s871_s0 + $0x10] ss:$8 sps:$4 sm:$0xff]  }
   0x8   :  { %619 = vmatprep.subr.bf16.mxu0 %v699_v4  ;;  %681 = vmatprep.subr.bf16.mxu1 %v699_v4  ;;  %v714_v19 = vld [vmem:[%s871_s0 + $0x40] ss:$8 sps:$4 sm:$0xff]   ;;  %v719_v21 = vld [vmem:[%s871_s0 + $0x54] ss:$8 sps:$4 sm:$0xff]   ;;  %v722_v23 = vld [vmem:[%s871_s0 + $0x50] ss:$8 sps:$4 sm:$0xff]  }
   0x9   :  { %336 = vmatprep.mubr.bf16.mxu1 %v716_v12  ;;  %v723_v24 = vld [vmem:[%s871_s0 + $0x24] ss:$8 sps:$4 sm:$0xff]   ;;  %v727_v26 = vld [vmem:[%s871_s0 + $0x20] ss:$8 sps:$4 sm:$0xff]   ;;  %v729_v28 = vld [vmem:[%s871_s0 + $0x34] ss:$8 sps:$4 sm:$0xff]  }
   0xa   :  { %v725_v25 = vld [vmem:[%s871_s0 + $0x64] ss:$8 sps:$4 sm:$0xff]   ;;  %v728_v27 = vld [vmem:[%s871_s0 + $0x60] ss:$8 sps:$4 sm:$0xff]   ;;  %v731_v29 = vld [vmem:[%s871_s0 + $0x74] ss:$8 sps:$4 sm:$0xff]  }
   0xb   :  { %620 = vmatpush3.bf16.msra.mxu0 %v700_v5  ;;  %689 = vmatpush3.bf16.msra.mxu1 %v700_v5  ;;  %v733_v30 = vld [vmem:[%s871_s0 + $0x30] ss:$8 sps:$4 sm:$0xff]  }
   0xc   :  { %621 = vmatprep.subr.bf16.mxu0 %v701_v6  ;;  %682 = vmatprep.subr.bf16.mxu1 %v701_v6  ;;  %v734_v31 = vld [vmem:[%s871_s0 + $0x70] ss:$8 sps:$4 sm:$0xff]  }
   0xf   :  { %622 = vmatpush3.bf16.msra.mxu0 %v702_v7  ;;  %690 = vmatpush3.bf16.msra.mxu1 %v702_v7 }
  0x10   :  { %623 = vmatprep.subr.bf16.mxu0 %v703_v8  ;;  %683 = vmatprep.subr.bf16.mxu1 %v703_v8 }
  0x13   :  { %624 = vmatpush3.bf16.msra.mxu0 %v704_v9  ;;  %691 = vmatpush3.bf16.msra.mxu1 %v704_v9 }
  0x14   :  { %625 = vmatprep.subr.bf16.mxu0 %v705_v10  ;;  %684 = vmatprep.subr.bf16.mxu1 %v705_v10 }
  0x17   :  { %626 = vmatpush3.bf16.msra.mxu0 %v706_v13  ;;  %692 = vmatpush3.bf16.msra.mxu1 %v706_v13 }
  0x18   :  { %627 = vmatprep.subr.bf16.mxu0 %v707_v14  ;;  %685 = vmatprep.subr.bf16.mxu1 %v707_v14 }
  0x1b   :  { %628 = vmatpush3.bf16.msra.mxu0 %v708_v15  ;;  %693 = vmatpush3.bf16.msra.mxu1 %v708_v15 }
  0x1c   :  { %629 = vmatprep.subr.bf16.mxu0 %v709_v16  ;;  %686 = vmatprep.subr.bf16.mxu1 %v709_v16 }
  0x1f   :  { %630 = vmatpush3.bf16.msra.mxu0 %v710_v17  ;;  %694 = vmatpush3.bf16.msra.mxu1 %v710_v17 }
  0x22   :  { %305 = vmatmul.mubr.bf16.vlgmr.msra.gmra.mrb[0].mxu0 %v711_v18  ;;  %337 = vmatmul.mubr.bf16.vlgmr.msra.gmra.mrb[0].mxu1 %v714_v19 }
  0x23   :  { %312 = vmatprep.mubr.bf16.mxu0 %v717_v20  ;;  %344 = vmatprep.mubr.bf16.mxu1 %v719_v21 }
  0x2a   :  { %313 = vmatmul.mubr.bf16.gmra.mrb[4].mxu0 %v721_v22  ;;  %345 = vmatmul.mubr.bf16.gmra.mrb[4].mxu1 %v722_v23 }
  0x2b   :  { %320 = vmatprep.mubr.bf16.mxu0 %v723_v24  ;;  %352 = vmatprep.mubr.bf16.mxu1 %v725_v25 }
  0x32   :  { %321 = vmatmul.mubr.bf16.gmra.mrb[8].mxu0 %v727_v26  ;;  %353 = vmatmul.mubr.bf16.gmra.mrb[8].mxu1 %v728_v27 }
  0x33   :  { %328 = vmatprep.mubr.bf16.mxu0 %v729_v28  ;;  %360 = vmatprep.mubr.bf16.mxu1 %v731_v29 }
  0x3a   :  { %329 = vmatmul.mubr.bf16.gmra.mrb[12].mxu0 %v733_v30  ;;  %361 = vmatmul.mubr.bf16.gmra.mrb[12].mxu1 %v734_v31 }
  0xf5   :  { %v631_v32 = vpop.f32.mrb[0].mxu0  ;;  %v655_v33 = vpop.f32.mrb[0].mxu1 }
  0xf6   :  { %v632_v34 = vpop.f32.mrb[1].mxu0  ;;  %v656_v35 = vpop.f32.mrb[1].mxu1 }
  0xf7   :  { %v633_v36 = vadd.f32 %v632_v34, %v631_v32  ;;  %v657_v37 = vadd.f32 %v656_v35, %v655_v33  ;;  %v634_v38 = vpop.f32.mrb[2].mxu0  ;;  %v658_v39 = vpop.f32.mrb[2].mxu1 }
  0xf8   :  { %v635_v40 = vpop.f32.mrb[3].mxu0  ;;  %v659_v41 = vpop.f32.mrb[3].mxu1 }
  0xf9   :  { %v636_v42 = vadd.f32 %v635_v40, %v634_v38  ;;  %v660_v43 = vadd.f32 %v659_v41, %v658_v39 }
  0xfb   :  { %v571_v44 = vpack.c.bf16 %v636_v42, %v633_v36  ;;  %v591_v45 = vpack.c.bf16 %v660_v43, %v657_v37 }
  0xfd   :  { %572 = vst [vmem:[%s872_s2] sm:$0xff] %v571_v44   ;;  %611 = vst [vmem:[%s872_s2 + $0x20] sm:$0xff] %v591_v45   ;;  %v637_v46 = vpop.f32.mrb[4].mxu0  ;;  %v661_v47 = vpop.f32.mrb[4].mxu1 }
  0xfe   :  { %v638_v48 = vpop.f32.mrb[5].mxu0  ;;  %v662_v49 = vpop.f32.mrb[5].mxu1 }
  0xff   :  { %v639_v50 = vadd.f32 %v638_v48, %v637_v46  ;;  %v663_v51 = vadd.f32 %v662_v49, %v661_v47  ;;  %v640_v52 = vpop.f32.mrb[6].mxu0  ;;  %v664_v53 = vpop.f32.mrb[6].mxu1 }
 0x100   :  { %v641_v54 = vpop.f32.mrb[7].mxu0  ;;  %v665_v55 = vpop.f32.mrb[7].mxu1 }
 0x101   :  { %v642_v56 = vadd.f32 %v641_v54, %v640_v52  ;;  %v666_v57 = vadd.f32 %v665_v55, %v664_v53 }
 0x103   :  { %v576_v58 = vpack.c.bf16 %v642_v56, %v639_v50  ;;  %v596_v59 = vpack.c.bf16 %v666_v57, %v663_v51 }
 0x105   :  { %608 = vst [vmem:[%s872_s2 + $0x8] sm:$0xff] %v576_v58   ;;  %612 = vst [vmem:[%s872_s2 + $0x28] sm:$0xff] %v596_v59   ;;  %v643_v60 = vpop.f32.mrb[8].mxu0  ;;  %v667_v61 = vpop.f32.mrb[8].mxu1 }
 0x106   :  { %v644_v62 = vpop.f32.mrb[9].mxu0  ;;  %v668_v63 = vpop.f32.mrb[9].mxu1 }
 0x107   :  { %v645_v0 = vadd.f32 %v644_v62, %v643_v60  ;;  %v669_v1 = vadd.f32 %v668_v63, %v667_v61  ;;  %v646_v2 = vpop.f32.mrb[10].mxu0  ;;  %v670_v3 = vpop.f32.mrb[10].mxu1 }
 0x108   :  { %v647_v4 = vpop.f32.mrb[11].mxu0  ;;  %v671_v5 = vpop.f32.mrb[11].mxu1 }
 0x109   :  { %v648_v6 = vadd.f32 %v647_v4, %v646_v2  ;;  %v672_v7 = vadd.f32 %v671_v5, %v670_v3 }
 0x10b   :  { %v581_v8 = vpack.c.bf16 %v648_v6, %v645_v0  ;;  %v601_v9 = vpack.c.bf16 %v672_v7, %v669_v1 }
 0x10d   :  { %609 = vst [vmem:[%s872_s2 + $0x10] sm:$0xff] %v581_v8   ;;  %613 = vst [vmem:[%s872_s2 + $0x30] sm:$0xff] %v601_v9   ;;  %v649_v10 = vpop.f32.mrb[12].mxu0  ;;  %v673_v11 = vpop.f32.mrb[12].mxu1 }
 0x10e   :  { %v650_v12 = vpop.f32.mrb[13].mxu0  ;;  %v674_v13 = vpop.f32.mrb[13].mxu1 }
 0x10f   :  { %v651_v14 = vadd.f32 %v650_v12, %v649_v10  ;;  %v675_v15 = vadd.f32 %v674_v13, %v673_v11  ;;  %v652_v16 = vpop.f32.mrb[14].mxu0  ;;  %v676_v17 = vpop.f32.mrb[14].mxu1 }
 0x110   :  { %v653_v18 = vpop.f32.mrb[15].mxu0  ;;  %v677_v19 = vpop.f32.mrb[15].mxu1 }
 0x111   :  { %v654_v20 = vadd.f32 %v653_v18, %v652_v16  ;;  %v678_v21 = vadd.f32 %v677_v19, %v676_v17 }
 0x113   :  { %v586_v22 = vpack.c.bf16 %v654_v20, %v651_v14  ;;  %v606_v23 = vpack.c.bf16 %v678_v21, %v675_v15 }
 0x115   :  { %610 = vst [vmem:[%s872_s2 + $0x18] sm:$0xff] %v586_v22   ;;  %614 = vst [vmem:[%s872_s2 + $0x38] sm:$0xff] %v606_v23  }

// kernel: generator_forward.44
= control target key start
LH: loop header
LB: loop body
LE: loop exit
PB: predicated region body
PF: predicated region fallthrough
CT: control target
= control target key end

     0   :  { %s670_s1 = inlined_call_operand.vmem [shape: bf16[128,128], index: 1, kind: input, shape index: {}]   ;;  %s671_s0 = inlined_call_operand.vmem [shape: bf16[128,128], index: 0, kind: input, shape index: {}]   ;;  %s672_s2 = inlined_call_operand.vmem [shape: bf16[128,128], index: 2, kind: output, shape index: {}]  }
   0x1   :  { %v567_v0 = vld [vmem:[%s670_s1] sm:$0xff]   ;;  %v568_v1 = vld [vmem:[%s670_s1 + $0x8] sm:$0xff]   ;;  %v569_v2 = vld [vmem:[%s670_s1 + $0x10] sm:$0xff]  }
   0x2   :  { %519 = vmatprep.subr.bf16.mxu0 %v567_v0  ;;  %551 = vmatprep.subr.bf16.mxu1 %v567_v0  ;;  %v570_v3 = vld [vmem:[%s670_s1 + $0x18] sm:$0xff]   ;;  %v575_v4 = vld [vmem:[%s671_s0] sm:$0xff]   ;;  %v572_v7 = vld [vmem:[%s670_s1 + $0x28] sm:$0xff]  }
   0x3   :  { %520 = vmatpush3.bf16.msra.mxu0 %v567_v0  ;;  %559 = vmatpush3.bf16.msra.mxu1 %v567_v0  ;;  %v576_v5 = vld [vmem:[%s671_s0 + $0x20] sm:$0xff]   ;;  %v573_v8 = vld [vmem:[%s670_s1 + $0x30] sm:$0xff]   ;;  %v574_v9 = vld [vmem:[%s670_s1 + $0x38] sm:$0xff]  }
   0x4   :  { %521 = vmatprep.subr.bf16.mxu0 %v568_v1  ;;  %552 = vmatprep.subr.bf16.mxu1 %v568_v1  ;;  %v571_v6 = vld [vmem:[%s670_s1 + $0x20] sm:$0xff]   ;;  %v577_v10 = vld [vmem:[%s671_s0 + $0x8] sm:$0xff]   ;;  %v579_v12 = vld [vmem:[%s671_s0 + $0x10] sm:$0xff]  }
   0x5   :  { %535 = vmatprep.mubr.bf16.mxu0 %v575_v4  ;;  %543 = vmatprep.mubr.bf16.mxu1 %v576_v5  ;;  %v578_v11 = vld [vmem:[%s671_s0 + $0x28] sm:$0xff]   ;;  %v580_v13 = vld [vmem:[%s671_s0 + $0x30] sm:$0xff]   ;;  %v581_v14 = vld [vmem:[%s671_s0 + $0x18] sm:$0xff]  }
   0x6   :  { %v582_v15 = vld [vmem:[%s671_s0 + $0x38] sm:$0xff]  }
   0x7   :  { %522 = vmatpush3.bf16.msra.mxu0 %v568_v1  ;;  %560 = vmatpush3.bf16.msra.mxu1 %v568_v1 }
   0x8   :  { %523 = vmatprep.subr.bf16.mxu0 %v569_v2  ;;  %553 = vmatprep.subr.bf16.mxu1 %v569_v2 }
   0xb   :  { %524 = vmatpush3.bf16.msra.mxu0 %v569_v2  ;;  %561 = vmatpush3.bf16.msra.mxu1 %v569_v2 }
   0xc   :  { %525 = vmatprep.subr.bf16.mxu0 %v570_v3  ;;  %554 = vmatprep.subr.bf16.mxu1 %v570_v3 }
   0xf   :  { %526 = vmatpush3.bf16.msra.mxu0 %v570_v3  ;;  %562 = vmatpush3.bf16.msra.mxu1 %v570_v3 }
  0x10   :  { %527 = vmatprep.subr.bf16.mxu0 %v571_v6  ;;  %555 = vmatprep.subr.bf16.mxu1 %v571_v6 }
  0x13   :  { %528 = vmatpush3.bf16.msra.mxu0 %v571_v6  ;;  %563 = vmatpush3.bf16.msra.mxu1 %v571_v6 }
  0x14   :  { %529 = vmatprep.subr.bf16.mxu0 %v572_v7  ;;  %556 = vmatprep.subr.bf16.mxu1 %v572_v7 }
  0x17   :  { %530 = vmatpush3.bf16.msra.mxu0 %v572_v7  ;;  %564 = vmatpush3.bf16.msra.mxu1 %v572_v7 }
  0x18   :  { %531 = vmatprep.subr.bf16.mxu0 %v573_v8  ;;  %557 = vmatprep.subr.bf16.mxu1 %v573_v8 }
  0x1b   :  { %532 = vmatpush3.bf16.msra.mxu0 %v573_v8  ;;  %565 = vmatpush3.bf16.msra.mxu1 %v573_v8 }
  0x1c   :  { %533 = vmatprep.subr.bf16.mxu0 %v574_v9  ;;  %558 = vmatprep.subr.bf16.mxu1 %v574_v9 }
  0x1f   :  { %534 = vmatpush3.bf16.msra.mxu0 %v574_v9  ;;  %566 = vmatpush3.bf16.msra.mxu1 %v574_v9 }
  0x22   :  { %536 = vmatmul.mubr.bf16.vlgmr.msra.gmra.mrb[0].mxu0 %v577_v10  ;;  %544 = vmatmul.mubr.bf16.vlgmr.msra.gmra.mrb[0].mxu1 %v578_v11 }
  0x23   :  { %539 = vmatprep.mubr.bf16.mxu0 %v579_v12  ;;  %547 = vmatprep.mubr.bf16.mxu1 %v580_v13 }
  0x2a   :  { %540 = vmatmul.mubr.bf16.gmra.mrb[4].mxu0 %v581_v14  ;;  %548 = vmatmul.mubr.bf16.gmra.mrb[4].mxu1 %v582_v15 }
  0xf5   :  { %v537_v16 = vpop.f32.mrb[0].mxu0  ;;  %v545_v17 = vpop.f32.mrb[0].mxu1 }
  0xf6   :  { %v210_v18 = vpop.f32.mrb[1].mxu0  ;;  %v242_v19 = vpop.f32.mrb[1].mxu1 }
  0xf7   :  { %v538_v20 = vpop.f32.mrb[2].mxu0  ;;  %v546_v21 = vpop.f32.mrb[2].mxu1 }
  0xf8   :  { %v464_v22 = vpack.c.bf16 %v538_v20, %v537_v16  ;;  %v484_v23 = vpack.c.bf16 %v546_v21, %v545_v17  ;;  %v213_v24 = vpop.f32.mrb[3].mxu0  ;;  %v245_v25 = vpop.f32.mrb[3].mxu1 }
  0xf9   :  { %v459_v26 = vpack.c.bf16 %v213_v24, %v210_v18  ;;  %v479_v27 = vpack.c.bf16 %v245_v25, %v242_v19 }
  0xfa   :  { %496 = vst [vmem:[%s672_s2 + $0x8] sm:$0xff] %v464_v22   ;;  %500 = vst [vmem:[%s672_s2 + $0x28] sm:$0xff] %v484_v23  }
  0xfb   :  { %460 = vst [vmem:[%s672_s2] sm:$0xff] %v459_v26   ;;  %499 = vst [vmem:[%s672_s2 + $0x20] sm:$0xff] %v479_v27  }
  0xfd   :  { %v541_v28 = vpop.f32.mrb[4].mxu0  ;;  %v549_v29 = vpop.f32.mrb[4].mxu1 }
  0xfe   :  { %v226_v30 = vpop.f32.mrb[5].mxu0  ;;  %v258_v31 = vpop.f32.mrb[5].mxu1 }
  0xff   :  { %v542_v32 = vpop.f32.mrb[6].mxu0  ;;  %v550_v33 = vpop.f32.mrb[6].mxu1 }
 0x100   :  { %v474_v34 = vpack.c.bf16 %v542_v32, %v541_v28  ;;  %v494_v35 = vpack.c.bf16 %v550_v33, %v549_v29  ;;  %v229_v36 = vpop.f32.mrb[7].mxu0  ;;  %v261_v37 = vpop.f32.mrb[7].mxu1 }
 0x101   :  { %v469_v38 = vpack.c.bf16 %v229_v36, %v226_v30  ;;  %v489_v39 = vpack.c.bf16 %v261_v37, %v258_v31 }
 0x102   :  { %498 = vst [vmem:[%s672_s2 + $0x18] sm:$0xff] %v474_v34   ;;  %502 = vst [vmem:[%s672_s2 + $0x38] sm:$0xff] %v494_v35  }
 0x103   :  { %497 = vst [vmem:[%s672_s2 + $0x10] sm:$0xff] %v469_v38   ;;  %501 = vst [vmem:[%s672_s2 + $0x30] sm:$0xff] %v489_v39  }

// kernel: generator_forward.49
= control target key start
LH: loop header
LB: loop body
LE: loop exit
PB: predicated region body
PF: predicated region fallthrough
CT: control target
= control target key end

     0   :  { %s3046_s12 = smov 0   ;;  %s3048_s13 = smov 0   ;;  %s3645_s0 = inlined_call_operand.vmem [shape: bf16[512,3200], index: 0, kind: input, shape index: {}]   ;;  %s3646_s1 = inlined_call_operand.vmem [shape: bf16[3200,128], index: 1, kind: input, shape index: {}]   ;;  %s3647_s2 = inlined_call_operand.vmem [shape: f32[1,128], index: 2, kind: input, shape index: {}]   ;;  %s3648_s3 = inlined_call_operand.vmem [shape: f32[512,128], index: 3, kind: output, shape index: {}]  }
   0x1   :  { %s3050_s14 = smov 0   ;;  %s3052_s15 = smov 0  }
   0x2   :  { %s3054_s16 = smov 0   ;;  %s3056_s17 = smov 0  }
   0x3   :  { %s3058_s18 = smov 0  }
   0x4 LB: > { %s25_s19 = sadd.s32 1, %s3015_s16  ;;  %s32_s20 = sadd.s32 1, %s3019_s17  ;;  %s3023_s18 = sphi %s3058_s18, %s13_s18   ;;  %s3019_s17 = sphi %s3056_s17, %s3654_s17   ;;  %s3015_s16 = sphi %s3054_s16, %s3653_s16   ;;  %s3011_s15 = sphi %s3052_s15, %s3652_s15   ;;  %s3007_s14 = sphi %s3050_s14, %s3651_s14   ;;  %s3003_s13 = sphi %s3048_s13, %s3650_s13   ;;  %s2999_s12 = sphi %s3046_s12, %s3649_s12  }
   0x5   : > { %p26_p0 = scmp.ge.s32.totalorder %s25_s19, 5  ;;  %p48_p1 = scmp.ne.s32.totalorder %s3003_s13, %s2999_s12 }
   0x6   : > { %p49_p2 = scmp.eq.s32.totalorder %s3023_s18, 0  ;;  %s41_s24 = sadd.s32 1, %s3003_s13 }
   0x7   : > { %s3656_s19 = smov (%p26_p0, %s25_s19), 0  ;;  %s3658_s20 = smov (!%p26_p0, %s32_s20), %s3019_s17 }
   0x8   : > { %p50_p3 = por %p49_p2, %p48_p1  ;;  %p34_p4 = scmp.ge.s32.totalorder %s3658_s20, 2 }
   0x9   : > { %s37_s21 = ssub.s32 %s3015_s16, %s3656_s19  ;;  %p2184_p6 = scmp.ge.s32.totalorder %s3023_s18, 10 }
   0xa   : > { %s3660_s20 = smov (%p34_p4, %s3658_s20), 0 }
   0xb   : > { %s36_s22 = ssub.s32 %s3019_s17, %s3660_s20  ;;  %162 = sbr.rel (%p2184_p6) target bundleno = 80 (0x50), region = 20 }
   0xc   : > { %s38_s23 = sor.u32 %s37_s21, %s36_s22 }
   0xd   : > { %p39_p5 = scmp.eq.s32.totalorder %s38_s23, 0 }
   0xf   : > { %s3097_s25 = scalar_select %p39_p5, %s3003_s13, %s41_s24  }
  0x12   : > { %165 = sbr.rel (!%p50_p3) target bundleno = 80 (0x50), region = 24  ;;  %s167_s26 = sand.u32 (%p50_p3), 1, %s3003_s13  }
  0x13   : > { %s171_s27 = smul.u32 (%p50_p3), 5, %s3015_s16 }
  0x14   : > { %s2693_s28 = smul.u32 (%p50_p3), 640, %s167_s26 }
  0x15   : > { %s2694_s29 = smul.u32 (%p50_p3), 800, %s3019_s17 }
  0x16   : > { %s3111_s8 = scalar_lea.vmem (%p50_p3), [#allocation3], %s2693_s28 }
  0x17   : > { %s173_s30 = sadd.s32 (%p50_p3), %s2694_s29, %s171_s27 }
  0x18   : > { %s2187_s4 = sshll.u32 (%p50_p3), %s173_s30, 2 }
  0x19   : > { %s3106_s7 = scalar_lea.vmem %s3645_s0, %s2187_s4 }
  0x1a   : > { %v190_v0 = vld [vmem:[%s3106_s7] sm:$0xff]  ;;  %v192_v1 = vld [vmem:[%s3106_s7 + $0x8] sm:$0xff]  ;;  %v200_v5 = vld [vmem:[%s3106_s7 + $0xd0] sm:$0xff] }
  0x1b   : > { %v194_v2 = vld [vmem:[%s3106_s7 + $0x64] sm:$0xff]  ;;  %191 = vst [vmem:[%s3111_s8] sm:$0xff] %v190_v0  ;;  %193 = vst [vmem:[%s3111_s8 + $0x8] sm:$0xff] %v192_v1  ;;  %v196_v3 = vld [vmem:[%s3106_s7 + $0x6c] sm:$0xff] }
  0x1c   : > { %195 = vst [vmem:[%s3111_s8 + $0x14] sm:$0xff] %v194_v2  ;;  %v198_v4 = vld [vmem:[%s3106_s7 + $0xc8] sm:$0xff]  ;;  %197 = vst [vmem:[%s3111_s8 + $0x1c] sm:$0xff] %v196_v3  ;;  %v204_v7 = vld [vmem:[%s3106_s7 + $0x134] sm:$0xff] }
  0x1d   : > { %199 = vst [vmem:[%s3111_s8 + $0x28] sm:$0xff] %v198_v4  ;;  %201 = vst [vmem:[%s3111_s8 + $0x30] sm:$0xff] %v200_v5  ;;  %v202_v6 = vld [vmem:[%s3106_s7 + $0x12c] sm:$0xff]  ;;  %v208_v9 = vld [vmem:[%s3106_s7 + $0x198] sm:$0xff] }
  0x1e   : > { %v206_v8 = vld [vmem:[%s3106_s7 + $0x190] sm:$0xff]  ;;  %203 = vst [vmem:[%s3111_s8 + $0x3c] sm:$0xff] %v202_v6  ;;  %205 = vst [vmem:[%s3111_s8 + $0x44] sm:$0xff] %v204_v7  ;;  %v212_v11 = vld [vmem:[%s3106_s7 + $0x1fc] sm:$0xff] }
  0x1f   : > { %207 = vst [vmem:[%s3111_s8 + $0x50] sm:$0xff] %v206_v8  ;;  %v210_v10 = vld [vmem:[%s3106_s7 + $0x1f4] sm:$0xff]  ;;  %209 = vst [vmem:[%s3111_s8 + $0x58] sm:$0xff] %v208_v9  ;;  %v216_v13 = vld [vmem:[%s3106_s7 + $0x260] sm:$0xff] }
  0x20   : > { %211 = vst [vmem:[%s3111_s8 + $0x64] sm:$0xff] %v210_v10  ;;  %213 = vst [vmem:[%s3111_s8 + $0x6c] sm:$0xff] %v212_v11  ;;  %v214_v12 = vld [vmem:[%s3106_s7 + $0x258] sm:$0xff]  ;;  %v220_v15 = vld [vmem:[%s3106_s7 + $0x2c4] sm:$0xff] }
  0x21   : > { %v218_v14 = vld [vmem:[%s3106_s7 + $0x2bc] sm:$0xff]  ;;  %215 = vst [vmem:[%s3111_s8 + $0x78] sm:$0xff] %v214_v12  ;;  %217 = vst [vmem:[%s3111_s8 + $0x80] sm:$0xff] %v216_v13  ;;  %v224_v17 = vld [vmem:[%s3106_s7 + $0x328] sm:$0xff] }
  0x22   : > { %219 = vst [vmem:[%s3111_s8 + $0x8c] sm:$0xff] %v218_v14  ;;  %v222_v16 = vld [vmem:[%s3106_s7 + $0x320] sm:$0xff]  ;;  %221 = vst [vmem:[%s3111_s8 + $0x94] sm:$0xff] %v220_v15  ;;  %v228_v19 = vld [vmem:[%s3106_s7 + $0x38c] sm:$0xff] }
  0x23   : > { %223 = vst [vmem:[%s3111_s8 + $0xa0] sm:$0xff] %v222_v16  ;;  %225 = vst [vmem:[%s3111_s8 + $0xa8] sm:$0xff] %v224_v17  ;;  %v226_v18 = vld [vmem:[%s3106_s7 + $0x384] sm:$0xff]  ;;  %v232_v21 = vld [vmem:[%s3106_s7 + $0x3f0] sm:$0xff] }
  0x24   : > { %v230_v20 = vld [vmem:[%s3106_s7 + $0x3e8] sm:$0xff]  ;;  %227 = vst [vmem:[%s3111_s8 + $0xb4] sm:$0xff] %v226_v18  ;;  %229 = vst [vmem:[%s3111_s8 + $0xbc] sm:$0xff] %v228_v19  ;;  %v236_v23 = vld [vmem:[%s3106_s7 + $0x454] sm:$0xff] }
  0x25   : > { %231 = vst [vmem:[%s3111_s8 + $0xc8] sm:$0xff] %v230_v20  ;;  %v234_v22 = vld [vmem:[%s3106_s7 + $0x44c] sm:$0xff]  ;;  %233 = vst [vmem:[%s3111_s8 + $0xd0] sm:$0xff] %v232_v21  ;;  %v240_v25 = vld [vmem:[%s3106_s7 + $0x4b8] sm:$0xff] }
  0x26   : > { %235 = vst [vmem:[%s3111_s8 + $0xdc] sm:$0xff] %v234_v22  ;;  %237 = vst [vmem:[%s3111_s8 + $0xe4] sm:$0xff] %v236_v23  ;;  %v238_v24 = vld [vmem:[%s3106_s7 + $0x4b0] sm:$0xff]  ;;  %v244_v27 = vld [vmem:[%s3106_s7 + $0x51c] sm:$0xff] }
  0x27   : > { %v242_v26 = vld [vmem:[%s3106_s7 + $0x514] sm:$0xff]  ;;  %239 = vst [vmem:[%s3111_s8 + $0xf0] sm:$0xff] %v238_v24  ;;  %241 = vst [vmem:[%s3111_s8 + $0xf8] sm:$0xff] %v240_v25  ;;  %v248_v29 = vld [vmem:[%s3106_s7 + $0x580] sm:$0xff] }
  0x28   : > { %243 = vst [vmem:[%s3111_s8 + $0x104] sm:$0xff] %v242_v26  ;;  %v246_v28 = vld [vmem:[%s3106_s7 + $0x578] sm:$0xff]  ;;  %245 = vst [vmem:[%s3111_s8 + $0x10c] sm:$0xff] %v244_v27  ;;  %v252_v31 = vld [vmem:[%s3106_s7 + $0x5e4] sm:$0xff] }
  0x29   : > { %247 = vst [vmem:[%s3111_s8 + $0x118] sm:$0xff] %v246_v28  ;;  %249 = vst [vmem:[%s3111_s8 + $0x120] sm:$0xff] %v248_v29  ;;  %v250_v30 = vld [vmem:[%s3106_s7 + $0x5dc] sm:$0xff]  ;;  %v256_v33 = vld [vmem:[%s3106_s7 + $0x648] sm:$0xff] }
  0x2a   : > { %v254_v32 = vld [vmem:[%s3106_s7 + $0x640] sm:$0xff]  ;;  %251 = vst [vmem:[%s3111_s8 + $0x12c] sm:$0xff] %v250_v30  ;;  %253 = vst [vmem:[%s3111_s8 + $0x134] sm:$0xff] %v252_v31  ;;  %v260_v35 = vld [vmem:[%s3106_s7 + $0x6ac] sm:$0xff] }
  0x2b   : > { %255 = vst [vmem:[%s3111_s8 + $0x140] sm:$0xff] %v254_v32  ;;  %v258_v34 = vld [vmem:[%s3106_s7 + $0x6a4] sm:$0xff]  ;;  %257 = vst [vmem:[%s3111_s8 + $0x148] sm:$0xff] %v256_v33  ;;  %v264_v37 = vld [vmem:[%s3106_s7 + $0x710] sm:$0xff] }
  0x2c   : > { %259 = vst [vmem:[%s3111_s8 + $0x154] sm:$0xff] %v258_v34  ;;  %261 = vst [vmem:[%s3111_s8 + $0x15c] sm:$0xff] %v260_v35  ;;  %v262_v36 = vld [vmem:[%s3106_s7 + $0x708] sm:$0xff]  ;;  %v268_v39 = vld [vmem:[%s3106_s7 + $0x774] sm:$0xff] }
  0x2d   : > { %v266_v38 = vld [vmem:[%s3106_s7 + $0x76c] sm:$0xff]  ;;  %263 = vst [vmem:[%s3111_s8 + $0x168] sm:$0xff] %v262_v36  ;;  %265 = vst [vmem:[%s3111_s8 + $0x170] sm:$0xff] %v264_v37  ;;  %v272_v41 = vld [vmem:[%s3106_s7 + $0x7d8] sm:$0xff] }
  0x2e   : > { %267 = vst [vmem:[%s3111_s8 + $0x17c] sm:$0xff] %v266_v38  ;;  %v270_v40 = vld [vmem:[%s3106_s7 + $0x7d0] sm:$0xff]  ;;  %269 = vst [vmem:[%s3111_s8 + $0x184] sm:$0xff] %v268_v39  ;;  %v276_v43 = vld [vmem:[%s3106_s7 + $0x83c] sm:$0xff] }
  0x2f   : > { %271 = vst [vmem:[%s3111_s8 + $0x190] sm:$0xff] %v270_v40  ;;  %273 = vst [vmem:[%s3111_s8 + $0x198] sm:$0xff] %v272_v41  ;;  %v274_v42 = vld [vmem:[%s3106_s7 + $0x834] sm:$0xff]  ;;  %v280_v45 = vld [vmem:[%s3106_s7 + $0x8a0] sm:$0xff] }
  0x30   : > { %v278_v44 = vld [vmem:[%s3106_s7 + $0x898] sm:$0xff]  ;;  %275 = vst [vmem:[%s3111_s8 + $0x1a4] sm:$0xff] %v274_v42  ;;  %277 = vst [vmem:[%s3111_s8 + $0x1ac] sm:$0xff] %v276_v43  ;;  %v284_v47 = vld [vmem:[%s3106_s7 + $0x904] sm:$0xff] }
  0x31   : > { %279 = vst [vmem:[%s3111_s8 + $0x1b8] sm:$0xff] %v278_v44  ;;  %v282_v46 = vld [vmem:[%s3106_s7 + $0x8fc] sm:$0xff]  ;;  %281 = vst [vmem:[%s3111_s8 + $0x1c0] sm:$0xff] %v280_v45  ;;  %v288_v49 = vld [vmem:[%s3106_s7 + $0x968] sm:$0xff] }
  0x32   : > { %283 = vst [vmem:[%s3111_s8 + $0x1cc] sm:$0xff] %v282_v46  ;;  %285 = vst [vmem:[%s3111_s8 + $0x1d4] sm:$0xff] %v284_v47  ;;  %v286_v48 = vld [vmem:[%s3106_s7 + $0x960] sm:$0xff]  ;;  %v292_v51 = vld [vmem:[%s3106_s7 + $0x9cc] sm:$0xff] }
  0x33   : > { %v290_v50 = vld [vmem:[%s3106_s7 + $0x9c4] sm:$0xff]  ;;  %287 = vst [vmem:[%s3111_s8 + $0x1e0] sm:$0xff] %v286_v48  ;;  %289 = vst [vmem:[%s3111_s8 + $0x1e8] sm:$0xff] %v288_v49  ;;  %v296_v53 = vld [vmem:[%s3106_s7 + $0xa30] sm:$0xff] }
  0x34   : > { %291 = vst [vmem:[%s3111_s8 + $0x1f4] sm:$0xff] %v290_v50  ;;  %v294_v52 = vld [vmem:[%s3106_s7 + $0xa28] sm:$0xff]  ;;  %293 = vst [vmem:[%s3111_s8 + $0x1fc] sm:$0xff] %v292_v51  ;;  %v300_v55 = vld [vmem:[%s3106_s7 + $0xa94] sm:$0xff] }
  0x35   : > { %295 = vst [vmem:[%s3111_s8 + $0x208] sm:$0xff] %v294_v52  ;;  %297 = vst [vmem:[%s3111_s8 + $0x210] sm:$0xff] %v296_v53  ;;  %v298_v54 = vld [vmem:[%s3106_s7 + $0xa8c] sm:$0xff]  ;;  %v304_v57 = vld [vmem:[%s3106_s7 + $0xaf8] sm:$0xff] }
  0x36   : > { %v302_v56 = vld [vmem:[%s3106_s7 + $0xaf0] sm:$0xff]  ;;  %299 = vst [vmem:[%s3111_s8 + $0x21c] sm:$0xff] %v298_v54  ;;  %301 = vst [vmem:[%s3111_s8 + $0x224] sm:$0xff] %v300_v55  ;;  %v308_v59 = vld [vmem:[%s3106_s7 + $0xb5c] sm:$0xff] }
  0x37   : > { %303 = vst [vmem:[%s3111_s8 + $0x230] sm:$0xff] %v302_v56  ;;  %v306_v58 = vld [vmem:[%s3106_s7 + $0xb54] sm:$0xff]  ;;  %305 = vst [vmem:[%s3111_s8 + $0x238] sm:$0xff] %v304_v57  ;;  %v312_v61 = vld [vmem:[%s3106_s7 + $0xbc0] sm:$0xff] }
  0x38   : > { %307 = vst [vmem:[%s3111_s8 + $0x244] sm:$0xff] %v306_v58  ;;  %309 = vst [vmem:[%s3111_s8 + $0x24c] sm:$0xff] %v308_v59  ;;  %v310_v60 = vld [vmem:[%s3106_s7 + $0xbb8] sm:$0xff]  ;;  %v316_v63 = vld [vmem:[%s3106_s7 + $0xc24] sm:$0xff] }
  0x39   : > { %v314_v62 = vld [vmem:[%s3106_s7 + $0xc1c] sm:$0xff]  ;;  %311 = vst [vmem:[%s3111_s8 + $0x258] sm:$0xff] %v310_v60  ;;  %313 = vst [vmem:[%s3111_s8 + $0x260] sm:$0xff] %v312_v61  ;;  %v2188_v0 = vld [vmem:[%s3106_s7 + $0x10] sm:$0xf] }
  0x3a   : > { %315 = vst [vmem:[%s3111_s8 + $0x26c] sm:$0xff] %v314_v62  ;;  %v2190_v1 = vld [vmem:[%s3106_s7 + $0x74] sm:$0xf]  ;;  %317 = vst [vmem:[%s3111_s8 + $0x274] sm:$0xff] %v316_v63  ;;  %v2192_v2 = vld [vmem:[%s3106_s7 + $0xd8] sm:$0xf] }
  0x3b   : > { %2189 = vst [vmem:[%s3111_s8 + $0x10] sm:$0xf] %v2188_v0  ;;  %2191 = vst [vmem:[%s3111_s8 + $0x24] sm:$0xf] %v2190_v1  ;;  %v2194_v3 = vld [vmem:[%s3106_s7 + $0x13c] sm:$0xf] }
  0x3c   : > { %v2196_v4 = vld [vmem:[%s3106_s7 + $0x1a0] sm:$0xf]  ;;  %2193 = vst [vmem:[%s3111_s8 + $0x38] sm:$0xf] %v2192_v2  ;;  %2195 = vst [vmem:[%s3111_s8 + $0x4c] sm:$0xf] %v2194_v3 }
  0x3d   : > { %2197 = vst [vmem:[%s3111_s8 + $0x60] sm:$0xf] %v2196_v4  ;;  %v2198_v5 = vld [vmem:[%s3106_s7 + $0x204] sm:$0xf]  ;;  %v2200_v6 = vld [vmem:[%s3106_s7 + $0x268] sm:$0xf] }
  0x3e   : > { %v2202_v7 = vld [vmem:[%s3106_s7 + $0x2cc] sm:$0xf]  ;;  %2199 = vst [vmem:[%s3111_s8 + $0x74] sm:$0xf] %v2198_v5  ;;  %2201 = vst [vmem:[%s3111_s8 + $0x88] sm:$0xf] %v2200_v6 }
  0x3f   : > { %2203 = vst [vmem:[%s3111_s8 + $0x9c] sm:$0xf] %v2202_v7  ;;  %v2204_v8 = vld [vmem:[%s3106_s7 + $0x330] sm:$0xf]  ;;  %v2206_v9 = vld [vmem:[%s3106_s7 + $0x394] sm:$0xf] }
  0x40   : > { %v2208_v10 = vld [vmem:[%s3106_s7 + $0x3f8] sm:$0xf]  ;;  %2205 = vst [vmem:[%s3111_s8 + $0xb0] sm:$0xf] %v2204_v8  ;;  %2207 = vst [vmem:[%s3111_s8 + $0xc4] sm:$0xf] %v2206_v9 }
  0x41   : > { %2209 = vst [vmem:[%s3111_s8 + $0xd8] sm:$0xf] %v2208_v10  ;;  %v2210_v11 = vld [vmem:[%s3106_s7 + $0x45c] sm:$0xf]  ;;  %v2212_v12 = vld [vmem:[%s3106_s7 + $0x4c0] sm:$0xf] }
  0x42   : > { %v2214_v13 = vld [vmem:[%s3106_s7 + $0x524] sm:$0xf]  ;;  %2211 = vst [vmem:[%s3111_s8 + $0xec] sm:$0xf] %v2210_v11  ;;  %2213 = vst [vmem:[%s3111_s8 + $0x100] sm:$0xf] %v2212_v12 }
  0x43   : > { %2215 = vst [vmem:[%s3111_s8 + $0x114] sm:$0xf] %v2214_v13  ;;  %v2216_v14 = vld [vmem:[%s3106_s7 + $0x588] sm:$0xf]  ;;  %v2218_v15 = vld [vmem:[%s3106_s7 + $0x5ec] sm:$0xf] }
  0x44   : > { %v2220_v16 = vld [vmem:[%s3106_s7 + $0x650] sm:$0xf]  ;;  %2217 = vst [vmem:[%s3111_s8 + $0x128] sm:$0xf] %v2216_v14  ;;  %2219 = vst [vmem:[%s3111_s8 + $0x13c] sm:$0xf] %v2218_v15 }
  0x45   : > { %2221 = vst [vmem:[%s3111_s8 + $0x150] sm:$0xf] %v2220_v16  ;;  %v2222_v17 = vld [vmem:[%s3106_s7 + $0x6b4] sm:$0xf]  ;;  %v2224_v18 = vld [vmem:[%s3106_s7 + $0x718] sm:$0xf] }
  0x46   : > { %v2226_v19 = vld [vmem:[%s3106_s7 + $0x77c] sm:$0xf]  ;;  %2223 = vst [vmem:[%s3111_s8 + $0x164] sm:$0xf] %v2222_v17  ;;  %2225 = vst [vmem:[%s3111_s8 + $0x178] sm:$0xf] %v2224_v18 }
  0x47   : > { %2227 = vst [vmem:[%s3111_s8 + $0x18c] sm:$0xf] %v2226_v19  ;;  %v2228_v20 = vld [vmem:[%s3106_s7 + $0x7e0] sm:$0xf]  ;;  %v2230_v21 = vld [vmem:[%s3106_s7 + $0x844] sm:$0xf] }
  0x48   : > { %v2232_v22 = vld [vmem:[%s3106_s7 + $0x8a8] sm:$0xf]  ;;  %2229 = vst [vmem:[%s3111_s8 + $0x1a0] sm:$0xf] %v2228_v20  ;;  %2231 = vst [vmem:[%s3111_s8 + $0x1b4] sm:$0xf] %v2230_v21 }
  0x49   : > { %2233 = vst [vmem:[%s3111_s8 + $0x1c8] sm:$0xf] %v2232_v22  ;;  %v2234_v23 = vld [vmem:[%s3106_s7 + $0x90c] sm:$0xf]  ;;  %v2236_v24 = vld [vmem:[%s3106_s7 + $0x970] sm:$0xf] }
  0x4a   : > { %v2238_v25 = vld [vmem:[%s3106_s7 + $0x9d4] sm:$0xf]  ;;  %2235 = vst [vmem:[%s3111_s8 + $0x1dc] sm:$0xf] %v2234_v23  ;;  %2237 = vst [vmem:[%s3111_s8 + $0x1f0] sm:$0xf] %v2236_v24 }
  0x4b   : > { %2239 = vst [vmem:[%s3111_s8 + $0x204] sm:$0xf] %v2238_v25  ;;  %v2240_v26 = vld [vmem:[%s3106_s7 + $0xa38] sm:$0xf]  ;;  %v2242_v27 = vld [vmem:[%s3106_s7 + $0xa9c] sm:$0xf] }
  0x4c   : > { %v2244_v28 = vld [vmem:[%s3106_s7 + $0xb00] sm:$0xf]  ;;  %2241 = vst [vmem:[%s3111_s8 + $0x218] sm:$0xf] %v2240_v26  ;;  %2243 = vst [vmem:[%s3111_s8 + $0x22c] sm:$0xf] %v2242_v27 }
  0x4d   : > { %2245 = vst [vmem:[%s3111_s8 + $0x240] sm:$0xf] %v2244_v28  ;;  %v2246_v29 = vld [vmem:[%s3106_s7 + $0xb64] sm:$0xf]  ;;  %v2248_v30 = vld [vmem:[%s3106_s7 + $0xbc8] sm:$0xf] }
  0x4e   : > { %v2250_v31 = vld [vmem:[%s3106_s7 + $0xc2c] sm:$0xf]  ;;  %2247 = vst [vmem:[%s3111_s8 + $0x254] sm:$0xf] %v2246_v29  ;;  %2249 = vst [vmem:[%s3111_s8 + $0x268] sm:$0xf] %v2248_v30 }
  0x4f   : > { %2251 = vst [vmem:[%s3111_s8 + $0x27c] sm:$0xf] %v2250_v31 }
  0x50 PF: > { %p2252_p7 = scmp.ge.s32.totalorder %s3023_s18, 1  ;;  %p405_p8 = scmp.lt.s32.totalorder %s3023_s18, 11 }
  0x52   : > { %p406_p9 = pnand %p2252_p7, %p405_p8 }
  0x53   : > { %s412_s9 = sand.u32 (!%p406_p9), 1, %s2999_s12   ;;  %s451_s10 = smul.u32 (!%p406_p9), 80, %s3007_s14 }
  0x54   : > { %409 = sbr.rel (%p406_p9) target bundleno = 556 (0x22c), region = 54  ;;  %s2254_s21 = sshll.u32 (!%p406_p9), %s3011_s15, 5 }
  0x55   : > { %s2695_s11 = smul.u32 (!%p406_p9), 640, %s412_s9  ;;  %p452_p10 = scmp.lt.s32.totalorder (!%p406_p9), %s451_s10, 399 }
  0x56   : > { %p464_p11 = scmp.lt.s32.totalorder (!%p406_p9), %s2254_s21, 63  ;;  %p2256_p12 = scmp.ne.s32.totalorder (!%p406_p9), %s3007_s14, 0 }
  0x57   : > { %s3317_s12 = scalar_lea.vmem (!%p406_p9), [#allocation3], %s2695_s11 }
  0x5b   : > { %s3662_s10 = smov (!%p452_p10, %s451_s10), 399  ;;  %s3664_s21 = smov (!%p464_p11, %s2254_s21), 63 }
  0x5c   : > { %s2253_s22 = sshll.u32 %s3662_s10, 2  ;;  %s2255_s27 = sshll.u32 %s3664_s21, 3  ;;  %v3025_v32 = vmov (!%p2256_p12), 0.0  }
  0x5d   : > { %s3310_s26 = scalar_lea.vmem %s3646_s1, %s2253_s22  ;;  %s3315_s30 = scalar_lea.vmem %s3648_s3, %s2255_s27  ;;  %477 = vst [vmem:[#allocation2] sm:$0xff] (!%p2256_p12), %v3025_v32  ;;  %478 = vst [vmem:[#allocation2 + $0x8] sm:$0xff] (!%p2256_p12), %v3025_v32 }
  0x5e   : > { %476 = sbr.rel (%p2256_p12) target bundleno = 109 (0x6d), region = 62  ;;  %479 = vst [vmem:[#allocation2 + $0x10] sm:$0xff] (!%p2256_p12), %v3025_v32  ;;  %480 = vst [vmem:[#allocation2 + $0x18] sm:$0xff] (!%p2256_p12), %v3025_v32 }
  0x5f   : > { %481 = vst [vmem:[#allocation2 + $0x20] sm:$0xff] (!%p2256_p12), %v3025_v32  ;;  %482 = vst [vmem:[#allocation2 + $0x28] sm:$0xff] (!%p2256_p12), %v3025_v32 }
  0x60   : > { %483 = vst [vmem:[#allocation2 + $0x30] sm:$0xff] (!%p2256_p12), %v3025_v32  ;;  %484 = vst [vmem:[#allocation2 + $0x38] sm:$0xff] (!%p2256_p12), %v3025_v32 }
  0x61   : > { %485 = vst [vmem:[#allocation2 + $0x40] sm:$0xff] (!%p2256_p12), %v3025_v32  ;;  %486 = vst [vmem:[#allocation2 + $0x48] sm:$0xff] (!%p2256_p12), %v3025_v32 }
  0x62   : > { %487 = vst [vmem:[#allocation2 + $0x50] sm:$0xff] (!%p2256_p12), %v3025_v32  ;;  %488 = vst [vmem:[#allocation2 + $0x58] sm:$0xff] (!%p2256_p12), %v3025_v32 }
  0x63   : > { %489 = vst [vmem:[#allocation2 + $0x60] sm:$0xff] (!%p2256_p12), %v3025_v32  ;;  %490 = vst [vmem:[#allocation2 + $0x68] sm:$0xff] (!%p2256_p12), %v3025_v32 }
  0x64   : > { %491 = vst [vmem:[#allocation2 + $0x70] sm:$0xff] (!%p2256_p12), %v3025_v32  ;;  %492 = vst [vmem:[#allocation2 + $0x78] sm:$0xff] (!%p2256_p12), %v3025_v32 }
  0x65   : > { %493 = vst [vmem:[#allocation2 + $0x80] sm:$0xff] %v3025_v32  ;;  %494 = vst [vmem:[#allocation2 + $0x88] sm:$0xff] %v3025_v32 }
  0x66   : > { %495 = vst [vmem:[#allocation2 + $0x90] sm:$0xff] %v3025_v32  ;;  %496 = vst [vmem:[#allocation2 + $0x98] sm:$0xff] %v3025_v32 }
  0x67   : > { %497 = vst [vmem:[#allocation2 + $0xa0] sm:$0xff] %v3025_v32  ;;  %498 = vst [vmem:[#allocation2 + $0xa8] sm:$0xff] %v3025_v32 }
  0x68   : > { %499 = vst [vmem:[#allocation2 + $0xb0] sm:$0xff] %v3025_v32  ;;  %500 = vst [vmem:[#allocation2 + $0xb8] sm:$0xff] %v3025_v32 }
  0x69   : > { %501 = vst [vmem:[#allocation2 + $0xc0] sm:$0xff] %v3025_v32  ;;  %502 = vst [vmem:[#allocation2 + $0xc8] sm:$0xff] %v3025_v32 }
  0x6a   : > { %503 = vst [vmem:[#allocation2 + $0xd0] sm:$0xff] %v3025_v32  ;;  %504 = vst [vmem:[#allocation2 + $0xd8] sm:$0xff] %v3025_v32 }
  0x6b   : > { %505 = vst [vmem:[#allocation2 + $0xe0] sm:$0xff] %v3025_v32  ;;  %506 = vst [vmem:[#allocation2 + $0xe8] sm:$0xff] %v3025_v32 }
  0x6c   : > { %507 = vst [vmem:[#allocation2 + $0xf0] sm:$0xff] %v3025_v32  ;;  %508 = vst [vmem:[#allocation2 + $0xf8] sm:$0xff] %v3025_v32 }
  0x6d PF: > { %v2753_v33 = vld [vmem:[%s3310_s26 + $0x40] sm:$0xff]   ;;  %v2755_v35 = vld [vmem:[%s3310_s26 + $0x48] sm:$0xff]   ;;  %v2757_v37 = vld [vmem:[%s3310_s26 + $0x50] sm:$0xff]   ;;  %p2377_p13 = scmp.ne.s32.totalorder %s3007_s14, 4 }
  0x6e   : > { %v2754_v34 = vld [vmem:[%s3310_s26] sm:$0xff]   ;;  %2381 = vmatprep.subr.bf16.mxu0 %v2753_v33  ;;  %2677 = vmatprep.subr.bf16.mxu1 %v2753_v33  ;;  %v2756_v36 = vld [vmem:[%s3310_s26 + $0x8] sm:$0xff]   ;;  %v2758_v38 = vld [vmem:[%s3310_s26 + $0x10] sm:$0xff]  }
  0x6f   : > { %2382 = vmatpush3.bf16.msra.mxu0 %v2754_v34  ;;  %2685 = vmatpush3.bf16.msra.mxu1 %v2754_v34  ;;  %v2759_v39 = vld [vmem:[%s3310_s26 + $0x58] sm:$0xff]   ;;  %v2761_v41 = vld [vmem:[%s3310_s26 + $0x60] sm:$0xff]   ;;  %v2763_v43 = vld [vmem:[%s3310_s26 + $0x68] sm:$0xff]  }
  0x70   : > { %2383 = vmatprep.subr.bf16.mxu0 %v2755_v35  ;;  %2678 = vmatprep.subr.bf16.mxu1 %v2755_v35  ;;  %v2760_v40 = vld [vmem:[%s3310_s26 + $0x18] sm:$0xff]   ;;  %v2762_v42 = vld [vmem:[%s3310_s26 + $0x20] sm:$0xff]   ;;  %v2764_v46 = vld [vmem:[%s3310_s26 + $0x28] sm:$0xff]  }
  0x71   : > { %v2771_v44 = vld [vmem:[%s3317_s12 + $0x4] ss:$20 sps:$4 sm:$0xff]   ;;  %v2765_v47 = vld [vmem:[%s3310_s26 + $0x70] sm:$0xff]   ;;  %v2777_v56 = vld [vmem:[%s3310_s26 + $0xc8] sm:$0xff]  }
  0x72   : > { %v2774_v45 = vld [vmem:[%s3317_s12 + $0x1e4] ss:$20 sps:$4 sm:$0xff]   ;;  %1405 = vmatprep.mubr.bf16.mxu0 %v2771_v44  ;;  %v2766_v48 = vld [vmem:[%s3310_s26 + $0x30] sm:$0xff]   ;;  %v2780_v57 = vld [vmem:[%s3317_s12 + $0x2c] ss:$20 sps:$4 sm:$0xff]  }
  0x73   : > { %2384 = vmatpush3.bf16.msra.mxu0 %v2756_v36  ;;  %2686 = vmatpush3.bf16.msra.mxu1 %v2756_v36  ;;  %v2767_v49 = vld [vmem:[%s3310_s26 + $0x78] sm:$0xff]   ;;  %v2775_v51 = vld [vmem:[%s3310_s26 + $0xc0] sm:$0xff]   ;;  %v2797_v59 = vld [vmem:[%s3310_s26 + $0x108] sm:$0xff]  }
  0x74   : > { %2385 = vmatprep.subr.bf16.mxu0 %v2757_v37  ;;  %2679 = vmatprep.subr.bf16.mxu1 %v2757_v37  ;;  %v2768_v50 = vld [vmem:[%s3310_s26 + $0x38] sm:$0xff]   ;;  %v2778_v52 = vld [vmem:[%s3310_s26 + $0x100] sm:$0xff]   ;;  %v2779_v60 = vld [vmem:[%s3310_s26 + $0x88] sm:$0xff]  }
  0x75   : > { %1501 = vmatprep.mubr.bf16.mxu1 %v2774_v45  ;;  %v2769_v53 = vld [vmem:[%s3317_s12] ss:$20 sps:$4 sm:$0xff]   ;;  %v2784_v61 = vld [vmem:[%s3317_s12 + $0x28] ss:$20 sps:$4 sm:$0xff]   ;;  %v2794_v6 = vld [vmem:[%s3317_s12 + $0x50] ss:$20 sps:$4 sm:$0xff]  }
  0x76   : > { %v2772_v54 = vld [vmem:[%s3317_s12 + $0x1e0] ss:$20 sps:$4 sm:$0xff]   ;;  %v2785_v63 = vld [vmem:[%s3317_s12 + $0x208] ss:$20 sps:$4 sm:$0xff]   ;;  %v2795_v8 = vld [vmem:[%s3317_s12 + $0x230] ss:$20 sps:$4 sm:$0xff]  }
  0x77   : > { %2386 = vmatpush3.bf16.msra.mxu0 %v2758_v38  ;;  %2687 = vmatpush3.bf16.msra.mxu1 %v2758_v38  ;;  %v2776_v55 = vld [vmem:[%s3310_s26 + $0x80] sm:$0xff]   ;;  %v2786_v62 = vld [vmem:[%s3310_s26 + $0xd0] sm:$0xff]   ;;  %v2788_v2 = vld [vmem:[%s3310_s26 + $0xd8] sm:$0xff]  }
  0x78   : > { %2387 = vmatprep.subr.bf16.mxu0 %v2759_v39  ;;  %2680 = vmatprep.subr.bf16.mxu1 %v2759_v39  ;;  %v2782_v58 = vld [vmem:[%s3317_s12 + $0x20c] ss:$20 sps:$4 sm:$0xff]   ;;  %v2787_v0 = vld [vmem:[%s3310_s26 + $0x90] sm:$0xff]   ;;  %v2789_v4 = vld [vmem:[%s3310_s26 + $0x98] sm:$0xff]  }
  0x79   : > { %v2790_v1 = vld [vmem:[%s3317_s12 + $0x54] ss:$20 sps:$4 sm:$0xff]   ;;  %v2796_v5 = vld [vmem:[%s3310_s26 + $0xe0] sm:$0xff]   ;;  %v2801_v11 = vld [vmem:[%s3317_s12 + $0x7c] ss:$20 sps:$4 sm:$0xff]  }
  0x7a   : > { %v2792_v3 = vld [vmem:[%s3317_s12 + $0x234] ss:$20 sps:$4 sm:$0xff]   ;;  %v2798_v9 = vld [vmem:[%s3310_s26 + $0xa0] sm:$0xff]   ;;  %v2803_v12 = vld [vmem:[%s3317_s12 + $0x25c] ss:$20 sps:$4 sm:$0xff]  }
  0x7b   : > { %2388 = vmatpush3.bf16.msra.mxu0 %v2760_v40  ;;  %2688 = vmatpush3.bf16.msra.mxu1 %v2760_v40  ;;  %v2810_v7 = vld [vmem:[%s3310_s26 + $0x110] sm:$0xff]   ;;  %v2799_v10 = vld [vmem:[%s3310_s26 + $0xe8] sm:$0xff]   ;;  %v2824_v14 = vld [vmem:[%s3310_s26 + $0x118] sm:$0xff]  }
  0x7c   : > { %2389 = vmatprep.subr.bf16.mxu0 %v2761_v41  ;;  %2681 = vmatprep.subr.bf16.mxu1 %v2761_v41  ;;  %v2800_v13 = vld [vmem:[%s3310_s26 + $0xa8] sm:$0xff]   ;;  %v2807_v17 = vld [vmem:[%s3310_s26 + $0xf0] sm:$0xff]   ;;  %v2809_v19 = vld [vmem:[%s3310_s26 + $0xf8] sm:$0xff]  }
  0x7d   : > { %v2805_v15 = vld [vmem:[%s3317_s12 + $0x78] ss:$20 sps:$4 sm:$0xff]   ;;  %v2808_v18 = vld [vmem:[%s3310_s26 + $0xb0] sm:$0xff]   ;;  %v2831_v21 = vld [vmem:[%s3310_s26 + $0x120] sm:$0xff]  }
  0x7e   : > { %v2806_v16 = vld [vmem:[%s3317_s12 + $0x258] ss:$20 sps:$4 sm:$0xff]   ;;  %v2814_v24 = vld [vmem:[%s3317_s12 + $0x8] ss:$20 sps:$4 sm:$0xff]   ;;  %v2817_v25 = vld [vmem:[%s3317_s12 + $0xa0] ss:$20 sps:$4 sm:$0xff]  }
  0x7f   : > { %2390 = vmatpush3.bf16.msra.mxu0 %v2762_v42  ;;  %2689 = vmatpush3.bf16.msra.mxu1 %v2762_v42  ;;  %v2812_v20 = vld [vmem:[%s3317_s12 + $0xa4] ss:$20 sps:$4 sm:$0xff]   ;;  %v2816_v22 = vld [vmem:[%s3317_s12 + $0xc] ss:$20 sps:$4 sm:$0xff]   ;;  %v2820_v28 = vld [vmem:[%s3317_s12 + $0x34] ss:$20 sps:$4 sm:$0xff]  }
  0x80   : > { %2391 = vmatprep.subr.bf16.mxu0 %v2763_v43  ;;  %2682 = vmatprep.subr.bf16.mxu1 %v2763_v43  ;;  %v2811_v23 = vld [vmem:[%s3310_s26 + $0xb8] sm:$0xff]   ;;  %v2844_v26 = vld [vmem:[%s3310_s26 + $0x128] sm:$0xff]   ;;  %v2851_v29 = vld [vmem:[%s3310_s26 + $0x130] sm:$0xff]  }
  0x81   : > { %v2818_v27 = vld [vmem:[%s3317_s12 + $0xcc] ss:$20 sps:$4 sm:$0xff]   ;;  %v2822_v30 = vld [vmem:[%s3317_s12 + $0xc8] ss:$20 sps:$4 sm:$0xff]   ;;  %v2823_v31 = vld [vmem:[%s3317_s12 + $0x30] ss:$20 sps:$4 sm:$0xff]  }
  0x82   : > { %v2825_v32 = vld [vmem:[%s3317_s12 + $0xf4] ss:$20 sps:$4 sm:$0xff]   ;;  %v2827_v33 = vld [vmem:[%s3317_s12 + $0x5c] ss:$20 sps:$4 sm:$0xff]   ;;  %v2830_v36 = vld [vmem:[%s3317_s12 + $0x58] ss:$20 sps:$4 sm:$0xff]  }
  0x83   : > { %2392 = vmatpush3.bf16.msra.mxu0 %v2764_v46  ;;  %2690 = vmatpush3.bf16.msra.mxu1 %v2764_v46  ;;  %v2864_v34 = vld [vmem:[%s3310_s26 + $0x138] sm:$0xff]   ;;  %v2829_v35 = vld [vmem:[%s3317_s12 + $0xf0] ss:$20 sps:$4 sm:$0xff]   ;;  %v2837_v40 = vld [vmem:[%s3317_s12 + $0x80] ss:$20 sps:$4 sm:$0xff]  }
  0x84   : > { %2393 = vmatprep.subr.bf16.mxu0 %v2765_v47  ;;  %2683 = vmatprep.subr.bf16.mxu1 %v2765_v47  ;;  %v2832_v37 = vld [vmem:[%s3317_s12 + $0x11c] ss:$20 sps:$4 sm:$0xff]   ;;  %v2834_v38 = vld [vmem:[%s3317_s12 + $0x84] ss:$20 sps:$4 sm:$0xff]   ;;  %v2840_v42 = vld [vmem:[%s3317_s12 + $0xac] ss:$20 sps:$4 sm:$0xff]  }
  0x85   : > { %v2836_v39 = vld [vmem:[%s3317_s12 + $0x118] ss:$20 sps:$4 sm:$0xff]   ;;  %v2842_v43 = vld [vmem:[%s3317_s12 + $0x140] ss:$20 sps:$4 sm:$0xff]   ;;  %v2843_v44 = vld [vmem:[%s3317_s12 + $0xa8] ss:$20 sps:$4 sm:$0xff]  }
  0x86   : > { %v2838_v41 = vld [vmem:[%s3317_s12 + $0x144] ss:$20 sps:$4 sm:$0xff]   ;;  %v2845_v45 = vld [vmem:[%s3317_s12 + $0x16c] ss:$20 sps:$4 sm:$0xff]   ;;  %v2847_v46 = vld [vmem:[%s3317_s12 + $0xd4] ss:$20 sps:$4 sm:$0xff]  }
  0x87   : > { %2394 = vmatpush3.bf16.msra.mxu0 %v2766_v48  ;;  %2691 = vmatpush3.bf16.msra.mxu1 %v2766_v48  ;;  %v2849_v47 = vld [vmem:[%s3317_s12 + $0x168] ss:$20 sps:$4 sm:$0xff]   ;;  %v2850_v48 = vld [vmem:[%s3317_s12 + $0xd0] ss:$20 sps:$4 sm:$0xff]  }
  0x88   : > { %2395 = vmatprep.subr.bf16.mxu0 %v2767_v49  ;;  %2684 = vmatprep.subr.bf16.mxu1 %v2767_v49  ;;  %v2852_v49 = vld [vmem:[%s3317_s12 + $0x194] ss:$20 sps:$4 sm:$0xff]  }
  0x8b   : > { %2396 = vmatpush3.bf16.msra.mxu0 %v2768_v50  ;;  %2692 = vmatpush3.bf16.msra.mxu1 %v2768_v50  ;;  %v2854_v50 = vld [vmem:[%s3317_s12 + $0xfc] ss:$20 sps:$4 sm:$0xff]  }
  0x8c   : > { %2493 = vmatprep.subr.bf16.mxu1 %v2775_v51  ;;  %2629 = vmatprep.subr.bf16.mxu0 %v2778_v52  ;;  %v2856_v51 = vld [vmem:[%s3317_s12 + $0x190] ss:$20 sps:$4 sm:$0xff]  }
  0x8e   : > { %1406 = vmatmul.mubr.bf16.vlgmr.msra.gmra.mrb[0].mxu0 %v2769_v53  ;;  %1502 = vmatmul.mubr.bf16.vlgmr.msra.gmra.mrb[0].mxu1 %v2772_v54  ;;  %v2858_v53 = vld [vmem:[%s3317_s12 + $0x1bc] ss:$20 sps:$4 sm:$0xff]   ;;  %v2860_v54 = vld [vmem:[%s3317_s12 + $0x124] ss:$20 sps:$4 sm:$0xff]  }
  0x8f   : > { %2494 = vmatpush3.bf16.msra.mxu1 %v2776_v55  ;;  %2630 = vmatpush3.bf16.msra.mxu0 %v2778_v52  ;;  %v2857_v52 = vld [vmem:[%s3317_s12 + $0xf8] ss:$20 sps:$4 sm:$0xff]  }
  0x90   : > { %2495 = vmatprep.subr.bf16.mxu1 %v2777_v56  ;;  %1413 = vmatprep.mubr.bf16.mxu0 %v2780_v57  ;;  %v2862_v55 = vld [vmem:[%s3317_s12 + $0x1b8] ss:$20 sps:$4 sm:$0xff]   ;;  %v2863_v56 = vld [vmem:[%s3317_s12 + $0x120] ss:$20 sps:$4 sm:$0xff]  }
  0x91   : > { %1509 = vmatprep.mubr.bf16.mxu1 %v2782_v58  ;;  %2631 = vmatprep.subr.bf16.mxu0 %v2797_v59  ;;  %v2865_v57 = vld [vmem:[%s3317_s12 + $0x14c] ss:$20 sps:$4 sm:$0xff]   ;;  %v2867_v58 = vld [vmem:[%s3317_s12 + $0x10] ss:$20 sps:$4 sm:$0xff]  }
  0x93   : > { %2496 = vmatpush3.bf16.msra.mxu1 %v2779_v60  ;;  %2632 = vmatpush3.bf16.msra.mxu0 %v2797_v59  ;;  %v2868_v59 = vld [vmem:[%s3317_s12 + $0x148] ss:$20 sps:$4 sm:$0xff]   ;;  %v2869_v60 = vld [vmem:[%s3317_s12 + $0x38] ss:$20 sps:$4 sm:$0xff]  }
  0x94   : > { %2497 = vmatprep.subr.bf16.mxu1 %v2786_v62  ;;  %2633 = vmatprep.subr.bf16.mxu0 %v2810_v7  ;;  %v2872_v62 = vld [vmem:[%s3317_s12 + $0x60] ss:$20 sps:$4 sm:$0xff]  }
  0x96   : > { %1414 = vmatmul.mubr.bf16.gmra.mrb[4].mxu0 %v2784_v61  ;;  %1510 = vmatmul.mubr.bf16.gmra.mrb[4].mxu1 %v2785_v63  ;;  %v2870_v61 = vld [vmem:[%s3317_s12 + $0x174] ss:$20 sps:$4 sm:$0xff]   ;;  %v2873_v63 = vld [vmem:[%s3317_s12 + $0x170] ss:$20 sps:$4 sm:$0xff]  }
  0x97   : > { %2498 = vmatpush3.bf16.msra.mxu1 %v2787_v0  ;;  %1421 = vmatprep.mubr.bf16.mxu0 %v2790_v1  ;;  %v2874_v0 = vld [vmem:[%s3317_s12 + $0x88] ss:$20 sps:$4 sm:$0xff]  }
  0x98   : > { %2499 = vmatprep.subr.bf16.mxu1 %v2788_v2  ;;  %1517 = vmatprep.mubr.bf16.mxu1 %v2792_v3  ;;  %v2875_v1 = vld [vmem:[%s3317_s12 + $0x19c] ss:$20 sps:$4 sm:$0xff]   ;;  %v2878_v3 = vld [vmem:[%s3317_s12 + $0x198] ss:$20 sps:$4 sm:$0xff]  }
  0x99   : > { %2634 = vmatpush3.bf16.msra.mxu0 %v2810_v7  ;;  %v2877_v2 = vld [vmem:[%s3317_s12 + $0xb0] ss:$20 sps:$4 sm:$0xff]   ;;  %v2883_v7 = vld [vmem:[%s3317_s12 + $0x1c0] ss:$20 sps:$4 sm:$0xff]  }
  0x9a   : > { %2635 = vmatprep.subr.bf16.mxu0 %v2824_v14 }
  0x9b   : > { %2500 = vmatpush3.bf16.msra.mxu1 %v2789_v4  ;;  %v2879_v4 = vld [vmem:[%s3317_s12 + $0xd8] ss:$20 sps:$4 sm:$0xff]  }
  0x9c   : > { %2501 = vmatprep.subr.bf16.mxu1 %v2796_v5  ;;  %v2880_v5 = vld [vmem:[%s3317_s12 + $0x1c4] ss:$20 sps:$4 sm:$0xff]  }
  0x9d   : > { %2636 = vmatpush3.bf16.msra.mxu0 %v2824_v14  ;;  %v2892_v14 = vld [vmem:[%s3317_s12 + $0x1a0] ss:$20 sps:$4 sm:$0xff]  }
  0x9e   : > { %1422 = vmatmul.mubr.bf16.gmra.mrb[8].mxu0 %v2794_v6  ;;  %1518 = vmatmul.mubr.bf16.gmra.mrb[8].mxu1 %v2795_v8  ;;  %v2882_v6 = vld [vmem:[%s3317_s12 + $0x100] ss:$20 sps:$4 sm:$0xff]   ;;  %v2884_v8 = vld [vmem:[%s3317_s12 + $0x128] ss:$20 sps:$4 sm:$0xff]  }
  0x9f   : > { %2502 = vmatpush3.bf16.msra.mxu1 %v2798_v9  ;;  %1429 = vmatprep.mubr.bf16.mxu0 %v2801_v11  ;;  %v2885_v9 = vld [vmem:[%s3317_s12 + $0x1ec] ss:$20 sps:$4 sm:$0xff]   ;;  %v2888_v11 = vld [vmem:[%s3317_s12 + $0x1e8] ss:$20 sps:$4 sm:$0xff]  }
  0xa0   : > { %2503 = vmatprep.subr.bf16.mxu1 %v2799_v10  ;;  %1525 = vmatprep.mubr.bf16.mxu1 %v2803_v12  ;;  %v2887_v10 = vld [vmem:[%s3317_s12 + $0x150] ss:$20 sps:$4 sm:$0xff]   ;;  %v2889_v12 = vld [vmem:[%s3317_s12 + $0x178] ss:$20 sps:$4 sm:$0xff]  }
  0xa1   : > { %2637 = vmatprep.subr.bf16.mxu0 %v2831_v21 }
  0xa2   : > { %2638 = vmatpush3.bf16.msra.mxu0 %v2831_v21  ;;  %v2900_v21 = vld [vmem:[%s3317_s12 + $0x264] ss:$20 sps:$4 sm:$0xff]  }
  0xa3   : > { %2504 = vmatpush3.bf16.msra.mxu1 %v2800_v13  ;;  %2639 = vmatprep.subr.bf16.mxu0 %v2844_v26  ;;  %v2890_v13 = vld [vmem:[%s3317_s12 + $0x214] ss:$20 sps:$4 sm:$0xff]  }
  0xa4   : > { %2505 = vmatprep.subr.bf16.mxu1 %v2807_v17  ;;  %v2895_v17 = vld [vmem:[%s3317_s12 + $0x23c] ss:$20 sps:$4 sm:$0xff]  }
  0xa6   : > { %1430 = vmatmul.mubr.bf16.gmra.mrb[12].mxu0 %v2805_v15  ;;  %1526 = vmatmul.mubr.bf16.gmra.mrb[12].mxu1 %v2806_v16  ;;  %v2893_v15 = vld [vmem:[%s3317_s12 + $0x210] ss:$20 sps:$4 sm:$0xff]   ;;  %v2894_v16 = vld [vmem:[%s3317_s12 + $0x1c8] ss:$20 sps:$4 sm:$0xff]  }
  0xa7   : > { %2506 = vmatpush3.bf16.msra.mxu1 %v2808_v18  ;;  %1437 = vmatprep.mubr.bf16.mxu0 %v2812_v20  ;;  %v2897_v18 = vld [vmem:[%s3317_s12 + $0x1f0] ss:$20 sps:$4 sm:$0xff]   ;;  %v2899_v20 = vld [vmem:[%s3317_s12 + $0x218] ss:$20 sps:$4 sm:$0xff]  }
  0xa8   : > { %2507 = vmatprep.subr.bf16.mxu1 %v2809_v19  ;;  %1566 = vmatprep.mubr.bf16.mxu1 %v2816_v22  ;;  %v2898_v19 = vld [vmem:[%s3317_s12 + $0x238] ss:$20 sps:$4 sm:$0xff]   ;;  %v2902_v22 = vld [vmem:[%s3317_s12 + $0x240] ss:$20 sps:$4 sm:$0xff]  }
  0xa9   : > { %2640 = vmatpush3.bf16.msra.mxu0 %v2844_v26 }
  0xaa   : > { %2641 = vmatprep.subr.bf16.mxu0 %v2851_v29 }
  0xab   : > { %2508 = vmatpush3.bf16.msra.mxu1 %v2811_v23  ;;  %v2903_v23 = vld [vmem:[%s3317_s12 + $0x260] ss:$20 sps:$4 sm:$0xff]  }
  0xad   : > { %2642 = vmatpush3.bf16.msra.mxu0 %v2851_v29 }
  0xae   : > { %1438 = vmatmul.mubr.bf16.gmra.mrb[16].mxu0 %v2817_v25  ;;  %1567 = vmatmul.mubr.bf16.vlgmr.msra.gmra.mrb[16].mxu1 %v2814_v24  ;;  %v2904_v24 = vld [vmem:[%s3317_s12 + $0x268] ss:$20 sps:$4 sm:$0xff]  }
  0xaf   : > { %1445 = vmatprep.mubr.bf16.mxu0 %v2818_v27  ;;  %1574 = vmatprep.mubr.bf16.mxu1 %v2820_v28 }
  0xb0   : > { %2643 = vmatprep.subr.bf16.mxu0 %v2864_v34 }
  0xb1   : > { %2644 = vmatpush3.bf16.msra.mxu0 %v2864_v34 }
  0xb6   : > { %1446 = vmatmul.mubr.bf16.gmra.mrb[20].mxu0 %v2822_v30  ;;  %1575 = vmatmul.mubr.bf16.gmra.mrb[20].mxu1 %v2823_v31 }
  0xb7   : > { %1453 = vmatprep.mubr.bf16.mxu0 %v2825_v32  ;;  %1582 = vmatprep.mubr.bf16.mxu1 %v2827_v33 }
  0xbe   : > { %1454 = vmatmul.mubr.bf16.gmra.mrb[24].mxu0 %v2829_v35  ;;  %1583 = vmatmul.mubr.bf16.gmra.mrb[24].mxu1 %v2830_v36 }
  0xbf   : > { %1461 = vmatprep.mubr.bf16.mxu0 %v2832_v37  ;;  %1590 = vmatprep.mubr.bf16.mxu1 %v2834_v38 }
  0xc6   : > { %1462 = vmatmul.mubr.bf16.gmra.mrb[28].mxu0 %v2836_v39  ;;  %1591 = vmatmul.mubr.bf16.gmra.mrb[28].mxu1 %v2837_v40 }
  0xc7   : > { %1469 = vmatprep.mubr.bf16.mxu0 %v2838_v41  ;;  %1598 = vmatprep.mubr.bf16.mxu1 %v2840_v42 }
  0xce   : > { %1470 = vmatmul.mubr.bf16.gmra.mrb[32].mxu0 %v2842_v43  ;;  %1599 = vmatmul.mubr.bf16.gmra.mrb[32].mxu1 %v2843_v44 }
  0xcf   : > { %1477 = vmatprep.mubr.bf16.mxu0 %v2845_v45  ;;  %1606 = vmatprep.mubr.bf16.mxu1 %v2847_v46 }
  0xd6   : > { %1478 = vmatmul.mubr.bf16.gmra.mrb[36].mxu0 %v2849_v47  ;;  %1607 = vmatmul.mubr.bf16.gmra.mrb[36].mxu1 %v2850_v48 }
  0xd7   : > { %1485 = vmatprep.mubr.bf16.mxu0 %v2852_v49  ;;  %1614 = vmatprep.mubr.bf16.mxu1 %v2854_v50 }
  0xde   : > { %1486 = vmatmul.mubr.bf16.gmra.mrb[40].mxu0 %v2856_v51  ;;  %1615 = vmatmul.mubr.bf16.gmra.mrb[40].mxu1 %v2857_v52 }
  0xdf   : > { %1493 = vmatprep.mubr.bf16.mxu0 %v2858_v53  ;;  %1622 = vmatprep.mubr.bf16.mxu1 %v2860_v54 }
  0xe6   : > { %1494 = vmatmul.mubr.bf16.gmra.mrb[44].mxu0 %v2862_v55  ;;  %1623 = vmatmul.mubr.bf16.gmra.mrb[44].mxu1 %v2863_v56 }
  0xe7   : > { %1630 = vmatprep.mubr.bf16.mxu1 %v2865_v57  ;;  %2645 = vmatprep.mubr.bf16.mxu0 %v2867_v58 }
  0xee   : > { %1631 = vmatmul.mubr.bf16.gmra.mrb[48].mxu1 %v2868_v59  ;;  %2646 = vmatmul.mubr.bf16.vlgmr.msra.gmra.mrb[48].mxu0 %v2869_v60 }
  0xef   : > { %1638 = vmatprep.mubr.bf16.mxu1 %v2870_v61  ;;  %2649 = vmatprep.mubr.bf16.mxu0 %v2872_v62 }
  0xf6   : > { %1639 = vmatmul.mubr.bf16.gmra.mrb[52].mxu1 %v2873_v63  ;;  %2650 = vmatmul.mubr.bf16.gmra.mrb[52].mxu0 %v2874_v0 }
  0xf7   : > { %1646 = vmatprep.mubr.bf16.mxu1 %v2875_v1  ;;  %2653 = vmatprep.mubr.bf16.mxu0 %v2877_v2 }
  0xfe   : > { %1647 = vmatmul.mubr.bf16.gmra.mrb[56].mxu1 %v2878_v3  ;;  %2654 = vmatmul.mubr.bf16.gmra.mrb[56].mxu0 %v2879_v4 }
  0xff   : > { %1654 = vmatprep.mubr.bf16.mxu1 %v2880_v5  ;;  %2657 = vmatprep.mubr.bf16.mxu0 %v2882_v6 }
 0x106   : > { %1655 = vmatmul.mubr.bf16.gmra.mrb[60].mxu1 %v2883_v7  ;;  %2658 = vmatmul.mubr.bf16.gmra.mrb[60].mxu0 %v2884_v8 }
 0x107   : > { %1662 = vmatprep.mubr.bf16.mxu1 %v2885_v9  ;;  %2661 = vmatprep.mubr.bf16.mxu0 %v2887_v10 }
 0x10e   : > { %1663 = vmatmul.mubr.bf16.gmra.mrb[64].mxu1 %v2888_v11  ;;  %2662 = vmatmul.mubr.bf16.gmra.mrb[64].mxu0 %v2889_v12 }
 0x10f   : > { %1670 = vmatprep.mubr.bf16.mxu1 %v2890_v13  ;;  %2665 = vmatprep.mubr.bf16.mxu0 %v2892_v14 }
 0x116   : > { %1671 = vmatmul.mubr.bf16.gmra.mrb[68].mxu1 %v2893_v15  ;;  %2666 = vmatmul.mubr.bf16.gmra.mrb[68].mxu0 %v2894_v16 }
 0x117   : > { %1678 = vmatprep.mubr.bf16.mxu1 %v2895_v17  ;;  %2669 = vmatprep.mubr.bf16.mxu0 %v2897_v18 }
 0x11e   : > { %1679 = vmatmul.mubr.bf16.gmra.mrb[72].mxu1 %v2898_v19  ;;  %2670 = vmatmul.mubr.bf16.gmra.mrb[72].mxu0 %v2899_v20 }
 0x11f   : > { %1686 = vmatprep.mubr.bf16.mxu1 %v2900_v21  ;;  %2673 = vmatprep.mubr.bf16.mxu0 %v2902_v22 }
 0x126   : > { %1687 = vmatmul.mubr.bf16.gmra.mrb[76].mxu1 %v2903_v23  ;;  %2674 = vmatmul.mubr.bf16.gmra.mrb[76].mxu0 %v2904_v24 }
 0x161   : > { %v2469_v25 = vpop.f32.mrb[0].mxu1  ;;  %v2397_v26 = vpop.f32.mrb[0].mxu0 }
 0x162   : > { %v2470_v27 = vpop.f32.mrb[1].mxu1  ;;  %v2398_v28 = vpop.f32.mrb[1].mxu0 }
 0x163   : > { %v3440_v29 = vadd.f32 %v2470_v27, %v2469_v25  ;;  %v2472_v30 = vpop.f32.mrb[2].mxu1  ;;  %v2399_v31 = vadd.f32 %v2398_v28, %v2397_v26  ;;  %v2400_v32 = vpop.f32.mrb[2].mxu0 }
 0x164   : > { %v2473_v33 = vpop.f32.mrb[3].mxu1  ;;  %v2401_v34 = vpop.f32.mrb[3].mxu0 }
 0x165   : > { %v3442_v35 = vadd.f32 %v2473_v33, %v2472_v30  ;;  %v2402_v36 = vadd.f32 %v2401_v34, %v2400_v32 }
 0x169   : > { %v2475_v37 = vpop.f32.mrb[4].mxu1  ;;  %v2403_v38 = vpop.f32.mrb[4].mxu0 }
 0x16a   : > { %v2476_v39 = vpop.f32.mrb[5].mxu1  ;;  %v2404_v40 = vpop.f32.mrb[5].mxu0 }
 0x16b   : > { %v3444_v41 = vadd.f32 %v2476_v39, %v2475_v37  ;;  %v2478_v42 = vpop.f32.mrb[6].mxu1  ;;  %v2405_v43 = vadd.f32 %v2404_v40, %v2403_v38  ;;  %v2406_v44 = vpop.f32.mrb[6].mxu0 }
 0x16c   : > { %v2479_v45 = vpop.f32.mrb[7].mxu1  ;;  %v2407_v46 = vpop.f32.mrb[7].mxu0 }
 0x16d   : > { %v3446_v47 = vadd.f32 %v2479_v45, %v2478_v42  ;;  %v2408_v48 = vadd.f32 %v2407_v46, %v2406_v44 }
 0x171   : > { %v2481_v49 = vpop.f32.mrb[8].mxu1  ;;  %v2409_v50 = vpop.f32.mrb[8].mxu0 }
 0x172   : > { %v2482_v51 = vpop.f32.mrb[9].mxu1  ;;  %v2410_v52 = vpop.f32.mrb[9].mxu0 }
 0x173   : > { %v3448_v53 = vadd.f32 %v2482_v51, %v2481_v49  ;;  %v2484_v54 = vpop.f32.mrb[10].mxu1  ;;  %v2411_v55 = vadd.f32 %v2410_v52, %v2409_v50  ;;  %v2412_v56 = vpop.f32.mrb[10].mxu0 }
 0x174   : > { %v2485_v57 = vpop.f32.mrb[11].mxu1  ;;  %v2413_v58 = vpop.f32.mrb[11].mxu0 }
 0x175   : > { %v3450_v59 = vadd.f32 %v2485_v57, %v2484_v54  ;;  %v2414_v60 = vadd.f32 %v2413_v58, %v2412_v56 }
 0x179   : > { %v2487_v61 = vpop.f32.mrb[12].mxu1  ;;  %v2415_v62 = vpop.f32.mrb[12].mxu0 }
 0x17a   : > { %v2488_v63 = vpop.f32.mrb[13].mxu1  ;;  %v2416_v0 = vpop.f32.mrb[13].mxu0 }
 0x17b   : > { %v3452_v1 = vadd.f32 %v2488_v63, %v2487_v61  ;;  %v2490_v2 = vpop.f32.mrb[14].mxu1  ;;  %v2417_v3 = vadd.f32 %v2416_v0, %v2415_v62  ;;  %v2418_v4 = vpop.f32.mrb[14].mxu0 }
 0x17c   : > { %v2491_v5 = vpop.f32.mrb[15].mxu1  ;;  %v2419_v6 = vpop.f32.mrb[15].mxu0 }
 0x17d   : > { %v3454_v7 = vadd.f32 %v2491_v5, %v2490_v2  ;;  %v2420_v8 = vadd.f32 %v2419_v6, %v2418_v4 }
 0x181   : > { %v2509_v9 = vpop.f32.mrb[16].mxu1  ;;  %v2421_v10 = vpop.f32.mrb[16].mxu0 }
 0x182   : > { %v2510_v11 = vpop.f32.mrb[17].mxu1  ;;  %v2422_v12 = vpop.f32.mrb[17].mxu0 }
 0x183   : > { %v2511_v13 = vadd.f32 %v2510_v11, %v2509_v9  ;;  %v2512_v14 = vpop.f32.mrb[18].mxu1  ;;  %v2423_v15 = vadd.f32 %v2422_v12, %v2421_v10  ;;  %v2424_v16 = vpop.f32.mrb[18].mxu0 }
 0x184   : > { %v2513_v17 = vpop.f32.mrb[19].mxu1  ;;  %v2425_v18 = vpop.f32.mrb[19].mxu0 }
 0x185   : > { %v2514_v19 = vadd.f32 %v2513_v17, %v2512_v14  ;;  %v2426_v20 = vadd.f32 %v2425_v18, %v2424_v16  ;;  %v3456_v21 = vadd.f32 %v2511_v13, %v2399_v31 }
 0x187   : > { %v3458_v22 = vadd.f32 %v2514_v19, %v2402_v36 }
 0x189   : > { %v2515_v23 = vpop.f32.mrb[20].mxu1  ;;  %v2427_v24 = vpop.f32.mrb[20].mxu0 }
 0x18a   : > { %v2516_v25 = vpop.f32.mrb[21].mxu1  ;;  %v2428_v26 = vpop.f32.mrb[21].mxu0 }
 0x18b   : > { %v2517_v27 = vadd.f32 %v2516_v25, %v2515_v23  ;;  %v2518_v28 = vpop.f32.mrb[22].mxu1  ;;  %v2429_v30 = vadd.f32 %v2428_v26, %v2427_v24  ;;  %v2430_v32 = vpop.f32.mrb[22].mxu0 }
 0x18c   : > { %v2519_v33 = vpop.f32.mrb[23].mxu1  ;;  %v2431_v34 = vpop.f32.mrb[23].mxu0 }
 0x18d   : > { %v2520_v37 = vadd.f32 %v2519_v33, %v2518_v28  ;;  %v2432_v38 = vadd.f32 %v2431_v34, %v2430_v32  ;;  %v3460_v39 = vadd.f32 %v2517_v27, %v2405_v43 }
 0x18f   : > { %v3462_v40 = vadd.f32 %v2520_v37, %v2408_v48 }
 0x191   : > { %v2521_v31 = vpop.f32.mrb[24].mxu1  ;;  %v2433_v42 = vpop.f32.mrb[24].mxu0 }
 0x192   : > { %v2522_v36 = vpop.f32.mrb[25].mxu1  ;;  %v2434_v44 = vpop.f32.mrb[25].mxu0 }
 0x193   : > { %v2523_v45 = vadd.f32 %v2522_v36, %v2521_v31  ;;  %v2524_v46 = vpop.f32.mrb[26].mxu1  ;;  %v2435_v49 = vadd.f32 %v2434_v44, %v2433_v42  ;;  %v2436_v50 = vpop.f32.mrb[26].mxu0 }
 0x194   : > { %v2525_v51 = vpop.f32.mrb[27].mxu1  ;;  %v2437_v52 = vpop.f32.mrb[27].mxu0 }
 0x195   : > { %v2526_v54 = vadd.f32 %v2525_v51, %v2524_v46  ;;  %v2438_v56 = vadd.f32 %v2437_v52, %v2436_v50  ;;  %v3464_v57 = vadd.f32 %v2523_v45, %v2411_v55 }
 0x197   : > { %v3466_v58 = vadd.f32 %v2526_v54, %v2414_v60 }
 0x199   : > { %v2527_v43 = vpop.f32.mrb[28].mxu1  ;;  %v2439_v61 = vpop.f32.mrb[28].mxu0 }
 0x19a   : > { %v2528_v48 = vpop.f32.mrb[29].mxu1  ;;  %v2440_v62 = vpop.f32.mrb[29].mxu0 }
 0x19b   : > { %v2529_v63 = vadd.f32 %v2528_v48, %v2527_v43  ;;  %v2530_v0 = vpop.f32.mrb[30].mxu1  ;;  %v2441_v2 = vadd.f32 %v2440_v62, %v2439_v61  ;;  %v2442_v4 = vpop.f32.mrb[30].mxu0 }
 0x19c   : > { %v2531_v5 = vpop.f32.mrb[31].mxu1  ;;  %v2443_v6 = vpop.f32.mrb[31].mxu0 }
 0x19d   : > { %v2532_v9 = vadd.f32 %v2531_v5, %v2530_v0  ;;  %v2444_v10 = vadd.f32 %v2443_v6, %v2442_v4  ;;  %v3468_v11 = vadd.f32 %v2529_v63, %v2417_v3 }
 0x19f   : > { %v3470_v12 = vadd.f32 %v2532_v9, %v2420_v8 }
 0x1a1   : > { %v2533_v55 = vpop.f32.mrb[32].mxu1  ;;  %v2445_v13 = vpop.f32.mrb[32].mxu0 }
 0x1a2   : > { %v2534_v60 = vpop.f32.mrb[33].mxu1  ;;  %v2446_v14 = vpop.f32.mrb[33].mxu0 }
 0x1a3   : > { %v2535_v16 = vadd.f32 %v2534_v60, %v2533_v55  ;;  %v2536_v17 = vpop.f32.mrb[34].mxu1  ;;  %v3472_v18 = vadd.f32 %v2446_v14, %v2445_v13  ;;  %v2448_v19 = vpop.f32.mrb[34].mxu0 }
 0x1a4   : > { %v2537_v23 = vpop.f32.mrb[35].mxu1  ;;  %v2449_v24 = vpop.f32.mrb[35].mxu0 }
 0x1a5   : > { %v2538_v25 = vadd.f32 %v2537_v23, %v2536_v17  ;;  %v3474_v26 = vadd.f32 %v2449_v24, %v2448_v19  ;;  %v3476_v27 = vadd.f32 %v2535_v16, %v2423_v15 }
 0x1a7   : > { %v3478_v3 = vadd.f32 %v2538_v25, %v2426_v20 }
 0x1a9   : > { %v2539_v8 = vpop.f32.mrb[36].mxu1  ;;  %v2451_v28 = vpop.f32.mrb[36].mxu0 }
 0x1aa   : > { %v2540_v32 = vpop.f32.mrb[37].mxu1  ;;  %v2452_v33 = vpop.f32.mrb[37].mxu0 }
 0x1ab   : > { %v2541_v34 = vadd.f32 %v2540_v32, %v2539_v8  ;;  %v2542_v37 = vpop.f32.mrb[38].mxu1  ;;  %v3480_v31 = vadd.f32 %v2452_v33, %v2451_v28  ;;  %v2454_v42 = vpop.f32.mrb[38].mxu0  ;;  %v511_v28 = vld [vmem:[#allocation2 + $0x10] sm:$0xff] }
 0x1ac   : > { %v2543_v36 = vpop.f32.mrb[39].mxu1  ;;  %v2455_v44 = vpop.f32.mrb[39].mxu0 }
 0x1ad   : > { %v2544_v45 = vadd.f32 %v2543_v36, %v2542_v37  ;;  %v3482_v46 = vadd.f32 %v2455_v44, %v2454_v42  ;;  %v3484_v50 = vadd.f32 %v2541_v34, %v2429_v30  ;;  %v509_v37 = vld [vmem:[#allocation2] sm:$0xff] }
 0x1af   : > { %v3486_v15 = vadd.f32 %v2544_v45, %v2432_v38 }
 0x1b1   : > { %v2545_v20 = vpop.f32.mrb[40].mxu1  ;;  %v2457_v51 = vpop.f32.mrb[40].mxu0 }
 0x1b2   : > { %v2546_v52 = vpop.f32.mrb[41].mxu1  ;;  %v2458_v54 = vpop.f32.mrb[41].mxu0 }
 0x1b3   : > { %v2547_v43 = vadd.f32 %v2546_v52, %v2545_v20  ;;  %v2548_v61 = vpop.f32.mrb[42].mxu1  ;;  %v3488_v48 = vadd.f32 %v2458_v54, %v2457_v51  ;;  %v2460_v62 = vpop.f32.mrb[42].mxu0  ;;  %v512_v20 = vld [vmem:[#allocation2 + $0x18] sm:$0xff] }
 0x1b4   : > { %v2549_v63 = vpop.f32.mrb[43].mxu1  ;;  %v2461_v0 = vpop.f32.mrb[43].mxu0 }
 0x1b5   : > { %v2550_v4 = vadd.f32 %v2549_v63, %v2548_v61  ;;  %v3490_v5 = vadd.f32 %v2461_v0, %v2460_v62  ;;  %v3492_v6 = vadd.f32 %v2547_v43, %v2435_v49 }
 0x1b7   : > { %v3494_v30 = vadd.f32 %v2550_v4, %v2438_v56 }
 0x1b9   : > { %v2551_v38 = vpop.f32.mrb[44].mxu1  ;;  %v2463_v9 = vpop.f32.mrb[44].mxu0 }
 0x1ba   : > { %v2552_v55 = vpop.f32.mrb[45].mxu1  ;;  %v2464_v13 = vpop.f32.mrb[45].mxu0 }
 0x1bb   : > { %v2553_v60 = vadd.f32 %v2552_v55, %v2551_v38  ;;  %v2554_v14 = vpop.f32.mrb[46].mxu1  ;;  %v3496_v16 = vadd.f32 %v2464_v13, %v2463_v9  ;;  %v2466_v17 = vpop.f32.mrb[46].mxu0  ;;  %v515_v38 = vld [vmem:[#allocation2 + $0x30] sm:$0xff] }
 0x1bc   : > { %v2555_v19 = vpop.f32.mrb[47].mxu1  ;;  %v2467_v23 = vpop.f32.mrb[47].mxu0 }
 0x1bd   : > { %v2556_v24 = vadd.f32 %v2555_v19, %v2554_v14  ;;  %v3498_v25 = vadd.f32 %v2467_v23, %v2466_v17  ;;  %v3500_v8 = vadd.f32 %v2553_v60, %v2441_v2  ;;  %v513_v60 = vld [vmem:[#allocation2 + $0x20] sm:$0xff]  ;;  %v516_v19 = vld [vmem:[#allocation2 + $0x38] sm:$0xff] }
 0x1bf   : > { %v3502_v49 = vadd.f32 %v2556_v24, %v2444_v10  ;;  %v510_v10 = vld [vmem:[#allocation2 + $0x8] sm:$0xff] }
 0x1c1   : > { %v2557_v56 = vpop.f32.mrb[48].mxu1  ;;  %v2647_v32 = vpop.f32.mrb[48].mxu0 }
 0x1c2   : > { %v1738_v33 = vadd.f32 %v2647_v32, %v3460_v39  ;;  %v2558_v34 = vpop.f32.mrb[49].mxu1  ;;  %v1729_v42 = vpop.f32.mrb[49].mxu0 }
 0x1c3   : > { %v2559_v36 = vadd.f32 %v2558_v34, %v2557_v56  ;;  %v1730_v44 = vadd.f32 %v1729_v42, %v3456_v21  ;;  %v2560_v45 = vpop.f32.mrb[50].mxu1  ;;  %v2648_v51 = vpop.f32.mrb[50].mxu0 }
 0x1c4   : > { %v1858_v52 = vadd.f32 %v1738_v33, %v511_v28  ;;  %v1741_v2 = vadd.f32 %v2648_v51, %v3462_v40  ;;  %v2561_v54 = vpop.f32.mrb[51].mxu1  ;;  %v1732_v43 = vpop.f32.mrb[51].mxu0  ;;  %v514_v28 = vld [vmem:[#allocation2 + $0x28] sm:$0xff] }
 0x1c5   : > { %v1856_v61 = vadd.f32 %v1730_v44, %v509_v37  ;;  %v2562_v62 = vadd.f32 %v2561_v54, %v2560_v45  ;;  %v1733_v63 = vadd.f32 %v1732_v43, %v3458_v22  ;;  %v3509_v39 = vadd.f32 %v2559_v36, %v3472_v18  ;;  %v519_v44 = vld [vmem:[#allocation2 + $0x50] sm:$0xff] }
 0x1c6   : > { %1890 = vst [vmem:[#allocation2 + $0x10] sm:$0xff] %v1858_v52  ;;  %v1859_v0 = vadd.f32 %v1741_v2, %v512_v20  ;;  %v517_v52 = vld [vmem:[#allocation2 + $0x40] sm:$0xff] }
 0x1c7   : > { %1888 = vst [vmem:[#allocation2] sm:$0xff] %v1856_v61  ;;  %v1857_v21 = vadd.f32 %v1733_v63, %v510_v10  ;;  %v3512_v4 = vadd.f32 %v2562_v62, %v3474_v26  ;;  %v520_v10 = vld [vmem:[#allocation2 + $0x58] sm:$0xff]  ;;  %v518_v63 = vld [vmem:[#allocation2 + $0x48] sm:$0xff] }
 0x1c8   : > { %1891 = vst [vmem:[#allocation2 + $0x18] sm:$0xff] %v1859_v0 }
 0x1c9   : > { %1889 = vst [vmem:[#allocation2 + $0x8] sm:$0xff] %v1857_v21  ;;  %v2563_v40 = vpop.f32.mrb[52].mxu1  ;;  %v2651_v9 = vpop.f32.mrb[52].mxu0 }
 0x1ca   : > { %v1754_v55 = vadd.f32 %v2651_v9, %v3468_v11  ;;  %v2564_v13 = vpop.f32.mrb[53].mxu1  ;;  %v1745_v22 = vpop.f32.mrb[53].mxu0 }
 0x1cb   : > { %v2565_v14 = vadd.f32 %v2564_v13, %v2563_v40  ;;  %v1746_v18 = vadd.f32 %v1745_v22, %v3464_v57  ;;  %v2566_v17 = vpop.f32.mrb[54].mxu1  ;;  %v2652_v23 = vpop.f32.mrb[54].mxu0  ;;  %v523_v13 = vld [vmem:[#allocation2 + $0x70] sm:$0xff] }
 0x1cc   : > { %v1862_v24 = vadd.f32 %v1754_v55, %v515_v38  ;;  %v1757_v26 = vadd.f32 %v2652_v23, %v3470_v12  ;;  %v2567_v56 = vpop.f32.mrb[55].mxu1  ;;  %v1748_v32 = vpop.f32.mrb[55].mxu0  ;;  %v524_v23 = vld [vmem:[#allocation2 + $0x78] sm:$0xff] }
 0x1cd   : > { %v1860_v33 = vadd.f32 %v1746_v18, %v513_v60  ;;  %v2568_v34 = vadd.f32 %v2567_v56, %v2566_v17  ;;  %v1749_v37 = vadd.f32 %v1748_v32, %v3466_v58  ;;  %v3519_v11 = vadd.f32 %v2565_v14, %v3480_v31  ;;  %v521_v18 = vld [vmem:[#allocation2 + $0x60] sm:$0xff] }
 0x1ce   : > { %1894 = vst [vmem:[#allocation2 + $0x30] sm:$0xff] %v1862_v24  ;;  %v1863_v42 = vadd.f32 %v1757_v26, %v516_v19 }
 0x1cf   : > { %1892 = vst [vmem:[#allocation2 + $0x20] sm:$0xff] %v1860_v33  ;;  %v1861_v57 = vadd.f32 %v1749_v37, %v514_v28  ;;  %v3522_v36 = vadd.f32 %v2568_v34, %v3482_v46  ;;  %v522_v28 = vld [vmem:[#allocation2 + $0x68] sm:$0xff] }
 0x1d0   : > { %1895 = vst [vmem:[#allocation2 + $0x38] sm:$0xff] %v1863_v42 }
 0x1d1   : > { %1893 = vst [vmem:[#allocation2 + $0x28] sm:$0xff] %v1861_v57  ;;  %v2569_v12 = vpop.f32.mrb[56].mxu1  ;;  %v2655_v45 = vpop.f32.mrb[56].mxu0 }
 0x1d2   : > { %v1770_v20 = vadd.f32 %v2655_v45, %v3484_v50  ;;  %v2570_v51 = vpop.f32.mrb[57].mxu1  ;;  %v1761_v58 = vpop.f32.mrb[57].mxu0 }
 0x1d3   : > { %v2571_v2 = vadd.f32 %v2570_v51, %v2569_v12  ;;  %v1762_v31 = vadd.f32 %v1761_v58, %v3476_v27  ;;  %v2572_v54 = vpop.f32.mrb[58].mxu1  ;;  %v2656_v43 = vpop.f32.mrb[58].mxu0  ;;  %v525_v51 = vld [vmem:[#allocation2 + $0x80] sm:$0xff] }
 0x1d4   : > { %v1866_v61 = vadd.f32 %v1770_v20, %v519_v44  ;;  %v1773_v46 = vadd.f32 %v2656_v43, %v3486_v15  ;;  %v2573_v62 = vpop.f32.mrb[59].mxu1  ;;  %v1764_v0 = vpop.f32.mrb[59].mxu0  ;;  %v527_v44 = vld [vmem:[#allocation2 + $0x90] sm:$0xff]  ;;  %v526_v43 = vld [vmem:[#allocation2 + $0x88] sm:$0xff] }
 0x1d5   : > { %v1864_v21 = vadd.f32 %v1762_v31, %v517_v52  ;;  %v2574_v40 = vadd.f32 %v2573_v62, %v2572_v54  ;;  %v1765_v38 = vadd.f32 %v1764_v0, %v3478_v3  ;;  %v3529_v50 = vadd.f32 %v2571_v2, %v3488_v48  ;;  %v528_v2 = vld [vmem:[#allocation2 + $0x98] sm:$0xff] }
 0x1d6   : > { %1898 = vst [vmem:[#allocation2 + $0x50] sm:$0xff] %v1866_v61  ;;  %v1867_v9 = vadd.f32 %v1773_v46, %v520_v10 }
 0x1d7   : > { %1896 = vst [vmem:[#allocation2 + $0x40] sm:$0xff] %v1864_v21  ;;  %v1865_v27 = vadd.f32 %v1765_v38, %v518_v63  ;;  %v3532_v55 = vadd.f32 %v2574_v40, %v3490_v5  ;;  %v531_v38 = vld [vmem:[#allocation2 + $0xb0] sm:$0xff] }
 0x1d8   : > { %1899 = vst [vmem:[#allocation2 + $0x58] sm:$0xff] %v1867_v9 }
 0x1d9   : > { %1897 = vst [vmem:[#allocation2 + $0x48] sm:$0xff] %v1865_v27  ;;  %v2575_v15 = vpop.f32.mrb[60].mxu1  ;;  %v2659_v60 = vpop.f32.mrb[60].mxu0 }
 0x1da   : > { %v1786_v22 = vadd.f32 %v2659_v60, %v3500_v8  ;;  %v2576_v14 = vpop.f32.mrb[61].mxu1  ;;  %v1777_v3 = vpop.f32.mrb[61].mxu0 }
 0x1db   : > { %v2577_v17 = vadd.f32 %v2576_v14, %v2575_v15  ;;  %v1778_v48 = vadd.f32 %v1777_v3, %v3492_v6  ;;  %v2578_v19 = vpop.f32.mrb[62].mxu1  ;;  %v2660_v24 = vpop.f32.mrb[62].mxu0  ;;  %v529_v15 = vld [vmem:[#allocation2 + $0xa0] sm:$0xff] }
 0x1dc   : > { %v1870_v26 = vadd.f32 %v1786_v22, %v523_v13  ;;  %v1789_v5 = vadd.f32 %v2660_v24, %v3502_v49  ;;  %v2579_v56 = vpop.f32.mrb[63].mxu1  ;;  %v1780_v32 = vpop.f32.mrb[63].mxu0 }
 0x1dd   : > { %v1868_v33 = vadd.f32 %v1778_v48, %v521_v18  ;;  %v2580_v34 = vadd.f32 %v2579_v56, %v2578_v19  ;;  %v1781_v37 = vadd.f32 %v1780_v32, %v3494_v30  ;;  %v1657_v8 = vadd.f32 %v2577_v17, %v3496_v16  ;;  %v530_v48 = vld [vmem:[#allocation2 + $0xa8] sm:$0xff]  ;;  %v535_v32 = vld [vmem:[#allocation2 + $0xd0] sm:$0xff] }
 0x1de   : > { %1902 = vst [vmem:[#allocation2 + $0x70] sm:$0xff] %v1870_v26  ;;  %v1871_v42 = vadd.f32 %v1789_v5, %v524_v23 }
 0x1df   : > { %1900 = vst [vmem:[#allocation2 + $0x60] sm:$0xff] %v1868_v33  ;;  %v1869_v57 = vadd.f32 %v1781_v37, %v522_v28  ;;  %v1660_v6 = vadd.f32 %v2580_v34, %v3498_v25 }
 0x1e0   : > { %1903 = vst [vmem:[#allocation2 + $0x78] sm:$0xff] %v1871_v42 }
 0x1e1   : > { %1901 = vst [vmem:[#allocation2 + $0x68] sm:$0xff] %v1869_v57  ;;  %v2581_v12 = vpop.f32.mrb[64].mxu1  ;;  %v2663_v49 = vpop.f32.mrb[64].mxu0 }
 0x1e2   : > { %v1802_v45 = vadd.f32 %v2663_v49, %v3519_v11  ;;  %v2582_v20 = vpop.f32.mrb[65].mxu1  ;;  %v1793_v52 = vpop.f32.mrb[65].mxu0 }
 0x1e3   : > { %v2583_v58 = vadd.f32 %v2582_v20, %v2581_v12  ;;  %v1794_v30 = vadd.f32 %v1793_v52, %v3509_v39  ;;  %v2584_v16 = vpop.f32.mrb[66].mxu1  ;;  %v2664_v31 = vpop.f32.mrb[66].mxu0  ;;  %v536_v12 = vld [vmem:[#allocation2 + $0xd8] sm:$0xff]  ;;  %v534_v20 = vld [vmem:[#allocation2 + $0xc8] sm:$0xff] }
 0x1e4   : > { %v1874_v54 = vadd.f32 %v1802_v45, %v527_v44  ;;  %v1805_v10 = vadd.f32 %v2664_v31, %v3522_v36  ;;  %v2585_v25 = vpop.f32.mrb[67].mxu1  ;;  %v1796_v61 = vpop.f32.mrb[67].mxu0 }
 0x1e5   : > { %v1872_v46 = vadd.f32 %v1794_v30, %v525_v51  ;;  %v2586_v62 = vadd.f32 %v2585_v25, %v2584_v16  ;;  %v1797_v63 = vadd.f32 %v1796_v61, %v3512_v4  ;;  %v1665_v11 = vadd.f32 %v2583_v58, %v3440_v29  ;;  %v532_v29 = vld [vmem:[#allocation2 + $0xb8] sm:$0xff] }
 0x1e6   : > { %1906 = vst [vmem:[#allocation2 + $0x90] sm:$0xff] %v1874_v54  ;;  %v1875_v0 = vadd.f32 %v1805_v10, %v528_v2 }
 0x1e7   : > { %1904 = vst [vmem:[#allocation2 + $0x80] sm:$0xff] %v1872_v46  ;;  %v1873_v21 = vadd.f32 %v1797_v63, %v526_v43  ;;  %v1668_v39 = vadd.f32 %v2586_v62, %v3442_v35  ;;  %v537_v43 = vld [vmem:[#allocation2 + $0xe0] sm:$0xff] }
 0x1e8   : > { %1907 = vst [vmem:[#allocation2 + $0x98] sm:$0xff] %v1875_v0 }
 0x1e9   : > { %1905 = vst [vmem:[#allocation2 + $0x88] sm:$0xff] %v1873_v21  ;;  %v2587_v40 = vpop.f32.mrb[68].mxu1  ;;  %v2667_v36 = vpop.f32.mrb[68].mxu0  ;;  %v538_v21 = vld [vmem:[#allocation2 + $0xe8] sm:$0xff] }
 0x1ea   : > { %v1818_v9 = vadd.f32 %v2667_v36, %v1657_v8  ;;  %v2588_v27 = vpop.f32.mrb[69].mxu1  ;;  %v1809_v13 = vpop.f32.mrb[69].mxu0  ;;  %v533_v8 = vld [vmem:[#allocation2 + $0xc0] sm:$0xff] }
 0x1eb   : > { %v2589_v60 = vadd.f32 %v2588_v27, %v2587_v40  ;;  %v1810_v4 = vadd.f32 %v1809_v13, %v3529_v50  ;;  %v2590_v22 = vpop.f32.mrb[70].mxu1  ;;  %v2668_v14 = vpop.f32.mrb[70].mxu0  ;;  %v540_v13 = vld [vmem:[#allocation2 + $0xf8] sm:$0xff] }
 0x1ec   : > { %v1878_v18 = vadd.f32 %v1818_v9, %v531_v38  ;;  %v1821_v3 = vadd.f32 %v2668_v14, %v1660_v6  ;;  %v2591_v17 = vpop.f32.mrb[71].mxu1  ;;  %v1812_v35 = vpop.f32.mrb[71].mxu0  ;;  %v1925_v14 = vld [vmem:[#allocation2 + $0x8] sm:$0xff] (!%p2377_p13) }
 0x1ed   : > { %v1876_v19 = vadd.f32 %v1810_v4, %v529_v15  ;;  %v2592_v23 = vadd.f32 %v2591_v17, %v2590_v22  ;;  %v1813_v24 = vadd.f32 %v1812_v35, %v3532_v55  ;;  %v1673_v26 = vadd.f32 %v2589_v60, %v3444_v41  ;;  %v1927_v17 = vld [vmem:[#allocation2 + $0x18] sm:$0xff] (!%p2377_p13) }
 0x1ee   : > { %1910 = vst [vmem:[#allocation2 + $0xb0] sm:$0xff] %v1878_v18  ;;  %v1879_v5 = vadd.f32 %v1821_v3, %v532_v29  ;;  %v3558_v29 = vld [vmem:[%s3647_s2] ss:$0 sm:$0xff] (!%p2377_p13)  ;;  %v1926_v3 = vld [vmem:[#allocation2 + $0x10] sm:$0xff] (!%p2377_p13) }
 0x1ef   : > { %1908 = vst [vmem:[#allocation2 + $0xa0] sm:$0xff] %v1876_v19  ;;  %v1877_v56 = vadd.f32 %v1813_v24, %v530_v48  ;;  %v1676_v50 = vadd.f32 %v2592_v23, %v3446_v47  ;;  %v1964_v18 = vadd.f32 (!%p2377_p13), %v3558_v29, %v1925_v14  ;;  %v1928_v48 = vld [vmem:[#allocation2 + $0x20] sm:$0xff] (!%p2377_p13)  ;;  %v1965_v35 = vadd.f32 (!%p2377_p13), %v3558_v29, %v1926_v3  ;;  %v1929_v23 = vld [vmem:[#allocation2 + $0x28] sm:$0xff] (!%p2377_p13)  ;;  %v1930_v24 = vld [vmem:[#allocation2 + $0x30] sm:$0xff] (!%p2377_p13) }
 0x1f0   : > { %1911 = vst [vmem:[#allocation2 + $0xb8] sm:$0xff] %v1879_v5  ;;  %v1966_v19 = vadd.f32 (!%p2377_p13), %v3558_v29, %v1927_v17  ;;  %v1931_v5 = vld [vmem:[#allocation2 + $0x38] sm:$0xff] (!%p2377_p13) }
 0x1f1   : > { %1909 = vst [vmem:[#allocation2 + $0xa8] sm:$0xff] %v1877_v56  ;;  %v2593_v28 = vpop.f32.mrb[72].mxu1  ;;  %v2671_v33 = vpop.f32.mrb[72].mxu0  ;;  %v1968_v56 = vadd.f32 (!%p2377_p13), %v3558_v29, %v1929_v23 }
 0x1f2   : > { %v1834_v34 = vadd.f32 %v2671_v33, %v1673_v26  ;;  %v2594_v37 = vpop.f32.mrb[73].mxu1  ;;  %v1825_v42 = vpop.f32.mrb[73].mxu0  ;;  %v1967_v26 = vadd.f32 (!%p2377_p13), %v3558_v29, %v1928_v48  ;;  %v1970_v33 = vadd.f32 (!%p2377_p13), %v3558_v29, %v1931_v5 }
 0x1f3   : > { %v2595_v57 = vadd.f32 %v2594_v37, %v2593_v28  ;;  %v1826_v6 = vadd.f32 %v1825_v42, %v1665_v11  ;;  %v2596_v55 = vpop.f32.mrb[74].mxu1  ;;  %v2672_v41 = vpop.f32.mrb[74].mxu0  ;;  %v1969_v28 = vadd.f32 (!%p2377_p13), %v3558_v29, %v1930_v24 }
 0x1f4   : > { %v1882_v44 = vadd.f32 %v1834_v34, %v535_v32  ;;  %v1837_v49 = vadd.f32 %v2672_v41, %v1676_v50  ;;  %v2597_v45 = vpop.f32.mrb[75].mxu1  ;;  %v1828_v51 = vpop.f32.mrb[75].mxu0  ;;  %v1932_v50 = vld [vmem:[#allocation2 + $0x40] sm:$0xff] (!%p2377_p13)  ;;  %v1933_v32 = vld [vmem:[#allocation2 + $0x48] sm:$0xff] (!%p2377_p13)  ;;  %v1934_v34 = vld [vmem:[#allocation2 + $0x50] sm:$0xff] (!%p2377_p13) }
 0x1f5   : > { %v1880_v47 = vadd.f32 %v1826_v6, %v533_v8  ;;  %v2598_v52 = vadd.f32 %v2597_v45, %v2596_v55  ;;  %v1829_v58 = vadd.f32 %v1828_v51, %v1668_v39  ;;  %v1681_v30 = vadd.f32 %v2595_v57, %v3448_v53  ;;  %v1935_v8 = vld [vmem:[#allocation2 + $0x58] sm:$0xff] (!%p2377_p13)  ;;  %v1936_v57 = vld [vmem:[#allocation2 + $0x60] sm:$0xff] (!%p2377_p13)  ;;  %v1937_v55 = vld [vmem:[#allocation2 + $0x68] sm:$0xff] (!%p2377_p13) }
 0x1f6   : > { %1914 = vst [vmem:[#allocation2 + $0xd0] sm:$0xff] %v1882_v44  ;;  %v1883_v16 = vadd.f32 %v1837_v49, %v536_v12  ;;  %v1971_v37 = vadd.f32 (!%p2377_p13), %v3558_v29, %v1932_v50  ;;  %v1972_v42 = vadd.f32 (!%p2377_p13), %v3558_v29, %v1933_v32  ;;  %v1973_v6 = vadd.f32 (!%p2377_p13), %v3558_v29, %v1934_v34  ;;  %v1938_v41 = vld [vmem:[#allocation2 + $0x70] sm:$0xff] (!%p2377_p13)  ;;  %v1939_v49 = vld [vmem:[#allocation2 + $0x78] sm:$0xff] (!%p2377_p13) }
 0x1f7   : > { %1912 = vst [vmem:[#allocation2 + $0xc0] sm:$0xff] %v1880_v47  ;;  %v1881_v2 = vadd.f32 %v1829_v58, %v534_v20  ;;  %v1684_v31 = vadd.f32 %v2598_v52, %v3450_v59  ;;  %v539_v59 = vld [vmem:[#allocation2 + $0xf0] sm:$0xff]  ;;  %v1974_v12 = vadd.f32 (!%p2377_p13), %v3558_v29, %v1935_v8  ;;  %v1975_v44 = vadd.f32 (!%p2377_p13), %v3558_v29, %v1936_v57  ;;  %v1940_v20 = vld [vmem:[#allocation2 + $0x80] sm:$0xff] (!%p2377_p13)  ;;  %v1941_v52 = vld [vmem:[#allocation2 + $0x88] sm:$0xff] (!%p2377_p13) }
 0x1f8   : > { %1915 = vst [vmem:[#allocation2 + $0xd8] sm:$0xff] %v1883_v16  ;;  %v1976_v45 = vadd.f32 (!%p2377_p13), %v3558_v29, %v1937_v55  ;;  %v1977_v47 = vadd.f32 (!%p2377_p13), %v3558_v29, %v1938_v41  ;;  %v1942_v16 = vld [vmem:[#allocation2 + $0x90] sm:$0xff] (!%p2377_p13) }
 0x1f9   : > { %1913 = vst [vmem:[#allocation2 + $0xc8] sm:$0xff] %v1881_v2  ;;  %v2599_v54 = vpop.f32.mrb[76].mxu1  ;;  %v2675_v10 = vpop.f32.mrb[76].mxu0 }
 0x1fa   : > { %v2600_v25 = vpop.f32.mrb[77].mxu1  ;;  %v1841_v61 = vpop.f32.mrb[77].mxu0 }
 0x1fb   : > { %v2601_v46 = vadd.f32 %v2600_v25, %v2599_v54  ;;  %v1842_v62 = vadd.f32 %v1841_v61, %v1681_v30  ;;  %v2602_v63 = vpop.f32.mrb[78].mxu1  ;;  %v2676_v11 = vpop.f32.mrb[78].mxu0  ;;  %v1978_v30 = vadd.f32 (!%p2377_p13), %v3558_v29, %v1939_v49  ;;  %v1943_v54 = vld [vmem:[#allocation2 + $0x98] sm:$0xff] (!%p2377_p13)  ;;  %v1980_v25 = vadd.f32 (!%p2377_p13), %v3558_v29, %v1941_v52 }
 0x1fc   : > { %v2603_v0 = vpop.f32.mrb[79].mxu1  ;;  %v1844_v53 = vpop.f32.mrb[79].mxu0 }
 0x1fd   : > { %v1689_v39 = vadd.f32 %v2601_v46, %v3452_v1  ;;  %v1884_v40 = vadd.f32 %v1842_v62, %v537_v43  ;;  %v2604_v38 = vadd.f32 %v2603_v0, %v2602_v63  ;;  %v1845_v36 = vadd.f32 %v1844_v53, %v1684_v31  ;;  %v1924_v1 = vld [vmem:[#allocation2] sm:$0xff] (!%p2377_p13)  ;;  %v1945_v62 = vld [vmem:[#allocation2 + $0xa8] sm:$0xff] (!%p2377_p13)  ;;  %v1946_v0 = vld [vmem:[#allocation2 + $0xb0] sm:$0xff] (!%p2377_p13) }
 0x1fe   : > { %v1979_v31 = vadd.f32 (!%p2377_p13), %v3558_v29, %v1940_v20  ;;  %v1944_v43 = vld [vmem:[#allocation2 + $0xa0] sm:$0xff] (!%p2377_p13)  ;;  %v1981_v46 = vadd.f32 (!%p2377_p13), %v3558_v29, %v1942_v16 }
 0x1ff   : > { %v1850_v9 = vadd.f32 %v2675_v10, %v1689_v39  ;;  %1916 = vst [vmem:[#allocation2 + $0xe0] sm:$0xff] %v1884_v40  ;;  %v1692_v27 = vadd.f32 %v2604_v38, %v3454_v7  ;;  %v1885_v15 = vadd.f32 %v1845_v36, %v538_v21  ;;  %1923 = sbr.rel (%p2377_p13) target bundleno = 556 (0x22c), region = 66  ;;  %v1963_v7 = vadd.f32 (!%p2377_p13), %v3558_v29, %v1924_v1  ;;  %v1947_v39 = vld [vmem:[#allocation2 + $0xb8] sm:$0xff] (!%p2377_p13)  ;;  %v1948_v36 = vld [vmem:[#allocation2 + $0xc0] sm:$0xff] (!%p2377_p13) }
 0x200   : > { %v1983_v53 = vadd.f32 (!%p2377_p13), %v3558_v29, %v1944_v43  ;;  %v1984_v38 = vadd.f32 (!%p2377_p13), %v3558_v29, %v1945_v62  ;;  %v1951_v1 = vld [vmem:[#allocation2 + $0xd8] sm:$0xff] (!%p2377_p13) }
 0x201   : > { %v1886_v60 = vadd.f32 %v1850_v9, %v539_v59  ;;  %v1853_v4 = vadd.f32 %v2676_v11, %v1692_v27  ;;  %1917 = vst [vmem:[#allocation2 + $0xe8] sm:$0xff] %v1885_v15  ;;  %2905 = vtanh.f32 (!%p2377_p13), %v1963_v7  ;;  %v1982_v11 = vadd.f32 (!%p2377_p13), %v3558_v29, %v1943_v54  ;;  %v1949_v27 = vld [vmem:[#allocation2 + $0xc8] sm:$0xff] (!%p2377_p13) }
 0x202   : > { %2907 = vtanh.f32 (!%p2377_p13), %v1964_v18  ;;  %v1985_v9 = vadd.f32 (!%p2377_p13), %v3558_v29, %v1946_v0  ;;  %v1988_v7 = vadd.f32 (!%p2377_p13), %v3558_v29, %v1949_v27 }
 0x203   : > { %1918 = vst [vmem:[#allocation2 + $0xf0] sm:$0xff] %v1886_v60  ;;  %v1887_v22 = vadd.f32 %v1853_v4, %v540_v13  ;;  %2909 = vtanh.f32 (!%p2377_p13), %v1965_v35  ;;  %v1986_v13 = vadd.f32 (!%p2377_p13), %v3558_v29, %v1947_v39  ;;  %v1950_v60 = vld [vmem:[#allocation2 + $0xd0] sm:$0xff] (!%p2377_p13) }
 0x204   : > { %2911 = vtanh.f32 (!%p2377_p13), %v1966_v19  ;;  %v1989_v17 = vadd.f32 (!%p2377_p13), %v3558_v29, %v1950_v60  ;;  %v1990_v19 = vadd.f32 (!%p2377_p13), %v3558_v29, %v1951_v1 }
 0x205   : > { %1919 = vst [vmem:[#allocation2 + $0xf8] sm:$0xff] %v1887_v22  ;;  %2913 = vtanh.f32 (!%p2377_p13), %v1967_v26  ;;  %v1987_v22 = vadd.f32 (!%p2377_p13), %v3558_v29, %v1948_v36 }
 0x206   : > { %2915 = vtanh.f32 %v1968_v56  ;;  %v1952_v18 = vld [vmem:[#allocation2 + $0xe0] sm:$0xff] }
 0x207   : > { %2917 = vtanh.f32 %v1969_v28  ;;  %v1991_v26 = vadd.f32 %v3558_v29, %v1952_v18 }
 0x208   : > { %2919 = vtanh.f32 %v1970_v33  ;;  %v1953_v48 = vld [vmem:[#allocation2 + $0xe8] sm:$0xff] }
 0x209   : > { %2921 = vtanh.f32 %v1971_v37  ;;  %v1992_v50 = vadd.f32 %v3558_v29, %v1953_v48 }
 0x20a   : > { %2923 = vtanh.f32 %v1972_v42  ;;  %v1954_v23 = vld [vmem:[#allocation2 + $0xf0] sm:$0xff] }
 0x20b   : > { %v2906_v51 = vpop.eup %2905  ;;  %2925 = vtanh.f32 %v1973_v6  ;;  %v1993_v32 = vadd.f32 %v3558_v29, %v1954_v23 }
 0x20c   : > { %v2908_v58 = vpop.eup %2907  ;;  %2027 = vst [vmem:[%s3315_s30] sm:$0xff] %v2906_v51  ;;  %2927 = vtanh.f32 %v1974_v12  ;;  %v1955_v5 = vld [vmem:[#allocation2 + $0xf8] sm:$0xff] }
 0x20d   : > { %v2910_v2 = vpop.eup %2909  ;;  %2028 = vst [vmem:[%s3315_s30 + $0x8] sm:$0xff] %v2908_v58  ;;  %2929 = vtanh.f32 %v1975_v44  ;;  %v1994_v34 = vadd.f32 %v3558_v29, %v1955_v5 }
 0x20e   : > { %v2912_v10 = vpop.eup %2911  ;;  %2029 = vst [vmem:[%s3315_s30 + $0x10] sm:$0xff] %v2910_v2  ;;  %2931 = vtanh.f32 %v1976_v45 }
 0x20f   : > { %v2914_v61 = vpop.eup %2913  ;;  %2030 = vst [vmem:[%s3315_s30 + $0x18] sm:$0xff] %v2912_v10  ;;  %2933 = vtanh.f32 %v1977_v47 }
 0x210   : > { %v2916_v63 = vpop.eup %2915  ;;  %2031 = vst [vmem:[%s3315_s30 + $0x20] sm:$0xff] %v2914_v61  ;;  %2935 = vtanh.f32 %v1978_v30 }
 0x211   : > { %v2918_v21 = vpop.eup %2917  ;;  %2032 = vst [vmem:[%s3315_s30 + $0x28] sm:$0xff] %v2916_v63  ;;  %2937 = vtanh.f32 %v1979_v31 }
 0x212   : > { %v2920_v40 = vpop.eup %2919  ;;  %2033 = vst [vmem:[%s3315_s30 + $0x30] sm:$0xff] %v2918_v21  ;;  %2939 = vtanh.f32 %v1980_v25 }
 0x213   : > { %v2922_v59 = vpop.eup %2921  ;;  %2034 = vst [vmem:[%s3315_s30 + $0x38] sm:$0xff] %v2920_v40  ;;  %2941 = vtanh.f32 %v1981_v46 }
 0x214   : > { %v2924_v15 = vpop.eup %2923  ;;  %2035 = vst [vmem:[%s3315_s30 + $0x40] sm:$0xff] %v2922_v59  ;;  %2943 = vtanh.f32 %v1982_v11 }
 0x215   : > { %v2926_v4 = vpop.eup %2925  ;;  %2036 = vst [vmem:[%s3315_s30 + $0x48] sm:$0xff] %v2924_v15  ;;  %2945 = vtanh.f32 %v1983_v53 }
 0x216   : > { %v2928_v14 = vpop.eup %2927  ;;  %2037 = vst [vmem:[%s3315_s30 + $0x50] sm:$0xff] %v2926_v4  ;;  %2947 = vtanh.f32 %v1984_v38 }
 0x217   : > { %v2930_v3 = vpop.eup %2929  ;;  %2038 = vst [vmem:[%s3315_s30 + $0x58] sm:$0xff] %v2928_v14  ;;  %2949 = vtanh.f32 %v1985_v9 }
 0x218   : > { %v2932_v35 = vpop.eup %2931  ;;  %2039 = vst [vmem:[%s3315_s30 + $0x60] sm:$0xff] %v2930_v3  ;;  %2951 = vtanh.f32 %v1986_v13 }
 0x219   : > { %v2934_v24 = vpop.eup %2933  ;;  %2040 = vst [vmem:[%s3315_s30 + $0x68] sm:$0xff] %v2932_v35  ;;  %2953 = vtanh.f32 %v1987_v22 }
 0x21a   : > { %v2936_v56 = vpop.eup %2935  ;;  %2041 = vst [vmem:[%s3315_s30 + $0x70] sm:$0xff] %v2934_v24  ;;  %2955 = vtanh.f32 %v1988_v7 }
 0x21b   : > { %v2938_v28 = vpop.eup %2937  ;;  %2042 = vst [vmem:[%s3315_s30 + $0x78] sm:$0xff] %v2936_v56  ;;  %2957 = vtanh.f32 %v1989_v17 }
 0x21c   : > { %v2940_v33 = vpop.eup %2939  ;;  %2043 = vst [vmem:[%s3315_s30 + $0x80] sm:$0xff] %v2938_v28  ;;  %2959 = vtanh.f32 %v1990_v19 }
 0x21d   : > { %v2942_v37 = vpop.eup %2941  ;;  %2044 = vst [vmem:[%s3315_s30 + $0x88] sm:$0xff] %v2940_v33  ;;  %2961 = vtanh.f32 %v1991_v26 }
 0x21e   : > { %v2944_v8 = vpop.eup %2943  ;;  %2045 = vst [vmem:[%s3315_s30 + $0x90] sm:$0xff] %v2942_v37  ;;  %2963 = vtanh.f32 %v1992_v50 }
 0x21f   : > { %v2946_v42 = vpop.eup %2945  ;;  %2046 = vst [vmem:[%s3315_s30 + $0x98] sm:$0xff] %v2944_v8  ;;  %2965 = vtanh.f32 %v1993_v32 }
 0x220   : > { %v2948_v57 = vpop.eup %2947  ;;  %2047 = vst [vmem:[%s3315_s30 + $0xa0] sm:$0xff] %v2946_v42  ;;  %2967 = vtanh.f32 %v1994_v34 }
 0x221   : > { %v2950_v29 = vpop.eup %2949  ;;  %2048 = vst [vmem:[%s3315_s30 + $0xa8] sm:$0xff] %v2948_v57 }
 0x222   : > { %v2952_v6 = vpop.eup %2951  ;;  %2049 = vst [vmem:[%s3315_s30 + $0xb0] sm:$0xff] %v2950_v29 }
 0x223   : > { %v2954_v55 = vpop.eup %2953  ;;  %2050 = vst [vmem:[%s3315_s30 + $0xb8] sm:$0xff] %v2952_v6 }
 0x224   : > { %v2956_v12 = vpop.eup %2955  ;;  %2051 = vst [vmem:[%s3315_s30 + $0xc0] sm:$0xff] %v2954_v55 }
 0x225   : > { %v2958_v41 = vpop.eup %2957  ;;  %2052 = vst [vmem:[%s3315_s30 + $0xc8] sm:$0xff] %v2956_v12 }
 0x226   : > { %v2960_v44 = vpop.eup %2959  ;;  %2053 = vst [vmem:[%s3315_s30 + $0xd0] sm:$0xff] %v2958_v41 }
 0x227   : > { %v2962_v49 = vpop.eup %2961  ;;  %2054 = vst [vmem:[%s3315_s30 + $0xd8] sm:$0xff] %v2960_v44 }
 0x228   : > { %v2964_v45 = vpop.eup %2963  ;;  %2055 = vst [vmem:[%s3315_s30 + $0xe0] sm:$0xff] %v2962_v49 }
 0x229   : > { %v2966_v20 = vpop.eup %2965  ;;  %2056 = vst [vmem:[%s3315_s30 + $0xe8] sm:$0xff] %v2964_v45 }
 0x22a   : > { %v2968_v51 = vpop.eup %2967  ;;  %2057 = vst [vmem:[%s3315_s30 + $0xf0] sm:$0xff] %v2966_v20 }
 0x22b   : > { %2058 = vst [vmem:[%s3315_s30 + $0xf8] sm:$0xff] %v2968_v51 }
 0x22c PF: > { %s13_s18 = sadd.s32 1, %s3023_s18   ;;  %s3649_s12 = smov %s3003_s13 }
 0x22d   : > { %p10_p0 = scmp.ge.s32.totalorder %s13_s18, 12   ;;  %s3650_s13 = smov %s3097_s25 }
 0x22e   : > { %s3651_s14 = smov %s3015_s16  ;;  %s3652_s15 = smov %s3019_s17 }
 0x22f   : > { %s3653_s16 = smov %s3656_s19  ;;  %s3654_s17 = smov %s3660_s20 }
 0x230   :  { %12 = sbr.rel (!%p10_p0) target bundleno = 4 (0x4), region = 113 }

</bundles_post_ra>
